<compile_context>
chip_gen: v7x
topology: tpu7x:2x2x1
jax: 0.10.0
libtpu: 0.0.40
codegen_flags: <defaults>
</compile_context>

<pallas_src>
import numpy as np
import jax
import jax.numpy as jnp
from jax import lax
from jax.experimental import pallas as pl
from jax.experimental.pallas import tpu as pltpu

# -----------------------------------------------------------------------------
# small deterministic config (consistent with RVQVAE_Decode's constructor)
# -----------------------------------------------------------------------------
INPUT_WIDTH = 263      # HumanML3D feature width (required by the upper-Y mask)
C_PAD       = 384      # channel axis padded to a lane-dense multiple of 128
NB_CODE     = 128      # nb_code (small synthetic)
CODE_DIM    = 64       # code_dim == output_emb_width
DOWN_T      = 2
STRIDE_T    = 2
WIDTH       = 64
DEPTH       = 2
DIL_GROWTH  = 3
NUM_QUANT   = 2        # residual-VQ layers in the (synthetic) frozen teacher
B, T        = 2, 16

assert DOWN_T == 2 and STRIDE_T == 2, "kernel body is written for 2 down/up stages"

T8    = T // STRIDE_T                      # 8
T_ENC = T // (STRIDE_T ** DOWN_T)          # 4
PMAX  = DIL_GROWTH ** (DEPTH - 1)          # max resnet dilation == max conv pad

# Batch-folded slab geometry: each temporal resolution L keeps both batches in
# one 2D (rows, C) VMEM buffer with G zero rows around / between the batches
# (the zeros provide the implicit conv padding).  The batch-folded strided
# down-convs require G_fine = STRIDE_T * G_coarse.
G4  = PMAX                                 # 3
G8  = STRIDE_T * G4                        # 6
G16 = STRIDE_T * G8                        # 12


def _geom(L, G):
    R = G + B * (L + G)                    # total slab rows
    N = R - 2 * G                          # "compute range" rows [G, R-G)
    return R, N


R4,  N4  = _geom(T_ENC, G4)                # 17, 11
R8,  N8  = _geom(T8,    G8)                # 34, 22
R16, N16 = _geom(T,     G16)               # 68, 44

ENC_DILS = tuple(DIL_GROWTH ** j for j in range(DEPTH))   # (1, 3)
DEC_DILS = ENC_DILS[::-1]                                  # (3, 1)

# y-coordinate indices of the 13 upper-body joints inside the 263-dim HumanML3D
# feature vector (ric part starts at 4, 3 values per joint, y is the 2nd).
UPPER_JOINTS = [3, 6, 9, 12, 13, 14, 15, 16, 17, 18, 19, 20, 21]
UPPER_JOINT_Y_IDX = np.array([4 + (j - 1) * 3 + 1 for j in UPPER_JOINTS], np.int32)
UPPER_JOINT_Y_MASK = np.zeros(INPUT_WIDTH, bool)
UPPER_JOINT_Y_MASK[UPPER_JOINT_Y_IDX] = True

MEAN_UPPER = jnp.array([0.1216, 0.2488, 0.2967, 0.5027, 0.4053, 0.41, 0.5703,
                        0.403, 0.4078, 0.1994, 0.1992, 0.0661, 0.0639], jnp.float32)
STD_UPPER  = jnp.array([0.0164, 0.0412, 0.0523, 0.0864, 0.0695, 0.0703, 0.1108,
                        0.0853, 0.0847, 0.1289, 0.1291, 0.2463, 0.2484], jnp.float32)


# -----------------------------------------------------------------------------
# static parameter-slab layout (shared by the wrapper packer and the kernel)
# -----------------------------------------------------------------------------
def _build_layout():
    wl, bl = {}, {}
    wo, bo = 0, 0

    def conv(name, k):
        nonlocal wo, bo
        wl[name] = wo
        bl[name] = bo
        wo += k
        bo += 1

    bl['enc_in'] = bo
    bo += 1                                   # enc_in weight is a separate 384-wide slab
    for i in range(DOWN_T):
        conv(f'down{i}', STRIDE_T * 2)
        for j in range(DEPTH):
            conv(f'enc_res{i}_{j}_c1', 3)
            conv(f'enc_res{i}_{j}_c2', 1)
    conv('enc_out', 3)
    conv('dec_in', 3)
    for i in range(DOWN_T):
        for j in range(DEPTH):
            conv(f'dec_res{i}_{j}_c1', 3)
            conv(f'dec_res{i}_{j}_c2', 1)
        conv(f'up{i}_conv', 3)
    conv('dec_mid', 3)
    return wl, bl, wo, bo


W64_OFF, B64_OFF, N_W64, N_B64 = _build_layout()   # 55 taps, 24 biases


def _upsample_sel(L_in, G_in, L_out, G_out):
    """Precomputed 0/1 selection matrix: full input slab -> full output slab
    nearest-neighbour x2 upsample (gap output rows are all-zero)."""
    R_in = G_in + B * (L_in + G_in)
    R_out = G_out + B * (L_out + G_out)
    S = np.zeros((R_out, R_in), np.float32)
    for b in range(B):
        ib = G_in + b * (L_in + G_in)
        ob = G_out + b * (L_out + G_out)
        for t in range(L_out):
            S[ob + t, ib + t // STRIDE_T] = 1.0
    return S


SEL8_NP  = _upsample_sel(T_ENC, G4, T8, G8)     # (R8,  R4)
SEL16_NP = _upsample_sel(T8,   G8, T,  G16)     # (R16, R8)


# -----------------------------------------------------------------------------
# the single fused kernel
# -----------------------------------------------------------------------------
def _fused_kernel(x_ref, vec_ref, w_in_ref, w64_ref, b64_ref, w_out_ref,
                  cb_ref, cbsq_ref, sel8_ref, sel16_ref,
                  o_ref, probs_ref, commit_ref,
                  s16x, s16a, s8a, s4a, zbuf,
                  d4, d4b, d8, d8b, d16, d16b, d16c):
    f32 = jnp.float32
    bf16 = jnp.bfloat16

    def brow(name):                                   # (1, Cout) bias row
        i = B64_OFF[name]
        return b64_ref[i:i + 1, :]

    def row_mask(L, G):                               # (N, 1) interior-row mask
        n = B * L + (B - 1) * G
        idx = lax.broadcasted_iota(jnp.int32, (n, 1), 0)
        m = None
        for b in range(B):
            lo = b * (L + G)
            t = (idx >= lo) & (idx < lo + L)
            m = t if m is None else (m | t)
        return m.astype(f32)

    def zero_gaps(ref, L, G):                         # zero only the gap rows
        z = jnp.zeros((G, ref.shape[-1]), ref.dtype)
        for b in range(B + 1):
            lo = b * (L + G)
            ref[lo:lo + G, :] = z

    def conv3(src, G, n, dil, wslab, woff, bias_row, pre_relu=False):
        """'same' K=3 conv over the batch-folded compute range [G, G+n)."""
        acc = None
        for k in range(3):
            lo = G + (k - 1) * dil
            tap = src[lo:lo + n, :]
            if pre_relu:
                tap = jnp.maximum(tap, 0.0)
            yk = jnp.dot(tap.astype(bf16), wslab[woff + k],
                         preferred_element_type=f32)
            acc = yk if acc is None else acc + yk
        return acc + bias_row

    def down_conv(src, G_out, n_out, name):
        """Strided conv (K=2*stride, stride=2, pad=1): batch-folded strided taps.
        Requires src gap = STRIDE_T * G_out, so input row = 2*r - 1 + k."""
        woff = W64_OFF[name]
        acc = None
        for k in range(STRIDE_T * 2):
            start = STRIDE_T * G_out - STRIDE_T // 2 + k
            tap = src[pl.ds(start, n_out, stride=STRIDE_T), :]
            yk = jnp.dot(tap.astype(bf16), w64_ref[woff + k],
                         preferred_element_type=f32)
            acc = yk if acc is None else acc + yk
        return acc + brow(name)

    def resnet(slab, L, G, mask, prefix, dils):
        """Per block: x = x + conv1(relu(conv3(relu(x)))), in place on the slab."""
        n = B * L + (B - 1) * G
        for j, dil in enumerate(dils):
            h = conv3(slab, G, n, dil, w64_ref, W64_OFF[f'{prefix}_{j}_c1'],
                      brow(f'{prefix}_{j}_c1'), pre_relu=True)
            h = jnp.maximum(h, 0.0)
            h = jnp.dot(h.astype(bf16), w64_ref[W64_OFF[f'{prefix}_{j}_c2']],
                        preferred_element_type=f32) + brow(f'{prefix}_{j}_c2')
            slab[G:G + n, :] = slab[G:G + n, :] + h * mask

    mask16 = row_mask(T, G16)
    mask8 = row_mask(T8, G8)
    mask4 = row_mask(T_ENC, G4)

    # Only gap rows need zeroing: interiors are overwritten before first read,
    # middle gaps are kept zero by the masked compute-range stores.
    zero_gaps(s16x, T, G16)
    zero_gaps(s16a, T, G16)
    zero_gaps(s8a, T8, G8)
    zero_gaps(s4a, T_ENC, G4)
    zero_gaps(d4, T_ENC, G4)
    zero_gaps(d4b, T_ENC, G4)
    zero_gaps(d8b, T8, G8)
    zero_gaps(d16b, T, G16)
    zero_gaps(d16c, T, G16)
    # (d8 / d16 are fully written by the upsample selection matmuls.)

    mean = vec_ref[0:1, :]
    std = vec_ref[1:2, :]
    inv_std = vec_ref[2:3, :]
    maskf = vec_ref[3:4, :]
    eff_mean = vec_ref[4:5, :]
    eff_std = vec_ref[5:6, :]
    inv_eff_std = vec_ref[6:7, :]
    dec_out_b = vec_ref[7:8, :]

    # ---- shift_upper_down fused into the encoder prologue ----
    x = x_ref[...]
    dsh = x * std + mean
    dsh = dsh - dsh[:, 3:4] * maskf
    xs = (dsh - eff_mean) * inv_eff_std
    for b in range(B):
        base = G16 + b * (T + G16)
        s16x[base:base + T, :] = xs[b * T:(b + 1) * T, :]

    # ---- teacher encoder (structurally-equivalent stand-in) ----
    h = conv3(s16x, G16, N16, 1, w_in_ref, 0, brow('enc_in'))
    s16a[G16:G16 + N16, :] = jnp.maximum(h, 0.0) * mask16

    y = down_conv(s16a, G8, N8, 'down0')
    s8a[G8:G8 + N8, :] = y * mask8
    resnet(s8a, T8, G8, mask8, 'enc_res0', ENC_DILS)

    y = down_conv(s8a, G4, N4, 'down1')
    s4a[G4:G4 + N4, :] = y * mask4
    resnet(s4a, T_ENC, G4, mask4, 'enc_res1', ENC_DILS)

    z = conv3(s4a, G4, N4, 1, w64_ref, W64_OFF['enc_out'], brow('enc_out'))
    for b in range(B):
        lo = b * (T_ENC + G4)
        zbuf[b * T_ENC:(b + 1) * T_ENC, :] = z[lo:lo + T_ENC, :]

    # ---- residual VQ (distance math kept in f32, argmin = first index) ----
    zz = zbuf[...]
    residual = zz
    quant = jnp.zeros_like(zz)
    n_rows = B * T_ENC
    for q in range(NUM_QUANT):
        cb = cb_ref[q]                                        # (NB_CODE, D)
        c2 = cbsq_ref[q:q + 1, :]                             # (1, NB_CODE)
        x2 = jnp.sum(residual * residual, axis=-1, keepdims=True)
        dots = lax.dot_general(residual, cb, (((1,), (1,)), ((), ())),
                               preferred_element_type=f32)    # (N, NB_CODE)
        dist = x2 - 2.0 * dots + c2
        mind = jnp.min(dist, axis=-1, keepdims=True)
        iota = lax.broadcasted_iota(jnp.int32, dist.shape, 1)
        idx = jnp.min(jnp.where(dist <= mind, iota, jnp.int32(2 ** 30)),
                      axis=-1, keepdims=True)
        onehot = (iota == idx).astype(f32)
        qv = jnp.dot(onehot, cb, preferred_element_type=f32)
        mse = jnp.sum(jnp.sum((residual - qv) ** 2, axis=-1, keepdims=True),
                      axis=0, keepdims=True) / (n_rows * CODE_DIM)
        commit_ref[q:q + 1, :] = mse + jnp.zeros((1, NB_CODE), f32)   # lane-dense
        probs_ref[q:q + 1, :] = jnp.sum(onehot, axis=0, keepdims=True) / n_rows
        quant = quant + qv
        residual = residual - qv

    # xq stays in VMEM: scatter straight into the decoder input slab
    for b in range(B):
        base = G4 + b * (T_ENC + G4)
        d4[base:base + T_ENC, :] = quant[b * T_ENC:(b + 1) * T_ENC, :]

    # ---- decoder ----
    h = conv3(d4, G4, N4, 1, w64_ref, W64_OFF['dec_in'], brow('dec_in'))
    d4b[G4:G4 + N4, :] = jnp.maximum(h, 0.0) * mask4
    resnet(d4b, T_ENC, G4, mask4, 'dec_res0', DEC_DILS)

    d8[...] = jnp.dot(sel8_ref[...], d4b[...].astype(bf16),     # nearest x2 up
                      preferred_element_type=f32)
    h = conv3(d8, G8, N8, 1, w64_ref, W64_OFF['up0_conv'], brow('up0_conv'))
    d8b[G8:G8 + N8, :] = h * mask8
    resnet(d8b, T8, G8, mask8, 'dec_res1', DEC_DILS)

    d16[...] = jnp.dot(sel16_ref[...], d8b[...].astype(bf16),   # nearest x2 up
                       preferred_element_type=f32)
    h = conv3(d16, G16, N16, 1, w64_ref, W64_OFF['up1_conv'], brow('up1_conv'))
    d16b[G16:G16 + N16, :] = h * mask16

    h = conv3(d16b, G16, N16, 1, w64_ref, W64_OFF['dec_mid'], brow('dec_mid'))
    d16c[G16:G16 + N16, :] = jnp.maximum(h, 0.0) * mask16

    y = conv3(d16c, G16, N16, 1, w_out_ref, 0, dec_out_b)       # (N16, C_PAD)

    # ---- shift_upper_up fused into the epilogue; lane-dense (384) stores ----
    dup = y * eff_std + eff_mean
    dup = dup + dup[:, 3:4] * maskf
    out = (dup - mean) * inv_std
    for b in range(B):
        lo = b * (T + G16)
        o_ref[b * T:(b + 1) * T, :] = out[lo:lo + T, :]


# -----------------------------------------------------------------------------
# deterministic parameter init (same structure as the previous version)
# -----------------------------------------------------------------------------
def _init_conv(key, K, Cin, Cout):
    kw, kb = jax.random.split(key)
    s = 1.0 / np.sqrt(K * Cin)
    return {'w': jax.random.uniform(kw, (K, Cin, Cout), jnp.float32, -s, s),
            'b': jax.random.uniform(kb, (Cout,), jnp.float32, -s, s)}


def _init_resnet(key, width, depth):
    blocks = []
    for _ in range(depth):
        key, k1, k2 = jax.random.split(key, 3)
        blocks.append({'c1': _init_conv(k1, 3, width, width),
                       'c2': _init_conv(k2, 1, width, width)})
    return blocks


def init_params(key):
    ks = jax.random.split(key, 16)
    p = {}
    # synthetic frozen teacher encoder
    p['enc_in'] = _init_conv(ks[0], 3, INPUT_WIDTH, WIDTH)
    p['enc_down'] = []
    for i in range(DOWN_T):
        kd, kr = jax.random.split(ks[1 + i])
        p['enc_down'].append({'down': _init_conv(kd, STRIDE_T * 2, WIDTH, WIDTH),
                              'res': _init_resnet(kr, WIDTH, DEPTH)})
    p['enc_out'] = _init_conv(ks[4], 3, WIDTH, CODE_DIM)
    # teacher residual quantizer codebooks
    p['codebooks'] = [jax.random.normal(ks[5 + q], (NB_CODE, CODE_DIM), jnp.float32) * 0.1
                      for q in range(NUM_QUANT)]
    # Decoder(input_width, output_emb_width, down_t, stride_t, width, depth, dgr)
    p['dec_in'] = _init_conv(ks[8], 3, CODE_DIM, WIDTH)
    p['dec_up'] = []
    for i in range(DOWN_T):
        kr, kc = jax.random.split(ks[9 + i])
        p['dec_up'].append({'res': _init_resnet(kr, WIDTH, DEPTH),
                            'conv': _init_conv(kc, 3, WIDTH, WIDTH)})
    p['dec_mid'] = _init_conv(ks[12], 3, WIDTH, WIDTH)
    p['dec_out'] = _init_conv(ks[13], 3, WIDTH, INPUT_WIDTH)
    # normalization buffers (dataset moments in the torch module)
    p['mean'] = jax.random.normal(ks[14], (INPUT_WIDTH,), jnp.float32) * 0.1
    p['std'] = 0.5 + jax.random.uniform(ks[15], (INPUT_WIDTH,), jnp.float32)
    return p


# -----------------------------------------------------------------------------
# wrapper: pack parameters into a few DMA slabs, launch the fused kernel
# -----------------------------------------------------------------------------
def _pad_vec(v, padval):
    out = jnp.full((C_PAD,), padval, jnp.float32)
    return out.at[:INPUT_WIDTH].set(v)


def _pack_inputs(x, p):
    xp = jnp.zeros((B * T, C_PAD), jnp.float32)
    xp = xp.at[:, :INPUT_WIDTH].set(x.reshape(B * T, INPUT_WIDTH))

    idx = jnp.asarray(UPPER_JOINT_Y_IDX)
    maskf = jnp.asarray(UPPER_JOINT_Y_MASK, jnp.float32)
    mean, std = p['mean'], p['std']
    eff_mean = mean.at[idx].set(MEAN_UPPER)     # mean with upper stats scattered in
    eff_std = std.at[idx].set(STD_UPPER)
    vec = jnp.stack([
        _pad_vec(mean, 0.0),
        _pad_vec(std, 1.0),
        _pad_vec(1.0 / std, 1.0),               # precomputed reciprocals
        _pad_vec(maskf, 0.0),
        _pad_vec(eff_mean, 0.0),
        _pad_vec(eff_std, 1.0),
        _pad_vec(1.0 / eff_std, 1.0),
        _pad_vec(p['dec_out']['b'], 0.0),       # dec_out bias (padded)
    ], axis=0)

    w_in = jnp.zeros((3, C_PAD, WIDTH), jnp.float32)
    w_in = w_in.at[:, :INPUT_WIDTH, :].set(p['enc_in']['w']).astype(jnp.bfloat16)
    w_out = jnp.zeros((3, WIDTH, C_PAD), jnp.float32)
    w_out = w_out.at[:, :, :INPUT_WIDTH].set(p['dec_out']['w']).astype(jnp.bfloat16)

    taps = [None] * N_W64
    biases = [None] * N_B64
    biases[B64_OFF['enc_in']] = p['enc_in']['b']

    def put(name, conv):
        o = W64_OFF[name]
        for k in range(conv['w'].shape[0]):
            taps[o + k] = conv['w'][k]
        biases[B64_OFF[name]] = conv['b']

    for i in range(DOWN_T):
        put(f'down{i}', p['enc_down'][i]['down'])
        for j in range(DEPTH):
            put(f'enc_res{i}_{j}_c1', p['enc_down'][i]['res'][j]['c1'])
            put(f'enc_res{i}_{j}_c2', p['enc_down'][i]['res'][j]['c2'])
    put('enc_out', p['enc_out'])
    put('dec_in', p['dec_in'])
    for i in range(DOWN_T):
        for j in range(DEPTH):
            put(f'dec_res{i}_{j}_c1', p['dec_up'][i]['res'][j]['c1'])
            put(f'dec_res{i}_{j}_c2', p['dec_up'][i]['res'][j]['c2'])
        put(f'up{i}_conv', p['dec_up'][i]['conv'])
    put('dec_mid', p['dec_mid'])

    w64 = jnp.stack(taps, axis=0).astype(jnp.bfloat16)        # (55, 64, 64)
    b64 = jnp.stack(biases, axis=0)                           # (24, 64) f32
    cb = jnp.stack(p['codebooks'], axis=0)                    # (Q, NB_CODE, D) f32
    cbsq = jnp.sum(cb * cb, axis=-1)                          # (Q, NB_CODE)
    sel8 = jnp.asarray(SEL8_NP, jnp.bfloat16)
    sel16 = jnp.asarray(SEL16_NP, jnp.bfloat16)
    return (xp, vec, w_in, w64, b64, w_out, cb, cbsq, sel8, sel16)


def rvqvae_decode_forward(x, p):
    # TODO(synk): the real teacher_net is an external pretrained module; this is
    # a structurally-equivalent deterministic stand-in (conv encoder + RVQ).
    inputs = _pack_inputs(x, p)

    out_shape = (
        jax.ShapeDtypeStruct((B * T, C_PAD), jnp.float32),         # x_out (padded)
        jax.ShapeDtypeStruct((NUM_QUANT, NB_CODE), jnp.float32),   # probs
        jax.ShapeDtypeStruct((NUM_QUANT, NB_CODE), jnp.float32),   # commit (bcast)
    )

    def full_spec(shape):
        nd = len(shape)
        return pl.BlockSpec(shape, lambda i, _nd=nd: (0,) * _nd)

    in_specs = [full_spec(a.shape) for a in inputs]
    out_specs = tuple(full_spec(s.shape) for s in out_shape)

    scratch = [
        pltpu.VMEM((R16, C_PAD), jnp.float32),            # s16x  shifted input
        pltpu.VMEM((R16, WIDTH), jnp.float32),            # s16a  enc_in out
        pltpu.VMEM((R8, WIDTH), jnp.float32),             # s8a
        pltpu.VMEM((R4, WIDTH), jnp.float32),             # s4a
        pltpu.VMEM((B * T_ENC, CODE_DIM), jnp.float32),   # zbuf (compact z)
        pltpu.VMEM((R4, WIDTH), jnp.float32),             # d4   xq slab
        pltpu.VMEM((R4, WIDTH), jnp.float32),             # d4b
        pltpu.VMEM((R8, WIDTH), jnp.float32),             # d8   upsample target
        pltpu.VMEM((R8, WIDTH), jnp.float32),             # d8b
        pltpu.VMEM((R16, WIDTH), jnp.float32),            # d16  upsample target
        pltpu.VMEM((R16, WIDTH), jnp.float32),            # d16b
        pltpu.VMEM((R16, WIDTH), jnp.float32),            # d16c
    ]

    bytes_accessed = sum(int(np.prod(a.shape)) * a.dtype.itemsize for a in inputs)
    bytes_accessed += sum(int(np.prod(s.shape)) * np.dtype(s.dtype).itemsize
                          for s in out_shape)

    xo, probs, commit = pl.pallas_call(
        _fused_kernel,
        grid=(1,),
        in_specs=in_specs,
        out_specs=out_specs,
        out_shape=out_shape,
        scratch_shapes=scratch,
        compiler_params=pltpu.CompilerParams(dimension_semantics=("arbitrary",)),
        cost_estimate=pl.CostEstimate(flops=int(3e7), transcendentals=0,
                                      bytes_accessed=int(bytes_accessed)),
    )(*inputs)

    x_out = xo[:, :INPUT_WIDTH].reshape(B, T, INPUT_WIDTH)
    # tiny scalar glue (perplexity / loss reduction) stays in the XLA wrapper
    commit_loss = jnp.mean(commit[:, 0])
    perp = jnp.exp(-jnp.sum(probs * jnp.log(probs + 1e-10), axis=-1))
    perplexity = jnp.mean(perp)
    return x_out, commit_loss, perplexity


# -----------------------------------------------------------------------------
if __name__ == "__main__":
    key = jax.random.PRNGKey(0)
    kp, kx = jax.random.split(key)
    params = init_params(kp)
    x = jax.random.normal(kx, (B, T, INPUT_WIDTH), jnp.float32)

    fwd = jax.jit(rvqvae_decode_forward)
    x_out, commit_loss, perplexity = fwd(x, params)
    jax.block_until_ready((x_out, commit_loss, perplexity))

    assert x_out.shape == (B, T, INPUT_WIDTH)
    assert commit_loss.shape == () and perplexity.shape == ()
    assert bool(jnp.all(jnp.isfinite(x_out)))
    print("KERNEL_OK")
</pallas_src>

<mosaic_0001>
module attributes {stable_mosaic.version = 11 : i64} {
  func.func @_fused_kernel(%arg0: i32, %arg1: memref<32x384xf32, #tpu.memory_space<vmem>>, %arg2: memref<8x384xf32, #tpu.memory_space<vmem>>, %arg3: memref<3x384x64xbf16, #tpu.memory_space<vmem>>, %arg4: memref<55x64x64xbf16, #tpu.memory_space<vmem>>, %arg5: memref<24x64xf32, #tpu.memory_space<vmem>>, %arg6: memref<3x64x384xbf16, #tpu.memory_space<vmem>>, %arg7: memref<2x128x64xf32, #tpu.memory_space<vmem>>, %arg8: memref<2x128xf32, #tpu.memory_space<vmem>>, %arg9: memref<34x17xbf16, #tpu.memory_space<vmem>>, %arg10: memref<68x34xbf16, #tpu.memory_space<vmem>>, %arg11: memref<32x384xf32, #tpu.memory_space<vmem>>, %arg12: memref<2x128xf32, #tpu.memory_space<vmem>>, %arg13: memref<2x128xf32, #tpu.memory_space<vmem>>, %arg14: memref<68x384xf32, #tpu.memory_space<vmem>>, %arg15: memref<68x64xf32, #tpu.memory_space<vmem>>, %arg16: memref<34x64xf32, #tpu.memory_space<vmem>>, %arg17: memref<17x64xf32, #tpu.memory_space<vmem>>, %arg18: memref<8x64xf32, #tpu.memory_space<vmem>>, %arg19: memref<17x64xf32, #tpu.memory_space<vmem>>, %arg20: memref<17x64xf32, #tpu.memory_space<vmem>>, %arg21: memref<34x64xf32, #tpu.memory_space<vmem>>, %arg22: memref<34x64xf32, #tpu.memory_space<vmem>>, %arg23: memref<68x64xf32, #tpu.memory_space<vmem>>, %arg24: memref<68x64xf32, #tpu.memory_space<vmem>>, %arg25: memref<68x64xf32, #tpu.memory_space<vmem>>) attributes {dimension_semantics = [#tpu.dimension_semantics<arbitrary>], iteration_bounds = array<i64: 1>, scalar_prefetch = 0 : i64, scratch_operands = 12 : i64, tpu.core_type = #tpu.core_type<tc>, window_params = [{pipeline_mode = #tpu.pipeline_mode<synchronous>, transform_indices = @transform_0, window_bounds = array<i64: 32, 384>}, {pipeline_mode = #tpu.pipeline_mode<synchronous>, transform_indices = @transform_1, window_bounds = array<i64: 8, 384>}, {pipeline_mode = #tpu.pipeline_mode<synchronous>, transform_indices = @transform_2, window_bounds = array<i64: 3, 384, 64>}, {pipeline_mode = #tpu.pipeline_mode<synchronous>, transform_indices = @transform_3, window_bounds = array<i64: 55, 64, 64>}, {pipeline_mode = #tpu.pipeline_mode<synchronous>, transform_indices = @transform_4, window_bounds = array<i64: 24, 64>}, {pipeline_mode = #tpu.pipeline_mode<synchronous>, transform_indices = @transform_5, window_bounds = array<i64: 3, 64, 384>}, {pipeline_mode = #tpu.pipeline_mode<synchronous>, transform_indices = @transform_6, window_bounds = array<i64: 2, 128, 64>}, {pipeline_mode = #tpu.pipeline_mode<synchronous>, transform_indices = @transform_7, window_bounds = array<i64: 2, 128>}, {pipeline_mode = #tpu.pipeline_mode<synchronous>, transform_indices = @transform_8, window_bounds = array<i64: 34, 17>}, {pipeline_mode = #tpu.pipeline_mode<synchronous>, transform_indices = @transform_9, window_bounds = array<i64: 68, 34>}, {pipeline_mode = #tpu.pipeline_mode<synchronous>, transform_indices = @transform_10, window_bounds = array<i64: 32, 384>}, {pipeline_mode = #tpu.pipeline_mode<synchronous>, transform_indices = @transform_11, window_bounds = array<i64: 2, 128>}, {pipeline_mode = #tpu.pipeline_mode<synchronous>, transform_indices = @transform_12, window_bounds = array<i64: 2, 128>}]} {
    %0 = tpu.iota {dimensions = array<i32: 0>} : vector<44x1xi32>
    %c0_i32 = arith.constant 0 : i32
    %1 = vector.broadcast %c0_i32 : i32 to vector<44x1xi32>
    %2 = arith.cmpi sge, %0, %1 : vector<44x1xi32>
    %c16_i32 = arith.constant 16 : i32
    %3 = vector.broadcast %c16_i32 : i32 to vector<44x1xi32>
    %4 = arith.cmpi slt, %0, %3 : vector<44x1xi32>
    %5 = arith.andi %2, %4 : vector<44x1xi1>
    %c28_i32 = arith.constant 28 : i32
    %6 = vector.broadcast %c28_i32 : i32 to vector<44x1xi32>
    %7 = arith.cmpi sge, %0, %6 : vector<44x1xi32>
    %c44_i32 = arith.constant 44 : i32
    %8 = vector.broadcast %c44_i32 : i32 to vector<44x1xi32>
    %9 = arith.cmpi slt, %0, %8 : vector<44x1xi32>
    %10 = arith.andi %7, %9 : vector<44x1xi1>
    %11 = arith.ori %5, %10 : vector<44x1xi1>
    %12 = arith.extui %11 : vector<44x1xi1> to vector<44x1xi32>
    %13 = arith.sitofp %12 : vector<44x1xi32> to vector<44x1xf32>
    %14 = tpu.iota {dimensions = array<i32: 0>} : vector<22x1xi32>
    %c0_i32_0 = arith.constant 0 : i32
    %15 = vector.broadcast %c0_i32_0 : i32 to vector<22x1xi32>
    %16 = arith.cmpi sge, %14, %15 : vector<22x1xi32>
    %c8_i32 = arith.constant 8 : i32
    %17 = vector.broadcast %c8_i32 : i32 to vector<22x1xi32>
    %18 = arith.cmpi slt, %14, %17 : vector<22x1xi32>
    %19 = arith.andi %16, %18 : vector<22x1xi1>
    %c14_i32 = arith.constant 14 : i32
    %20 = vector.broadcast %c14_i32 : i32 to vector<22x1xi32>
    %21 = arith.cmpi sge, %14, %20 : vector<22x1xi32>
    %c22_i32 = arith.constant 22 : i32
    %22 = vector.broadcast %c22_i32 : i32 to vector<22x1xi32>
    %23 = arith.cmpi slt, %14, %22 : vector<22x1xi32>
    %24 = arith.andi %21, %23 : vector<22x1xi1>
    %25 = arith.ori %19, %24 : vector<22x1xi1>
    %26 = arith.extui %25 : vector<22x1xi1> to vector<22x1xi32>
    %27 = arith.sitofp %26 : vector<22x1xi32> to vector<22x1xf32>
    %28 = tpu.iota {dimensions = array<i32: 0>} : vector<11x1xi32>
    %c0_i32_1 = arith.constant 0 : i32
    %29 = vector.broadcast %c0_i32_1 : i32 to vector<11x1xi32>
    %30 = arith.cmpi sge, %28, %29 : vector<11x1xi32>
    %c4_i32 = arith.constant 4 : i32
    %31 = vector.broadcast %c4_i32 : i32 to vector<11x1xi32>
    %32 = arith.cmpi slt, %28, %31 : vector<11x1xi32>
    %33 = arith.andi %30, %32 : vector<11x1xi1>
    %c7_i32 = arith.constant 7 : i32
    %34 = vector.broadcast %c7_i32 : i32 to vector<11x1xi32>
    %35 = arith.cmpi sge, %28, %34 : vector<11x1xi32>
    %c11_i32 = arith.constant 11 : i32
    %36 = vector.broadcast %c11_i32 : i32 to vector<11x1xi32>
    %37 = arith.cmpi slt, %28, %36 : vector<11x1xi32>
    %38 = arith.andi %35, %37 : vector<11x1xi1>
    %39 = arith.ori %33, %38 : vector<11x1xi1>
    %40 = arith.extui %39 : vector<11x1xi1> to vector<11x1xi32>
    %41 = arith.sitofp %40 : vector<11x1xi32> to vector<11x1xf32>
    %cst = arith.constant 0.000000e+00 : f32
    %42 = vector.broadcast %cst : f32 to vector<12x384xf32>
    %c0 = arith.constant 0 : index
    %c0_2 = arith.constant 0 : index
    %43 = vector.load %arg14[%c0, %c0_2] : memref<68x384xf32, #tpu.memory_space<vmem>>, vector<12x384xf32>
    tpu.vector_store %arg14[%c0, %c0_2], %42 {strides = array<i32>} : memref<68x384xf32, #tpu.memory_space<vmem>>, vector<12x384xf32>,
    %c28 = arith.constant 28 : index
    %c0_3 = arith.constant 0 : index
    %44 = vector.load %arg14[%c28, %c0_3] : memref<68x384xf32, #tpu.memory_space<vmem>>, vector<12x384xf32>
    tpu.vector_store %arg14[%c28, %c0_3], %42 {strides = array<i32>} : memref<68x384xf32, #tpu.memory_space<vmem>>, vector<12x384xf32>,
    %c56 = arith.constant 56 : index
    %c0_4 = arith.constant 0 : index
    %45 = vector.load %arg14[%c56, %c0_4] : memref<68x384xf32, #tpu.memory_space<vmem>>, vector<12x384xf32>
    tpu.vector_store %arg14[%c56, %c0_4], %42 {strides = array<i32>} : memref<68x384xf32, #tpu.memory_space<vmem>>, vector<12x384xf32>,
    %cst_5 = arith.constant 0.000000e+00 : f32
    %46 = vector.broadcast %cst_5 : f32 to vector<12x64xf32>
    %c0_6 = arith.constant 0 : index
    %c0_7 = arith.constant 0 : index
    %47 = vector.load %arg15[%c0_6, %c0_7] : memref<68x64xf32, #tpu.memory_space<vmem>>, vector<12x64xf32>
    tpu.vector_store %arg15[%c0_6, %c0_7], %46 {strides = array<i32>} : memref<68x64xf32, #tpu.memory_space<vmem>>, vector<12x64xf32>,
    %c28_8 = arith.constant 28 : index
    %c0_9 = arith.constant 0 : index
    %48 = vector.load %arg15[%c28_8, %c0_9] : memref<68x64xf32, #tpu.memory_space<vmem>>, vector<12x64xf32>
    tpu.vector_store %arg15[%c28_8, %c0_9], %46 {strides = array<i32>} : memref<68x64xf32, #tpu.memory_space<vmem>>, vector<12x64xf32>,
    %c56_10 = arith.constant 56 : index
    %c0_11 = arith.constant 0 : index
    %49 = vector.load %arg15[%c56_10, %c0_11] : memref<68x64xf32, #tpu.memory_space<vmem>>, vector<12x64xf32>
    tpu.vector_store %arg15[%c56_10, %c0_11], %46 {strides = array<i32>} : memref<68x64xf32, #tpu.memory_space<vmem>>, vector<12x64xf32>,
    %cst_12 = arith.constant 0.000000e+00 : f32
    %50 = vector.broadcast %cst_12 : f32 to vector<6x64xf32>
    %c0_13 = arith.constant 0 : index
    %c0_14 = arith.constant 0 : index
    %51 = vector.load %arg16[%c0_13, %c0_14] : memref<34x64xf32, #tpu.memory_space<vmem>>, vector<6x64xf32>
    tpu.vector_store %arg16[%c0_13, %c0_14], %50 {strides = array<i32>} : memref<34x64xf32, #tpu.memory_space<vmem>>, vector<6x64xf32>,
    %c14 = arith.constant 14 : index
    %c0_15 = arith.constant 0 : index
    %52 = vector.load %arg16[%c14, %c0_15] : memref<34x64xf32, #tpu.memory_space<vmem>>, vector<6x64xf32>
    tpu.vector_store %arg16[%c14, %c0_15], %50 {strides = array<i32>} : memref<34x64xf32, #tpu.memory_space<vmem>>, vector<6x64xf32>,
    %c28_16 = arith.constant 28 : index
    %c0_17 = arith.constant 0 : index
    %53 = vector.load %arg16[%c28_16, %c0_17] : memref<34x64xf32, #tpu.memory_space<vmem>>, vector<6x64xf32>
    tpu.vector_store %arg16[%c28_16, %c0_17], %50 {strides = array<i32>} : memref<34x64xf32, #tpu.memory_space<vmem>>, vector<6x64xf32>,
    %cst_18 = arith.constant 0.000000e+00 : f32
    %54 = vector.broadcast %cst_18 : f32 to vector<3x64xf32>
    %c0_19 = arith.constant 0 : index
    %c0_20 = arith.constant 0 : index
    %55 = vector.load %arg17[%c0_19, %c0_20] : memref<17x64xf32, #tpu.memory_space<vmem>>, vector<3x64xf32>
    tpu.vector_store %arg17[%c0_19, %c0_20], %54 {strides = array<i32>} : memref<17x64xf32, #tpu.memory_space<vmem>>, vector<3x64xf32>,
    %c7 = arith.constant 7 : index
    %c0_21 = arith.constant 0 : index
    %56 = vector.load %arg17[%c7, %c0_21] : memref<17x64xf32, #tpu.memory_space<vmem>>, vector<3x64xf32>
    tpu.vector_store %arg17[%c7, %c0_21], %54 {strides = array<i32>} : memref<17x64xf32, #tpu.memory_space<vmem>>, vector<3x64xf32>,
    %c14_22 = arith.constant 14 : index
    %c0_23 = arith.constant 0 : index
    %57 = vector.load %arg17[%c14_22, %c0_23] : memref<17x64xf32, #tpu.memory_space<vmem>>, vector<3x64xf32>
    tpu.vector_store %arg17[%c14_22, %c0_23], %54 {strides = array<i32>} : memref<17x64xf32, #tpu.memory_space<vmem>>, vector<3x64xf32>,
    %cst_24 = arith.constant 0.000000e+00 : f32
    %58 = vector.broadcast %cst_24 : f32 to vector<3x64xf32>
    %c0_25 = arith.constant 0 : index
    %c0_26 = arith.constant 0 : index
    %59 = vector.load %arg19[%c0_25, %c0_26] : memref<17x64xf32, #tpu.memory_space<vmem>>, vector<3x64xf32>
    tpu.vector_store %arg19[%c0_25, %c0_26], %58 {strides = array<i32>} : memref<17x64xf32, #tpu.memory_space<vmem>>, vector<3x64xf32>,
    %c7_27 = arith.constant 7 : index
    %c0_28 = arith.constant 0 : index
    %60 = vector.load %arg19[%c7_27, %c0_28] : memref<17x64xf32, #tpu.memory_space<vmem>>, vector<3x64xf32>
    tpu.vector_store %arg19[%c7_27, %c0_28], %58 {strides = array<i32>} : memref<17x64xf32, #tpu.memory_space<vmem>>, vector<3x64xf32>,
    %c14_29 = arith.constant 14 : index
    %c0_30 = arith.constant 0 : index
    %61 = vector.load %arg19[%c14_29, %c0_30] : memref<17x64xf32, #tpu.memory_space<vmem>>, vector<3x64xf32>
    tpu.vector_store %arg19[%c14_29, %c0_30], %58 {strides = array<i32>} : memref<17x64xf32, #tpu.memory_space<vmem>>, vector<3x64xf32>,
    %cst_31 = arith.constant 0.000000e+00 : f32
    %62 = vector.broadcast %cst_31 : f32 to vector<3x64xf32>
    %c0_32 = arith.constant 0 : index
    %c0_33 = arith.constant 0 : index
    %63 = vector.load %arg20[%c0_32, %c0_33] : memref<17x64xf32, #tpu.memory_space<vmem>>, vector<3x64xf32>
    tpu.vector_store %arg20[%c0_32, %c0_33], %62 {strides = array<i32>} : memref<17x64xf32, #tpu.memory_space<vmem>>, vector<3x64xf32>,
    %c7_34 = arith.constant 7 : index
    %c0_35 = arith.constant 0 : index
    %64 = vector.load %arg20[%c7_34, %c0_35] : memref<17x64xf32, #tpu.memory_space<vmem>>, vector<3x64xf32>
    tpu.vector_store %arg20[%c7_34, %c0_35], %62 {strides = array<i32>} : memref<17x64xf32, #tpu.memory_space<vmem>>, vector<3x64xf32>,
    %c14_36 = arith.constant 14 : index
    %c0_37 = arith.constant 0 : index
    %65 = vector.load %arg20[%c14_36, %c0_37] : memref<17x64xf32, #tpu.memory_space<vmem>>, vector<3x64xf32>
    tpu.vector_store %arg20[%c14_36, %c0_37], %62 {strides = array<i32>} : memref<17x64xf32, #tpu.memory_space<vmem>>, vector<3x64xf32>,
    %cst_38 = arith.constant 0.000000e+00 : f32
    %66 = vector.broadcast %cst_38 : f32 to vector<6x64xf32>
    %c0_39 = arith.constant 0 : index
    %c0_40 = arith.constant 0 : index
    %67 = vector.load %arg22[%c0_39, %c0_40] : memref<34x64xf32, #tpu.memory_space<vmem>>, vector<6x64xf32>
    tpu.vector_store %arg22[%c0_39, %c0_40], %66 {strides = array<i32>} : memref<34x64xf32, #tpu.memory_space<vmem>>, vector<6x64xf32>,
    %c14_41 = arith.constant 14 : index
    %c0_42 = arith.constant 0 : index
    %68 = vector.load %arg22[%c14_41, %c0_42] : memref<34x64xf32, #tpu.memory_space<vmem>>, vector<6x64xf32>
    tpu.vector_store %arg22[%c14_41, %c0_42], %66 {strides = array<i32>} : memref<34x64xf32, #tpu.memory_space<vmem>>, vector<6x64xf32>,
    %c28_43 = arith.constant 28 : index
    %c0_44 = arith.constant 0 : index
    %69 = vector.load %arg22[%c28_43, %c0_44] : memref<34x64xf32, #tpu.memory_space<vmem>>, vector<6x64xf32>
    tpu.vector_store %arg22[%c28_43, %c0_44], %66 {strides = array<i32>} : memref<34x64xf32, #tpu.memory_space<vmem>>, vector<6x64xf32>,
    %cst_45 = arith.constant 0.000000e+00 : f32
    %70 = vector.broadcast %cst_45 : f32 to vector<12x64xf32>
    %c0_46 = arith.constant 0 : index
    %c0_47 = arith.constant 0 : index
    %71 = vector.load %arg24[%c0_46, %c0_47] : memref<68x64xf32, #tpu.memory_space<vmem>>, vector<12x64xf32>
    tpu.vector_store %arg24[%c0_46, %c0_47], %70 {strides = array<i32>} : memref<68x64xf32, #tpu.memory_space<vmem>>, vector<12x64xf32>,
    %c28_48 = arith.constant 28 : index
    %c0_49 = arith.constant 0 : index
    %72 = vector.load %arg24[%c28_48, %c0_49] : memref<68x64xf32, #tpu.memory_space<vmem>>, vector<12x64xf32>
    tpu.vector_store %arg24[%c28_48, %c0_49], %70 {strides = array<i32>} : memref<68x64xf32, #tpu.memory_space<vmem>>, vector<12x64xf32>,
    %c56_50 = arith.constant 56 : index
    %c0_51 = arith.constant 0 : index
    %73 = vector.load %arg24[%c56_50, %c0_51] : memref<68x64xf32, #tpu.memory_space<vmem>>, vector<12x64xf32>
    tpu.vector_store %arg24[%c56_50, %c0_51], %70 {strides = array<i32>} : memref<68x64xf32, #tpu.memory_space<vmem>>, vector<12x64xf32>,
    %cst_52 = arith.constant 0.000000e+00 : f32
    %74 = vector.broadcast %cst_52 : f32 to vector<12x64xf32>
    %c0_53 = arith.constant 0 : index
    %c0_54 = arith.constant 0 : index
    %75 = vector.load %arg25[%c0_53, %c0_54] : memref<68x64xf32, #tpu.memory_space<vmem>>, vector<12x64xf32>
    tpu.vector_store %arg25[%c0_53, %c0_54], %74 {strides = array<i32>} : memref<68x64xf32, #tpu.memory_space<vmem>>, vector<12x64xf32>,
    %c28_55 = arith.constant 28 : index
    %c0_56 = arith.constant 0 : index
    %76 = vector.load %arg25[%c28_55, %c0_56] : memref<68x64xf32, #tpu.memory_space<vmem>>, vector<12x64xf32>
    tpu.vector_store %arg25[%c28_55, %c0_56], %74 {strides = array<i32>} : memref<68x64xf32, #tpu.memory_space<vmem>>, vector<12x64xf32>,
    %c56_57 = arith.constant 56 : index
    %c0_58 = arith.constant 0 : index
    %77 = vector.load %arg25[%c56_57, %c0_58] : memref<68x64xf32, #tpu.memory_space<vmem>>, vector<12x64xf32>
    tpu.vector_store %arg25[%c56_57, %c0_58], %74 {strides = array<i32>} : memref<68x64xf32, #tpu.memory_space<vmem>>, vector<12x64xf32>,
    %c0_59 = arith.constant 0 : index
    %c0_60 = arith.constant 0 : index
    %78 = vector.load %arg2[%c0_59, %c0_60] : memref<8x384xf32, #tpu.memory_space<vmem>>, vector<1x384xf32>
    %c1 = arith.constant 1 : index
    %c0_61 = arith.constant 0 : index
    %79 = vector.load %arg2[%c1, %c0_61] : memref<8x384xf32, #tpu.memory_space<vmem>>, vector<1x384xf32>
    %c2 = arith.constant 2 : index
    %c0_62 = arith.constant 0 : index
    %80 = vector.load %arg2[%c2, %c0_62] : memref<8x384xf32, #tpu.memory_space<vmem>>, vector<1x384xf32>
    %c3 = arith.constant 3 : index
    %c0_63 = arith.constant 0 : index
    %81 = vector.load %arg2[%c3, %c0_63] : memref<8x384xf32, #tpu.memory_space<vmem>>, vector<1x384xf32>
    %c4 = arith.constant 4 : index
    %c0_64 = arith.constant 0 : index
    %82 = vector.load %arg2[%c4, %c0_64] : memref<8x384xf32, #tpu.memory_space<vmem>>, vector<1x384xf32>
    %c5 = arith.constant 5 : index
    %c0_65 = arith.constant 0 : index
    %83 = vector.load %arg2[%c5, %c0_65] : memref<8x384xf32, #tpu.memory_space<vmem>>, vector<1x384xf32>
    %c6 = arith.constant 6 : index
    %c0_66 = arith.constant 0 : index
    %84 = vector.load %arg2[%c6, %c0_66] : memref<8x384xf32, #tpu.memory_space<vmem>>, vector<1x384xf32>
    %c7_67 = arith.constant 7 : index
    %c0_68 = arith.constant 0 : index
    %85 = vector.load %arg2[%c7_67, %c0_68] : memref<8x384xf32, #tpu.memory_space<vmem>>, vector<1x384xf32>
    %c0_69 = arith.constant 0 : index
    %c0_70 = arith.constant 0 : index
    %86 = vector.load %arg1[%c0_69, %c0_70] : memref<32x384xf32, #tpu.memory_space<vmem>>, vector<32x384xf32>
    %87 = vector.broadcast %79 : vector<1x384xf32> to vector<32x384xf32>
    %88 = arith.mulf %86, %87 : vector<32x384xf32>
    %89 = vector.broadcast %78 : vector<1x384xf32> to vector<32x384xf32>
    %90 = arith.addf %88, %89 : vector<32x384xf32>
    %91 = vector.extract_strided_slice %90 {offsets = [0, 3], sizes = [32, 1], strides = [1, 1]} : vector<32x384xf32> to vector<32x1xf32>
    %92 = vector.broadcast %91 : vector<32x1xf32> to vector<32x384xf32>
    %93 = vector.broadcast %81 : vector<1x384xf32> to vector<32x384xf32>
    %94 = arith.mulf %92, %93 : vector<32x384xf32>
    %95 = arith.subf %90, %94 : vector<32x384xf32>
    %96 = vector.broadcast %82 : vector<1x384xf32> to vector<32x384xf32>
    %97 = arith.subf %95, %96 : vector<32x384xf32>
    %98 = vector.broadcast %84 : vector<1x384xf32> to vector<32x384xf32>
    %99 = arith.mulf %97, %98 : vector<32x384xf32>
    %100 = vector.extract_strided_slice %99 {offsets = [0, 0], sizes = [16, 384], strides = [1, 1]} : vector<32x384xf32> to vector<16x384xf32>
    %c12 = arith.constant 12 : index
    %c0_71 = arith.constant 0 : index
    %101 = vector.load %arg14[%c12, %c0_71] : memref<68x384xf32, #tpu.memory_space<vmem>>, vector<16x384xf32>
    tpu.vector_store %arg14[%c12, %c0_71], %100 {strides = array<i32>} : memref<68x384xf32, #tpu.memory_space<vmem>>, vector<16x384xf32>,
    %102 = vector.extract_strided_slice %99 {offsets = [16, 0], sizes = [16, 384], strides = [1, 1]} : vector<32x384xf32> to vector<16x384xf32>
    %c40 = arith.constant 40 : index
    %c0_72 = arith.constant 0 : index
    %103 = vector.load %arg14[%c40, %c0_72] : memref<68x384xf32, #tpu.memory_space<vmem>>, vector<16x384xf32>
    tpu.vector_store %arg14[%c40, %c0_72], %102 {strides = array<i32>} : memref<68x384xf32, #tpu.memory_space<vmem>>, vector<16x384xf32>,
    %c0_73 = arith.constant 0 : index
    %c0_74 = arith.constant 0 : index
    %104 = vector.load %arg5[%c0_73, %c0_74] : memref<24x64xf32, #tpu.memory_space<vmem>>, vector<1x64xf32>
    %c11 = arith.constant 11 : index
    %c0_75 = arith.constant 0 : index
    %105 = vector.load %arg14[%c11, %c0_75] : memref<68x384xf32, #tpu.memory_space<vmem>>, vector<44x384xf32>
    %106 = arith.truncf %105 : vector<44x384xf32> to vector<44x384xbf16>
    %c0_76 = arith.constant 0 : index
    %c0_77 = arith.constant 0 : index
    %c0_78 = arith.constant 0 : index
    %107 = vector.load %arg3[%c0_76, %c0_77, %c0_78] : memref<3x384x64xbf16, #tpu.memory_space<vmem>>, vector<1x384x64xbf16>
    %108 = vector.shape_cast %107 : vector<1x384x64xbf16> to vector<384x64xbf16>
    %cst_79 = arith.constant dense<0.000000e+00> : vector<44x64xf32>
    %109 = tpu.matmul %106, %108, %cst_79 {dimension_numbers = #tpu.dot_dimension_numbers<[1], [0], [0], [1], [0, 0, 1, 1], [], []>} : vector<44x384xbf16>, vector<384x64xbf16>, vector<44x64xf32> -> vector<44x64xf32>
    %c12_80 = arith.constant 12 : index
    %c0_81 = arith.constant 0 : index
    %110 = vector.load %arg14[%c12_80, %c0_81] : memref<68x384xf32, #tpu.memory_space<vmem>>, vector<44x384xf32>
    %111 = arith.truncf %110 : vector<44x384xf32> to vector<44x384xbf16>
    %c1_82 = arith.constant 1 : index
    %c0_83 = arith.constant 0 : index
    %c0_84 = arith.constant 0 : index
    %112 = vector.load %arg3[%c1_82, %c0_83, %c0_84] : memref<3x384x64xbf16, #tpu.memory_space<vmem>>, vector<1x384x64xbf16>
    %113 = vector.shape_cast %112 : vector<1x384x64xbf16> to vector<384x64xbf16>
    %cst_85 = arith.constant dense<0.000000e+00> : vector<44x64xf32>
    %114 = tpu.matmul %111, %113, %cst_85 {dimension_numbers = #tpu.dot_dimension_numbers<[1], [0], [0], [1], [0, 0, 1, 1], [], []>} : vector<44x384xbf16>, vector<384x64xbf16>, vector<44x64xf32> -> vector<44x64xf32>
    %115 = arith.addf %109, %114 : vector<44x64xf32>
    %c13 = arith.constant 13 : index
    %c0_86 = arith.constant 0 : index
    %116 = vector.load %arg14[%c13, %c0_86] : memref<68x384xf32, #tpu.memory_space<vmem>>, vector<44x384xf32>
    %117 = arith.truncf %116 : vector<44x384xf32> to vector<44x384xbf16>
    %c2_87 = arith.constant 2 : index
    %c0_88 = arith.constant 0 : index
    %c0_89 = arith.constant 0 : index
    %118 = vector.load %arg3[%c2_87, %c0_88, %c0_89] : memref<3x384x64xbf16, #tpu.memory_space<vmem>>, vector<1x384x64xbf16>
    %119 = vector.shape_cast %118 : vector<1x384x64xbf16> to vector<384x64xbf16>
    %cst_90 = arith.constant dense<0.000000e+00> : vector<44x64xf32>
    %120 = tpu.matmul %117, %119, %cst_90 {dimension_numbers = #tpu.dot_dimension_numbers<[1], [0], [0], [1], [0, 0, 1, 1], [], []>} : vector<44x384xbf16>, vector<384x64xbf16>, vector<44x64xf32> -> vector<44x64xf32>
    %121 = arith.addf %115, %120 : vector<44x64xf32>
    %122 = vector.broadcast %104 : vector<1x64xf32> to vector<44x64xf32>
    %123 = arith.addf %121, %122 : vector<44x64xf32>
    %cst_91 = arith.constant 0.000000e+00 : f32
    %124 = vector.broadcast %cst_91 : f32 to vector<44x64xf32>
    %125 = arith.maximumf %123, %124 : vector<44x64xf32>
    %126 = vector.broadcast %13 : vector<44x1xf32> to vector<44x64xf32>
    %127 = arith.mulf %125, %126 : vector<44x64xf32>
    %c12_92 = arith.constant 12 : index
    %c0_93 = arith.constant 0 : index
    %128 = vector.load %arg15[%c12_92, %c0_93] : memref<68x64xf32, #tpu.memory_space<vmem>>, vector<44x64xf32>
    tpu.vector_store %arg15[%c12_92, %c0_93], %127 {strides = array<i32>} : memref<68x64xf32, #tpu.memory_space<vmem>>, vector<44x64xf32>,
    %c11_94 = arith.constant 11 : index
    %c0_95 = arith.constant 0 : index
    %129 = tpu.strided_load %arg15[%c11_94, %c0_95] {strides = array<i32: 2, 1>} : memref<68x64xf32, #tpu.memory_space<vmem>>, vector<22x64xf32>
    %130 = arith.truncf %129 : vector<22x64xf32> to vector<22x64xbf16>
    %c0_96 = arith.constant 0 : index
    %c0_97 = arith.constant 0 : index
    %c0_98 = arith.constant 0 : index
    %131 = vector.load %arg4[%c0_96, %c0_97, %c0_98] : memref<55x64x64xbf16, #tpu.memory_space<vmem>>, vector<1x64x64xbf16>
    %132 = vector.shape_cast %131 : vector<1x64x64xbf16> to vector<64x64xbf16>
    %cst_99 = arith.constant dense<0.000000e+00> : vector<22x64xf32>
    %133 = tpu.matmul %130, %132, %cst_99 {dimension_numbers = #tpu.dot_dimension_numbers<[1], [0], [0], [1], [0, 0, 1, 1], [], []>} : vector<22x64xbf16>, vector<64x64xbf16>, vector<22x64xf32> -> vector<22x64xf32>
    %c12_100 = arith.constant 12 : index
    %c0_101 = arith.constant 0 : index
    %134 = tpu.strided_load %arg15[%c12_100, %c0_101] {strides = array<i32: 2, 1>} : memref<68x64xf32, #tpu.memory_space<vmem>>, vector<22x64xf32>
    %135 = arith.truncf %134 : vector<22x64xf32> to vector<22x64xbf16>
    %c1_102 = arith.constant 1 : index
    %c0_103 = arith.constant 0 : index
    %c0_104 = arith.constant 0 : index
    %136 = vector.load %arg4[%c1_102, %c0_103, %c0_104] : memref<55x64x64xbf16, #tpu.memory_space<vmem>>, vector<1x64x64xbf16>
    %137 = vector.shape_cast %136 : vector<1x64x64xbf16> to vector<64x64xbf16>
    %cst_105 = arith.constant dense<0.000000e+00> : vector<22x64xf32>
    %138 = tpu.matmul %135, %137, %cst_105 {dimension_numbers = #tpu.dot_dimension_numbers<[1], [0], [0], [1], [0, 0, 1, 1], [], []>} : vector<22x64xbf16>, vector<64x64xbf16>, vector<22x64xf32> -> vector<22x64xf32>
    %139 = arith.addf %133, %138 : vector<22x64xf32>
    %c13_106 = arith.constant 13 : index
    %c0_107 = arith.constant 0 : index
    %140 = tpu.strided_load %arg15[%c13_106, %c0_107] {strides = array<i32: 2, 1>} : memref<68x64xf32, #tpu.memory_space<vmem>>, vector<22x64xf32>
    %141 = arith.truncf %140 : vector<22x64xf32> to vector<22x64xbf16>
    %c2_108 = arith.constant 2 : index
    %c0_109 = arith.constant 0 : index
    %c0_110 = arith.constant 0 : index
    %142 = vector.load %arg4[%c2_108, %c0_109, %c0_110] : memref<55x64x64xbf16, #tpu.memory_space<vmem>>, vector<1x64x64xbf16>
    %143 = vector.shape_cast %142 : vector<1x64x64xbf16> to vector<64x64xbf16>
    %cst_111 = arith.constant dense<0.000000e+00> : vector<22x64xf32>
    %144 = tpu.matmul %141, %143, %cst_111 {dimension_numbers = #tpu.dot_dimension_numbers<[1], [0], [0], [1], [0, 0, 1, 1], [], []>} : vector<22x64xbf16>, vector<64x64xbf16>, vector<22x64xf32> -> vector<22x64xf32>
    %145 = arith.addf %139, %144 : vector<22x64xf32>
    %c14_112 = arith.constant 14 : index
    %c0_113 = arith.constant 0 : index
    %146 = tpu.strided_load %arg15[%c14_112, %c0_113] {strides = array<i32: 2, 1>} : memref<68x64xf32, #tpu.memory_space<vmem>>, vector<22x64xf32>
    %147 = arith.truncf %146 : vector<22x64xf32> to vector<22x64xbf16>
    %c3_114 = arith.constant 3 : index
    %c0_115 = arith.constant 0 : index
    %c0_116 = arith.constant 0 : index
    %148 = vector.load %arg4[%c3_114, %c0_115, %c0_116] : memref<55x64x64xbf16, #tpu.memory_space<vmem>>, vector<1x64x64xbf16>
    %149 = vector.shape_cast %148 : vector<1x64x64xbf16> to vector<64x64xbf16>
    %cst_117 = arith.constant dense<0.000000e+00> : vector<22x64xf32>
    %150 = tpu.matmul %147, %149, %cst_117 {dimension_numbers = #tpu.dot_dimension_numbers<[1], [0], [0], [1], [0, 0, 1, 1], [], []>} : vector<22x64xbf16>, vector<64x64xbf16>, vector<22x64xf32> -> vector<22x64xf32>
    %151 = arith.addf %145, %150 : vector<22x64xf32>
    %c1_118 = arith.constant 1 : index
    %c0_119 = arith.constant 0 : index
    %152 = vector.load %arg5[%c1_118, %c0_119] : memref<24x64xf32, #tpu.memory_space<vmem>>, vector<1x64xf32>
    %153 = vector.broadcast %152 : vector<1x64xf32> to vector<22x64xf32>
    %154 = arith.addf %151, %153 : vector<22x64xf32>
    %155 = vector.broadcast %27 : vector<22x1xf32> to vector<22x64xf32>
    %156 = arith.mulf %154, %155 : vector<22x64xf32>
    %c6_120 = arith.constant 6 : index
    %c0_121 = arith.constant 0 : index
    %157 = vector.load %arg16[%c6_120, %c0_121] : memref<34x64xf32, #tpu.memory_space<vmem>>, vector<22x64xf32>
    tpu.vector_store %arg16[%c6_120, %c0_121], %156 {strides = array<i32>} : memref<34x64xf32, #tpu.memory_space<vmem>>, vector<22x64xf32>,
    %c2_122 = arith.constant 2 : index
    %c0_123 = arith.constant 0 : index
    %158 = vector.load %arg5[%c2_122, %c0_123] : memref<24x64xf32, #tpu.memory_space<vmem>>, vector<1x64xf32>
    %c5_124 = arith.constant 5 : index
    %c0_125 = arith.constant 0 : index
    %159 = vector.load %arg16[%c5_124, %c0_125] : memref<34x64xf32, #tpu.memory_space<vmem>>, vector<22x64xf32>
    %cst_126 = arith.constant 0.000000e+00 : f32
    %160 = vector.broadcast %cst_126 : f32 to vector<22x64xf32>
    %161 = arith.maximumf %159, %160 : vector<22x64xf32>
    %162 = arith.truncf %161 : vector<22x64xf32> to vector<22x64xbf16>
    %c4_127 = arith.constant 4 : index
    %c0_128 = arith.constant 0 : index
    %c0_129 = arith.constant 0 : index
    %163 = vector.load %arg4[%c4_127, %c0_128, %c0_129] : memref<55x64x64xbf16, #tpu.memory_space<vmem>>, vector<1x64x64xbf16>
    %164 = vector.shape_cast %163 : vector<1x64x64xbf16> to vector<64x64xbf16>
    %cst_130 = arith.constant dense<0.000000e+00> : vector<22x64xf32>
    %165 = tpu.matmul %162, %164, %cst_130 {dimension_numbers = #tpu.dot_dimension_numbers<[1], [0], [0], [1], [0, 0, 1, 1], [], []>} : vector<22x64xbf16>, vector<64x64xbf16>, vector<22x64xf32> -> vector<22x64xf32>
    %c6_131 = arith.constant 6 : index
    %c0_132 = arith.constant 0 : index
    %166 = vector.load %arg16[%c6_131, %c0_132] : memref<34x64xf32, #tpu.memory_space<vmem>>, vector<22x64xf32>
    %cst_133 = arith.constant 0.000000e+00 : f32
    %167 = vector.broadcast %cst_133 : f32 to vector<22x64xf32>
    %168 = arith.maximumf %166, %167 : vector<22x64xf32>
    %169 = arith.truncf %168 : vector<22x64xf32> to vector<22x64xbf16>
    %c5_134 = arith.constant 5 : index
    %c0_135 = arith.constant 0 : index
    %c0_136 = arith.constant 0 : index
    %170 = vector.load %arg4[%c5_134, %c0_135, %c0_136] : memref<55x64x64xbf16, #tpu.memory_space<vmem>>, vector<1x64x64xbf16>
    %171 = vector.shape_cast %170 : vector<1x64x64xbf16> to vector<64x64xbf16>
    %cst_137 = arith.constant dense<0.000000e+00> : vector<22x64xf32>
    %172 = tpu.matmul %169, %171, %cst_137 {dimension_numbers = #tpu.dot_dimension_numbers<[1], [0], [0], [1], [0, 0, 1, 1], [], []>} : vector<22x64xbf16>, vector<64x64xbf16>, vector<22x64xf32> -> vector<22x64xf32>
    %173 = arith.addf %165, %172 : vector<22x64xf32>
    %c7_138 = arith.constant 7 : index
    %c0_139 = arith.constant 0 : index
    %174 = vector.load %arg16[%c7_138, %c0_139] : memref<34x64xf32, #tpu.memory_space<vmem>>, vector<22x64xf32>
    %cst_140 = arith.constant 0.000000e+00 : f32
    %175 = vector.broadcast %cst_140 : f32 to vector<22x64xf32>
    %176 = arith.maximumf %174, %175 : vector<22x64xf32>
    %177 = arith.truncf %176 : vector<22x64xf32> to vector<22x64xbf16>
    %c6_141 = arith.constant 6 : index
    %c0_142 = arith.constant 0 : index
    %c0_143 = arith.constant 0 : index
    %178 = vector.load %arg4[%c6_141, %c0_142, %c0_143] : memref<55x64x64xbf16, #tpu.memory_space<vmem>>, vector<1x64x64xbf16>
    %179 = vector.shape_cast %178 : vector<1x64x64xbf16> to vector<64x64xbf16>
    %cst_144 = arith.constant dense<0.000000e+00> : vector<22x64xf32>
    %180 = tpu.matmul %177, %179, %cst_144 {dimension_numbers = #tpu.dot_dimension_numbers<[1], [0], [0], [1], [0, 0, 1, 1], [], []>} : vector<22x64xbf16>, vector<64x64xbf16>, vector<22x64xf32> -> vector<22x64xf32>
    %181 = arith.addf %173, %180 : vector<22x64xf32>
    %182 = vector.broadcast %158 : vector<1x64xf32> to vector<22x64xf32>
    %183 = arith.addf %181, %182 : vector<22x64xf32>
    %cst_145 = arith.constant 0.000000e+00 : f32
    %184 = vector.broadcast %cst_145 : f32 to vector<22x64xf32>
    %185 = arith.maximumf %183, %184 : vector<22x64xf32>
    %186 = arith.truncf %185 : vector<22x64xf32> to vector<22x64xbf16>
    %c7_146 = arith.constant 7 : index
    %c0_147 = arith.constant 0 : index
    %c0_148 = arith.constant 0 : index
    %187 = vector.load %arg4[%c7_146, %c0_147, %c0_148] : memref<55x64x64xbf16, #tpu.memory_space<vmem>>, vector<1x64x64xbf16>
    %188 = vector.shape_cast %187 : vector<1x64x64xbf16> to vector<64x64xbf16>
    %cst_149 = arith.constant dense<0.000000e+00> : vector<22x64xf32>
    %189 = tpu.matmul %186, %188, %cst_149 {dimension_numbers = #tpu.dot_dimension_numbers<[1], [0], [0], [1], [0, 0, 1, 1], [], []>} : vector<22x64xbf16>, vector<64x64xbf16>, vector<22x64xf32> -> vector<22x64xf32>
    %c3_150 = arith.constant 3 : index
    %c0_151 = arith.constant 0 : index
    %190 = vector.load %arg5[%c3_150, %c0_151] : memref<24x64xf32, #tpu.memory_space<vmem>>, vector<1x64xf32>
    %191 = vector.broadcast %190 : vector<1x64xf32> to vector<22x64xf32>
    %192 = arith.addf %189, %191 : vector<22x64xf32>
    %c6_152 = arith.constant 6 : index
    %c0_153 = arith.constant 0 : index
    %193 = vector.load %arg16[%c6_152, %c0_153] : memref<34x64xf32, #tpu.memory_space<vmem>>, vector<22x64xf32>
    %194 = vector.broadcast %27 : vector<22x1xf32> to vector<22x64xf32>
    %195 = arith.mulf %192, %194 : vector<22x64xf32>
    %196 = arith.addf %193, %195 : vector<22x64xf32>
    %c6_154 = arith.constant 6 : index
    %c0_155 = arith.constant 0 : index
    %197 = vector.load %arg16[%c6_154, %c0_155] : memref<34x64xf32, #tpu.memory_space<vmem>>, vector<22x64xf32>
    tpu.vector_store %arg16[%c6_154, %c0_155], %196 {strides = array<i32>} : memref<34x64xf32, #tpu.memory_space<vmem>>, vector<22x64xf32>,
    %c4_156 = arith.constant 4 : index
    %c0_157 = arith.constant 0 : index
    %198 = vector.load %arg5[%c4_156, %c0_157] : memref<24x64xf32, #tpu.memory_space<vmem>>, vector<1x64xf32>
    %c3_158 = arith.constant 3 : index
    %c0_159 = arith.constant 0 : index
    %199 = vector.load %arg16[%c3_158, %c0_159] : memref<34x64xf32, #tpu.memory_space<vmem>>, vector<22x64xf32>
    %cst_160 = arith.constant 0.000000e+00 : f32
    %200 = vector.broadcast %cst_160 : f32 to vector<22x64xf32>
    %201 = arith.maximumf %199, %200 : vector<22x64xf32>
    %202 = arith.truncf %201 : vector<22x64xf32> to vector<22x64xbf16>
    %c8 = arith.constant 8 : index
    %c0_161 = arith.constant 0 : index
    %c0_162 = arith.constant 0 : index
    %203 = vector.load %arg4[%c8, %c0_161, %c0_162] : memref<55x64x64xbf16, #tpu.memory_space<vmem>>, vector<1x64x64xbf16>
    %204 = vector.shape_cast %203 : vector<1x64x64xbf16> to vector<64x64xbf16>
    %cst_163 = arith.constant dense<0.000000e+00> : vector<22x64xf32>
    %205 = tpu.matmul %202, %204, %cst_163 {dimension_numbers = #tpu.dot_dimension_numbers<[1], [0], [0], [1], [0, 0, 1, 1], [], []>} : vector<22x64xbf16>, vector<64x64xbf16>, vector<22x64xf32> -> vector<22x64xf32>
    %c6_164 = arith.constant 6 : index
    %c0_165 = arith.constant 0 : index
    %206 = vector.load %arg16[%c6_164, %c0_165] : memref<34x64xf32, #tpu.memory_space<vmem>>, vector<22x64xf32>
    %cst_166 = arith.constant 0.000000e+00 : f32
    %207 = vector.broadcast %cst_166 : f32 to vector<22x64xf32>
    %208 = arith.maximumf %206, %207 : vector<22x64xf32>
    %209 = arith.truncf %208 : vector<22x64xf32> to vector<22x64xbf16>
    %c9 = arith.constant 9 : index
    %c0_167 = arith.constant 0 : index
    %c0_168 = arith.constant 0 : index
    %210 = vector.load %arg4[%c9, %c0_167, %c0_168] : memref<55x64x64xbf16, #tpu.memory_space<vmem>>, vector<1x64x64xbf16>
    %211 = vector.shape_cast %210 : vector<1x64x64xbf16> to vector<64x64xbf16>
    %cst_169 = arith.constant dense<0.000000e+00> : vector<22x64xf32>
    %212 = tpu.matmul %209, %211, %cst_169 {dimension_numbers = #tpu.dot_dimension_numbers<[1], [0], [0], [1], [0, 0, 1, 1], [], []>} : vector<22x64xbf16>, vector<64x64xbf16>, vector<22x64xf32> -> vector<22x64xf32>
    %213 = arith.addf %205, %212 : vector<22x64xf32>
    %c9_170 = arith.constant 9 : index
    %c0_171 = arith.constant 0 : index
    %214 = vector.load %arg16[%c9_170, %c0_171] : memref<34x64xf32, #tpu.memory_space<vmem>>, vector<22x64xf32>
    %cst_172 = arith.constant 0.000000e+00 : f32
    %215 = vector.broadcast %cst_172 : f32 to vector<22x64xf32>
    %216 = arith.maximumf %214, %215 : vector<22x64xf32>
    %217 = arith.truncf %216 : vector<22x64xf32> to vector<22x64xbf16>
    %c10 = arith.constant 10 : index
    %c0_173 = arith.constant 0 : index
    %c0_174 = arith.constant 0 : index
    %218 = vector.load %arg4[%c10, %c0_173, %c0_174] : memref<55x64x64xbf16, #tpu.memory_space<vmem>>, vector<1x64x64xbf16>
    %219 = vector.shape_cast %218 : vector<1x64x64xbf16> to vector<64x64xbf16>
    %cst_175 = arith.constant dense<0.000000e+00> : vector<22x64xf32>
    %220 = tpu.matmul %217, %219, %cst_175 {dimension_numbers = #tpu.dot_dimension_numbers<[1], [0], [0], [1], [0, 0, 1, 1], [], []>} : vector<22x64xbf16>, vector<64x64xbf16>, vector<22x64xf32> -> vector<22x64xf32>
    %221 = arith.addf %213, %220 : vector<22x64xf32>
    %222 = vector.broadcast %198 : vector<1x64xf32> to vector<22x64xf32>
    %223 = arith.addf %221, %222 : vector<22x64xf32>
    %cst_176 = arith.constant 0.000000e+00 : f32
    %224 = vector.broadcast %cst_176 : f32 to vector<22x64xf32>
    %225 = arith.maximumf %223, %224 : vector<22x64xf32>
    %226 = arith.truncf %225 : vector<22x64xf32> to vector<22x64xbf16>
    %c11_177 = arith.constant 11 : index
    %c0_178 = arith.constant 0 : index
    %c0_179 = arith.constant 0 : index
    %227 = vector.load %arg4[%c11_177, %c0_178, %c0_179] : memref<55x64x64xbf16, #tpu.memory_space<vmem>>, vector<1x64x64xbf16>
    %228 = vector.shape_cast %227 : vector<1x64x64xbf16> to vector<64x64xbf16>
    %cst_180 = arith.constant dense<0.000000e+00> : vector<22x64xf32>
    %229 = tpu.matmul %226, %228, %cst_180 {dimension_numbers = #tpu.dot_dimension_numbers<[1], [0], [0], [1], [0, 0, 1, 1], [], []>} : vector<22x64xbf16>, vector<64x64xbf16>, vector<22x64xf32> -> vector<22x64xf32>
    %c5_181 = arith.constant 5 : index
    %c0_182 = arith.constant 0 : index
    %230 = vector.load %arg5[%c5_181, %c0_182] : memref<24x64xf32, #tpu.memory_space<vmem>>, vector<1x64xf32>
    %231 = vector.broadcast %230 : vector<1x64xf32> to vector<22x64xf32>
    %232 = arith.addf %229, %231 : vector<22x64xf32>
    %c6_183 = arith.constant 6 : index
    %c0_184 = arith.constant 0 : index
    %233 = vector.load %arg16[%c6_183, %c0_184] : memref<34x64xf32, #tpu.memory_space<vmem>>, vector<22x64xf32>
    %234 = vector.broadcast %27 : vector<22x1xf32> to vector<22x64xf32>
    %235 = arith.mulf %232, %234 : vector<22x64xf32>
    %236 = arith.addf %233, %235 : vector<22x64xf32>
    %c6_185 = arith.constant 6 : index
    %c0_186 = arith.constant 0 : index
    %237 = vector.load %arg16[%c6_185, %c0_186] : memref<34x64xf32, #tpu.memory_space<vmem>>, vector<22x64xf32>
    tpu.vector_store %arg16[%c6_185, %c0_186], %236 {strides = array<i32>} : memref<34x64xf32, #tpu.memory_space<vmem>>, vector<22x64xf32>,
    %c5_187 = arith.constant 5 : index
    %c0_188 = arith.constant 0 : index
    %238 = tpu.strided_load %arg16[%c5_187, %c0_188] {strides = array<i32: 2, 1>} : memref<34x64xf32, #tpu.memory_space<vmem>>, vector<11x64xf32>
    %239 = arith.truncf %238 : vector<11x64xf32> to vector<11x64xbf16>
    %c12_189 = arith.constant 12 : index
    %c0_190 = arith.constant 0 : index
    %c0_191 = arith.constant 0 : index
    %240 = vector.load %arg4[%c12_189, %c0_190, %c0_191] : memref<55x64x64xbf16, #tpu.memory_space<vmem>>, vector<1x64x64xbf16>
    %241 = vector.shape_cast %240 : vector<1x64x64xbf16> to vector<64x64xbf16>
    %cst_192 = arith.constant dense<0.000000e+00> : vector<11x64xf32>
    %242 = tpu.matmul %239, %241, %cst_192 {dimension_numbers = #tpu.dot_dimension_numbers<[1], [0], [0], [1], [0, 0, 1, 1], [], []>} : vector<11x64xbf16>, vector<64x64xbf16>, vector<11x64xf32> -> vector<11x64xf32>
    %c6_193 = arith.constant 6 : index
    %c0_194 = arith.constant 0 : index
    %243 = tpu.strided_load %arg16[%c6_193, %c0_194] {strides = array<i32: 2, 1>} : memref<34x64xf32, #tpu.memory_space<vmem>>, vector<11x64xf32>
    %244 = arith.truncf %243 : vector<11x64xf32> to vector<11x64xbf16>
    %c13_195 = arith.constant 13 : index
    %c0_196 = arith.constant 0 : index
    %c0_197 = arith.constant 0 : index
    %245 = vector.load %arg4[%c13_195, %c0_196, %c0_197] : memref<55x64x64xbf16, #tpu.memory_space<vmem>>, vector<1x64x64xbf16>
    %246 = vector.shape_cast %245 : vector<1x64x64xbf16> to vector<64x64xbf16>
    %cst_198 = arith.constant dense<0.000000e+00> : vector<11x64xf32>
    %247 = tpu.matmul %244, %246, %cst_198 {dimension_numbers = #tpu.dot_dimension_numbers<[1], [0], [0], [1], [0, 0, 1, 1], [], []>} : vector<11x64xbf16>, vector<64x64xbf16>, vector<11x64xf32> -> vector<11x64xf32>
    %248 = arith.addf %242, %247 : vector<11x64xf32>
    %c7_199 = arith.constant 7 : index
    %c0_200 = arith.constant 0 : index
    %249 = tpu.strided_load %arg16[%c7_199, %c0_200] {strides = array<i32: 2, 1>} : memref<34x64xf32, #tpu.memory_space<vmem>>, vector<11x64xf32>
    %250 = arith.truncf %249 : vector<11x64xf32> to vector<11x64xbf16>
    %c14_201 = arith.constant 14 : index
    %c0_202 = arith.constant 0 : index
    %c0_203 = arith.constant 0 : index
    %251 = vector.load %arg4[%c14_201, %c0_202, %c0_203] : memref<55x64x64xbf16, #tpu.memory_space<vmem>>, vector<1x64x64xbf16>
    %252 = vector.shape_cast %251 : vector<1x64x64xbf16> to vector<64x64xbf16>
    %cst_204 = arith.constant dense<0.000000e+00> : vector<11x64xf32>
    %253 = tpu.matmul %250, %252, %cst_204 {dimension_numbers = #tpu.dot_dimension_numbers<[1], [0], [0], [1], [0, 0, 1, 1], [], []>} : vector<11x64xbf16>, vector<64x64xbf16>, vector<11x64xf32> -> vector<11x64xf32>
    %254 = arith.addf %248, %253 : vector<11x64xf32>
    %c8_205 = arith.constant 8 : index
    %c0_206 = arith.constant 0 : index
    %255 = tpu.strided_load %arg16[%c8_205, %c0_206] {strides = array<i32: 2, 1>} : memref<34x64xf32, #tpu.memory_space<vmem>>, vector<11x64xf32>
    %256 = arith.truncf %255 : vector<11x64xf32> to vector<11x64xbf16>
    %c15 = arith.constant 15 : index
    %c0_207 = arith.constant 0 : index
    %c0_208 = arith.constant 0 : index
    %257 = vector.load %arg4[%c15, %c0_207, %c0_208] : memref<55x64x64xbf16, #tpu.memory_space<vmem>>, vector<1x64x64xbf16>
    %258 = vector.shape_cast %257 : vector<1x64x64xbf16> to vector<64x64xbf16>
    %cst_209 = arith.constant dense<0.000000e+00> : vector<11x64xf32>
    %259 = tpu.matmul %256, %258, %cst_209 {dimension_numbers = #tpu.dot_dimension_numbers<[1], [0], [0], [1], [0, 0, 1, 1], [], []>} : vector<11x64xbf16>, vector<64x64xbf16>, vector<11x64xf32> -> vector<11x64xf32>
    %260 = arith.addf %254, %259 : vector<11x64xf32>
    %c6_210 = arith.constant 6 : index
    %c0_211 = arith.constant 0 : index
    %261 = vector.load %arg5[%c6_210, %c0_211] : memref<24x64xf32, #tpu.memory_space<vmem>>, vector<1x64xf32>
    %262 = vector.broadcast %261 : vector<1x64xf32> to vector<11x64xf32>
    %263 = arith.addf %260, %262 : vector<11x64xf32>
    %264 = vector.broadcast %41 : vector<11x1xf32> to vector<11x64xf32>
    %265 = arith.mulf %263, %264 : vector<11x64xf32>
    %c3_212 = arith.constant 3 : index
    %c0_213 = arith.constant 0 : index
    %266 = vector.load %arg17[%c3_212, %c0_213] : memref<17x64xf32, #tpu.memory_space<vmem>>, vector<11x64xf32>
    tpu.vector_store %arg17[%c3_212, %c0_213], %265 {strides = array<i32>} : memref<17x64xf32, #tpu.memory_space<vmem>>, vector<11x64xf32>,
    %c7_214 = arith.constant 7 : index
    %c0_215 = arith.constant 0 : index
    %267 = vector.load %arg5[%c7_214, %c0_215] : memref<24x64xf32, #tpu.memory_space<vmem>>, vector<1x64xf32>
    %c2_216 = arith.constant 2 : index
    %c0_217 = arith.constant 0 : index
    %268 = vector.load %arg17[%c2_216, %c0_217] : memref<17x64xf32, #tpu.memory_space<vmem>>, vector<11x64xf32>
    %cst_218 = arith.constant 0.000000e+00 : f32
    %269 = vector.broadcast %cst_218 : f32 to vector<11x64xf32>
    %270 = arith.maximumf %268, %269 : vector<11x64xf32>
    %271 = arith.truncf %270 : vector<11x64xf32> to vector<11x64xbf16>
    %c16 = arith.constant 16 : index
    %c0_219 = arith.constant 0 : index
    %c0_220 = arith.constant 0 : index
    %272 = vector.load %arg4[%c16, %c0_219, %c0_220] : memref<55x64x64xbf16, #tpu.memory_space<vmem>>, vector<1x64x64xbf16>
    %273 = vector.shape_cast %272 : vector<1x64x64xbf16> to vector<64x64xbf16>
    %cst_221 = arith.constant dense<0.000000e+00> : vector<11x64xf32>
    %274 = tpu.matmul %271, %273, %cst_221 {dimension_numbers = #tpu.dot_dimension_numbers<[1], [0], [0], [1], [0, 0, 1, 1], [], []>} : vector<11x64xbf16>, vector<64x64xbf16>, vector<11x64xf32> -> vector<11x64xf32>
    %c3_222 = arith.constant 3 : index
    %c0_223 = arith.constant 0 : index
    %275 = vector.load %arg17[%c3_222, %c0_223] : memref<17x64xf32, #tpu.memory_space<vmem>>, vector<11x64xf32>
    %cst_224 = arith.constant 0.000000e+00 : f32
    %276 = vector.broadcast %cst_224 : f32 to vector<11x64xf32>
    %277 = arith.maximumf %275, %276 : vector<11x64xf32>
    %278 = arith.truncf %277 : vector<11x64xf32> to vector<11x64xbf16>
    %c17 = arith.constant 17 : index
    %c0_225 = arith.constant 0 : index
    %c0_226 = arith.constant 0 : index
    %279 = vector.load %arg4[%c17, %c0_225, %c0_226] : memref<55x64x64xbf16, #tpu.memory_space<vmem>>, vector<1x64x64xbf16>
    %280 = vector.shape_cast %279 : vector<1x64x64xbf16> to vector<64x64xbf16>
    %cst_227 = arith.constant dense<0.000000e+00> : vector<11x64xf32>
    %281 = tpu.matmul %278, %280, %cst_227 {dimension_numbers = #tpu.dot_dimension_numbers<[1], [0], [0], [1], [0, 0, 1, 1], [], []>} : vector<11x64xbf16>, vector<64x64xbf16>, vector<11x64xf32> -> vector<11x64xf32>
    %282 = arith.addf %274, %281 : vector<11x64xf32>
    %c4_228 = arith.constant 4 : index
    %c0_229 = arith.constant 0 : index
    %283 = vector.load %arg17[%c4_228, %c0_229] : memref<17x64xf32, #tpu.memory_space<vmem>>, vector<11x64xf32>
    %cst_230 = arith.constant 0.000000e+00 : f32
    %284 = vector.broadcast %cst_230 : f32 to vector<11x64xf32>
    %285 = arith.maximumf %283, %284 : vector<11x64xf32>
    %286 = arith.truncf %285 : vector<11x64xf32> to vector<11x64xbf16>
    %c18 = arith.constant 18 : index
    %c0_231 = arith.constant 0 : index
    %c0_232 = arith.constant 0 : index
    %287 = vector.load %arg4[%c18, %c0_231, %c0_232] : memref<55x64x64xbf16, #tpu.memory_space<vmem>>, vector<1x64x64xbf16>
    %288 = vector.shape_cast %287 : vector<1x64x64xbf16> to vector<64x64xbf16>
    %cst_233 = arith.constant dense<0.000000e+00> : vector<11x64xf32>
    %289 = tpu.matmul %286, %288, %cst_233 {dimension_numbers = #tpu.dot_dimension_numbers<[1], [0], [0], [1], [0, 0, 1, 1], [], []>} : vector<11x64xbf16>, vector<64x64xbf16>, vector<11x64xf32> -> vector<11x64xf32>
    %290 = arith.addf %282, %289 : vector<11x64xf32>
    %291 = vector.broadcast %267 : vector<1x64xf32> to vector<11x64xf32>
    %292 = arith.addf %290, %291 : vector<11x64xf32>
    %cst_234 = arith.constant 0.000000e+00 : f32
    %293 = vector.broadcast %cst_234 : f32 to vector<11x64xf32>
    %294 = arith.maximumf %292, %293 : vector<11x64xf32>
    %295 = arith.truncf %294 : vector<11x64xf32> to vector<11x64xbf16>
    %c19 = arith.constant 19 : index
    %c0_235 = arith.constant 0 : index
    %c0_236 = arith.constant 0 : index
    %296 = vector.load %arg4[%c19, %c0_235, %c0_236] : memref<55x64x64xbf16, #tpu.memory_space<vmem>>, vector<1x64x64xbf16>
    %297 = vector.shape_cast %296 : vector<1x64x64xbf16> to vector<64x64xbf16>
    %cst_237 = arith.constant dense<0.000000e+00> : vector<11x64xf32>
    %298 = tpu.matmul %295, %297, %cst_237 {dimension_numbers = #tpu.dot_dimension_numbers<[1], [0], [0], [1], [0, 0, 1, 1], [], []>} : vector<11x64xbf16>, vector<64x64xbf16>, vector<11x64xf32> -> vector<11x64xf32>
    %c8_238 = arith.constant 8 : index
    %c0_239 = arith.constant 0 : index
    %299 = vector.load %arg5[%c8_238, %c0_239] : memref<24x64xf32, #tpu.memory_space<vmem>>, vector<1x64xf32>
    %300 = vector.broadcast %299 : vector<1x64xf32> to vector<11x64xf32>
    %301 = arith.addf %298, %300 : vector<11x64xf32>
    %c3_240 = arith.constant 3 : index
    %c0_241 = arith.constant 0 : index
    %302 = vector.load %arg17[%c3_240, %c0_241] : memref<17x64xf32, #tpu.memory_space<vmem>>, vector<11x64xf32>
    %303 = vector.broadcast %41 : vector<11x1xf32> to vector<11x64xf32>
    %304 = arith.mulf %301, %303 : vector<11x64xf32>
    %305 = arith.addf %302, %304 : vector<11x64xf32>
    %c3_242 = arith.constant 3 : index
    %c0_243 = arith.constant 0 : index
    %306 = vector.load %arg17[%c3_242, %c0_243] : memref<17x64xf32, #tpu.memory_space<vmem>>, vector<11x64xf32>
    tpu.vector_store %arg17[%c3_242, %c0_243], %305 {strides = array<i32>} : memref<17x64xf32, #tpu.memory_space<vmem>>, vector<11x64xf32>,
    %c9_244 = arith.constant 9 : index
    %c0_245 = arith.constant 0 : index
    %307 = vector.load %arg5[%c9_244, %c0_245] : memref<24x64xf32, #tpu.memory_space<vmem>>, vector<1x64xf32>
    %c0_246 = arith.constant 0 : index
    %c0_247 = arith.constant 0 : index
    %308 = vector.load %arg17[%c0_246, %c0_247] : memref<17x64xf32, #tpu.memory_space<vmem>>, vector<11x64xf32>
    %cst_248 = arith.constant 0.000000e+00 : f32
    %309 = vector.broadcast %cst_248 : f32 to vector<11x64xf32>
    %310 = arith.maximumf %308, %309 : vector<11x64xf32>
    %311 = arith.truncf %310 : vector<11x64xf32> to vector<11x64xbf16>
    %c20 = arith.constant 20 : index
    %c0_249 = arith.constant 0 : index
    %c0_250 = arith.constant 0 : index
    %312 = vector.load %arg4[%c20, %c0_249, %c0_250] : memref<55x64x64xbf16, #tpu.memory_space<vmem>>, vector<1x64x64xbf16>
    %313 = vector.shape_cast %312 : vector<1x64x64xbf16> to vector<64x64xbf16>
    %cst_251 = arith.constant dense<0.000000e+00> : vector<11x64xf32>
    %314 = tpu.matmul %311, %313, %cst_251 {dimension_numbers = #tpu.dot_dimension_numbers<[1], [0], [0], [1], [0, 0, 1, 1], [], []>} : vector<11x64xbf16>, vector<64x64xbf16>, vector<11x64xf32> -> vector<11x64xf32>
    %c3_252 = arith.constant 3 : index
    %c0_253 = arith.constant 0 : index
    %315 = vector.load %arg17[%c3_252, %c0_253] : memref<17x64xf32, #tpu.memory_space<vmem>>, vector<11x64xf32>
    %cst_254 = arith.constant 0.000000e+00 : f32
    %316 = vector.broadcast %cst_254 : f32 to vector<11x64xf32>
    %317 = arith.maximumf %315, %316 : vector<11x64xf32>
    %318 = arith.truncf %317 : vector<11x64xf32> to vector<11x64xbf16>
    %c21 = arith.constant 21 : index
    %c0_255 = arith.constant 0 : index
    %c0_256 = arith.constant 0 : index
    %319 = vector.load %arg4[%c21, %c0_255, %c0_256] : memref<55x64x64xbf16, #tpu.memory_space<vmem>>, vector<1x64x64xbf16>
    %320 = vector.shape_cast %319 : vector<1x64x64xbf16> to vector<64x64xbf16>
    %cst_257 = arith.constant dense<0.000000e+00> : vector<11x64xf32>
    %321 = tpu.matmul %318, %320, %cst_257 {dimension_numbers = #tpu.dot_dimension_numbers<[1], [0], [0], [1], [0, 0, 1, 1], [], []>} : vector<11x64xbf16>, vector<64x64xbf16>, vector<11x64xf32> -> vector<11x64xf32>
    %322 = arith.addf %314, %321 : vector<11x64xf32>
    %c6_258 = arith.constant 6 : index
    %c0_259 = arith.constant 0 : index
    %323 = vector.load %arg17[%c6_258, %c0_259] : memref<17x64xf32, #tpu.memory_space<vmem>>, vector<11x64xf32>
    %cst_260 = arith.constant 0.000000e+00 : f32
    %324 = vector.broadcast %cst_260 : f32 to vector<11x64xf32>
    %325 = arith.maximumf %323, %324 : vector<11x64xf32>
    %326 = arith.truncf %325 : vector<11x64xf32> to vector<11x64xbf16>
    %c22 = arith.constant 22 : index
    %c0_261 = arith.constant 0 : index
    %c0_262 = arith.constant 0 : index
    %327 = vector.load %arg4[%c22, %c0_261, %c0_262] : memref<55x64x64xbf16, #tpu.memory_space<vmem>>, vector<1x64x64xbf16>
    %328 = vector.shape_cast %327 : vector<1x64x64xbf16> to vector<64x64xbf16>
    %cst_263 = arith.constant dense<0.000000e+00> : vector<11x64xf32>
    %329 = tpu.matmul %326, %328, %cst_263 {dimension_numbers = #tpu.dot_dimension_numbers<[1], [0], [0], [1], [0, 0, 1, 1], [], []>} : vector<11x64xbf16>, vector<64x64xbf16>, vector<11x64xf32> -> vector<11x64xf32>
    %330 = arith.addf %322, %329 : vector<11x64xf32>
    %331 = vector.broadcast %307 : vector<1x64xf32> to vector<11x64xf32>
    %332 = arith.addf %330, %331 : vector<11x64xf32>
    %cst_264 = arith.constant 0.000000e+00 : f32
    %333 = vector.broadcast %cst_264 : f32 to vector<11x64xf32>
    %334 = arith.maximumf %332, %333 : vector<11x64xf32>
    %335 = arith.truncf %334 : vector<11x64xf32> to vector<11x64xbf16>
    %c23 = arith.constant 23 : index
    %c0_265 = arith.constant 0 : index
    %c0_266 = arith.constant 0 : index
    %336 = vector.load %arg4[%c23, %c0_265, %c0_266] : memref<55x64x64xbf16, #tpu.memory_space<vmem>>, vector<1x64x64xbf16>
    %337 = vector.shape_cast %336 : vector<1x64x64xbf16> to vector<64x64xbf16>
    %cst_267 = arith.constant dense<0.000000e+00> : vector<11x64xf32>
    %338 = tpu.matmul %335, %337, %cst_267 {dimension_numbers = #tpu.dot_dimension_numbers<[1], [0], [0], [1], [0, 0, 1, 1], [], []>} : vector<11x64xbf16>, vector<64x64xbf16>, vector<11x64xf32> -> vector<11x64xf32>
    %c10_268 = arith.constant 10 : index
    %c0_269 = arith.constant 0 : index
    %339 = vector.load %arg5[%c10_268, %c0_269] : memref<24x64xf32, #tpu.memory_space<vmem>>, vector<1x64xf32>
    %340 = vector.broadcast %339 : vector<1x64xf32> to vector<11x64xf32>
    %341 = arith.addf %338, %340 : vector<11x64xf32>
    %c3_270 = arith.constant 3 : index
    %c0_271 = arith.constant 0 : index
    %342 = vector.load %arg17[%c3_270, %c0_271] : memref<17x64xf32, #tpu.memory_space<vmem>>, vector<11x64xf32>
    %343 = vector.broadcast %41 : vector<11x1xf32> to vector<11x64xf32>
    %344 = arith.mulf %341, %343 : vector<11x64xf32>
    %345 = arith.addf %342, %344 : vector<11x64xf32>
    %c3_272 = arith.constant 3 : index
    %c0_273 = arith.constant 0 : index
    %346 = vector.load %arg17[%c3_272, %c0_273] : memref<17x64xf32, #tpu.memory_space<vmem>>, vector<11x64xf32>
    tpu.vector_store %arg17[%c3_272, %c0_273], %345 {strides = array<i32>} : memref<17x64xf32, #tpu.memory_space<vmem>>, vector<11x64xf32>,
    %c11_274 = arith.constant 11 : index
    %c0_275 = arith.constant 0 : index
    %347 = vector.load %arg5[%c11_274, %c0_275] : memref<24x64xf32, #tpu.memory_space<vmem>>, vector<1x64xf32>
    %c2_276 = arith.constant 2 : index
    %c0_277 = arith.constant 0 : index
    %348 = vector.load %arg17[%c2_276, %c0_277] : memref<17x64xf32, #tpu.memory_space<vmem>>, vector<11x64xf32>
    %349 = arith.truncf %348 : vector<11x64xf32> to vector<11x64xbf16>
    %c24 = arith.constant 24 : index
    %c0_278 = arith.constant 0 : index
    %c0_279 = arith.constant 0 : index
    %350 = vector.load %arg4[%c24, %c0_278, %c0_279] : memref<55x64x64xbf16, #tpu.memory_space<vmem>>, vector<1x64x64xbf16>
    %351 = vector.shape_cast %350 : vector<1x64x64xbf16> to vector<64x64xbf16>
    %cst_280 = arith.constant dense<0.000000e+00> : vector<11x64xf32>
    %352 = tpu.matmul %349, %351, %cst_280 {dimension_numbers = #tpu.dot_dimension_numbers<[1], [0], [0], [1], [0, 0, 1, 1], [], []>} : vector<11x64xbf16>, vector<64x64xbf16>, vector<11x64xf32> -> vector<11x64xf32>
    %c3_281 = arith.constant 3 : index
    %c0_282 = arith.constant 0 : index
    %353 = vector.load %arg17[%c3_281, %c0_282] : memref<17x64xf32, #tpu.memory_space<vmem>>, vector<11x64xf32>
    %354 = arith.truncf %353 : vector<11x64xf32> to vector<11x64xbf16>
    %c25 = arith.constant 25 : index
    %c0_283 = arith.constant 0 : index
    %c0_284 = arith.constant 0 : index
    %355 = vector.load %arg4[%c25, %c0_283, %c0_284] : memref<55x64x64xbf16, #tpu.memory_space<vmem>>, vector<1x64x64xbf16>
    %356 = vector.shape_cast %355 : vector<1x64x64xbf16> to vector<64x64xbf16>
    %cst_285 = arith.constant dense<0.000000e+00> : vector<11x64xf32>
    %357 = tpu.matmul %354, %356, %cst_285 {dimension_numbers = #tpu.dot_dimension_numbers<[1], [0], [0], [1], [0, 0, 1, 1], [], []>} : vector<11x64xbf16>, vector<64x64xbf16>, vector<11x64xf32> -> vector<11x64xf32>
    %358 = arith.addf %352, %357 : vector<11x64xf32>
    %c4_286 = arith.constant 4 : index
    %c0_287 = arith.constant 0 : index
    %359 = vector.load %arg17[%c4_286, %c0_287] : memref<17x64xf32, #tpu.memory_space<vmem>>, vector<11x64xf32>
    %360 = arith.truncf %359 : vector<11x64xf32> to vector<11x64xbf16>
    %c26 = arith.constant 26 : index
    %c0_288 = arith.constant 0 : index
    %c0_289 = arith.constant 0 : index
    %361 = vector.load %arg4[%c26, %c0_288, %c0_289] : memref<55x64x64xbf16, #tpu.memory_space<vmem>>, vector<1x64x64xbf16>
    %362 = vector.shape_cast %361 : vector<1x64x64xbf16> to vector<64x64xbf16>
    %cst_290 = arith.constant dense<0.000000e+00> : vector<11x64xf32>
    %363 = tpu.matmul %360, %362, %cst_290 {dimension_numbers = #tpu.dot_dimension_numbers<[1], [0], [0], [1], [0, 0, 1, 1], [], []>} : vector<11x64xbf16>, vector<64x64xbf16>, vector<11x64xf32> -> vector<11x64xf32>
    %364 = arith.addf %358, %363 : vector<11x64xf32>
    %365 = vector.broadcast %347 : vector<1x64xf32> to vector<11x64xf32>
    %366 = arith.addf %364, %365 : vector<11x64xf32>
    %367 = vector.extract_strided_slice %366 {offsets = [0, 0], sizes = [4, 64], strides = [1, 1]} : vector<11x64xf32> to vector<4x64xf32>
    %c0_291 = arith.constant 0 : index
    %c0_292 = arith.constant 0 : index
    %368 = vector.load %arg18[%c0_291, %c0_292] : memref<8x64xf32, #tpu.memory_space<vmem>>, vector<4x64xf32>
    tpu.vector_store %arg18[%c0_291, %c0_292], %367 {strides = array<i32>} : memref<8x64xf32, #tpu.memory_space<vmem>>, vector<4x64xf32>,
    %369 = vector.extract_strided_slice %366 {offsets = [7, 0], sizes = [4, 64], strides = [1, 1]} : vector<11x64xf32> to vector<4x64xf32>
    %c4_293 = arith.constant 4 : index
    %c0_294 = arith.constant 0 : index
    %370 = vector.load %arg18[%c4_293, %c0_294] : memref<8x64xf32, #tpu.memory_space<vmem>>, vector<4x64xf32>
    tpu.vector_store %arg18[%c4_293, %c0_294], %369 {strides = array<i32>} : memref<8x64xf32, #tpu.memory_space<vmem>>, vector<4x64xf32>,
    %c0_295 = arith.constant 0 : index
    %c0_296 = arith.constant 0 : index
    %371 = vector.load %arg18[%c0_295, %c0_296] : memref<8x64xf32, #tpu.memory_space<vmem>>, vector<8x64xf32>
    %cst_297 = arith.constant 0.000000e+00 : f32
    %372 = vector.broadcast %cst_297 : f32 to vector<8x64xf32>
    %c0_298 = arith.constant 0 : index
    %c0_299 = arith.constant 0 : index
    %c0_300 = arith.constant 0 : index
    %373 = vector.load %arg7[%c0_298, %c0_299, %c0_300] : memref<2x128x64xf32, #tpu.memory_space<vmem>>, vector<1x128x64xf32>
    %374 = vector.shape_cast %373 : vector<1x128x64xf32> to vector<128x64xf32>
    %c0_301 = arith.constant 0 : index
    %c0_302 = arith.constant 0 : index
    %375 = vector.load %arg8[%c0_301, %c0_302] : memref<2x128xf32, #tpu.memory_space<vmem>>, vector<1x128xf32>
    %376 = arith.mulf %371, %371 : vector<8x64xf32>
    %cst_303 = arith.constant dense<0.000000e+00> : vector<8xf32>
    %377 = vector.multi_reduction <add>, %376, %cst_303 [1] : vector<8x64xf32> to vector<8xf32>
    %378 = vector.shape_cast %377 : vector<8xf32> to vector<8x1xf32>
    %cst_304 = arith.constant dense<0.000000e+00> : vector<8x128xf32>
    %379 = tpu.matmul %371, %374, %cst_304 {dimension_numbers = #tpu.dot_dimension_numbers<[1], [1], [0], [0], [0, 0, 1, 0], [], []>} : vector<8x64xf32>, vector<128x64xf32>, vector<8x128xf32> -> vector<8x128xf32>
    %cst_305 = arith.constant 2.000000e+00 : f32
    %380 = vector.broadcast %cst_305 : f32 to vector<8x128xf32>
    %381 = arith.mulf %380, %379 : vector<8x128xf32>
    %382 = vector.broadcast %378 : vector<8x1xf32> to vector<8x128xf32>
    %383 = arith.subf %382, %381 : vector<8x128xf32>
    %384 = vector.broadcast %375 : vector<1x128xf32> to vector<8x128xf32>
    %385 = arith.addf %383, %384 : vector<8x128xf32>
    %cst_306 = arith.constant dense<0x7F800000> : vector<8xf32>
    %386 = vector.multi_reduction <minimumf>, %385, %cst_306 [1] : vector<8x128xf32> to vector<8xf32>
    %387 = vector.shape_cast %386 : vector<8xf32> to vector<8x1xf32>
    %388 = tpu.iota {dimensions = array<i32: 1>} : vector<8x128xi32>
    %389 = vector.broadcast %387 : vector<8x1xf32> to vector<8x128xf32>
    %390 = arith.cmpf ole, %385, %389 : vector<8x128xf32>
    %c1073741824_i32 = arith.constant 1073741824 : i32
    %391 = vector.broadcast %c1073741824_i32 : i32 to vector<8x128xi32>
    %392 = arith.select %390, %388, %391 : vector<8x128xi1>, vector<8x128xi32>
    %cst_307 = arith.constant dense<2147483647> : vector<8xi32>
    %393 = vector.multi_reduction <minsi>, %392, %cst_307 [1] : vector<8x128xi32> to vector<8xi32>
    %394 = vector.shape_cast %393 : vector<8xi32> to vector<8x1xi32>
    %395 = vector.broadcast %394 : vector<8x1xi32> to vector<8x128xi32>
    %396 = arith.cmpi eq, %388, %395 : vector<8x128xi32>
    %397 = arith.extui %396 : vector<8x128xi1> to vector<8x128xi32>
    %398 = arith.sitofp %397 : vector<8x128xi32> to vector<8x128xf32>
    %cst_308 = arith.constant dense<0.000000e+00> : vector<8x64xf32>
    %399 = tpu.matmul %398, %374, %cst_308 {dimension_numbers = #tpu.dot_dimension_numbers<[1], [0], [0], [1], [0, 0, 1, 1], [], []>} : vector<8x128xf32>, vector<128x64xf32>, vector<8x64xf32> -> vector<8x64xf32>
    %400 = arith.subf %371, %399 : vector<8x64xf32>
    %401 = arith.mulf %400, %400 : vector<8x64xf32>
    %cst_309 = arith.constant dense<0.000000e+00> : vector<8xf32>
    %402 = vector.multi_reduction <add>, %401, %cst_309 [1] : vector<8x64xf32> to vector<8xf32>
    %403 = vector.shape_cast %402 : vector<8xf32> to vector<8x1xf32>
    %cst_310 = arith.constant dense<0.000000e+00> : vector<1xf32>
    %404 = vector.multi_reduction <add>, %403, %cst_310 [0] : vector<8x1xf32> to vector<1xf32>
    %405 = vector.shape_cast %404 : vector<1xf32> to vector<1x1xf32>
    %cst_311 = arith.constant 5.120000e+02 : f32
    %406 = vector.broadcast %cst_311 : f32 to vector<1x1xf32>
    %407 = arith.divf %405, %406 : vector<1x1xf32>
    %cst_312 = arith.constant 0.000000e+00 : f32
    %408 = vector.broadcast %cst_312 : f32 to vector<1x128xf32>
    %409 = vector.broadcast %407 : vector<1x1xf32> to vector<1x128xf32>
    %410 = arith.addf %409, %408 : vector<1x128xf32>
    %c0_313 = arith.constant 0 : index
    %c0_314 = arith.constant 0 : index
    %411 = vector.load %arg13[%c0_313, %c0_314] : memref<2x128xf32, #tpu.memory_space<vmem>>, vector<1x128xf32>
    tpu.vector_store %arg13[%c0_313, %c0_314], %410 {strides = array<i32>} : memref<2x128xf32, #tpu.memory_space<vmem>>, vector<1x128xf32>,
    %cst_315 = arith.constant dense<0.000000e+00> : vector<128xf32>
    %412 = vector.multi_reduction <add>, %398, %cst_315 [0] : vector<8x128xf32> to vector<128xf32>
    %413 = vector.shape_cast %412 : vector<128xf32> to vector<1x128xf32>
    %cst_316 = arith.constant 8.000000e+00 : f32
    %414 = vector.broadcast %cst_316 : f32 to vector<1x128xf32>
    %415 = arith.divf %413, %414 : vector<1x128xf32>
    %c0_317 = arith.constant 0 : index
    %c0_318 = arith.constant 0 : index
    %416 = vector.load %arg12[%c0_317, %c0_318] : memref<2x128xf32, #tpu.memory_space<vmem>>, vector<1x128xf32>
    tpu.vector_store %arg12[%c0_317, %c0_318], %415 {strides = array<i32>} : memref<2x128xf32, #tpu.memory_space<vmem>>, vector<1x128xf32>,
    %417 = arith.addf %372, %399 : vector<8x64xf32>
    %418 = arith.subf %371, %399 : vector<8x64xf32>
    %c1_319 = arith.constant 1 : index
    %c0_320 = arith.constant 0 : index
    %c0_321 = arith.constant 0 : index
    %419 = vector.load %arg7[%c1_319, %c0_320, %c0_321] : memref<2x128x64xf32, #tpu.memory_space<vmem>>, vector<1x128x64xf32>
    %420 = vector.shape_cast %419 : vector<1x128x64xf32> to vector<128x64xf32>
    %c1_322 = arith.constant 1 : index
    %c0_323 = arith.constant 0 : index
    %421 = vector.load %arg8[%c1_322, %c0_323] : memref<2x128xf32, #tpu.memory_space<vmem>>, vector<1x128xf32>
    %422 = arith.mulf %418, %418 : vector<8x64xf32>
    %cst_324 = arith.constant dense<0.000000e+00> : vector<8xf32>
    %423 = vector.multi_reduction <add>, %422, %cst_324 [1] : vector<8x64xf32> to vector<8xf32>
    %424 = vector.shape_cast %423 : vector<8xf32> to vector<8x1xf32>
    %cst_325 = arith.constant dense<0.000000e+00> : vector<8x128xf32>
    %425 = tpu.matmul %418, %420, %cst_325 {dimension_numbers = #tpu.dot_dimension_numbers<[1], [1], [0], [0], [0, 0, 1, 0], [], []>} : vector<8x64xf32>, vector<128x64xf32>, vector<8x128xf32> -> vector<8x128xf32>
    %cst_326 = arith.constant 2.000000e+00 : f32
    %426 = vector.broadcast %cst_326 : f32 to vector<8x128xf32>
    %427 = arith.mulf %426, %425 : vector<8x128xf32>
    %428 = vector.broadcast %424 : vector<8x1xf32> to vector<8x128xf32>
    %429 = arith.subf %428, %427 : vector<8x128xf32>
    %430 = vector.broadcast %421 : vector<1x128xf32> to vector<8x128xf32>
    %431 = arith.addf %429, %430 : vector<8x128xf32>
    %cst_327 = arith.constant dense<0x7F800000> : vector<8xf32>
    %432 = vector.multi_reduction <minimumf>, %431, %cst_327 [1] : vector<8x128xf32> to vector<8xf32>
    %433 = vector.shape_cast %432 : vector<8xf32> to vector<8x1xf32>
    %434 = tpu.iota {dimensions = array<i32: 1>} : vector<8x128xi32>
    %435 = vector.broadcast %433 : vector<8x1xf32> to vector<8x128xf32>
    %436 = arith.cmpf ole, %431, %435 : vector<8x128xf32>
    %c1073741824_i32_328 = arith.constant 1073741824 : i32
    %437 = vector.broadcast %c1073741824_i32_328 : i32 to vector<8x128xi32>
    %438 = arith.select %436, %434, %437 : vector<8x128xi1>, vector<8x128xi32>
    %cst_329 = arith.constant dense<2147483647> : vector<8xi32>
    %439 = vector.multi_reduction <minsi>, %438, %cst_329 [1] : vector<8x128xi32> to vector<8xi32>
    %440 = vector.shape_cast %439 : vector<8xi32> to vector<8x1xi32>
    %441 = vector.broadcast %440 : vector<8x1xi32> to vector<8x128xi32>
    %442 = arith.cmpi eq, %434, %441 : vector<8x128xi32>
    %443 = arith.extui %442 : vector<8x128xi1> to vector<8x128xi32>
    %444 = arith.sitofp %443 : vector<8x128xi32> to vector<8x128xf32>
    %cst_330 = arith.constant dense<0.000000e+00> : vector<8x64xf32>
    %445 = tpu.matmul %444, %420, %cst_330 {dimension_numbers = #tpu.dot_dimension_numbers<[1], [0], [0], [1], [0, 0, 1, 1], [], []>} : vector<8x128xf32>, vector<128x64xf32>, vector<8x64xf32> -> vector<8x64xf32>
    %446 = arith.subf %418, %445 : vector<8x64xf32>
    %447 = arith.mulf %446, %446 : vector<8x64xf32>
    %cst_331 = arith.constant dense<0.000000e+00> : vector<8xf32>
    %448 = vector.multi_reduction <add>, %447, %cst_331 [1] : vector<8x64xf32> to vector<8xf32>
    %449 = vector.shape_cast %448 : vector<8xf32> to vector<8x1xf32>
    %cst_332 = arith.constant dense<0.000000e+00> : vector<1xf32>
    %450 = vector.multi_reduction <add>, %449, %cst_332 [0] : vector<8x1xf32> to vector<1xf32>
    %451 = vector.shape_cast %450 : vector<1xf32> to vector<1x1xf32>
    %cst_333 = arith.constant 5.120000e+02 : f32
    %452 = vector.broadcast %cst_333 : f32 to vector<1x1xf32>
    %453 = arith.divf %451, %452 : vector<1x1xf32>
    %cst_334 = arith.constant 0.000000e+00 : f32
    %454 = vector.broadcast %cst_334 : f32 to vector<1x128xf32>
    %455 = vector.broadcast %453 : vector<1x1xf32> to vector<1x128xf32>
    %456 = arith.addf %455, %454 : vector<1x128xf32>
    %c1_335 = arith.constant 1 : index
    %c0_336 = arith.constant 0 : index
    %457 = vector.load %arg13[%c1_335, %c0_336] : memref<2x128xf32, #tpu.memory_space<vmem>>, vector<1x128xf32>
    tpu.vector_store %arg13[%c1_335, %c0_336], %456 {strides = array<i32>} : memref<2x128xf32, #tpu.memory_space<vmem>>, vector<1x128xf32>,
    %cst_337 = arith.constant dense<0.000000e+00> : vector<128xf32>
    %458 = vector.multi_reduction <add>, %444, %cst_337 [0] : vector<8x128xf32> to vector<128xf32>
    %459 = vector.shape_cast %458 : vector<128xf32> to vector<1x128xf32>
    %cst_338 = arith.constant 8.000000e+00 : f32
    %460 = vector.broadcast %cst_338 : f32 to vector<1x128xf32>
    %461 = arith.divf %459, %460 : vector<1x128xf32>
    %c1_339 = arith.constant 1 : index
    %c0_340 = arith.constant 0 : index
    %462 = vector.load %arg12[%c1_339, %c0_340] : memref<2x128xf32, #tpu.memory_space<vmem>>, vector<1x128xf32>
    tpu.vector_store %arg12[%c1_339, %c0_340], %461 {strides = array<i32>} : memref<2x128xf32, #tpu.memory_space<vmem>>, vector<1x128xf32>,
    %463 = arith.addf %417, %445 : vector<8x64xf32>
    %464 = vector.extract_strided_slice %463 {offsets = [0, 0], sizes = [4, 64], strides = [1, 1]} : vector<8x64xf32> to vector<4x64xf32>
    %c3_341 = arith.constant 3 : index
    %c0_342 = arith.constant 0 : index
    %465 = vector.load %arg19[%c3_341, %c0_342] : memref<17x64xf32, #tpu.memory_space<vmem>>, vector<4x64xf32>
    tpu.vector_store %arg19[%c3_341, %c0_342], %464 {strides = array<i32>} : memref<17x64xf32, #tpu.memory_space<vmem>>, vector<4x64xf32>,
    %466 = vector.extract_strided_slice %463 {offsets = [4, 0], sizes = [4, 64], strides = [1, 1]} : vector<8x64xf32> to vector<4x64xf32>
    %c10_343 = arith.constant 10 : index
    %c0_344 = arith.constant 0 : index
    %467 = vector.load %arg19[%c10_343, %c0_344] : memref<17x64xf32, #tpu.memory_space<vmem>>, vector<4x64xf32>
    tpu.vector_store %arg19[%c10_343, %c0_344], %466 {strides = array<i32>} : memref<17x64xf32, #tpu.memory_space<vmem>>, vector<4x64xf32>,
    %c12_345 = arith.constant 12 : index
    %c0_346 = arith.constant 0 : index
    %468 = vector.load %arg5[%c12_345, %c0_346] : memref<24x64xf32, #tpu.memory_space<vmem>>, vector<1x64xf32>
    %c2_347 = arith.constant 2 : index
    %c0_348 = arith.constant 0 : index
    %469 = vector.load %arg19[%c2_347, %c0_348] : memref<17x64xf32, #tpu.memory_space<vmem>>, vector<11x64xf32>
    %470 = arith.truncf %469 : vector<11x64xf32> to vector<11x64xbf16>
    %c27 = arith.constant 27 : index
    %c0_349 = arith.constant 0 : index
    %c0_350 = arith.constant 0 : index
    %471 = vector.load %arg4[%c27, %c0_349, %c0_350] : memref<55x64x64xbf16, #tpu.memory_space<vmem>>, vector<1x64x64xbf16>
    %472 = vector.shape_cast %471 : vector<1x64x64xbf16> to vector<64x64xbf16>
    %cst_351 = arith.constant dense<0.000000e+00> : vector<11x64xf32>
    %473 = tpu.matmul %470, %472, %cst_351 {dimension_numbers = #tpu.dot_dimension_numbers<[1], [0], [0], [1], [0, 0, 1, 1], [], []>} : vector<11x64xbf16>, vector<64x64xbf16>, vector<11x64xf32> -> vector<11x64xf32>
    %c3_352 = arith.constant 3 : index
    %c0_353 = arith.constant 0 : index
    %474 = vector.load %arg19[%c3_352, %c0_353] : memref<17x64xf32, #tpu.memory_space<vmem>>, vector<11x64xf32>
    %475 = arith.truncf %474 : vector<11x64xf32> to vector<11x64xbf16>
    %c28_354 = arith.constant 28 : index
    %c0_355 = arith.constant 0 : index
    %c0_356 = arith.constant 0 : index
    %476 = vector.load %arg4[%c28_354, %c0_355, %c0_356] : memref<55x64x64xbf16, #tpu.memory_space<vmem>>, vector<1x64x64xbf16>
    %477 = vector.shape_cast %476 : vector<1x64x64xbf16> to vector<64x64xbf16>
    %cst_357 = arith.constant dense<0.000000e+00> : vector<11x64xf32>
    %478 = tpu.matmul %475, %477, %cst_357 {dimension_numbers = #tpu.dot_dimension_numbers<[1], [0], [0], [1], [0, 0, 1, 1], [], []>} : vector<11x64xbf16>, vector<64x64xbf16>, vector<11x64xf32> -> vector<11x64xf32>
    %479 = arith.addf %473, %478 : vector<11x64xf32>
    %c4_358 = arith.constant 4 : index
    %c0_359 = arith.constant 0 : index
    %480 = vector.load %arg19[%c4_358, %c0_359] : memref<17x64xf32, #tpu.memory_space<vmem>>, vector<11x64xf32>
    %481 = arith.truncf %480 : vector<11x64xf32> to vector<11x64xbf16>
    %c29 = arith.constant 29 : index
    %c0_360 = arith.constant 0 : index
    %c0_361 = arith.constant 0 : index
    %482 = vector.load %arg4[%c29, %c0_360, %c0_361] : memref<55x64x64xbf16, #tpu.memory_space<vmem>>, vector<1x64x64xbf16>
    %483 = vector.shape_cast %482 : vector<1x64x64xbf16> to vector<64x64xbf16>
    %cst_362 = arith.constant dense<0.000000e+00> : vector<11x64xf32>
    %484 = tpu.matmul %481, %483, %cst_362 {dimension_numbers = #tpu.dot_dimension_numbers<[1], [0], [0], [1], [0, 0, 1, 1], [], []>} : vector<11x64xbf16>, vector<64x64xbf16>, vector<11x64xf32> -> vector<11x64xf32>
    %485 = arith.addf %479, %484 : vector<11x64xf32>
    %486 = vector.broadcast %468 : vector<1x64xf32> to vector<11x64xf32>
    %487 = arith.addf %485, %486 : vector<11x64xf32>
    %cst_363 = arith.constant 0.000000e+00 : f32
    %488 = vector.broadcast %cst_363 : f32 to vector<11x64xf32>
    %489 = arith.maximumf %487, %488 : vector<11x64xf32>
    %490 = vector.broadcast %41 : vector<11x1xf32> to vector<11x64xf32>
    %491 = arith.mulf %489, %490 : vector<11x64xf32>
    %c3_364 = arith.constant 3 : index
    %c0_365 = arith.constant 0 : index
    %492 = vector.load %arg20[%c3_364, %c0_365] : memref<17x64xf32, #tpu.memory_space<vmem>>, vector<11x64xf32>
    tpu.vector_store %arg20[%c3_364, %c0_365], %491 {strides = array<i32>} : memref<17x64xf32, #tpu.memory_space<vmem>>, vector<11x64xf32>,
    %c13_366 = arith.constant 13 : index
    %c0_367 = arith.constant 0 : index
    %493 = vector.load %arg5[%c13_366, %c0_367] : memref<24x64xf32, #tpu.memory_space<vmem>>, vector<1x64xf32>
    %c0_368 = arith.constant 0 : index
    %c0_369 = arith.constant 0 : index
    %494 = vector.load %arg20[%c0_368, %c0_369] : memref<17x64xf32, #tpu.memory_space<vmem>>, vector<11x64xf32>
    %cst_370 = arith.constant 0.000000e+00 : f32
    %495 = vector.broadcast %cst_370 : f32 to vector<11x64xf32>
    %496 = arith.maximumf %494, %495 : vector<11x64xf32>
    %497 = arith.truncf %496 : vector<11x64xf32> to vector<11x64xbf16>
    %c30 = arith.constant 30 : index
    %c0_371 = arith.constant 0 : index
    %c0_372 = arith.constant 0 : index
    %498 = vector.load %arg4[%c30, %c0_371, %c0_372] : memref<55x64x64xbf16, #tpu.memory_space<vmem>>, vector<1x64x64xbf16>
    %499 = vector.shape_cast %498 : vector<1x64x64xbf16> to vector<64x64xbf16>
    %cst_373 = arith.constant dense<0.000000e+00> : vector<11x64xf32>
    %500 = tpu.matmul %497, %499, %cst_373 {dimension_numbers = #tpu.dot_dimension_numbers<[1], [0], [0], [1], [0, 0, 1, 1], [], []>} : vector<11x64xbf16>, vector<64x64xbf16>, vector<11x64xf32> -> vector<11x64xf32>
    %c3_374 = arith.constant 3 : index
    %c0_375 = arith.constant 0 : index
    %501 = vector.load %arg20[%c3_374, %c0_375] : memref<17x64xf32, #tpu.memory_space<vmem>>, vector<11x64xf32>
    %cst_376 = arith.constant 0.000000e+00 : f32
    %502 = vector.broadcast %cst_376 : f32 to vector<11x64xf32>
    %503 = arith.maximumf %501, %502 : vector<11x64xf32>
    %504 = arith.truncf %503 : vector<11x64xf32> to vector<11x64xbf16>
    %c31 = arith.constant 31 : index
    %c0_377 = arith.constant 0 : index
    %c0_378 = arith.constant 0 : index
    %505 = vector.load %arg4[%c31, %c0_377, %c0_378] : memref<55x64x64xbf16, #tpu.memory_space<vmem>>, vector<1x64x64xbf16>
    %506 = vector.shape_cast %505 : vector<1x64x64xbf16> to vector<64x64xbf16>
    %cst_379 = arith.constant dense<0.000000e+00> : vector<11x64xf32>
    %507 = tpu.matmul %504, %506, %cst_379 {dimension_numbers = #tpu.dot_dimension_numbers<[1], [0], [0], [1], [0, 0, 1, 1], [], []>} : vector<11x64xbf16>, vector<64x64xbf16>, vector<11x64xf32> -> vector<11x64xf32>
    %508 = arith.addf %500, %507 : vector<11x64xf32>
    %c6_380 = arith.constant 6 : index
    %c0_381 = arith.constant 0 : index
    %509 = vector.load %arg20[%c6_380, %c0_381] : memref<17x64xf32, #tpu.memory_space<vmem>>, vector<11x64xf32>
    %cst_382 = arith.constant 0.000000e+00 : f32
    %510 = vector.broadcast %cst_382 : f32 to vector<11x64xf32>
    %511 = arith.maximumf %509, %510 : vector<11x64xf32>
    %512 = arith.truncf %511 : vector<11x64xf32> to vector<11x64xbf16>
    %c32 = arith.constant 32 : index
    %c0_383 = arith.constant 0 : index
    %c0_384 = arith.constant 0 : index
    %513 = vector.load %arg4[%c32, %c0_383, %c0_384] : memref<55x64x64xbf16, #tpu.memory_space<vmem>>, vector<1x64x64xbf16>
    %514 = vector.shape_cast %513 : vector<1x64x64xbf16> to vector<64x64xbf16>
    %cst_385 = arith.constant dense<0.000000e+00> : vector<11x64xf32>
    %515 = tpu.matmul %512, %514, %cst_385 {dimension_numbers = #tpu.dot_dimension_numbers<[1], [0], [0], [1], [0, 0, 1, 1], [], []>} : vector<11x64xbf16>, vector<64x64xbf16>, vector<11x64xf32> -> vector<11x64xf32>
    %516 = arith.addf %508, %515 : vector<11x64xf32>
    %517 = vector.broadcast %493 : vector<1x64xf32> to vector<11x64xf32>
    %518 = arith.addf %516, %517 : vector<11x64xf32>
    %cst_386 = arith.constant 0.000000e+00 : f32
    %519 = vector.broadcast %cst_386 : f32 to vector<11x64xf32>
    %520 = arith.maximumf %518, %519 : vector<11x64xf32>
    %521 = arith.truncf %520 : vector<11x64xf32> to vector<11x64xbf16>
    %c33 = arith.constant 33 : index
    %c0_387 = arith.constant 0 : index
    %c0_388 = arith.constant 0 : index
    %522 = vector.load %arg4[%c33, %c0_387, %c0_388] : memref<55x64x64xbf16, #tpu.memory_space<vmem>>, vector<1x64x64xbf16>
    %523 = vector.shape_cast %522 : vector<1x64x64xbf16> to vector<64x64xbf16>
    %cst_389 = arith.constant dense<0.000000e+00> : vector<11x64xf32>
    %524 = tpu.matmul %521, %523, %cst_389 {dimension_numbers = #tpu.dot_dimension_numbers<[1], [0], [0], [1], [0, 0, 1, 1], [], []>} : vector<11x64xbf16>, vector<64x64xbf16>, vector<11x64xf32> -> vector<11x64xf32>
    %c14_390 = arith.constant 14 : index
    %c0_391 = arith.constant 0 : index
    %525 = vector.load %arg5[%c14_390, %c0_391] : memref<24x64xf32, #tpu.memory_space<vmem>>, vector<1x64xf32>
    %526 = vector.broadcast %525 : vector<1x64xf32> to vector<11x64xf32>
    %527 = arith.addf %524, %526 : vector<11x64xf32>
    %c3_392 = arith.constant 3 : index
    %c0_393 = arith.constant 0 : index
    %528 = vector.load %arg20[%c3_392, %c0_393] : memref<17x64xf32, #tpu.memory_space<vmem>>, vector<11x64xf32>
    %529 = vector.broadcast %41 : vector<11x1xf32> to vector<11x64xf32>
    %530 = arith.mulf %527, %529 : vector<11x64xf32>
    %531 = arith.addf %528, %530 : vector<11x64xf32>
    %c3_394 = arith.constant 3 : index
    %c0_395 = arith.constant 0 : index
    %532 = vector.load %arg20[%c3_394, %c0_395] : memref<17x64xf32, #tpu.memory_space<vmem>>, vector<11x64xf32>
    tpu.vector_store %arg20[%c3_394, %c0_395], %531 {strides = array<i32>} : memref<17x64xf32, #tpu.memory_space<vmem>>, vector<11x64xf32>,
    %c15_396 = arith.constant 15 : index
    %c0_397 = arith.constant 0 : index
    %533 = vector.load %arg5[%c15_396, %c0_397] : memref<24x64xf32, #tpu.memory_space<vmem>>, vector<1x64xf32>
    %c2_398 = arith.constant 2 : index
    %c0_399 = arith.constant 0 : index
    %534 = vector.load %arg20[%c2_398, %c0_399] : memref<17x64xf32, #tpu.memory_space<vmem>>, vector<11x64xf32>
    %cst_400 = arith.constant 0.000000e+00 : f32
    %535 = vector.broadcast %cst_400 : f32 to vector<11x64xf32>
    %536 = arith.maximumf %534, %535 : vector<11x64xf32>
    %537 = arith.truncf %536 : vector<11x64xf32> to vector<11x64xbf16>
    %c34 = arith.constant 34 : index
    %c0_401 = arith.constant 0 : index
    %c0_402 = arith.constant 0 : index
    %538 = vector.load %arg4[%c34, %c0_401, %c0_402] : memref<55x64x64xbf16, #tpu.memory_space<vmem>>, vector<1x64x64xbf16>
    %539 = vector.shape_cast %538 : vector<1x64x64xbf16> to vector<64x64xbf16>
    %cst_403 = arith.constant dense<0.000000e+00> : vector<11x64xf32>
    %540 = tpu.matmul %537, %539, %cst_403 {dimension_numbers = #tpu.dot_dimension_numbers<[1], [0], [0], [1], [0, 0, 1, 1], [], []>} : vector<11x64xbf16>, vector<64x64xbf16>, vector<11x64xf32> -> vector<11x64xf32>
    %c3_404 = arith.constant 3 : index
    %c0_405 = arith.constant 0 : index
    %541 = vector.load %arg20[%c3_404, %c0_405] : memref<17x64xf32, #tpu.memory_space<vmem>>, vector<11x64xf32>
    %cst_406 = arith.constant 0.000000e+00 : f32
    %542 = vector.broadcast %cst_406 : f32 to vector<11x64xf32>
    %543 = arith.maximumf %541, %542 : vector<11x64xf32>
    %544 = arith.truncf %543 : vector<11x64xf32> to vector<11x64xbf16>
    %c35 = arith.constant 35 : index
    %c0_407 = arith.constant 0 : index
    %c0_408 = arith.constant 0 : index
    %545 = vector.load %arg4[%c35, %c0_407, %c0_408] : memref<55x64x64xbf16, #tpu.memory_space<vmem>>, vector<1x64x64xbf16>
    %546 = vector.shape_cast %545 : vector<1x64x64xbf16> to vector<64x64xbf16>
    %cst_409 = arith.constant dense<0.000000e+00> : vector<11x64xf32>
    %547 = tpu.matmul %544, %546, %cst_409 {dimension_numbers = #tpu.dot_dimension_numbers<[1], [0], [0], [1], [0, 0, 1, 1], [], []>} : vector<11x64xbf16>, vector<64x64xbf16>, vector<11x64xf32> -> vector<11x64xf32>
    %548 = arith.addf %540, %547 : vector<11x64xf32>
    %c4_410 = arith.constant 4 : index
    %c0_411 = arith.constant 0 : index
    %549 = vector.load %arg20[%c4_410, %c0_411] : memref<17x64xf32, #tpu.memory_space<vmem>>, vector<11x64xf32>
    %cst_412 = arith.constant 0.000000e+00 : f32
    %550 = vector.broadcast %cst_412 : f32 to vector<11x64xf32>
    %551 = arith.maximumf %549, %550 : vector<11x64xf32>
    %552 = arith.truncf %551 : vector<11x64xf32> to vector<11x64xbf16>
    %c36 = arith.constant 36 : index
    %c0_413 = arith.constant 0 : index
    %c0_414 = arith.constant 0 : index
    %553 = vector.load %arg4[%c36, %c0_413, %c0_414] : memref<55x64x64xbf16, #tpu.memory_space<vmem>>, vector<1x64x64xbf16>
    %554 = vector.shape_cast %553 : vector<1x64x64xbf16> to vector<64x64xbf16>
    %cst_415 = arith.constant dense<0.000000e+00> : vector<11x64xf32>
    %555 = tpu.matmul %552, %554, %cst_415 {dimension_numbers = #tpu.dot_dimension_numbers<[1], [0], [0], [1], [0, 0, 1, 1], [], []>} : vector<11x64xbf16>, vector<64x64xbf16>, vector<11x64xf32> -> vector<11x64xf32>
    %556 = arith.addf %548, %555 : vector<11x64xf32>
    %557 = vector.broadcast %533 : vector<1x64xf32> to vector<11x64xf32>
    %558 = arith.addf %556, %557 : vector<11x64xf32>
    %cst_416 = arith.constant 0.000000e+00 : f32
    %559 = vector.broadcast %cst_416 : f32 to vector<11x64xf32>
    %560 = arith.maximumf %558, %559 : vector<11x64xf32>
    %561 = arith.truncf %560 : vector<11x64xf32> to vector<11x64xbf16>
    %c37 = arith.constant 37 : index
    %c0_417 = arith.constant 0 : index
    %c0_418 = arith.constant 0 : index
    %562 = vector.load %arg4[%c37, %c0_417, %c0_418] : memref<55x64x64xbf16, #tpu.memory_space<vmem>>, vector<1x64x64xbf16>
    %563 = vector.shape_cast %562 : vector<1x64x64xbf16> to vector<64x64xbf16>
    %cst_419 = arith.constant dense<0.000000e+00> : vector<11x64xf32>
    %564 = tpu.matmul %561, %563, %cst_419 {dimension_numbers = #tpu.dot_dimension_numbers<[1], [0], [0], [1], [0, 0, 1, 1], [], []>} : vector<11x64xbf16>, vector<64x64xbf16>, vector<11x64xf32> -> vector<11x64xf32>
    %c16_420 = arith.constant 16 : index
    %c0_421 = arith.constant 0 : index
    %565 = vector.load %arg5[%c16_420, %c0_421] : memref<24x64xf32, #tpu.memory_space<vmem>>, vector<1x64xf32>
    %566 = vector.broadcast %565 : vector<1x64xf32> to vector<11x64xf32>
    %567 = arith.addf %564, %566 : vector<11x64xf32>
    %c3_422 = arith.constant 3 : index
    %c0_423 = arith.constant 0 : index
    %568 = vector.load %arg20[%c3_422, %c0_423] : memref<17x64xf32, #tpu.memory_space<vmem>>, vector<11x64xf32>
    %569 = vector.broadcast %41 : vector<11x1xf32> to vector<11x64xf32>
    %570 = arith.mulf %567, %569 : vector<11x64xf32>
    %571 = arith.addf %568, %570 : vector<11x64xf32>
    %c3_424 = arith.constant 3 : index
    %c0_425 = arith.constant 0 : index
    %572 = vector.load %arg20[%c3_424, %c0_425] : memref<17x64xf32, #tpu.memory_space<vmem>>, vector<11x64xf32>
    tpu.vector_store %arg20[%c3_424, %c0_425], %571 {strides = array<i32>} : memref<17x64xf32, #tpu.memory_space<vmem>>, vector<11x64xf32>,
    %c0_426 = arith.constant 0 : index
    %c0_427 = arith.constant 0 : index
    %573 = vector.load %arg9[%c0_426, %c0_427] : memref<34x17xbf16, #tpu.memory_space<vmem>>, vector<34x17xbf16>
    %c0_428 = arith.constant 0 : index
    %c0_429 = arith.constant 0 : index
    %574 = vector.load %arg20[%c0_428, %c0_429] : memref<17x64xf32, #tpu.memory_space<vmem>>, vector<17x64xf32>
    %575 = arith.truncf %574 : vector<17x64xf32> to vector<17x64xbf16>
    %cst_430 = arith.constant dense<0.000000e+00> : vector<34x64xf32>
    %576 = tpu.matmul %573, %575, %cst_430 {dimension_numbers = #tpu.dot_dimension_numbers<[1], [0], [0], [1], [0, 0, 1, 1], [], []>} : vector<34x17xbf16>, vector<17x64xbf16>, vector<34x64xf32> -> vector<34x64xf32>
    %c0_431 = arith.constant 0 : index
    %c0_432 = arith.constant 0 : index
    %577 = vector.load %arg21[%c0_431, %c0_432] : memref<34x64xf32, #tpu.memory_space<vmem>>, vector<34x64xf32>
    tpu.vector_store %arg21[%c0_431, %c0_432], %576 {strides = array<i32>} : memref<34x64xf32, #tpu.memory_space<vmem>>, vector<34x64xf32>,
    %c17_433 = arith.constant 17 : index
    %c0_434 = arith.constant 0 : index
    %578 = vector.load %arg5[%c17_433, %c0_434] : memref<24x64xf32, #tpu.memory_space<vmem>>, vector<1x64xf32>
    %c5_435 = arith.constant 5 : index
    %c0_436 = arith.constant 0 : index
    %579 = vector.load %arg21[%c5_435, %c0_436] : memref<34x64xf32, #tpu.memory_space<vmem>>, vector<22x64xf32>
    %580 = arith.truncf %579 : vector<22x64xf32> to vector<22x64xbf16>
    %c38 = arith.constant 38 : index
    %c0_437 = arith.constant 0 : index
    %c0_438 = arith.constant 0 : index
    %581 = vector.load %arg4[%c38, %c0_437, %c0_438] : memref<55x64x64xbf16, #tpu.memory_space<vmem>>, vector<1x64x64xbf16>
    %582 = vector.shape_cast %581 : vector<1x64x64xbf16> to vector<64x64xbf16>
    %cst_439 = arith.constant dense<0.000000e+00> : vector<22x64xf32>
    %583 = tpu.matmul %580, %582, %cst_439 {dimension_numbers = #tpu.dot_dimension_numbers<[1], [0], [0], [1], [0, 0, 1, 1], [], []>} : vector<22x64xbf16>, vector<64x64xbf16>, vector<22x64xf32> -> vector<22x64xf32>
    %c6_440 = arith.constant 6 : index
    %c0_441 = arith.constant 0 : index
    %584 = vector.load %arg21[%c6_440, %c0_441] : memref<34x64xf32, #tpu.memory_space<vmem>>, vector<22x64xf32>
    %585 = arith.truncf %584 : vector<22x64xf32> to vector<22x64xbf16>
    %c39 = arith.constant 39 : index
    %c0_442 = arith.constant 0 : index
    %c0_443 = arith.constant 0 : index
    %586 = vector.load %arg4[%c39, %c0_442, %c0_443] : memref<55x64x64xbf16, #tpu.memory_space<vmem>>, vector<1x64x64xbf16>
    %587 = vector.shape_cast %586 : vector<1x64x64xbf16> to vector<64x64xbf16>
    %cst_444 = arith.constant dense<0.000000e+00> : vector<22x64xf32>
    %588 = tpu.matmul %585, %587, %cst_444 {dimension_numbers = #tpu.dot_dimension_numbers<[1], [0], [0], [1], [0, 0, 1, 1], [], []>} : vector<22x64xbf16>, vector<64x64xbf16>, vector<22x64xf32> -> vector<22x64xf32>
    %589 = arith.addf %583, %588 : vector<22x64xf32>
    %c7_445 = arith.constant 7 : index
    %c0_446 = arith.constant 0 : index
    %590 = vector.load %arg21[%c7_445, %c0_446] : memref<34x64xf32, #tpu.memory_space<vmem>>, vector<22x64xf32>
    %591 = arith.truncf %590 : vector<22x64xf32> to vector<22x64xbf16>
    %c40_447 = arith.constant 40 : index
    %c0_448 = arith.constant 0 : index
    %c0_449 = arith.constant 0 : index
    %592 = vector.load %arg4[%c40_447, %c0_448, %c0_449] : memref<55x64x64xbf16, #tpu.memory_space<vmem>>, vector<1x64x64xbf16>
    %593 = vector.shape_cast %592 : vector<1x64x64xbf16> to vector<64x64xbf16>
    %cst_450 = arith.constant dense<0.000000e+00> : vector<22x64xf32>
    %594 = tpu.matmul %591, %593, %cst_450 {dimension_numbers = #tpu.dot_dimension_numbers<[1], [0], [0], [1], [0, 0, 1, 1], [], []>} : vector<22x64xbf16>, vector<64x64xbf16>, vector<22x64xf32> -> vector<22x64xf32>
    %595 = arith.addf %589, %594 : vector<22x64xf32>
    %596 = vector.broadcast %578 : vector<1x64xf32> to vector<22x64xf32>
    %597 = arith.addf %595, %596 : vector<22x64xf32>
    %598 = vector.broadcast %27 : vector<22x1xf32> to vector<22x64xf32>
    %599 = arith.mulf %597, %598 : vector<22x64xf32>
    %c6_451 = arith.constant 6 : index
    %c0_452 = arith.constant 0 : index
    %600 = vector.load %arg22[%c6_451, %c0_452] : memref<34x64xf32, #tpu.memory_space<vmem>>, vector<22x64xf32>
    tpu.vector_store %arg22[%c6_451, %c0_452], %599 {strides = array<i32>} : memref<34x64xf32, #tpu.memory_space<vmem>>, vector<22x64xf32>,
    %c18_453 = arith.constant 18 : index
    %c0_454 = arith.constant 0 : index
    %601 = vector.load %arg5[%c18_453, %c0_454] : memref<24x64xf32, #tpu.memory_space<vmem>>, vector<1x64xf32>
    %c3_455 = arith.constant 3 : index
    %c0_456 = arith.constant 0 : index
    %602 = vector.load %arg22[%c3_455, %c0_456] : memref<34x64xf32, #tpu.memory_space<vmem>>, vector<22x64xf32>
    %cst_457 = arith.constant 0.000000e+00 : f32
    %603 = vector.broadcast %cst_457 : f32 to vector<22x64xf32>
    %604 = arith.maximumf %602, %603 : vector<22x64xf32>
    %605 = arith.truncf %604 : vector<22x64xf32> to vector<22x64xbf16>
    %c41 = arith.constant 41 : index
    %c0_458 = arith.constant 0 : index
    %c0_459 = arith.constant 0 : index
    %606 = vector.load %arg4[%c41, %c0_458, %c0_459] : memref<55x64x64xbf16, #tpu.memory_space<vmem>>, vector<1x64x64xbf16>
    %607 = vector.shape_cast %606 : vector<1x64x64xbf16> to vector<64x64xbf16>
    %cst_460 = arith.constant dense<0.000000e+00> : vector<22x64xf32>
    %608 = tpu.matmul %605, %607, %cst_460 {dimension_numbers = #tpu.dot_dimension_numbers<[1], [0], [0], [1], [0, 0, 1, 1], [], []>} : vector<22x64xbf16>, vector<64x64xbf16>, vector<22x64xf32> -> vector<22x64xf32>
    %c6_461 = arith.constant 6 : index
    %c0_462 = arith.constant 0 : index
    %609 = vector.load %arg22[%c6_461, %c0_462] : memref<34x64xf32, #tpu.memory_space<vmem>>, vector<22x64xf32>
    %cst_463 = arith.constant 0.000000e+00 : f32
    %610 = vector.broadcast %cst_463 : f32 to vector<22x64xf32>
    %611 = arith.maximumf %609, %610 : vector<22x64xf32>
    %612 = arith.truncf %611 : vector<22x64xf32> to vector<22x64xbf16>
    %c42 = arith.constant 42 : index
    %c0_464 = arith.constant 0 : index
    %c0_465 = arith.constant 0 : index
    %613 = vector.load %arg4[%c42, %c0_464, %c0_465] : memref<55x64x64xbf16, #tpu.memory_space<vmem>>, vector<1x64x64xbf16>
    %614 = vector.shape_cast %613 : vector<1x64x64xbf16> to vector<64x64xbf16>
    %cst_466 = arith.constant dense<0.000000e+00> : vector<22x64xf32>
    %615 = tpu.matmul %612, %614, %cst_466 {dimension_numbers = #tpu.dot_dimension_numbers<[1], [0], [0], [1], [0, 0, 1, 1], [], []>} : vector<22x64xbf16>, vector<64x64xbf16>, vector<22x64xf32> -> vector<22x64xf32>
    %616 = arith.addf %608, %615 : vector<22x64xf32>
    %c9_467 = arith.constant 9 : index
    %c0_468 = arith.constant 0 : index
    %617 = vector.load %arg22[%c9_467, %c0_468] : memref<34x64xf32, #tpu.memory_space<vmem>>, vector<22x64xf32>
    %cst_469 = arith.constant 0.000000e+00 : f32
    %618 = vector.broadcast %cst_469 : f32 to vector<22x64xf32>
    %619 = arith.maximumf %617, %618 : vector<22x64xf32>
    %620 = arith.truncf %619 : vector<22x64xf32> to vector<22x64xbf16>
    %c43 = arith.constant 43 : index
    %c0_470 = arith.constant 0 : index
    %c0_471 = arith.constant 0 : index
    %621 = vector.load %arg4[%c43, %c0_470, %c0_471] : memref<55x64x64xbf16, #tpu.memory_space<vmem>>, vector<1x64x64xbf16>
    %622 = vector.shape_cast %621 : vector<1x64x64xbf16> to vector<64x64xbf16>
    %cst_472 = arith.constant dense<0.000000e+00> : vector<22x64xf32>
    %623 = tpu.matmul %620, %622, %cst_472 {dimension_numbers = #tpu.dot_dimension_numbers<[1], [0], [0], [1], [0, 0, 1, 1], [], []>} : vector<22x64xbf16>, vector<64x64xbf16>, vector<22x64xf32> -> vector<22x64xf32>
    %624 = arith.addf %616, %623 : vector<22x64xf32>
    %625 = vector.broadcast %601 : vector<1x64xf32> to vector<22x64xf32>
    %626 = arith.addf %624, %625 : vector<22x64xf32>
    %cst_473 = arith.constant 0.000000e+00 : f32
    %627 = vector.broadcast %cst_473 : f32 to vector<22x64xf32>
    %628 = arith.maximumf %626, %627 : vector<22x64xf32>
    %629 = arith.truncf %628 : vector<22x64xf32> to vector<22x64xbf16>
    %c44 = arith.constant 44 : index
    %c0_474 = arith.constant 0 : index
    %c0_475 = arith.constant 0 : index
    %630 = vector.load %arg4[%c44, %c0_474, %c0_475] : memref<55x64x64xbf16, #tpu.memory_space<vmem>>, vector<1x64x64xbf16>
    %631 = vector.shape_cast %630 : vector<1x64x64xbf16> to vector<64x64xbf16>
    %cst_476 = arith.constant dense<0.000000e+00> : vector<22x64xf32>
    %632 = tpu.matmul %629, %631, %cst_476 {dimension_numbers = #tpu.dot_dimension_numbers<[1], [0], [0], [1], [0, 0, 1, 1], [], []>} : vector<22x64xbf16>, vector<64x64xbf16>, vector<22x64xf32> -> vector<22x64xf32>
    %c19_477 = arith.constant 19 : index
    %c0_478 = arith.constant 0 : index
    %633 = vector.load %arg5[%c19_477, %c0_478] : memref<24x64xf32, #tpu.memory_space<vmem>>, vector<1x64xf32>
    %634 = vector.broadcast %633 : vector<1x64xf32> to vector<22x64xf32>
    %635 = arith.addf %632, %634 : vector<22x64xf32>
    %c6_479 = arith.constant 6 : index
    %c0_480 = arith.constant 0 : index
    %636 = vector.load %arg22[%c6_479, %c0_480] : memref<34x64xf32, #tpu.memory_space<vmem>>, vector<22x64xf32>
    %637 = vector.broadcast %27 : vector<22x1xf32> to vector<22x64xf32>
    %638 = arith.mulf %635, %637 : vector<22x64xf32>
    %639 = arith.addf %636, %638 : vector<22x64xf32>
    %c6_481 = arith.constant 6 : index
    %c0_482 = arith.constant 0 : index
    %640 = vector.load %arg22[%c6_481, %c0_482] : memref<34x64xf32, #tpu.memory_space<vmem>>, vector<22x64xf32>
    tpu.vector_store %arg22[%c6_481, %c0_482], %639 {strides = array<i32>} : memref<34x64xf32, #tpu.memory_space<vmem>>, vector<22x64xf32>,
    %c20_483 = arith.constant 20 : index
    %c0_484 = arith.constant 0 : index
    %641 = vector.load %arg5[%c20_483, %c0_484] : memref<24x64xf32, #tpu.memory_space<vmem>>, vector<1x64xf32>
    %c5_485 = arith.constant 5 : index
    %c0_486 = arith.constant 0 : index
    %642 = vector.load %arg22[%c5_485, %c0_486] : memref<34x64xf32, #tpu.memory_space<vmem>>, vector<22x64xf32>
    %cst_487 = arith.constant 0.000000e+00 : f32
    %643 = vector.broadcast %cst_487 : f32 to vector<22x64xf32>
    %644 = arith.maximumf %642, %643 : vector<22x64xf32>
    %645 = arith.truncf %644 : vector<22x64xf32> to vector<22x64xbf16>
    %c45 = arith.constant 45 : index
    %c0_488 = arith.constant 0 : index
    %c0_489 = arith.constant 0 : index
    %646 = vector.load %arg4[%c45, %c0_488, %c0_489] : memref<55x64x64xbf16, #tpu.memory_space<vmem>>, vector<1x64x64xbf16>
    %647 = vector.shape_cast %646 : vector<1x64x64xbf16> to vector<64x64xbf16>
    %cst_490 = arith.constant dense<0.000000e+00> : vector<22x64xf32>
    %648 = tpu.matmul %645, %647, %cst_490 {dimension_numbers = #tpu.dot_dimension_numbers<[1], [0], [0], [1], [0, 0, 1, 1], [], []>} : vector<22x64xbf16>, vector<64x64xbf16>, vector<22x64xf32> -> vector<22x64xf32>
    %c6_491 = arith.constant 6 : index
    %c0_492 = arith.constant 0 : index
    %649 = vector.load %arg22[%c6_491, %c0_492] : memref<34x64xf32, #tpu.memory_space<vmem>>, vector<22x64xf32>
    %cst_493 = arith.constant 0.000000e+00 : f32
    %650 = vector.broadcast %cst_493 : f32 to vector<22x64xf32>
    %651 = arith.maximumf %649, %650 : vector<22x64xf32>
    %652 = arith.truncf %651 : vector<22x64xf32> to vector<22x64xbf16>
    %c46 = arith.constant 46 : index
    %c0_494 = arith.constant 0 : index
    %c0_495 = arith.constant 0 : index
    %653 = vector.load %arg4[%c46, %c0_494, %c0_495] : memref<55x64x64xbf16, #tpu.memory_space<vmem>>, vector<1x64x64xbf16>
    %654 = vector.shape_cast %653 : vector<1x64x64xbf16> to vector<64x64xbf16>
    %cst_496 = arith.constant dense<0.000000e+00> : vector<22x64xf32>
    %655 = tpu.matmul %652, %654, %cst_496 {dimension_numbers = #tpu.dot_dimension_numbers<[1], [0], [0], [1], [0, 0, 1, 1], [], []>} : vector<22x64xbf16>, vector<64x64xbf16>, vector<22x64xf32> -> vector<22x64xf32>
    %656 = arith.addf %648, %655 : vector<22x64xf32>
    %c7_497 = arith.constant 7 : index
    %c0_498 = arith.constant 0 : index
    %657 = vector.load %arg22[%c7_497, %c0_498] : memref<34x64xf32, #tpu.memory_space<vmem>>, vector<22x64xf32>
    %cst_499 = arith.constant 0.000000e+00 : f32
    %658 = vector.broadcast %cst_499 : f32 to vector<22x64xf32>
    %659 = arith.maximumf %657, %658 : vector<22x64xf32>
    %660 = arith.truncf %659 : vector<22x64xf32> to vector<22x64xbf16>
    %c47 = arith.constant 47 : index
    %c0_500 = arith.constant 0 : index
    %c0_501 = arith.constant 0 : index
    %661 = vector.load %arg4[%c47, %c0_500, %c0_501] : memref<55x64x64xbf16, #tpu.memory_space<vmem>>, vector<1x64x64xbf16>
    %662 = vector.shape_cast %661 : vector<1x64x64xbf16> to vector<64x64xbf16>
    %cst_502 = arith.constant dense<0.000000e+00> : vector<22x64xf32>
    %663 = tpu.matmul %660, %662, %cst_502 {dimension_numbers = #tpu.dot_dimension_numbers<[1], [0], [0], [1], [0, 0, 1, 1], [], []>} : vector<22x64xbf16>, vector<64x64xbf16>, vector<22x64xf32> -> vector<22x64xf32>
    %664 = arith.addf %656, %663 : vector<22x64xf32>
    %665 = vector.broadcast %641 : vector<1x64xf32> to vector<22x64xf32>
    %666 = arith.addf %664, %665 : vector<22x64xf32>
    %cst_503 = arith.constant 0.000000e+00 : f32
    %667 = vector.broadcast %cst_503 : f32 to vector<22x64xf32>
    %668 = arith.maximumf %666, %667 : vector<22x64xf32>
    %669 = arith.truncf %668 : vector<22x64xf32> to vector<22x64xbf16>
    %c48 = arith.constant 48 : index
    %c0_504 = arith.constant 0 : index
    %c0_505 = arith.constant 0 : index
    %670 = vector.load %arg4[%c48, %c0_504, %c0_505] : memref<55x64x64xbf16, #tpu.memory_space<vmem>>, vector<1x64x64xbf16>
    %671 = vector.shape_cast %670 : vector<1x64x64xbf16> to vector<64x64xbf16>
    %cst_506 = arith.constant dense<0.000000e+00> : vector<22x64xf32>
    %672 = tpu.matmul %669, %671, %cst_506 {dimension_numbers = #tpu.dot_dimension_numbers<[1], [0], [0], [1], [0, 0, 1, 1], [], []>} : vector<22x64xbf16>, vector<64x64xbf16>, vector<22x64xf32> -> vector<22x64xf32>
    %c21_507 = arith.constant 21 : index
    %c0_508 = arith.constant 0 : index
    %673 = vector.load %arg5[%c21_507, %c0_508] : memref<24x64xf32, #tpu.memory_space<vmem>>, vector<1x64xf32>
    %674 = vector.broadcast %673 : vector<1x64xf32> to vector<22x64xf32>
    %675 = arith.addf %672, %674 : vector<22x64xf32>
    %c6_509 = arith.constant 6 : index
    %c0_510 = arith.constant 0 : index
    %676 = vector.load %arg22[%c6_509, %c0_510] : memref<34x64xf32, #tpu.memory_space<vmem>>, vector<22x64xf32>
    %677 = vector.broadcast %27 : vector<22x1xf32> to vector<22x64xf32>
    %678 = arith.mulf %675, %677 : vector<22x64xf32>
    %679 = arith.addf %676, %678 : vector<22x64xf32>
    %c6_511 = arith.constant 6 : index
    %c0_512 = arith.constant 0 : index
    %680 = vector.load %arg22[%c6_511, %c0_512] : memref<34x64xf32, #tpu.memory_space<vmem>>, vector<22x64xf32>
    tpu.vector_store %arg22[%c6_511, %c0_512], %679 {strides = array<i32>} : memref<34x64xf32, #tpu.memory_space<vmem>>, vector<22x64xf32>,
    %c0_513 = arith.constant 0 : index
    %c0_514 = arith.constant 0 : index
    %681 = vector.load %arg10[%c0_513, %c0_514] : memref<68x34xbf16, #tpu.memory_space<vmem>>, vector<68x34xbf16>
    %c0_515 = arith.constant 0 : index
    %c0_516 = arith.constant 0 : index
    %682 = vector.load %arg22[%c0_515, %c0_516] : memref<34x64xf32, #tpu.memory_space<vmem>>, vector<34x64xf32>
    %683 = arith.truncf %682 : vector<34x64xf32> to vector<34x64xbf16>
    %cst_517 = arith.constant dense<0.000000e+00> : vector<68x64xf32>
    %684 = tpu.matmul %681, %683, %cst_517 {dimension_numbers = #tpu.dot_dimension_numbers<[1], [0], [0], [1], [0, 0, 1, 1], [], []>} : vector<68x34xbf16>, vector<34x64xbf16>, vector<68x64xf32> -> vector<68x64xf32>
    %c0_518 = arith.constant 0 : index
    %c0_519 = arith.constant 0 : index
    %685 = vector.load %arg23[%c0_518, %c0_519] : memref<68x64xf32, #tpu.memory_space<vmem>>, vector<68x64xf32>
    tpu.vector_store %arg23[%c0_518, %c0_519], %684 {strides = array<i32>} : memref<68x64xf32, #tpu.memory_space<vmem>>, vector<68x64xf32>,
    %c22_520 = arith.constant 22 : index
    %c0_521 = arith.constant 0 : index
    %686 = vector.load %arg5[%c22_520, %c0_521] : memref<24x64xf32, #tpu.memory_space<vmem>>, vector<1x64xf32>
    %c11_522 = arith.constant 11 : index
    %c0_523 = arith.constant 0 : index
    %687 = vector.load %arg23[%c11_522, %c0_523] : memref<68x64xf32, #tpu.memory_space<vmem>>, vector<44x64xf32>
    %688 = arith.truncf %687 : vector<44x64xf32> to vector<44x64xbf16>
    %c49 = arith.constant 49 : index
    %c0_524 = arith.constant 0 : index
    %c0_525 = arith.constant 0 : index
    %689 = vector.load %arg4[%c49, %c0_524, %c0_525] : memref<55x64x64xbf16, #tpu.memory_space<vmem>>, vector<1x64x64xbf16>
    %690 = vector.shape_cast %689 : vector<1x64x64xbf16> to vector<64x64xbf16>
    %cst_526 = arith.constant dense<0.000000e+00> : vector<44x64xf32>
    %691 = tpu.matmul %688, %690, %cst_526 {dimension_numbers = #tpu.dot_dimension_numbers<[1], [0], [0], [1], [0, 0, 1, 1], [], []>} : vector<44x64xbf16>, vector<64x64xbf16>, vector<44x64xf32> -> vector<44x64xf32>
    %c12_527 = arith.constant 12 : index
    %c0_528 = arith.constant 0 : index
    %692 = vector.load %arg23[%c12_527, %c0_528] : memref<68x64xf32, #tpu.memory_space<vmem>>, vector<44x64xf32>
    %693 = arith.truncf %692 : vector<44x64xf32> to vector<44x64xbf16>
    %c50 = arith.constant 50 : index
    %c0_529 = arith.constant 0 : index
    %c0_530 = arith.constant 0 : index
    %694 = vector.load %arg4[%c50, %c0_529, %c0_530] : memref<55x64x64xbf16, #tpu.memory_space<vmem>>, vector<1x64x64xbf16>
    %695 = vector.shape_cast %694 : vector<1x64x64xbf16> to vector<64x64xbf16>
    %cst_531 = arith.constant dense<0.000000e+00> : vector<44x64xf32>
    %696 = tpu.matmul %693, %695, %cst_531 {dimension_numbers = #tpu.dot_dimension_numbers<[1], [0], [0], [1], [0, 0, 1, 1], [], []>} : vector<44x64xbf16>, vector<64x64xbf16>, vector<44x64xf32> -> vector<44x64xf32>
    %697 = arith.addf %691, %696 : vector<44x64xf32>
    %c13_532 = arith.constant 13 : index
    %c0_533 = arith.constant 0 : index
    %698 = vector.load %arg23[%c13_532, %c0_533] : memref<68x64xf32, #tpu.memory_space<vmem>>, vector<44x64xf32>
    %699 = arith.truncf %698 : vector<44x64xf32> to vector<44x64xbf16>
    %c51 = arith.constant 51 : index
    %c0_534 = arith.constant 0 : index
    %c0_535 = arith.constant 0 : index
    %700 = vector.load %arg4[%c51, %c0_534, %c0_535] : memref<55x64x64xbf16, #tpu.memory_space<vmem>>, vector<1x64x64xbf16>
    %701 = vector.shape_cast %700 : vector<1x64x64xbf16> to vector<64x64xbf16>
    %cst_536 = arith.constant dense<0.000000e+00> : vector<44x64xf32>
    %702 = tpu.matmul %699, %701, %cst_536 {dimension_numbers = #tpu.dot_dimension_numbers<[1], [0], [0], [1], [0, 0, 1, 1], [], []>} : vector<44x64xbf16>, vector<64x64xbf16>, vector<44x64xf32> -> vector<44x64xf32>
    %703 = arith.addf %697, %702 : vector<44x64xf32>
    %704 = vector.broadcast %686 : vector<1x64xf32> to vector<44x64xf32>
    %705 = arith.addf %703, %704 : vector<44x64xf32>
    %706 = vector.broadcast %13 : vector<44x1xf32> to vector<44x64xf32>
    %707 = arith.mulf %705, %706 : vector<44x64xf32>
    %c12_537 = arith.constant 12 : index
    %c0_538 = arith.constant 0 : index
    %708 = vector.load %arg24[%c12_537, %c0_538] : memref<68x64xf32, #tpu.memory_space<vmem>>, vector<44x64xf32>
    tpu.vector_store %arg24[%c12_537, %c0_538], %707 {strides = array<i32>} : memref<68x64xf32, #tpu.memory_space<vmem>>, vector<44x64xf32>,
    %c23_539 = arith.constant 23 : index
    %c0_540 = arith.constant 0 : index
    %709 = vector.load %arg5[%c23_539, %c0_540] : memref<24x64xf32, #tpu.memory_space<vmem>>, vector<1x64xf32>
    %c11_541 = arith.constant 11 : index
    %c0_542 = arith.constant 0 : index
    %710 = vector.load %arg24[%c11_541, %c0_542] : memref<68x64xf32, #tpu.memory_space<vmem>>, vector<44x64xf32>
    %711 = arith.truncf %710 : vector<44x64xf32> to vector<44x64xbf16>
    %c52 = arith.constant 52 : index
    %c0_543 = arith.constant 0 : index
    %c0_544 = arith.constant 0 : index
    %712 = vector.load %arg4[%c52, %c0_543, %c0_544] : memref<55x64x64xbf16, #tpu.memory_space<vmem>>, vector<1x64x64xbf16>
    %713 = vector.shape_cast %712 : vector<1x64x64xbf16> to vector<64x64xbf16>
    %cst_545 = arith.constant dense<0.000000e+00> : vector<44x64xf32>
    %714 = tpu.matmul %711, %713, %cst_545 {dimension_numbers = #tpu.dot_dimension_numbers<[1], [0], [0], [1], [0, 0, 1, 1], [], []>} : vector<44x64xbf16>, vector<64x64xbf16>, vector<44x64xf32> -> vector<44x64xf32>
    %c12_546 = arith.constant 12 : index
    %c0_547 = arith.constant 0 : index
    %715 = vector.load %arg24[%c12_546, %c0_547] : memref<68x64xf32, #tpu.memory_space<vmem>>, vector<44x64xf32>
    %716 = arith.truncf %715 : vector<44x64xf32> to vector<44x64xbf16>
    %c53 = arith.constant 53 : index
    %c0_548 = arith.constant 0 : index
    %c0_549 = arith.constant 0 : index
    %717 = vector.load %arg4[%c53, %c0_548, %c0_549] : memref<55x64x64xbf16, #tpu.memory_space<vmem>>, vector<1x64x64xbf16>
    %718 = vector.shape_cast %717 : vector<1x64x64xbf16> to vector<64x64xbf16>
    %cst_550 = arith.constant dense<0.000000e+00> : vector<44x64xf32>
    %719 = tpu.matmul %716, %718, %cst_550 {dimension_numbers = #tpu.dot_dimension_numbers<[1], [0], [0], [1], [0, 0, 1, 1], [], []>} : vector<44x64xbf16>, vector<64x64xbf16>, vector<44x64xf32> -> vector<44x64xf32>
    %720 = arith.addf %714, %719 : vector<44x64xf32>
    %c13_551 = arith.constant 13 : index
    %c0_552 = arith.constant 0 : index
    %721 = vector.load %arg24[%c13_551, %c0_552] : memref<68x64xf32, #tpu.memory_space<vmem>>, vector<44x64xf32>
    %722 = arith.truncf %721 : vector<44x64xf32> to vector<44x64xbf16>
    %c54 = arith.constant 54 : index
    %c0_553 = arith.constant 0 : index
    %c0_554 = arith.constant 0 : index
    %723 = vector.load %arg4[%c54, %c0_553, %c0_554] : memref<55x64x64xbf16, #tpu.memory_space<vmem>>, vector<1x64x64xbf16>
    %724 = vector.shape_cast %723 : vector<1x64x64xbf16> to vector<64x64xbf16>
    %cst_555 = arith.constant dense<0.000000e+00> : vector<44x64xf32>
    %725 = tpu.matmul %722, %724, %cst_555 {dimension_numbers = #tpu.dot_dimension_numbers<[1], [0], [0], [1], [0, 0, 1, 1], [], []>} : vector<44x64xbf16>, vector<64x64xbf16>, vector<44x64xf32> -> vector<44x64xf32>
    %726 = arith.addf %720, %725 : vector<44x64xf32>
    %727 = vector.broadcast %709 : vector<1x64xf32> to vector<44x64xf32>
    %728 = arith.addf %726, %727 : vector<44x64xf32>
    %cst_556 = arith.constant 0.000000e+00 : f32
    %729 = vector.broadcast %cst_556 : f32 to vector<44x64xf32>
    %730 = arith.maximumf %728, %729 : vector<44x64xf32>
    %731 = vector.broadcast %13 : vector<44x1xf32> to vector<44x64xf32>
    %732 = arith.mulf %730, %731 : vector<44x64xf32>
    %c12_557 = arith.constant 12 : index
    %c0_558 = arith.constant 0 : index
    %733 = vector.load %arg25[%c12_557, %c0_558] : memref<68x64xf32, #tpu.memory_space<vmem>>, vector<44x64xf32>
    tpu.vector_store %arg25[%c12_557, %c0_558], %732 {strides = array<i32>} : memref<68x64xf32, #tpu.memory_space<vmem>>, vector<44x64xf32>,
    %c11_559 = arith.constant 11 : index
    %c0_560 = arith.constant 0 : index
    %734 = vector.load %arg25[%c11_559, %c0_560] : memref<68x64xf32, #tpu.memory_space<vmem>>, vector<44x64xf32>
    %735 = arith.truncf %734 : vector<44x64xf32> to vector<44x64xbf16>
    %c0_561 = arith.constant 0 : index
    %c0_562 = arith.constant 0 : index
    %c0_563 = arith.constant 0 : index
    %736 = vector.load %arg6[%c0_561, %c0_562, %c0_563] : memref<3x64x384xbf16, #tpu.memory_space<vmem>>, vector<1x64x384xbf16>
    %737 = vector.shape_cast %736 : vector<1x64x384xbf16> to vector<64x384xbf16>
    %cst_564 = arith.constant dense<0.000000e+00> : vector<44x384xf32>
    %738 = tpu.matmul %735, %737, %cst_564 {dimension_numbers = #tpu.dot_dimension_numbers<[1], [0], [0], [1], [0, 0, 1, 1], [], []>} : vector<44x64xbf16>, vector<64x384xbf16>, vector<44x384xf32> -> vector<44x384xf32>
    %c12_565 = arith.constant 12 : index
    %c0_566 = arith.constant 0 : index
    %739 = vector.load %arg25[%c12_565, %c0_566] : memref<68x64xf32, #tpu.memory_space<vmem>>, vector<44x64xf32>
    %740 = arith.truncf %739 : vector<44x64xf32> to vector<44x64xbf16>
    %c1_567 = arith.constant 1 : index
    %c0_568 = arith.constant 0 : index
    %c0_569 = arith.constant 0 : index
    %741 = vector.load %arg6[%c1_567, %c0_568, %c0_569] : memref<3x64x384xbf16, #tpu.memory_space<vmem>>, vector<1x64x384xbf16>
    %742 = vector.shape_cast %741 : vector<1x64x384xbf16> to vector<64x384xbf16>
    %cst_570 = arith.constant dense<0.000000e+00> : vector<44x384xf32>
    %743 = tpu.matmul %740, %742, %cst_570 {dimension_numbers = #tpu.dot_dimension_numbers<[1], [0], [0], [1], [0, 0, 1, 1], [], []>} : vector<44x64xbf16>, vector<64x384xbf16>, vector<44x384xf32> -> vector<44x384xf32>
    %744 = arith.addf %738, %743 : vector<44x384xf32>
    %c13_571 = arith.constant 13 : index
    %c0_572 = arith.constant 0 : index
    %745 = vector.load %arg25[%c13_571, %c0_572] : memref<68x64xf32, #tpu.memory_space<vmem>>, vector<44x64xf32>
    %746 = arith.truncf %745 : vector<44x64xf32> to vector<44x64xbf16>
    %c2_573 = arith.constant 2 : index
    %c0_574 = arith.constant 0 : index
    %c0_575 = arith.constant 0 : index
    %747 = vector.load %arg6[%c2_573, %c0_574, %c0_575] : memref<3x64x384xbf16, #tpu.memory_space<vmem>>, vector<1x64x384xbf16>
    %748 = vector.shape_cast %747 : vector<1x64x384xbf16> to vector<64x384xbf16>
    %cst_576 = arith.constant dense<0.000000e+00> : vector<44x384xf32>
    %749 = tpu.matmul %746, %748, %cst_576 {dimension_numbers = #tpu.dot_dimension_numbers<[1], [0], [0], [1], [0, 0, 1, 1], [], []>} : vector<44x64xbf16>, vector<64x384xbf16>, vector<44x384xf32> -> vector<44x384xf32>
    %750 = arith.addf %744, %749 : vector<44x384xf32>
    %751 = vector.broadcast %85 : vector<1x384xf32> to vector<44x384xf32>
    %752 = arith.addf %750, %751 : vector<44x384xf32>
    %753 = vector.broadcast %83 : vector<1x384xf32> to vector<44x384xf32>
    %754 = arith.mulf %752, %753 : vector<44x384xf32>
    %755 = vector.broadcast %82 : vector<1x384xf32> to vector<44x384xf32>
    %756 = arith.addf %754, %755 : vector<44x384xf32>
    %757 = vector.extract_strided_slice %756 {offsets = [0, 3], sizes = [44, 1], strides = [1, 1]} : vector<44x384xf32> to vector<44x1xf32>
    %758 = vector.broadcast %757 : vector<44x1xf32> to vector<44x384xf32>
    %759 = vector.broadcast %81 : vector<1x384xf32> to vector<44x384xf32>
    %760 = arith.mulf %758, %759 : vector<44x384xf32>
    %761 = arith.addf %756, %760 : vector<44x384xf32>
    %762 = vector.broadcast %78 : vector<1x384xf32> to vector<44x384xf32>
    %763 = arith.subf %761, %762 : vector<44x384xf32>
    %764 = vector.broadcast %80 : vector<1x384xf32> to vector<44x384xf32>
    %765 = arith.mulf %763, %764 : vector<44x384xf32>
    %766 = vector.extract_strided_slice %765 {offsets = [0, 0], sizes = [16, 384], strides = [1, 1]} : vector<44x384xf32> to vector<16x384xf32>
    %c0_577 = arith.constant 0 : index
    %c0_578 = arith.constant 0 : index
    %767 = vector.load %arg11[%c0_577, %c0_578] : memref<32x384xf32, #tpu.memory_space<vmem>>, vector<16x384xf32>
    tpu.vector_store %arg11[%c0_577, %c0_578], %766 {strides = array<i32>} : memref<32x384xf32, #tpu.memory_space<vmem>>, vector<16x384xf32>,
    %768 = vector.extract_strided_slice %765 {offsets = [28, 0], sizes = [16, 384], strides = [1, 1]} : vector<44x384xf32> to vector<16x384xf32>
    %c16_579 = arith.constant 16 : index
    %c0_580 = arith.constant 0 : index
    %769 = vector.load %arg11[%c16_579, %c0_580] : memref<32x384xf32, #tpu.memory_space<vmem>>, vector<16x384xf32>
    tpu.vector_store %arg11[%c16_579, %c0_580], %768 {strides = array<i32>} : memref<32x384xf32, #tpu.memory_space<vmem>>, vector<16x384xf32>,
    return
  }
  func.func @transform_0(%arg0: i32) -> (i32, i32) {
    %c0_i32 = arith.constant 0 : i32
    %c0_i32_0 = arith.constant 0 : i32
    %c0_i32_1 = arith.constant 0 : i32
    return %c0_i32, %c0_i32_0 : i32, i32
  }
  func.func @transform_1(%arg0: i32) -> (i32, i32) {
    %c0_i32 = arith.constant 0 : i32
    %c0_i32_0 = arith.constant 0 : i32
    %c0_i32_1 = arith.constant 0 : i32
    return %c0_i32, %c0_i32_0 : i32, i32
  }
  func.func @transform_2(%arg0: i32) -> (i32, i32, i32) {
    %c0_i32 = arith.constant 0 : i32
    %c0_i32_0 = arith.constant 0 : i32
    %c0_i32_1 = arith.constant 0 : i32
    %c0_i32_2 = arith.constant 0 : i32
    return %c0_i32, %c0_i32_0, %c0_i32_1 : i32, i32, i32
  }
  func.func @transform_3(%arg0: i32) -> (i32, i32, i32) {
    %c0_i32 = arith.constant 0 : i32
    %c0_i32_0 = arith.constant 0 : i32
    %c0_i32_1 = arith.constant 0 : i32
    %c0_i32_2 = arith.constant 0 : i32
    return %c0_i32, %c0_i32_0, %c0_i32_1 : i32, i32, i32
  }
  func.func @transform_4(%arg0: i32) -> (i32, i32) {
    %c0_i32 = arith.constant 0 : i32
    %c0_i32_0 = arith.constant 0 : i32
    %c0_i32_1 = arith.constant 0 : i32
    return %c0_i32, %c0_i32_0 : i32, i32
  }
  func.func @transform_5(%arg0: i32) -> (i32, i32, i32) {
    %c0_i32 = arith.constant 0 : i32
    %c0_i32_0 = arith.constant 0 : i32
    %c0_i32_1 = arith.constant 0 : i32
    %c0_i32_2 = arith.constant 0 : i32
    return %c0_i32, %c0_i32_0, %c0_i32_1 : i32, i32, i32
  }
  func.func @transform_6(%arg0: i32) -> (i32, i32, i32) {
    %c0_i32 = arith.constant 0 : i32
    %c0_i32_0 = arith.constant 0 : i32
    %c0_i32_1 = arith.constant 0 : i32
    %c0_i32_2 = arith.constant 0 : i32
    return %c0_i32, %c0_i32_0, %c0_i32_1 : i32, i32, i32
  }
  func.func @transform_7(%arg0: i32) -> (i32, i32) {
    %c0_i32 = arith.constant 0 : i32
    %c0_i32_0 = arith.constant 0 : i32
    %c0_i32_1 = arith.constant 0 : i32
    return %c0_i32, %c0_i32_0 : i32, i32
  }
  func.func @transform_8(%arg0: i32) -> (i32, i32) {
    %c0_i32 = arith.constant 0 : i32
    %c0_i32_0 = arith.constant 0 : i32
    %c0_i32_1 = arith.constant 0 : i32
    return %c0_i32, %c0_i32_0 : i32, i32
  }
  func.func @transform_9(%arg0: i32) -> (i32, i32) {
    %c0_i32 = arith.constant 0 : i32
    %c0_i32_0 = arith.constant 0 : i32
    %c0_i32_1 = arith.constant 0 : i32
    return %c0_i32, %c0_i32_0 : i32, i32
  }
  func.func @transform_10(%arg0: i32) -> (i32, i32) {
    %c0_i32 = arith.constant 0 : i32
    %c0_i32_0 = arith.constant 0 : i32
    %c0_i32_1 = arith.constant 0 : i32
    return %c0_i32, %c0_i32_0 : i32, i32
  }
  func.func @transform_11(%arg0: i32) -> (i32, i32) {
    %c0_i32 = arith.constant 0 : i32
    %c0_i32_0 = arith.constant 0 : i32
    %c0_i32_1 = arith.constant 0 : i32
    return %c0_i32, %c0_i32_0 : i32, i32
  }
  func.func @transform_12(%arg0: i32) -> (i32, i32) {
    %c0_i32 = arith.constant 0 : i32
    %c0_i32_0 = arith.constant 0 : i32
    %c0_i32_1 = arith.constant 0 : i32
    return %c0_i32, %c0_i32_0 : i32, i32
  }
}

</mosaic_0001>

<bundles_post_ra>
// kernel: rvqvae_decode_forward.1
= control target key start
LH: loop header
LB: loop body
LE: loop exit
PB: predicated region body
PF: predicated region fallthrough
CT: control target
= control target key end

     0   :  { %v14496_v0 = vlaneseq  ;;  %v11815_v1 = vmov 3   ;;  %v11816_v5 = vmov 0.0   ;;  %vm11817_vm0 = vmmov 0   ;;  %s14483_s0 = inlined_call_operand.vmem [shape: f32[32,384], index: 0, kind: input, shape index: {}]   ;;  %s14484_s1 = inlined_call_operand.vmem [shape: f32[8,384], index: 1, kind: input, shape index: {}]   ;;  %s14485_s2 = inlined_call_operand.vmem [shape: bf16[3,384,64], index: 2, kind: input, shape index: {}]   ;;  %s14486_s3 = inlined_call_operand.vmem [shape: bf16[55,64,64], index: 3, kind: input, shape index: {}]   ;;  %s14487_s4 = inlined_call_operand.vmem [shape: f32[24,64], index: 4, kind: input, shape index: {}]   ;;  %s14488_s5 = inlined_call_operand.vmem [shape: bf16[3,64,384], index: 5, kind: input, shape index: {}]   ;;  %s14489_s6 = inlined_call_operand.vmem [shape: f32[2,128,64], index: 6, kind: input, shape index: {}]   ;;  %s14490_s7 = inlined_call_operand.vmem [shape: f32[2,128], index: 7, kind: input, shape index: {}]   ;;  %s14491_s8 = inlined_call_operand.vmem [shape: bf16[34,17], index: 8, kind: input, shape index: {}]   ;;  %s14492_s9 = inlined_call_operand.vmem [shape: bf16[68,34], index: 9, kind: input, shape index: {}]   ;;  %s14493_s10 = inlined_call_operand.hbm [shape: f32[32,384], index: 10, kind: output, shape index: {0}]   ;;  %s14494_s11 = inlined_call_operand.vmem [shape: f32[2,128], index: 11, kind: output, shape index: {1}]   ;;  %s14495_s12 = inlined_call_operand.vmem [shape: f32[2,128], index: 12, kind: output, shape index: {2}]  }
   0x1   :  { %11435 = vset.pattern.permute.xlu0 %v11815_v1  ;;  %v11892_v2 = vld [vmem:[%s14484_s1] ss:$8 sm:$0x7]  ;;  %v11897_v3 = vld [vmem:[%s14484_s1 + $0x1] ss:$8 sm:$0x7]  ;;  %11436 = vset.pattern.permute.xlu1 %v11815_v1 }
   0x2   :  { %v11900_v4 = vshrl.u32 %v14496_v0, 7  ;;  %10264 = vmatprep.subr.bf16.mxu1 %v11816_v5  ;;  %141 = vst [vmem:[#allocation2] sm:$0xff] %v11816_v5  ;;  %144 = vst [vmem:[#allocation2 + $0x18] sm:$0xf] %v11816_v5  ;;  %v11437_v6 = vld [vmem:[%s14485_s2 + $0x100] sm:$0xff]   ;;  %v217_v10 = vld [vmem:[%s14483_s0 + $0x30] sm:$0xff]  ;;  %10280 = vmatprep.mubr.msk.bf16.mxu1 %vm11817_vm0, %v11816_v5 }
   0x3   :  { %145 = vst [vmem:[#allocation2 + $0x20] sm:$0xf] %v11816_v5  ;;  %146 = vst [vmem:[#allocation2 + $0x28] sm:$0xf] %v11816_v5  ;;  %v211_v7 = vld [vmem:[%s14483_s0] sm:$0xff]  ;;  %9717 = vmatprep.subr.bf16.mxu0 %v11437_v6  ;;  %v214_v12 = vld [vmem:[%s14483_s0 + $0x18] sm:$0xff] }
   0x4   :  { %147 = vst [vmem:[#allocation2 + $0x48] sm:$0xf0] %v11816_v5  ;;  %148 = vst [vmem:[#allocation2 + $0x50] sm:$0xf0] %v11816_v5  ;;  %v11438_v8 = vld [vmem:[%s14485_s2 + $0x140] sm:$0xff]   ;;  %v11923_v9 = vsub.s32 0, %v11900_v4 }
   0x5   :  { %149 = vst [vmem:[#allocation2 + $0x58] sm:$0xf0] %v11816_v5  ;;  %153 = vst [vmem:[#allocation2 + $0xa8] sm:$0xff] %v11816_v5  ;;  %v11439_v11 = vld [vmem:[%s14485_s2 + $0xc0] sm:$0xff]   ;;  %v220_v13 = vld [vmem:[%s14483_s0 + $0x48] sm:$0xff]  ;;  %10265 = vmatpush3.bf16.msra.mxu1 %v11438_v8  ;;  %v12036_v52 = vsub.s32 1, %v11900_v4 }
   0x6   :  { %154 = vst [vmem:[#allocation2 + $0xb0] sm:$0xff] %v11816_v5  ;;  %155 = vst [vmem:[#allocation2 + $0xb8] sm:$0xff] %v11816_v5  ;;  %v227_v14 = vrot.slane %v11897_v3, %v11923_v9  ;;  %v11941_v15 = vrot.slane %v11892_v2, %v11923_v9  ;;  %9718 = vmatpush3.bf16.msra.mxu0 %v11439_v11  ;;  %10266 = vmatprep.subr.bf16.mxu1 %v11816_v5  ;;  %v11440_v20 = vld [vmem:[%s14485_s2 + $0x108] sm:$0xff]   ;;  %v11443_v27 = vld [vmem:[%s14485_s2 + $0x110] sm:$0xff]   ;;  %v12039_v53 = vsub.s32 2, %v11900_v4  ;;  %vm401_vm1 = vcmask 1043456  }
   0x7   :  { %v11441_v21 = vld [vmem:[%s14485_s2 + $0x148] sm:$0xff]   ;;  %9719 = vmatprep.subr.bf16.mxu0 %v11440_v20  ;;  %v11444_v28 = vld [vmem:[%s14485_s2 + $0x150] sm:$0xff]   ;;  %v11446_v30 = vld [vmem:[%s14485_s2 + $0x118] sm:$0xff]   ;;  %v231_v58 = vrot.slane %v11897_v3, %v12036_v52  ;;  %vm581_vm2 = vcmask 1045504   ;;  %vm864_vm3 = vsmask.f32 6400 }
   0x8   :  { %14510 = vst [vmem:[#allocation17_spill] sm:$0xff] %v11941_v15  ;;  %v239_v16 = vmul.f32 %v227_v14, %v211_v7  ;;  %v245_v17 = vmul.f32 %v227_v14, %v217_v10  ;;  %v242_v18 = vmul.f32 %v227_v14, %v214_v12  ;;  %v248_v19 = vmul.f32 %v227_v14, %v220_v13  ;;  %v11442_v24 = vld [vmem:[%s14485_s2 + $0xc8] sm:$0xff]   ;;  %v11445_v29 = vld [vmem:[%s14485_s2 + $0xd0] sm:$0xff]   ;;  %v11447_v31 = vld [vmem:[%s14485_s2 + $0x158] sm:$0xff]  }
   0x9   :  { %10267 = vmatpush3.bf16.msra.mxu1 %v11441_v21  ;;  %v11448_v32 = vld [vmem:[%s14485_s2 + $0xd8] sm:$0xff]   ;;  %v11449_v33 = vld [vmem:[%s14485_s2 + $0x120] sm:$0xff]   ;;  %v11452_v36 = vld [vmem:[%s14485_s2 + $0x128] sm:$0xff]   ;;  %v235_v60 = vrot.slane %v11897_v3, %v12039_v53  ;;  %v12081_v8 = vrot.slane %v11892_v2, %v12039_v53  ;;  %vm1292_vm4 = vsmask.f32 5376 }
   0xa   :  { %v11951_v22 = vadd.f32 %v11941_v15, %v239_v16  ;;  %v11954_v23 = vadd.f32 %v11941_v15, %v245_v17  ;;  %v11962_v25 = vadd.f32 %v11941_v15, %v242_v18  ;;  %v11965_v26 = vadd.f32 %v11941_v15, %v248_v19  ;;  %9720 = vmatpush3.bf16.msra.mxu0 %v11442_v24  ;;  %v11450_v34 = vld [vmem:[%s14485_s2 + $0x160] sm:$0xff]   ;;  %v11453_v37 = vld [vmem:[%s14485_s2 + $0x168] sm:$0xff]   ;;  %v11455_v39 = vld [vmem:[%s14485_s2 + $0x130] sm:$0xff]  }
   0xb   :  { %10268 = vmatprep.subr.bf16.mxu1 %v11816_v5  ;;  %9721 = vmatprep.subr.bf16.mxu0 %v11443_v27  ;;  %v11451_v35 = vld [vmem:[%s14485_s2 + $0xe0] sm:$0xff]   ;;  %v11454_v38 = vld [vmem:[%s14485_s2 + $0xe8] sm:$0xff]   ;;  %v11456_v40 = vld [vmem:[%s14485_s2 + $0x170] sm:$0xff]   ;;  %14512 = vst [vmem:[#allocation19_spill] sm:$0xff] %v12081_v8 }
   0xc   :  { %281 = vperm.xlu0 %11435, %v11951_v22   ;;  %291 = vperm.xlu1 %11436, %v11954_v23   ;;  %v11457_v41 = vld [vmem:[%s14485_s2 + $0xf0] sm:$0xff]   ;;  %v11458_v42 = vld [vmem:[%s14485_s2 + $0x138] sm:$0xff]   ;;  %v11461_v45 = vld [vmem:[%s14485_s2 + $0x40] sm:$0xff]  }
   0xd   :  { %10269 = vmatpush3.bf16.msra.mxu1 %v11444_v28  ;;  %v11459_v43 = vld [vmem:[%s14485_s2 + $0x178] sm:$0xff]   ;;  %v1229_v46 = vld [vmem:[#allocation2 + $0xb0] sm:$0x1]  ;;  %v1228_v48 = vld [vmem:[#allocation2 + $0xa8] sm:$0x1] }
   0xe   :  { %9722 = vmatpush3.bf16.msra.mxu0 %v11445_v29  ;;  %10270 = vmatprep.subr.bf16.mxu1 %v11816_v5  ;;  %v11460_v44 = vld [vmem:[%s14485_s2 + $0xf8] sm:$0xff]   ;;  %v1241_v49 = vpack.c.bf16 %v1229_v46, %v1229_v46  ;;  %v1240_v51 = vpack.c.bf16 %v1228_v48, %v1228_v48  ;;  %v212_v57 = vld [vmem:[%s14483_s0 + $0x8] sm:$0xff]  ;;  %v213_v59 = vld [vmem:[%s14483_s0 + $0x10] sm:$0xff] }
   0xf   :  { %9723 = vmatprep.subr.bf16.mxu0 %v11446_v30  ;;  %v1230_v47 = vld [vmem:[#allocation2 + $0xb8] sm:$0x1]  ;;  %v8620_v61 = vld [vmem:[%s14484_s1 + $0x3] ss:$8 sm:$0x7]  ;;  %v240_v3 = vmul.f32 %v231_v58, %v212_v57  ;;  %v241_v11 = vmul.f32 %v235_v60, %v213_v59 }
  0x10   :  { %286 = vperm.xlu0 %11435, %v11962_v25   ;;  %296 = vperm.xlu1 %11436, %v11965_v26   ;;  %v1242_v50 = vpack.c.bf16 %v1230_v47, %v1230_v47  ;;  %v12041_v54 = vshll.u32 %v1241_v49, 16  ;;  %v12045_v56 = vshll.u32 %v1240_v51, 16  ;;  %v218_v62 = vld [vmem:[%s14483_s0 + $0x38] sm:$0xff]  ;;  %v219_v63 = vld [vmem:[%s14483_s0 + $0x40] sm:$0xff]  ;;  %v216_v7 = vld [vmem:[%s14483_s0 + $0x28] sm:$0xff]  ;;  %v12093_v14 = vrot.slane %v8620_v61, %v11923_v9 }
  0x11   :  { %10271 = vmatpush3.bf16.msra.mxu1 %v11447_v31  ;;  %v8621_v1 = vld [vmem:[%s14484_s1 + $0x4] ss:$8 sm:$0x7]  ;;  %v8623_v10 = vld [vmem:[%s14484_s1 + $0x6] ss:$8 sm:$0x7]  ;;  %v246_v16 = vmul.f32 %v231_v58, %v218_v62  ;;  %v247_v17 = vmul.f32 %v235_v60, %v219_v63  ;;  %v12097_v18 = vrot.slane %v8620_v61, %v12036_v52  ;;  %v12100_v19 = vrot.slane %v8620_v61, %v12039_v53 }
  0x12   :  { %9724 = vmatpush3.bf16.msra.mxu0 %v11448_v32  ;;  %10272 = vmatprep.subr.bf16.mxu1 %v11816_v5  ;;  %v12043_v55 = vshll.u32 %v1242_v50, 16  ;;  %v215_v6 = vld [vmem:[%s14483_s0 + $0x20] sm:$0xff]  ;;  %v221_v12 = vld [vmem:[%s14483_s0 + $0x50] sm:$0xff]  ;;  %v222_v13 = vld [vmem:[%s14483_s0 + $0x58] sm:$0xff]  ;;  %v12103_v20 = vrot.slane %v8621_v1, %v11923_v9  ;;  %v269_v21 = vadd.f32 %v12081_v8, %v241_v11  ;;  %v12107_v24 = vrot.slane %v8621_v1, %v12036_v52 }
  0x13   :  { %9725 = vmatprep.subr.bf16.mxu0 %v11449_v33  ;;  %14513 = vst [vmem:[#allocation20_spill] sm:$0xff] %v12100_v19  ;;  %v243_v27 = vmul.f32 %v231_v58, %v215_v6  ;;  %v244_v28 = vmul.f32 %v235_v60, %v216_v7  ;;  %v12110_v29 = vrot.slane %v8621_v1, %v12039_v53 }
  0x14   :  { %v12113_v30 = vrot.slane %v8623_v10, %v11923_v9  ;;  %v12116_v31 = vrot.slane %v8623_v10, %v12036_v52  ;;  %v12119_v32 = vrot.slane %v8623_v10, %v12039_v53 }
  0x15   :  { %10273 = vmatpush3.bf16.msra.mxu1 %v11450_v34  ;;  %v272_v46 = vadd.f32 %v12081_v8, %v244_v28 }
  0x16   :  { %9726 = vmatpush3.bf16.msra.mxu0 %v11451_v35  ;;  %10274 = vmatprep.subr.bf16.mxu1 %v11816_v5  ;;  %v275_v35 = vadd.f32 %v12081_v8, %v247_v17 }
  0x17   :  { %9727 = vmatprep.subr.bf16.mxu0 %v11452_v36 }
  0x19   :  { %10275 = vmatpush3.bf16.msra.mxu1 %v11453_v37  ;;  %v249_v37 = vmul.f32 %v231_v58, %v221_v12 }
  0x1a   :  { %9728 = vmatpush3.bf16.msra.mxu0 %v11454_v38  ;;  %10276 = vmatprep.subr.bf16.mxu1 %v11816_v5  ;;  %v250_v38 = vmul.f32 %v235_v60, %v222_v13 }
  0x1b   :  { %9729 = vmatprep.subr.bf16.mxu0 %v11455_v39 }
  0x1c   :  { %v278_v60 = vadd.f32 %v12081_v8, %v250_v38 }
  0x1d   :  { %10277 = vmatpush3.bf16.msra.mxu1 %v11456_v40 }
  0x1e   :  { %9730 = vmatpush3.bf16.msra.mxu0 %v11457_v41  ;;  %10278 = vmatprep.subr.bf16.mxu1 %v11816_v5 }
  0x1f   :  { %9731 = vmatprep.subr.bf16.mxu0 %v11458_v42 }
  0x21   :  { %10279 = vmatpush3.bf16.msra.mxu1 %v11459_v43 }
  0x22   :  { %9732 = vmatpush3.bf16.msra.mxu0 %v11460_v44  ;;  %10292 = vmatprep.subr.bf16.mxu1 %v11816_v5  ;;  %v12071_v5 = vrot.slane %v11892_v2, %v12036_v52 }
  0x23   :  { %9762 = vmatprep.subr.bf16.mxu0 %v11461_v45 }
  0x24   :  { %14511 = vst [vmem:[#allocation18_spill] sm:$0xff] %v12071_v5  ;;  %v268_v2 = vadd.f32 %v12071_v5, %v240_v3  ;;  %v274_v34 = vadd.f32 %v12071_v5, %v246_v16  ;;  %v271_v45 = vadd.f32 %v12071_v5, %v243_v27  ;;  %v277_v59 = vadd.f32 %v12071_v5, %v249_v37 }
  0x8b   :  { %v282_v33 = vpop.permute.xlu0 %281  ;;  %v292_v36 = vpop.permute.xlu1 %291 }
  0x8c   :  { %v315_v39 = vmul.f32 %v12093_v14, %v282_v33  ;;  %v316_v40 = vmul.f32 %v12097_v18, %v282_v33  ;;  %v317_v41 = vmul.f32 %v12100_v19, %v282_v33  ;;  %v321_v42 = vmul.f32 %v12093_v14, %v292_v36 }
  0x8d   :  { %v322_v43 = vmul.f32 %v12097_v18, %v292_v36  ;;  %v323_v44 = vmul.f32 %v12100_v19, %v292_v36 }
  0x8e   :  { %v327_v47 = vsub.f32 %v11951_v22, %v315_v39  ;;  %v328_v48 = vsub.f32 %v268_v2, %v316_v40  ;;  %v329_v49 = vsub.f32 %v269_v21, %v317_v41  ;;  %v333_v50 = vsub.f32 %v11954_v23, %v321_v42 }
  0x8f   :  { %v334_v51 = vsub.f32 %v274_v34, %v322_v43  ;;  %v335_v57 = vsub.f32 %v275_v35, %v323_v44  ;;  %v287_v58 = vpop.permute.xlu0 %286  ;;  %v297_v13 = vpop.permute.xlu1 %296 }
  0x90   :  { %v355_v61 = vsub.f32 %v327_v47, %v12103_v20  ;;  %v356_v62 = vsub.f32 %v328_v48, %v12107_v24  ;;  %v357_v63 = vsub.f32 %v329_v49, %v12110_v29  ;;  %v361_v1 = vsub.f32 %v333_v50, %v12103_v20 }
  0x91   :  { %v362_v22 = vsub.f32 %v334_v51, %v12107_v24  ;;  %v363_v23 = vsub.f32 %v335_v57, %v12110_v29  ;;  %v318_v3 = vmul.f32 %v12093_v14, %v287_v58  ;;  %v319_v6 = vmul.f32 %v12097_v18, %v287_v58 }
  0x92   :  { %v383_v7 = vmul.f32 %v12113_v30, %v355_v61  ;;  %v384_v10 = vmul.f32 %v12116_v31, %v356_v62  ;;  %v385_v11 = vmul.f32 %v12119_v32, %v357_v63  ;;  %v12147_v12 = vmul.f32 %v12113_v30, %v361_v1 }
  0x93   :  { %v12150_v16 = vmul.f32 %v12116_v31, %v362_v22  ;;  %v12153_v17 = vmul.f32 %v12119_v32, %v363_v23  ;;  %v320_v2 = vmul.f32 %v12100_v19, %v287_v58  ;;  %v330_v21 = vsub.f32 %v11962_v25, %v318_v3 }
  0x94   :  { %v402_v27 = vrot.slane %v383_v7, 4  ;;  %v403_v28 = vrot.slane %v384_v10, 4  ;;  %v404_v33 = vrot.slane %v385_v11, 4  ;;  %429 = vst [vmem:[#allocation2 + $0x78] sm:$0xff] %v12147_v12  ;;  %v331_v34 = vsub.f32 %v271_v45, %v319_v6 }
  0x95   :  { %430 = vst [vmem:[#allocation2 + $0x80] sm:$0xff] %v12150_v16  ;;  %431 = vst [vmem:[#allocation2 + $0x88] sm:$0xff] %v12153_v17  ;;  %v332_v35 = vsub.f32 %v272_v46, %v320_v2  ;;  %v358_v36 = vsub.f32 %v330_v21, %v12103_v20  ;;  %v324_v37 = vmul.f32 %v12093_v14, %v297_v13 }
  0x96   :  { %v325_v38 = vmul.f32 %v12097_v18, %v297_v13  ;;  %420 = vst [vmem:[#allocation2 + $0x18] sm:$0xf0] %v402_v27  ;;  %421 = vst [vmem:[#allocation2 + $0x20] sm:$0xf0] %v403_v28  ;;  %v359_v25 = vsub.f32 %v331_v34, %v12107_v24  ;;  %v326_v39 = vmul.f32 %v12100_v19, %v297_v13 }
  0x97   :  { %422 = vst [vmem:[#allocation2 + $0x28] sm:$0xf0] %v404_v33  ;;  %v360_v40 = vsub.f32 %v332_v35, %v12110_v29  ;;  %v386_v41 = vmul.f32 %v12113_v30, %v358_v36  ;;  %v336_v42 = vsub.f32 %v11965_v26, %v324_v37 }
  0x98   :  { %v337_v43 = vsub.f32 %v277_v59, %v325_v38  ;;  %v387_v44 = vmul.f32 %v12116_v31, %v359_v25  ;;  %v338_v45 = vsub.f32 %v278_v60, %v326_v39 }
  0x99   :  { %v388_v46 = vmul.f32 %v12119_v32, %v360_v40  ;;  %v405_v47 = vrot.slane %v386_v41, 4  ;;  %v364_v48 = vsub.f32 %v336_v42, %v12103_v20 }
  0x9a   :  { %v365_v49 = vsub.f32 %v337_v43, %v12107_v24  ;;  %v407_v50 = vrot.slane %v387_v44, 4  ;;  %v366_v51 = vsub.f32 %v338_v45, %v12110_v29 }
  0x9b   :  { %v12174_v57 = vsel %vm401_vm1, %v402_v27, %v405_v47  ;;  %v409_v58 = vrot.slane %v388_v46, 4  ;;  %426 = vst [vmem:[#allocation2 + $0x48] sm:$0xf] %v405_v47  ;;  %v12177_v26 = vmul.f32 %v12113_v30, %v364_v48  ;;  %v12217_v47 = vld [vmem:[#allocation2] sm:$0xff] }
  0x9c   :  { %v12180_v59 = vmul.f32 %v12116_v31, %v365_v49  ;;  %v12183_v60 = vsel %vm401_vm1, %v403_v28, %v407_v50  ;;  %427 = vst [vmem:[#allocation2 + $0x50] sm:$0xf] %v407_v50  ;;  %v12186_v61 = vmul.f32 %v12119_v32, %v366_v51 }
  0x9d   :  { %v12191_v1 = vsel %vm401_vm1, %v404_v33, %v409_v58  ;;  %428 = vst [vmem:[#allocation2 + $0x58] sm:$0xf] %v409_v58  ;;  %432 = vst [vmem:[#allocation2 + $0x90] sm:$0xff] %v12177_v26  ;;  %v437_v30 = vld [vmem:[#allocation2 + $0x20] sm:$0xf8]  ;;  %v520_v28 = vpack.c.bf16 %v12177_v26, %v12147_v12 }
  0x9e   :  { %433 = vst [vmem:[#allocation2 + $0x98] sm:$0xff] %v12180_v59  ;;  %v512_v31 = vld [vmem:[#allocation2 + $0x20] sm:$0xf0]  ;;  %v438_v22 = vld [vmem:[#allocation2 + $0x28] sm:$0xf8]  ;;  %v521_v32 = vpack.c.bf16 %v12180_v59, %v12150_v16  ;;  %434 = vst [vmem:[#allocation2 + $0xa0] sm:$0xff] %v12186_v61  ;;  %v455_v23 = vpack.c.bf16 %v12183_v60, %v437_v30  ;;  %v522_v13 = vpack.c.bf16 %v12186_v61, %v12153_v17 }
  0x9f   :  { %v518_v3 = vpack.c.bf16 %v12183_v60, %v512_v31  ;;  %v456_v6 = vpack.c.bf16 %v12191_v1, %v438_v22  ;;  %v513_v7 = vld [vmem:[#allocation2 + $0x28] sm:$0xf0]  ;;  %v436_v10 = vld [vmem:[#allocation2 + $0x18] sm:$0xf8]  ;;  %v12222_v49 = vrot.slane %v520_v28, 2 }
  0xa0   :  { %v511_v11 = vld [vmem:[#allocation2 + $0x18] sm:$0xf0]  ;;  %v519_v2 = vpack.c.bf16 %v12191_v1, %v513_v7  ;;  %v454_v21 = vpack.c.bf16 %v12174_v57, %v436_v10  ;;  %v12208_v35 = vrot.slane %v521_v32, 2  ;;  %v12211_v39 = vrot.slane %v522_v13, 2  ;;  %v11462_v7 = vld [vmem:[%s14485_s2 + $0x80] sm:$0xff]  }
  0xa1   :  { %v517_v27 = vpack.c.bf16 %v12174_v57, %v511_v11  ;;  %v900_v33 = vshrl.u32 %v456_v6, 16  ;;  %v903_v34 = vshll.u32 %v456_v6, 16  ;;  %v585_v37 = vrot.slane %v518_v3, 2  ;;  %v1211_v3 = vld [vmem:[#allocation2 + $0x20] sm:$0xe0] }
  0xa2   :  { %v866_v38 = vshrl.u32 %v454_v21, 16  ;;  %v869_v25 = vshll.u32 %v454_v21, 16  ;;  %v588_v40 = vrot.slane %v519_v2, 2  ;;  %v442_v42 = vld [vmem:[#allocation2 + $0x48] sm:$0xff]  ;;  %v883_v44 = vshrl.u32 %v455_v23, 16  ;;  %v11463_v10 = vld [vmem:[%s14485_s2] sm:$0xff]  }
  0xa3   :  { %v12213_v41 = vrot.slane %v900_v33, 1  ;;  %v582_v43 = vrot.slane %v517_v27, 2  ;;  %v443_v45 = vld [vmem:[#allocation2 + $0x50] sm:$0xff]  ;;  %v12215_v46 = vrot.slane %v903_v34, 2  ;;  %v12220_v48 = vpack.c.bf16 %v12217_v47, %v442_v42  ;;  %v1212_v63 = vld [vmem:[#allocation2 + $0x28] sm:$0xe0] }
  0xa4   :  { %v886_v50 = vshll.u32 %v455_v23, 16  ;;  %v12225_v51 = vpack.c.bf16 %v12217_v47, %v443_v45  ;;  %v444_v58 = vld [vmem:[#allocation2 + $0x58] sm:$0xff]  ;;  %v12227_v30 = vrot.slane %v866_v38, 1  ;;  %v12229_v31 = vrot.slane %v869_v25, 2  ;;  %v451_v13 = vld [vmem:[#allocation2 + $0x90] sm:$0x7f] }
  0xa5   :  { %v452_v22 = vld [vmem:[#allocation2 + $0x98] sm:$0x7f]  ;;  %v12231_v32 = vrot.slane %v883_v44, 1  ;;  %v12234_v6 = vpack.c.bf16 %v12217_v47, %v444_v58  ;;  %v14501_v23 = vrot.slane %v12220_v48, 2  ;;  %v453_v11 = vld [vmem:[#allocation2 + $0xa0] sm:$0x7f]  ;;  %v1232_v58 = vpack.c.bf16 %v12183_v60, %v1211_v3 }
  0xa6   :  { %v586_v2 = vrot.slane %v12225_v51, 2  ;;  %v12244_v21 = vrot.slane %v886_v50, 2  ;;  %v14500_v27 = vshrl.u32 %v12225_v51, 16  ;;  %v461_v34 = vpack.c.bf16 %v452_v22, %v12150_v16  ;;  %v11464_v38 = vld [vmem:[%s14485_s2 + $0x48] sm:$0xff]  }
  0xa7   :  { %v589_v28 = vrot.slane %v12234_v6, 2  ;;  %v584_v33 = vsel %vm581_vm2, %v582_v43, %v14501_v23  ;;  %v14499_v25 = vshll.u32 %v12225_v51, 16  ;;  %v462_v44 = vpack.c.bf16 %v453_v11, %v12153_v17  ;;  %v11465_v16 = vld [vmem:[%s14485_s2 + $0x88] sm:$0xff]  }
  0xa8   :  { %v587_v42 = vsel %vm581_vm2, %v585_v37, %v586_v2  ;;  %v12260_v45 = vrot.slane %v14500_v27, 1  ;;  %v11466_v43 = vld [vmem:[%s14485_s2 + $0x8] sm:$0xff]   ;;  %v908_v17 = vshrl.u32 %v12234_v6, 16  ;;  %v460_v22 = vpack.c.bf16 %v451_v13, %v12147_v12 }
  0xa9   :  { %782 = vmatprep.mubr.bf16.mxu0 %v587_v42  ;;  %v590_v50 = vsel %vm581_vm2, %v588_v40, %v589_v28  ;;  %v12271_v37 = vrot.slane %v14499_v25, 2  ;;  %v11467_v40 = vld [vmem:[%s14485_s2 + $0x50] sm:$0xff]   ;;  %v911_v11 = vshll.u32 %v12234_v6, 16  ;;  %v14498_v42 = vshrl.u32 %v12220_v48, 16 }
  0xaa   :  { %10281 = vmatmul.mubr.bf16.vlgmr.msra.gmra.mrb[0].mxu1 %v590_v50  ;;  %783 = vmatmul.mubr.bf16.vlgmr.msra.gmra.mrb[0].mxu0 %v584_v33  ;;  %v14497_v0 = vshll.u32 %v12220_v48, 16  ;;  %v594_v36 = vsel %vm581_vm2, %v586_v2, %v12208_v35  ;;  %v12284_v60 = vrot.slane %v908_v17, 1  ;;  %v926_v3 = vshrl.u32 %v461_v34, 16 }
  0xab   :  { %10293 = vmatpush3.bf16.msra.mxu1 %v11462_v7  ;;  %9763 = vmatpush3.bf16.msra.mxu0 %v11463_v10  ;;  %v929_v33 = vshll.u32 %v461_v34, 16  ;;  %v12287_v50 = vrot.slane %v911_v11, 2  ;;  %v12291_v12 = vrot.slane %v14498_v42, 1  ;;  %v935_v7 = vshrl.u32 %v462_v44, 16  ;;  %v11469_v10 = vld [vmem:[%s14485_s2 + $0x10] sm:$0xff]   ;;  %v11470_v42 = vld [vmem:[%s14485_s2 + $0x58] sm:$0xff]  }
  0xac   :  { %790 = vmatprep.mubr.bf16.mxu0 %v594_v36  ;;  %10294 = vmatprep.subr.bf16.mxu1 %v12217_v47  ;;  %v12295_v6 = vrot.slane %v14497_v0, 2  ;;  %v11468_v36 = vld [vmem:[%s14485_s2 + $0x90] sm:$0xff]   ;;  %v12305_v13 = vrot.slane %v926_v3, 1  ;;  %v938_v34 = vshll.u32 %v462_v44, 16  ;;  %v1223_v0 = vld [vmem:[#allocation2 + $0x80] sm:$0xff]  ;;  %v920_v27 = vshll.u32 %v460_v22, 16 }
  0xad   :  { %9764 = vmatprep.subr.bf16.mxu0 %v11464_v38  ;;  %10284 = vmatprep.mubr.msk.bf16.mxu1 %vm11817_vm0, %v12217_v47  ;;  %v12307_v2 = vrot.slane %v929_v33, 2  ;;  %v12309_v62 = vrot.slane %v935_v7, 1  ;;  %v917_v38 = vshrl.u32 %v460_v22, 16  ;;  %v1311_v23 = vshrl.u32 %v1232_v58, 16  ;;  %v1210_v33 = vld [vmem:[#allocation2 + $0x18] sm:$0xe0] }
  0xae   :  { %v12314_v25 = vrot.slane %v938_v34, 2  ;;  %v1314_v3 = vshll.u32 %v1232_v58, 16  ;;  %v11471_v22 = vld [vmem:[%s14485_s2 + $0x98] sm:$0xff]   ;;  %v12331_v34 = vrot.slane %v920_v27, 2  ;;  %v14516_v5 = vshll.u32 %v12225_v51, 16 }
  0xaf   :  { %10295 = vmatpush3.bf16.msra.mxu1 %v11465_v16  ;;  %9765 = vmatpush3.bf16.msra.mxu0 %v11466_v43  ;;  %v12317_v44 = vrot.slane %v917_v38, 1  ;;  %v596_v16 = vsel %vm581_vm2, %v589_v28, %v12211_v39  ;;  %v14514_v43 = vrot.slane %v12220_v48, 2  ;;  %v12333_v58 = vrot.slane %v1311_v23, 2  ;;  %v11473_v28 = vld [vmem:[%s14485_s2 + $0x60] sm:$0xff]  }
  0xb0   :  { %10296 = vmatprep.subr.bf16.mxu1 %v12217_v47  ;;  %9766 = vmatprep.subr.bf16.mxu0 %v11467_v40  ;;  %v11472_v40 = vld [vmem:[%s14485_s2 + $0x18] sm:$0xff]   ;;  %v12338_v38 = vrot.slane %v1314_v3, 3  ;;  %v12346_v15 = vrot.slane %v14516_v5, 3  ;;  %v1233_v27 = vpack.c.bf16 %v12191_v1, %v1212_v63  ;;  %v12349_v23 = vrot.slane %v908_v17, 2  ;;  %v1224_v3 = vld [vmem:[#allocation2 + $0x88] sm:$0xff]  ;;  %v11474_v5 = vld [vmem:[%s14485_s2 + $0xa0] sm:$0xff]  }
  0xb1   :  { %v592_v7 = vsel %vm581_vm2, %v14514_v43, %v12222_v49  ;;  %v14515_v43 = vshrl.u32 %v12225_v51, 16  ;;  %v11475_v63 = vld [vmem:[%s14485_s2 + $0x20] sm:$0xff]   ;;  %v12371_v51 = vor.u32 %v12271_v37, %v12260_v45  ;;  %v11477_v45 = vld [vmem:[%s14485_s2 + $0xa8] sm:$0xff]  }
  0xb2   :  { %10285 = vmatmul.mubr.bf16.gmra.mrb[4].mxu1 %v596_v16  ;;  %791 = vmatmul.mubr.bf16.gmra.mrb[4].mxu0 %v592_v7  ;;  %v12351_v16 = vrot.slane %v911_v11, 3  ;;  %v1238_v7 = vpack.c.bf16 %v12180_v59, %v1223_v0  ;;  %v1331_v19 = vshll.u32 %v1233_v27, 16  ;;  %v1231_v0 = vpack.c.bf16 %v12174_v57, %v1210_v33  ;;  %v11476_v57 = vld [vmem:[%s14485_s2 + $0x68] sm:$0xff]  }
  0xb3   :  { %v12342_v8 = vrot.slane %v14515_v43, 2  ;;  %10297 = vmatpush3.bf16.msra.mxu1 %v11468_v36  ;;  %9767 = vmatpush3.bf16.msra.mxu0 %v11469_v10  ;;  %v1328_v43 = vshrl.u32 %v1233_v27, 16  ;;  %v14517_v59 = vshrl.u32 %v12220_v48, 16  ;;  %v11478_v37 = vld [vmem:[%s14485_s2 + $0x28] sm:$0xff]  }
  0xb4   :  { %798 = vmatprep.mubr.bf16.mxu0 %v12208_v35  ;;  %10298 = vmatprep.subr.bf16.mxu1 %v12217_v47  ;;  %v1222_v35 = vld [vmem:[#allocation2 + $0x78] sm:$0xff]  ;;  %v12375_v11 = vrot.slane %v1331_v19, 3  ;;  %v1294_v10 = vshrl.u32 %v1231_v0, 16  ;;  %v1297_v33 = vshll.u32 %v1231_v0, 16  ;;  %v1354_v27 = vshrl.u32 %v1238_v7, 16 }
  0xb5   :  { %9768 = vmatprep.subr.bf16.mxu0 %v11470_v42  ;;  %10288 = vmatprep.mubr.msk.bf16.mxu1 %vm11817_vm0, %v12217_v47  ;;  %v12367_v1 = vrot.slane %v14517_v59, 2  ;;  %v12373_v17 = vrot.slane %v1328_v43, 2  ;;  %v14518_v42 = vshll.u32 %v12220_v48, 16  ;;  %v1357_v59 = vshll.u32 %v1238_v7, 16 }
  0xb6   :  { %v889_v19 = vor.u32 %v12244_v21, %v12231_v32  ;;  %v1239_v48 = vpack.c.bf16 %v12186_v61, %v1224_v3  ;;  %v12398_v7 = vrot.slane %v1354_v27, 2  ;;  %v11479_v61 = vld [vmem:[%s14485_s2 + $0x70] sm:$0xff]   ;;  %v1237_v3 = vpack.c.bf16 %v12177_v26, %v1222_v35  ;;  %v11485_v27 = vld [vmem:[%s14485_s2 + $0x1c0] sm:$0xff]  }
  0xb7   :  { %v12379_v36 = vrot.slane %v14518_v42, 3  ;;  %10299 = vmatpush3.bf16.msra.mxu1 %v11471_v22  ;;  %9769 = vmatpush3.bf16.msra.mxu0 %v11472_v40  ;;  %v12394_v22 = vrot.slane %v1294_v10, 2  ;;  %v12396_v40 = vrot.slane %v1297_v33, 3  ;;  %v11480_v10 = vld [vmem:[%s14485_s2 + $0xb0] sm:$0xff]   ;;  %v11484_v33 = vld [vmem:[%s14485_s2 + $0x38] sm:$0xff]  }
  0xb8   :  { %10300 = vmatprep.subr.bf16.mxu1 %v12217_v47  ;;  %9770 = vmatprep.subr.bf16.mxu0 %v11473_v28  ;;  %v12400_v28 = vrot.slane %v1357_v59, 3  ;;  %v1363_v32 = vshrl.u32 %v1239_v48, 16  ;;  %v1366_v21 = vshll.u32 %v1239_v48, 16  ;;  %v898_v43 = vsel %vm864_vm3, %v889_v19, %v12371_v51  ;;  %v11481_v26 = vld [vmem:[%s14485_s2 + $0x30] sm:$0xff]   ;;  %v11486_v48 = vld [vmem:[%s14485_s2 + $0x200] sm:$0xff]  }
  0xb9   :  { %v1348_v42 = vshll.u32 %v1237_v3, 16  ;;  %v914_v59 = vor.u32 %v12287_v50, %v12284_v60  ;;  %v880_v19 = vor.u32 %v12295_v6, %v12291_v12  ;;  %v872_v60 = vor.u32 %v12229_v31, %v12227_v30  ;;  %v11488_v50 = vld [vmem:[%s14485_s2 + $0x1c8] sm:$0xff]   ;;  %v11491_v30 = vld [vmem:[%s14485_s2 + $0x1d0] sm:$0xff]  }
  0xba   :  { %10289 = vmatmul.mubr.bf16.gmra.mrb[8].mxu1 %v12211_v39  ;;  %799 = vmatmul.mubr.bf16.gmra.mrb[8].mxu0 %v12222_v49  ;;  %v12411_v0 = vrot.slane %v1363_v32, 2  ;;  %v12413_v39 = vrot.slane %v1366_v21, 3  ;;  %v1345_v49 = vshrl.u32 %v1237_v3, 16  ;;  %v941_v31 = vor.u32 %v12314_v25, %v12309_v62  ;;  %v11493_v32 = vld [vmem:[%s14485_s2 + $0x190] sm:$0xff]   ;;  %v11494_v21 = vld [vmem:[%s14485_s2 + $0x1d8] sm:$0xff]   ;;  %v11497_v3 = vld [vmem:[%s14485_s2 + $0x1e0] sm:$0xff]  }
  0xbb   :  { %10301 = vmatpush3.bf16.msra.mxu1 %v11474_v5  ;;  %9771 = vmatpush3.bf16.msra.mxu0 %v11475_v63  ;;  %v11482_v5 = vld [vmem:[%s14485_s2 + $0x78] sm:$0xff]   ;;  %v12428_v35 = vrot.slane %v1348_v42, 3  ;;  %v881_v6 = vsel %vm864_vm3, %v872_v60, %v880_v19  ;;  %v1325_v42 = vor.u32 %v12346_v15, %v12342_v8  ;;  %v11502_v8 = vld [vmem:[%s14485_s2 + $0x1a8] sm:$0xff]  }
  0xbc   :  { %1128 = vmatprep.mubr.bf16.mxu0 %v898_v43  ;;  %10302 = vmatprep.subr.bf16.mxu1 %v12217_v47  ;;  %v12426_v63 = vrot.slane %v1345_v49, 2  ;;  %v942_v62 = vsel %vm864_vm3, %v914_v59, %v941_v31  ;;  %v11498_v43 = vld [vmem:[%s14485_s2 + $0x220] sm:$0xff]  }
  0xbd   :  { %9772 = vmatprep.subr.bf16.mxu0 %v11476_v57  ;;  %10308 = vmatprep.mubr.msk.bf16.mxu1 %vm11817_vm0, %v12217_v47  ;;  %v11483_v57 = vld [vmem:[%s14485_s2 + $0xb8] sm:$0xff]   ;;  %v11499_v49 = vld [vmem:[%s14485_s2 + $0x1a0] sm:$0xff]  }
  0xbf   :  { %10303 = vmatpush3.bf16.msra.mxu1 %v11477_v45  ;;  %9773 = vmatpush3.bf16.msra.mxu0 %v11478_v37  ;;  %v932_v45 = vor.u32 %v12307_v2, %v12305_v13  ;;  %v11487_v37 = vld [vmem:[%s14485_s2 + $0x180] sm:$0xff]   ;;  %v11489_v13 = vld [vmem:[%s14485_s2 + $0x208] sm:$0xff]   ;;  %v923_v2 = vor.u32 %v12331_v34, %v12317_v44  ;;  %v11495_v44 = vld [vmem:[%s14485_s2 + $0x218] sm:$0xff]  }
  0xc0   :  { %10304 = vmatprep.subr.bf16.mxu1 %v12217_v47  ;;  %9774 = vmatprep.subr.bf16.mxu0 %v11479_v61  ;;  %v906_v61 = vor.u32 %v12215_v46, %v12213_v41  ;;  %v11490_v46 = vld [vmem:[%s14485_s2 + $0x188] sm:$0xff]   ;;  %v11496_v34 = vld [vmem:[%s14485_s2 + $0x198] sm:$0xff]  }
  0xc1   :  { %v933_v41 = vsel %vm864_vm3, %v12371_v51, %v932_v45  ;;  %v11492_v51 = vld [vmem:[%s14485_s2 + $0x210] sm:$0xff]   ;;  %v924_v25 = vsel %vm864_vm3, %v880_v19, %v923_v2  ;;  %v1342_v19 = vor.u32 %v12351_v16, %v12349_v23  ;;  %v1369_v16 = vor.u32 %v12413_v39, %v12411_v0 }
  0xc2   :  { %v915_v12 = vsel %vm864_vm3, %v906_v61, %v914_v59  ;;  %v11508_v59 = vld [vmem:[%s14485_s2 + $0x1b8] sm:$0xff]   ;;  %v1300_v61 = vor.u32 %v12396_v40, %v12394_v22  ;;  %v14520_v40 = vrot.slane %v12043_v55, 3 }
  0xc3   :  { %10305 = vmatpush3.bf16.msra.mxu1 %v11480_v10  ;;  %9775 = vmatpush3.bf16.msra.mxu0 %v11481_v26  ;;  %v11500_v10 = vld [vmem:[%s14485_s2 + $0x1e8] sm:$0xff]   ;;  %v1317_v26 = vor.u32 %v12338_v38, %v12333_v58  ;;  %v11504_v58 = vld [vmem:[%s14485_s2 + $0x230] sm:$0xff]  }
  0xc4   :  { %10306 = vmatprep.subr.bf16.mxu1 %v12217_v47  ;;  %9776 = vmatprep.subr.bf16.mxu0 %v11482_v5  ;;  %v11501_v5 = vld [vmem:[%s14485_s2 + $0x228] sm:$0xff]   ;;  %v11505_v38 = vld [vmem:[%s14485_s2 + $0x1b0] sm:$0xff]  }
  0xc5   :  { %v1326_v15 = vsel %vm1292_vm4, %v1317_v26, %v1325_v42 }
  0xc7   :  { %10307 = vmatpush3.bf16.msra.mxu1 %v11483_v57  ;;  %9777 = vmatpush3.bf16.msra.mxu0 %v11484_v33  ;;  %v11503_v57 = vld [vmem:[%s14485_s2 + $0x1f0] sm:$0xff]   ;;  %v11506_v33 = vld [vmem:[%s14485_s2 + $0x1f8] sm:$0xff]  }
  0xc8   :  { %10320 = vmatprep.subr.bf16.mxu1 %v12217_v47  ;;  %9807 = vmatprep.subr.bf16.mxu0 %v11485_v27  ;;  %v11507_v27 = vld [vmem:[%s14485_s2 + $0x238] sm:$0xff]  }
  0xca   :  { %10309 = vmatmul.mubr.bf16.vlgmr.msra.gmra.mrb[12].mxu1 %v915_v12  ;;  %1129 = vmatmul.mubr.bf16.vlgmr.msra.gmra.mrb[12].mxu0 %v881_v6 }
  0xcb   :  { %10321 = vmatpush3.bf16.msra.mxu1 %v11486_v48  ;;  %1136 = vmatprep.mubr.bf16.mxu0 %v933_v41  ;;  %v1308_v48 = vor.u32 %v12379_v36, %v12367_v1  ;;  %v1351_v1 = vor.u32 %v12428_v35, %v12426_v63  ;;  %v14519_v36 = vrot.slane %v12041_v54, 3 }
  0xcc   :  { %9808 = vmatpush3.bf16.msra.mxu0 %v11487_v37  ;;  %10322 = vmatprep.subr.bf16.mxu1 %v12217_v47  ;;  %v1360_v37 = vor.u32 %v12400_v28, %v12398_v7  ;;  %v1385_v7 = vsel %vm1292_vm4, %v1369_v16, %v14520_v40  ;;  %v14521_v28 = vrot.slane %v12045_v56, 3 }
  0xcd   :  { %9809 = vmatprep.subr.bf16.mxu0 %v11488_v50  ;;  %10312 = vmatprep.mubr.msk.bf16.mxu1 %vm11817_vm0, %v12217_v47  ;;  %v1309_v50 = vsel %vm1292_vm4, %v1300_v61, %v1308_v48 }
  0xce   :  { %v1361_v23 = vsel %vm1292_vm4, %v1325_v42, %v1360_v37  ;;  %v1380_v22 = vsel %vm1292_vm4, %v1360_v37, %v14519_v36  ;;  %v1375_v0 = vsel %vm1292_vm4, %v1351_v1, %v14521_v28 }
  0xcf   :  { %10323 = vmatpush3.bf16.msra.mxu1 %v11489_v13 }
  0xd0   :  { %9810 = vmatpush3.bf16.msra.mxu0 %v11490_v46  ;;  %10324 = vmatprep.subr.bf16.mxu1 %v12217_v47 }
  0xd1   :  { %9811 = vmatprep.subr.bf16.mxu0 %v11491_v30 }
  0xd2   :  { %10313 = vmatmul.mubr.bf16.gmra.mrb[16].mxu1 %v942_v62  ;;  %1137 = vmatmul.mubr.bf16.gmra.mrb[16].mxu0 %v924_v25 }
  0xd3   :  { %10325 = vmatpush3.bf16.msra.mxu1 %v11492_v51  ;;  %1144 = vmatprep.mubr.bf16.mxu0 %v932_v45  ;;  %v1334_v45 = vor.u32 %v12375_v11, %v12373_v17  ;;  %v1370_v17 = vsel %vm1292_vm4, %v1342_v19, %v1369_v16  ;;  %v1352_v11 = vsel %vm1292_vm4, %v1308_v48, %v1351_v1 }
  0xd4   :  { %9812 = vmatpush3.bf16.msra.mxu0 %v11493_v32  ;;  %10326 = vmatprep.subr.bf16.mxu1 %v12217_v47 }
  0xd5   :  { %9813 = vmatprep.subr.bf16.mxu0 %v11494_v21  ;;  %10316 = vmatprep.mubr.msk.bf16.mxu1 %vm11817_vm0, %v12217_v47  ;;  %v1343_v60 = vsel %vm1292_vm4, %v1334_v45, %v1342_v19 }
  0xd7   :  { %10327 = vmatpush3.bf16.msra.mxu1 %v11495_v44 }
  0xd8   :  { %9814 = vmatpush3.bf16.msra.mxu0 %v11496_v34  ;;  %10328 = vmatprep.subr.bf16.mxu1 %v12217_v47 }
  0xd9   :  { %9815 = vmatprep.subr.bf16.mxu0 %v11497_v3 }
  0xda   :  { %10317 = vmatmul.mubr.bf16.gmra.mrb[20].mxu1 %v941_v31  ;;  %1145 = vmatmul.mubr.bf16.gmra.mrb[20].mxu0 %v923_v2 }
  0xdb   :  { %10329 = vmatpush3.bf16.msra.mxu1 %v11498_v43  ;;  %1571 = vmatprep.mubr.bf16.mxu0 %v1326_v15 }
  0xdc   :  { %9816 = vmatpush3.bf16.msra.mxu0 %v11499_v49  ;;  %10330 = vmatprep.subr.bf16.mxu1 %v12217_v47 }
  0xdd   :  { %9817 = vmatprep.subr.bf16.mxu0 %v11500_v10  ;;  %10336 = vmatprep.mubr.msk.bf16.mxu1 %vm11817_vm0, %v12217_v47 }
  0xdf   :  { %10331 = vmatpush3.bf16.msra.mxu1 %v11501_v5 }
  0xe0   :  { %9818 = vmatpush3.bf16.msra.mxu0 %v11502_v8  ;;  %10332 = vmatprep.subr.bf16.mxu1 %v12217_v47 }
  0xe1   :  { %9819 = vmatprep.subr.bf16.mxu0 %v11503_v57 }
  0xe3   :  { %10333 = vmatpush3.bf16.msra.mxu1 %v11504_v58 }
  0xe4   :  { %9820 = vmatpush3.bf16.msra.mxu0 %v11505_v38  ;;  %10334 = vmatprep.subr.bf16.mxu1 %v12217_v47 }
  0xe5   :  { %9821 = vmatprep.subr.bf16.mxu0 %v11506_v33 }
  0xe7   :  { %10335 = vmatpush3.bf16.msra.mxu1 %v11507_v27 }
  0xe8   :  { %9822 = vmatpush3.bf16.msra.mxu0 %v11508_v59 }
  0xea   :  { %10337 = vmatmul.mubr.bf16.vlgmr.msra.gmra.mrb[24].mxu1 %v1343_v60 }
  0xeb   :  { %1572 = vmatmul.mubr.bf16.vlgmr.msra.gmra.mrb[24].mxu0 %v1309_v50  ;;  %10340 = vmatprep.mubr.msk.bf16.mxu1 %vm11817_vm0, %v12217_v47 }
  0xec   :  { %1579 = vmatprep.mubr.bf16.mxu0 %v1361_v23 }
  0xf2   :  { %10341 = vmatmul.mubr.bf16.gmra.mrb[28].mxu1 %v1370_v17 }
  0xf3   :  { %1580 = vmatmul.mubr.bf16.gmra.mrb[28].mxu0 %v1352_v11  ;;  %10344 = vmatprep.mubr.msk.bf16.mxu1 %vm11817_vm0, %v12217_v47 }
  0xf4   :  { %1587 = vmatprep.mubr.bf16.mxu0 %v1380_v22 }
  0xfa   :  { %10345 = vmatmul.mubr.bf16.gmra.mrb[32].mxu1 %v1385_v7 }
  0xfb   :  { %1588 = vmatmul.mubr.bf16.gmra.mrb[32].mxu0 %v1375_v0 }
  0xfc   :  { %18 = vsyncpa [#allocation15], 0  ;;  %vm159_vm5 = vcmask 523264   ;;  %v12581_v39 = vld [vmem:[#allocation2] sm:$0xff]  ;;  %vm161_vm6 = vcmask 519168   ;;  %v11511_v56 = vld [vmem:[%s14486_s3 + $0x28] sm:$0xff]  }
  0xfd   :  { %163 = vst.msk [vmem:[#allocation3 + $0x1c] sm:$0xff] %vm159_vm5, %v12581_v39  ;;  %165 = vst.msk [vmem:[#allocation3 + $0x38] sm:$0xff] %vm159_vm5, %v12581_v39  ;;  %v11509_v54 = vld [vmem:[%s14486_s3 + $0x20] sm:$0xff]   ;;  %v11512_v47 = vld [vmem:[%s14486_s3 + $0x8] sm:$0xff]   ;;  %vm167_vm9 = vcmask 521216   ;;  %vm171_vm12 = vcmask 518144  }
  0xfe   :  { %186 = vst.msk [vmem:[#allocation12 + $0x1c] sm:$0xff] %vm159_vm5, %v12581_v39  ;;  %188 = vst.msk [vmem:[#allocation12 + $0x38] sm:$0xff] %vm159_vm5, %v12581_v39  ;;  %10348 = vmatprep.subr.bf16.mxu0 %v11509_v54  ;;  %v11510_v55 = vld [vmem:[%s14486_s3] sm:$0xff]   ;;  %v11513_v63 = vld [vmem:[%s14486_s3 + $0x30] sm:$0xff]   ;;  %vm125_vm13 = vcmp.lt.s32.totalorder %v11900_v4, 4  ;;  %vm129_vm14 = vcmp.ge.s32.totalorder %v11900_v4, 7 }
  0xff   :  { %192 = vst.msk [vmem:[#allocation13 + $0x1c] sm:$0xff] %vm159_vm5, %v12581_v39  ;;  %194 = vst.msk [vmem:[#allocation13 + $0x38] sm:$0xff] %vm159_vm5, %v12581_v39  ;;  %10349 = vmatpush3.bf16.msra.mxu0 %v11509_v54  ;;  %10360 = vmatprep.subr.bf16.mxu1 %v11510_v55  ;;  %v11514_v35 = vld [vmem:[%s14486_s3 + $0x10] sm:$0xff]   ;;  %v11515_v12 = vld [vmem:[%s14486_s3 + $0x38] sm:$0xff]   ;;  %vm4175_vm4 = vcmask 523271  }
 0x100   :  { %164 = vst.msk [vmem:[#allocation3 + $0x24] sm:$0xf] %vm161_vm6, %v12581_v39  ;;  %162 = vst.msk [vmem:[#allocation3 + $0x8] sm:$0xf] %vm161_vm6, %v12581_v39  ;;  %10350 = vmatprep.subr.bf16.mxu0 %v11511_v56  ;;  %10361 = vmatpush3.bf16.msra.mxu1 %v11510_v55  ;;  %v11516_v6 = vld [vmem:[%s14486_s3 + $0x18] sm:$0xff]   ;;  %v12634_v13 = vld [vmem:[%s14486_s3 + $0x40] sm:$0xff]  }
 0x101   :  { %185 = vst.msk [vmem:[#allocation12 + $0x8] sm:$0xf] %vm161_vm6, %v12581_v39  ;;  %187 = vst.msk [vmem:[#allocation12 + $0x24] sm:$0xf] %vm161_vm6, %v12581_v39  ;;  %10362 = vmatprep.subr.bf16.mxu1 %v11512_v47  ;;  %v12640_v41 = vld [vmem:[%s14486_s3 + $0x60] sm:$0xff]  }
 0x102   :  { %191 = vst.msk [vmem:[#allocation13 + $0x8] sm:$0xf] %vm161_vm6, %v12581_v39  ;;  %193 = vst.msk [vmem:[#allocation13 + $0x24] sm:$0xf] %vm161_vm6, %v12581_v39 }
 0x103   :  { %10351 = vmatpush3.bf16.msra.mxu0 %v11511_v56  ;;  %168 = vst.msk [vmem:[#allocation4] sm:$0x3f] %vm167_vm9, %v12581_v39  ;;  %169 = vst.msk [vmem:[#allocation4 + $0xe] sm:$0x3f] %vm167_vm9, %v12581_v39 }
 0x104   :  { %10352 = vmatprep.subr.bf16.mxu0 %v11513_v63  ;;  %10363 = vmatpush3.bf16.msra.mxu1 %v11512_v47  ;;  %170 = vst.msk [vmem:[#allocation4 + $0x1c] sm:$0x3f] %vm167_vm9, %v12581_v39  ;;  %181 = vst.msk [vmem:[#allocation10] sm:$0x3f] %vm167_vm9, %v12581_v39 }
 0x105   :  { %10364 = vmatprep.subr.bf16.mxu1 %v11514_v35  ;;  %182 = vst.msk [vmem:[#allocation10 + $0xe] sm:$0x3f] %vm167_vm9, %v12581_v39  ;;  %183 = vst.msk [vmem:[#allocation10 + $0x1c] sm:$0x3f] %vm167_vm9, %v12581_v39 }
 0x106   :  { %vm135_vm15 = vmor %vm125_vm13, %vm129_vm14 }
 0x107   :  { %10353 = vmatpush3.bf16.msra.mxu0 %v11513_v63  ;;  %vm13235_vm3 = vmpackc.low %vm159_vm5, %vm159_vm5 }
 0x108   :  { %10354 = vmatprep.subr.bf16.mxu0 %v11515_v12  ;;  %10365 = vmatpush3.bf16.msra.mxu1 %v11514_v35 }
 0x109   :  { %10366 = vmatprep.subr.bf16.mxu1 %v11516_v6 }
 0x10b   :  { %10355 = vmatpush3.bf16.msra.mxu0 %v11515_v12 }
 0x10c   :  { %10372 = vmatprep.subr.bf16.mxu0 %v12634_v13  ;;  %10367 = vmatpush3.bf16.msra.mxu1 %v11516_v6 }
 0x10d   :  { %10384 = vmatprep.subr.bf16.mxu1 %v12640_v41 }
 0x17d   :  { %v841_v46 = vpop.f32.mrb[0].mxu1  ;;  %v9733_v30 = vpop.f32.mrb[0].mxu0 }
 0x17e   :  { %v10282_v31 = vpop.f32.mrb[1].mxu1  ;;  %v9734_v2 = vpop.f32.mrb[1].mxu0 }
 0x17f   :  { %v9735_v51 = vadd.f32 %v9734_v2, %v9733_v30  ;;  %v844_v32 = vpop.f32.mrb[2].mxu1  ;;  %v9736_v21 = vpop.f32.mrb[2].mxu0 }
 0x180   :  { %v10283_v62 = vpop.f32.mrb[3].mxu1  ;;  %v9737_v25 = vpop.f32.mrb[3].mxu0 }
 0x181   :  { %v842_v44 = vadd.f32 %v9735_v51, %v841_v46  ;;  %v9738_v34 = vadd.f32 %v9737_v25, %v9736_v21 }
 0x183   :  { %v845_v3 = vadd.f32 %v9738_v34, %v844_v32 }
 0x185   :  { %v849_v43 = vpop.f32.mrb[4].mxu1  ;;  %v9739_v49 = vpop.f32.mrb[4].mxu0 }
 0x186   :  { %v10286_v42 = vpop.f32.mrb[5].mxu1  ;;  %v9740_v10 = vpop.f32.mrb[5].mxu0 }
 0x187   :  { %v9741_v26 = vadd.f32 %v9740_v10, %v9739_v49  ;;  %v852_v5 = vpop.f32.mrb[6].mxu1  ;;  %v9742_v15 = vpop.f32.mrb[6].mxu0 }
 0x188   :  { %v10287_v8 = vpop.f32.mrb[7].mxu1  ;;  %v9743_v57 = vpop.f32.mrb[7].mxu0 }
 0x189   :  { %v850_v58 = vadd.f32 %v9741_v26, %v849_v43  ;;  %v9744_v38 = vadd.f32 %v9743_v57, %v9742_v15 }
 0x18b   :  { %v853_v33 = vadd.f32 %v9744_v38, %v852_v5 }
 0x18d   :  { %v857_v27 = vpop.f32.mrb[8].mxu1  ;;  %v9745_v59 = vpop.f32.mrb[8].mxu0 }
 0x18e   :  { %v10290_v19 = vpop.f32.mrb[9].mxu1  ;;  %v9746_v48 = vpop.f32.mrb[9].mxu0 }
 0x18f   :  { %v9747_v45 = vadd.f32 %v9746_v48, %v9745_v59  ;;  %v860_v37 = vpop.f32.mrb[10].mxu1  ;;  %v9748_v61 = vpop.f32.mrb[10].mxu0 }
 0x190   :  { %v10291_v60 = vpop.f32.mrb[11].mxu1  ;;  %v9749_v50 = vpop.f32.mrb[11].mxu0 }
 0x191   :  { %v858_v23 = vadd.f32 %v9747_v45, %v857_v27  ;;  %v9750_v16 = vadd.f32 %v9749_v50, %v9748_v61 }
 0x193   :  { %v861_v1 = vadd.f32 %v9750_v16, %v860_v37 }
 0x19d   :  { %v1187_v17 = vpop.f32.mrb[12].mxu1  ;;  %v9778_v11 = vpop.f32.mrb[12].mxu0 }
 0x19e   :  { %v10310_v36 = vpop.f32.mrb[13].mxu1  ;;  %v9779_v22 = vpop.f32.mrb[13].mxu0 }
 0x19f   :  { %v9780_v40 = vadd.f32 %v9779_v22, %v9778_v11  ;;  %v1190_v7 = vpop.f32.mrb[14].mxu1  ;;  %v9781_v28 = vpop.f32.mrb[14].mxu0 }
 0x1a0   :  { %v10311_v0 = vpop.f32.mrb[15].mxu1  ;;  %v9782_v54 = vpop.f32.mrb[15].mxu0 }
 0x1a1   :  { %v1131_v55 = vadd.f32 %v9780_v40, %v842_v44  ;;  %v9783_v56 = vadd.f32 %v9782_v54, %v9781_v28 }
 0x1a3   :  { %v1188_v47 = vadd.f32 %v1187_v17, %v1131_v55  ;;  %v1134_v63 = vadd.f32 %v9783_v56, %v845_v3 }
 0x1a5   :  { %v1191_v35 = vadd.f32 %v1190_v7, %v1134_v63  ;;  %v1195_v12 = vpop.f32.mrb[16].mxu1  ;;  %v9784_v6 = vpop.f32.mrb[16].mxu0 }
 0x1a6   :  { %v10314_v46 = vpop.f32.mrb[17].mxu1  ;;  %v9785_v30 = vpop.f32.mrb[17].mxu0 }
 0x1a7   :  { %v9786_v31 = vadd.f32 %v9785_v30, %v9784_v6  ;;  %v1198_v2 = vpop.f32.mrb[18].mxu1  ;;  %v9787_v51 = vpop.f32.mrb[18].mxu0 }
 0x1a8   :  { %v10315_v32 = vpop.f32.mrb[19].mxu1  ;;  %v9788_v21 = vpop.f32.mrb[19].mxu0 }
 0x1a9   :  { %v1139_v62 = vadd.f32 %v9786_v31, %v850_v58  ;;  %v9789_v25 = vadd.f32 %v9788_v21, %v9787_v51 }
 0x1ab   :  { %v1196_v34 = vadd.f32 %v1195_v12, %v1139_v62  ;;  %v1142_v43 = vadd.f32 %v9789_v25, %v853_v33 }
 0x1ad   :  { %v1199_v49 = vadd.f32 %v1198_v2, %v1142_v43  ;;  %v1203_v42 = vpop.f32.mrb[20].mxu1  ;;  %v9790_v44 = vpop.f32.mrb[20].mxu0 }
 0x1ae   :  { %v10318_v10 = vpop.f32.mrb[21].mxu1  ;;  %v9791_v26 = vpop.f32.mrb[21].mxu0 }
 0x1af   :  { %v9792_v3 = vadd.f32 %v9791_v26, %v9790_v44  ;;  %v1206_v5 = vpop.f32.mrb[22].mxu1  ;;  %v9793_v15 = vpop.f32.mrb[22].mxu0 }
 0x1b0   :  { %v10319_v8 = vpop.f32.mrb[23].mxu1  ;;  %v9794_v57 = vpop.f32.mrb[23].mxu0 }
 0x1b1   :  { %v1147_v38 = vadd.f32 %v9792_v3, %v858_v23  ;;  %v9795_v27 = vadd.f32 %v9794_v57, %v9793_v15  ;;  %v8793_v23 = vld [vmem:[%s14487_s4] ss:$0 sm:$0xff] }
 0x1b3   :  { %v1204_v59 = vadd.f32 %v1203_v42, %v1147_v38  ;;  %v1150_v19 = vadd.f32 %v9795_v27, %v861_v1  ;;  %v46_v27 = vadd.s32 40, %v11900_v4 }
 0x1b5   :  { %v12643_v48 = vadd.f32 %v1206_v5, %v1150_v19  ;;  %vm76_vm8 = vcmp.lt.s32.totalorder %v46_v27, 44 }
 0x1bd   :  { %v1630_v58 = vpop.f32.mrb[24].mxu1 }
 0x1be   :  { %v9823_v45 = vpop.f32.mrb[24].mxu0  ;;  %v10338_v37 = vpop.f32.mrb[25].mxu1 }
 0x1bf   :  { %v9824_v33 = vpop.f32.mrb[25].mxu0  ;;  %v1633_v61 = vpop.f32.mrb[26].mxu1 }
 0x1c0   :  { %v9825_v60 = vadd.f32 %v9824_v33, %v9823_v45  ;;  %v9826_v50 = vpop.f32.mrb[26].mxu0  ;;  %v10339_v16 = vpop.f32.mrb[27].mxu1 }
 0x1c1   :  { %v9827_v17 = vpop.f32.mrb[27].mxu0 }
 0x1c2   :  { %v1631_v11 = vadd.f32 %v9825_v60, %v1630_v58  ;;  %v9828_v36 = vadd.f32 %v9827_v17, %v9826_v50 }
 0x1c4   :  { %v1653_v22 = vadd.f32 %v1631_v11, %v1188_v47  ;;  %v1634_v40 = vadd.f32 %v9828_v36, %v1633_v61  ;;  %v44_v47 = vadd.s32 24, %v11900_v4  ;;  %v12660_v11 = vsel %vm76_vm8, 1.0, %v12581_v39 }
 0x1c5   :  { %v1638_v1 = vpop.f32.mrb[28].mxu1 }
 0x1c6   :  { %v1663_v7 = vadd.f32 %v8793_v23, %v1653_v22  ;;  %v1654_v28 = vadd.f32 %v1634_v40, %v1191_v35  ;;  %v9829_v0 = vpop.f32.mrb[28].mxu0  ;;  %v10342_v54 = vpop.f32.mrb[29].mxu1  ;;  %vm68_vm7 = vcmp.ge.s32.totalorder %v44_v47, 28  ;;  %v11522_v47 = vld [vmem:[%s14486_s3 + $0x70] sm:$0xff]  }
 0x1c7   :  { %v9830_v55 = vpop.f32.mrb[29].mxu0  ;;  %v1641_v56 = vpop.f32.mrb[30].mxu1  ;;  %v12652_v38 = vsel %vm68_vm7, 1.0, %v12581_v39 }
 0x1c8   :  { %v1669_v63 = vmax.f32 %v1663_v7, 0.0  ;;  %v1664_v12 = vadd.f32 %v8793_v23, %v1654_v28  ;;  %v9831_v6 = vadd.f32 %v9830_v55, %v9829_v0  ;;  %v9832_v46 = vpop.f32.mrb[30].mxu0  ;;  %v10343_v30 = vpop.f32.mrb[31].mxu1 }
 0x1c9   :  { %v9833_v31 = vpop.f32.mrb[31].mxu0  ;;  %v11520_v30 = vld [vmem:[%s14486_s3 + $0x68] sm:$0xff]  }
 0x1ca   :  { %1681 = vst.msk [vmem:[#allocation3 + $0xc] sm:$0xff] %vm159_vm5, %v1669_v63  ;;  %v1670_v2 = vmax.f32 %v1664_v12, 0.0  ;;  %v1639_v51 = vadd.f32 %v9831_v6, %v1638_v1  ;;  %v9834_v32 = vadd.f32 %v9833_v31, %v9832_v46  ;;  %v11519_v12 = vld [vmem:[%s14486_s3 + $0x48] sm:$0xff]  }
 0x1cc   :  { %1682 = vst.msk [vmem:[#allocation3 + $0x14] sm:$0xff] %vm159_vm5, %v1670_v2  ;;  %v1655_v35 = vadd.f32 %v1639_v51, %v1196_v34  ;;  %v1642_v21 = vadd.f32 %v9834_v32, %v1641_v56  ;;  %v11521_v51 = vld [vmem:[%s14486_s3 + $0x50] sm:$0xff]  }
 0x1cd   :  { %v1646_v62 = vpop.f32.mrb[32].mxu1 }
 0x1ce   :  { %v1665_v25 = vadd.f32 %v8793_v23, %v1655_v35  ;;  %v1656_v43 = vadd.f32 %v1642_v21, %v1199_v49  ;;  %v9835_v42 = vpop.f32.mrb[32].mxu0  ;;  %v10346_v44 = vpop.f32.mrb[33].mxu1 }
 0x1cf   :  { %v9836_v10 = vpop.f32.mrb[33].mxu0  ;;  %v1649_v26 = vpop.f32.mrb[34].mxu1  ;;  %v11528_v44 = vld [vmem:[%s14486_s3 + $0x88] sm:$0xff]  }
 0x1d0   :  { %v1671_v3 = vmax.f32 %v1665_v25, 0.0  ;;  %v1666_v5 = vadd.f32 %v8793_v23, %v1656_v43  ;;  %v9837_v15 = vadd.f32 %v9836_v10, %v9835_v42  ;;  %v9838_v8 = vpop.f32.mrb[34].mxu0  ;;  %v10347_v57 = vpop.f32.mrb[35].mxu1  ;;  %v11525_v25 = vld [vmem:[%s14486_s3 + $0xa0] sm:$0xff]   ;;  %v11527_v42 = vld [vmem:[%s14486_s3 + $0xa8] sm:$0xff]   ;;  %v11529_v10 = vld [vmem:[%s14486_s3 + $0xb0] sm:$0xff]  }
 0x1d1   :  { %v9839_v34 = vpop.f32.mrb[35].mxu0  ;;  %v11526_v43 = vld [vmem:[%s14486_s3 + $0x80] sm:$0xff]  }
 0x1d2   :  { %v1677_v19 = vmul.f32 0.0, %v1671_v3  ;;  %v1672_v58 = vmax.f32 %v1666_v5, 0.0  ;;  %v1647_v45 = vadd.f32 %v9837_v15, %v1646_v62  ;;  %v9840_v37 = vadd.f32 %v9839_v34, %v9838_v8  ;;  %v11531_v3 = vld [vmem:[%s14486_s3 + $0xb8] sm:$0xff]   ;;  %v12732_v15 = vld [vmem:[%s14486_s3 + $0xc0] sm:$0xff]  }
 0x1d3   :  { %v1704_v40 = vld [vmem:[#allocation3 + $0xc] ss:$2 sm:$0xff]  ;;  %v1877_v6 = vld [vmem:[#allocation3 + $0xd] ss:$2 sm:$0xff]  ;;  %v11532_v5 = vld [vmem:[%s14486_s3 + $0x98] sm:$0xff]  }
 0x1d4   :  { %1683 = vst.msk [vmem:[#allocation3 + $0x1c] sm:$0xff] %vm159_vm5, %v1677_v19  ;;  %v1678_v49 = vmul.f32 %v12652_v38, %v1672_v58  ;;  %v1657_v33 = vadd.f32 %v1647_v45, %v1204_v59  ;;  %v1650_v61 = vadd.f32 %v9840_v37, %v1649_v26  ;;  %v1688_v59 = vld [vmem:[#allocation3 + $0xb] ss:$2 sm:$0xff] }
 0x1d5   :  { %v11530_v26 = vld [vmem:[%s14486_s3 + $0x90] sm:$0xff]  }
 0x1d6   :  { %1684 = vst.msk [vmem:[#allocation3 + $0x24] sm:$0xff] %vm159_vm5, %v1678_v49  ;;  %v1667_v60 = vadd.f32 %v8793_v23, %v1657_v33  ;;  %v1658_v50 = vadd.f32 %v1650_v61, %v12643_v48 }
 0x1d8   :  { %v1673_v16 = vmax.f32 %v1667_v60, 0.0  ;;  %v1668_v17 = vadd.f32 %v8793_v23, %v1658_v50  ;;  %v43_v60 = vadd.s32 16, %v11900_v4 }
 0x1da   :  { %1685 = vst.msk [vmem:[#allocation3 + $0x2c] sm:$0xff] %vm159_vm5, %v1673_v16  ;;  %v1674_v36 = vmax.f32 %v1668_v17, 0.0  ;;  %v12737_v17 = vadd.s32 8, %v11900_v4  ;;  %vm112_vm10 = vcmp.lt.s32.totalorder %v43_v60, 22  ;;  %v11538_v60 = vld [vmem:[%s14486_s3 + $0xe8] sm:$0xff]  }
 0x1db   :  { %v1975_v46 = vld [vmem:[#allocation3 + $0xe] ss:$2 sm:$0xff] }
 0x1dc   :  { %v1680_v22 = vmul.f32 %v12660_v11, %v1674_v36  ;;  %vm108_vm11 = vcmp.ge.s32.totalorder %v12737_v17, 14  ;;  %vm132_vm2 = vcmp.lt.s32.totalorder %v12737_v17, 11 }
 0x1dd   :  { %v1706_v1 = vld [vmem:[#allocation3 + $0x1c] ss:$2 sm:$0xff]  ;;  %v1690_v7 = vld [vmem:[#allocation3 + $0x1b] ss:$2 sm:$0xff] }
 0x1de   :  { %1686 = vst.msk [vmem:[#allocation3 + $0x34] sm:$0xf] %vm161_vm6, %v1680_v22  ;;  %v1709_v28 = vpack.c.bf16 %v1706_v1, %v1704_v40  ;;  %v1693_v0 = vpack.c.bf16 %v1690_v7, %v1688_v59  ;;  %v1879_v48 = vld [vmem:[#allocation3 + $0x1d] ss:$2 sm:$0xff] }
 0x1df   :  { %v1882_v31 = vpack.c.bf16 %v1879_v48, %v1877_v6  ;;  %v8842_v1 = vld [vmem:[%s14487_s4 + $0x1] ss:$0 sm:$0xff] }
 0x1e0   :  { %10356 = vmatprep.mubr.msk.bf16.mxu0 %vm159_vm5, %v1709_v28  ;;  %10368 = vmatprep.mubr.msk.bf16.mxu1 %vm159_vm5, %v1693_v0 }
 0x1e1   :  { %v1977_v23 = vld [vmem:[#allocation3 + $0x1e] ss:$2 sm:$0xff] }
 0x1e2   :  { %v1980_v2 = vpack.c.bf16 %v1977_v23, %v1975_v46 }
 0x1e5   :  { %v1708_v54 = vld [vmem:[#allocation3 + $0x2c] ss:$2 sm:$0x3f]  ;;  %v1692_v55 = vld [vmem:[#allocation3 + $0x2b] ss:$2 sm:$0x3f] }
 0x1e6   :  { %v1710_v56 = vpack.c.bf16 %v1708_v54, %v1708_v54  ;;  %v1694_v63 = vpack.c.bf16 %v1692_v55, %v1692_v55  ;;  %v1881_v32 = vld [vmem:[#allocation3 + $0x2d] ss:$2 sm:$0x3f]  ;;  %v1979_v35 = vld [vmem:[#allocation3 + $0x2e] ss:$2 sm:$0x3f] }
 0x1e7   :  { %v1883_v21 = vpack.c.bf16 %v1881_v32, %v1881_v32  ;;  %v1981_v62 = vpack.c.bf16 %v1979_v35, %v1979_v35  ;;  %v12743_v54 = vsel %vm112_vm10, 1.0, %v12581_v39 }
 0x1e8   :  { %10357 = vmatmul.mubr.msk.bf16.vlgmr.msra.gmra.mrb[36].mxu0 %vm159_vm5, %v1710_v56  ;;  %10369 = vmatmul.mubr.msk.bf16.vlgmr.msra.gmra.mrb[36].mxu1 %vm159_vm5, %v1694_v63 }
 0x1e9   :  { %10373 = vmatpush3.bf16.msra.mxu0 %v12634_v13  ;;  %10385 = vmatpush3.bf16.msra.mxu1 %v12640_v41  ;;  %v11523_v13 = vld [vmem:[%s14486_s3 + $0x58] sm:$0xff]  }
 0x1ea   :  { %10380 = vmatprep.mubr.msk.bf16.mxu0 %vm159_vm5, %v1882_v31  ;;  %10392 = vmatprep.mubr.msk.bf16.mxu1 %vm159_vm5, %v1980_v2  ;;  %v11524_v41 = vld [vmem:[%s14486_s3 + $0x78] sm:$0xff]  }
 0x1eb   :  { %10374 = vmatprep.subr.bf16.mxu0 %v11519_v12  ;;  %10386 = vmatprep.subr.bf16.mxu1 %v11520_v30 }
 0x1ed   :  { %10375 = vmatpush3.bf16.msra.mxu0 %v11519_v12  ;;  %10387 = vmatpush3.bf16.msra.mxu1 %v11520_v30  ;;  %v12748_v30 = vsel %vm108_vm11, 1.0, %v12581_v39 }
 0x1ee   :  { %10376 = vmatprep.subr.bf16.mxu0 %v11521_v51  ;;  %10388 = vmatprep.subr.bf16.mxu1 %v11522_v47 }
 0x1f1   :  { %10377 = vmatpush3.bf16.msra.mxu0 %v11521_v51  ;;  %10389 = vmatpush3.bf16.msra.mxu1 %v11522_v47 }
 0x1f2   :  { %10378 = vmatprep.subr.bf16.mxu0 %v11523_v13  ;;  %10390 = vmatprep.subr.bf16.mxu1 %v11524_v41 }
 0x1f5   :  { %10379 = vmatpush3.bf16.msra.mxu0 %v11523_v13  ;;  %10391 = vmatpush3.bf16.msra.mxu1 %v11524_v41 }
 0x1f6   :  { %10396 = vmatprep.subr.bf16.mxu0 %v11525_v25  ;;  %10408 = vmatprep.subr.bf16.mxu1 %v11526_v43 }
 0x1f8   :  { %10381 = vmatmul.mubr.msk.bf16.vlgmr.msra.gmra.mrb[40].mxu0 %vm159_vm5, %v1883_v21  ;;  %10393 = vmatmul.mubr.msk.bf16.vlgmr.msra.gmra.mrb[40].mxu1 %vm159_vm5, %v1981_v62 }
 0x1f9   :  { %10397 = vmatpush3.bf16.msra.mxu0 %v11525_v25  ;;  %10409 = vmatpush3.bf16.msra.mxu1 %v11526_v43 }
 0x1fa   :  { %10398 = vmatprep.subr.bf16.mxu0 %v11527_v42  ;;  %10410 = vmatprep.subr.bf16.mxu1 %v11528_v44 }
 0x1fd   :  { %10399 = vmatpush3.bf16.msra.mxu0 %v11527_v42  ;;  %10411 = vmatpush3.bf16.msra.mxu1 %v11528_v44 }
 0x1fe   :  { %10400 = vmatprep.subr.bf16.mxu0 %v11529_v10  ;;  %10412 = vmatprep.subr.bf16.mxu1 %v11530_v26 }
 0x201   :  { %10401 = vmatpush3.bf16.msra.mxu0 %v11529_v10  ;;  %10413 = vmatpush3.bf16.msra.mxu1 %v11530_v26 }
 0x202   :  { %10402 = vmatprep.subr.bf16.mxu0 %v11531_v3  ;;  %10414 = vmatprep.subr.bf16.mxu1 %v11532_v5 }
 0x205   :  { %10403 = vmatpush3.bf16.msra.mxu0 %v11531_v3  ;;  %10415 = vmatpush3.bf16.msra.mxu1 %v11532_v5 }
 0x206   :  { %10420 = vmatprep.subr.bf16.mxu0 %v12732_v15 }
 0x2bb   :  { %v10358_v8 = vpop.f32.mrb[36].mxu0  ;;  %v10370_v57 = vpop.f32.mrb[36].mxu1 }
 0x2bc   :  { %v1871_v27 = vadd.f32 %v10370_v57, %v10358_v8  ;;  %v1784_v34 = vpop.f32.mrb[37].mxu0  ;;  %v1862_v19 = vpop.f32.mrb[37].mxu1 }
 0x2bd   :  { %v1863_v58 = vadd.f32 %v1862_v19, %v1784_v34  ;;  %v10359_v45 = vpop.f32.mrb[38].mxu0  ;;  %v10371_v37 = vpop.f32.mrb[38].mxu1  ;;  %v11534_v19 = vld [vmem:[%s14486_s3 + $0xc8] sm:$0xff]  }
 0x2be   :  { %v1787_v49 = vpop.f32.mrb[39].mxu0  ;;  %v1865_v33 = vpop.f32.mrb[39].mxu1  ;;  %v11535_v45 = vld [vmem:[%s14486_s3 + $0xd0] sm:$0xff]   ;;  %v11536_v37 = vld [vmem:[%s14486_s3 + $0xd8] sm:$0xff]  }
 0x2bf   :  { %v1866_v61 = vadd.f32 %v1865_v33, %v1787_v49 }
 0x2cb   :  { %v10382_v50 = vpop.f32.mrb[40].mxu0  ;;  %v10394_v16 = vpop.f32.mrb[40].mxu1 }
 0x2cc   :  { %v1973_v36 = vadd.f32 %v10382_v50, %v1871_v27  ;;  %v1957_v22 = vpop.f32.mrb[41].mxu0  ;;  %v2055_v40 = vpop.f32.mrb[41].mxu1  ;;  %v11539_v50 = vld [vmem:[%s14486_s3 + $0xf0] sm:$0xff]  }
 0x2cd   :  { %v1971_v59 = vadd.f32 %v1957_v22, %v1863_v58  ;;  %v10383_v7 = vpop.f32.mrb[42].mxu0  ;;  %v10395_v28 = vpop.f32.mrb[42].mxu1 }
 0x2ce   :  { %v2071_v0 = vadd.f32 %v10394_v16, %v1973_v36  ;;  %v1960_v48 = vpop.f32.mrb[43].mxu0  ;;  %v2058_v23 = vpop.f32.mrb[43].mxu1  ;;  %v11540_v16 = vld [vmem:[%s14486_s3 + $0xf8] sm:$0xff]  }
 0x2cf   :  { %v2069_v55 = vadd.f32 %v2055_v40, %v1971_v59  ;;  %v1972_v56 = vadd.f32 %v1960_v48, %v1866_v61 }
 0x2d0   :  { %v2079_v63 = vadd.f32 %v8842_v1, %v2071_v0 }
 0x2d1   :  { %v2077_v12 = vadd.f32 %v8842_v1, %v2069_v55  ;;  %v2070_v6 = vadd.f32 %v2058_v23, %v1972_v56  ;;  %v8885_v56 = vld [vmem:[%s14487_s4 + $0x2] ss:$0 sm:$0xff] }
 0x2d2   :  { %v2082_v46 = vmul.f32 %v12743_v54, %v2079_v63 }
 0x2d3   :  { %2083 = vst.msk [vmem:[#allocation4 + $0x6] sm:$0xff] %vm159_vm5, %v2077_v12  ;;  %v2078_v31 = vadd.f32 %v8842_v1, %v2070_v6 }
 0x2d4   :  { %2085 = vst.msk [vmem:[#allocation4 + $0x16] sm:$0x3f] %vm167_vm9, %v2082_v46 }
 0x2d5   :  { %v2081_v2 = vmul.f32 %v12748_v30, %v2078_v31 }
 0x2d7   :  { %2084 = vst.msk [vmem:[#allocation4 + $0xe] sm:$0xff] %vm159_vm5, %v2081_v2 }
 0x2da   :  { %v12754_v51 = vld [vmem:[#allocation4 + $0x6] sm:$0xff] }
 0x2db   :  { %v12756_v47 = vld [vmem:[#allocation4 + $0x16] sm:$0x3f]  ;;  %v2087_v13 = vld [vmem:[#allocation4 + $0x5] sm:$0xff]  ;;  %v2107_v32 = vmax.f32 %v12754_v51, 0.0 }
 0x2dc   :  { %v2109_v21 = vmax.f32 %v12756_v47, 0.0  ;;  %v2090_v43 = vmax.f32 %v2087_v13, 0.0  ;;  %v2279_v49 = vld [vmem:[#allocation4 + $0x17] sm:$0x3f] }
 0x2dd   :  { %v2282_v33 = vmax.f32 %v2279_v49, 0.0 }
 0x2de   :  { %v12758_v41 = vld [vmem:[#allocation4 + $0xe] sm:$0xff]  ;;  %v2111_v34 = vpack.c.bf16 %v2109_v21, %v2109_v21 }
 0x2df   :  { %v2088_v35 = vld [vmem:[#allocation4 + $0xd] sm:$0xff]  ;;  %v2089_v62 = vld [vmem:[#allocation4 + $0x15] sm:$0x3f]  ;;  %v2108_v25 = vmax.f32 %v12758_v41, 0.0  ;;  %v2284_v61 = vpack.c.bf16 %v2282_v33, %v2282_v33 }
 0x2e0   :  { %v2091_v42 = vmax.f32 %v2088_v35, 0.0  ;;  %v2092_v44 = vmax.f32 %v2089_v62, 0.0  ;;  %v2277_v10 = vld [vmem:[#allocation4 + $0x7] sm:$0xff]  ;;  %v2278_v26 = vld [vmem:[#allocation4 + $0xf] sm:$0xff] }
 0x2e1   :  { %v2280_v3 = vmax.f32 %v2277_v10, 0.0  ;;  %v2281_v5 = vmax.f32 %v2278_v26, 0.0  ;;  %v2110_v8 = vpack.c.bf16 %v2108_v25, %v2107_v32  ;;  %v11541_v10 = vld [vmem:[%s14486_s3 + $0x120] sm:$0xff]  }
 0x2e2   :  { %v2093_v57 = vpack.c.bf16 %v2091_v42, %v2090_v43  ;;  %v2094_v27 = vpack.c.bf16 %v2092_v44, %v2092_v44  ;;  %v11542_v26 = vld [vmem:[%s14486_s3 + $0x100] sm:$0xff]  }
 0x2e3   :  { %10404 = vmatprep.mubr.msk.bf16.mxu0 %vm159_vm5, %v2110_v8  ;;  %v2283_v58 = vpack.c.bf16 %v2281_v5, %v2280_v3  ;;  %v11543_v3 = vld [vmem:[%s14486_s3 + $0x128] sm:$0xff]   ;;  %v11545_v8 = vld [vmem:[%s14486_s3 + $0x130] sm:$0xff]  }
 0x2e4   :  { %10416 = vmatprep.mubr.msk.bf16.mxu1 %vm159_vm5, %v2093_v57  ;;  %10405 = vmatmul.mubr.msk.bf16.vlgmr.msra.gmra.mrb[44].mxu0 %vm159_vm5, %v2111_v34  ;;  %v11544_v5 = vld [vmem:[%s14486_s3 + $0x108] sm:$0xff]   ;;  %v11546_v57 = vld [vmem:[%s14486_s3 + $0x110] sm:$0xff]   ;;  %v11548_v34 = vld [vmem:[%s14486_s3 + $0x118] sm:$0xff]  }
 0x2e5   :  { %10417 = vmatmul.mubr.msk.bf16.vlgmr.msra.gmra.mrb[44].mxu1 %vm159_vm5, %v2094_v27  ;;  %10421 = vmatpush3.bf16.msra.mxu0 %v12732_v15  ;;  %v11537_v15 = vld [vmem:[%s14486_s3 + $0xe0] sm:$0xff]   ;;  %v11547_v27 = vld [vmem:[%s14486_s3 + $0x138] sm:$0xff]  }
 0x2e6   :  { %10428 = vmatprep.mubr.msk.bf16.mxu0 %vm159_vm5, %v2283_v58  ;;  %10422 = vmatprep.subr.bf16.mxu0 %v11534_v19  ;;  %v8894_v58 = vld [vmem:[%s14487_s4 + $0x3] ss:$0 sm:$0xff] }
 0x2e7   :  { %10432 = vmatprep.subr.bf16.mxu1 %v11537_v15 }
 0x2e8   :  { %10433 = vmatpush3.bf16.msra.mxu1 %v11537_v15 }
 0x2e9   :  { %10423 = vmatpush3.bf16.msra.mxu0 %v11534_v19  ;;  %10434 = vmatprep.subr.bf16.mxu1 %v11538_v60  ;;  %v11549_v19 = vld [vmem:[%s14486_s3 + $0x140] sm:$0xff]  }
 0x2ea   :  { %10424 = vmatprep.subr.bf16.mxu0 %v11535_v45 }
 0x2ec   :  { %10435 = vmatpush3.bf16.msra.mxu1 %v11538_v60 }
 0x2ed   :  { %10425 = vmatpush3.bf16.msra.mxu0 %v11535_v45  ;;  %10436 = vmatprep.subr.bf16.mxu1 %v11539_v50 }
 0x2ee   :  { %10426 = vmatprep.subr.bf16.mxu0 %v11536_v37 }
 0x2f0   :  { %10437 = vmatpush3.bf16.msra.mxu1 %v11539_v50 }
 0x2f1   :  { %10427 = vmatpush3.bf16.msra.mxu0 %v11536_v37  ;;  %10438 = vmatprep.subr.bf16.mxu1 %v11540_v16 }
 0x2f2   :  { %10444 = vmatprep.subr.bf16.mxu0 %v11541_v10 }
 0x2f4   :  { %10429 = vmatmul.mubr.msk.bf16.vlgmr.msra.gmra.mrb[48].mxu0 %vm159_vm5, %v2284_v61  ;;  %10439 = vmatpush3.bf16.msra.mxu1 %v11540_v16 }
 0x2f5   :  { %10456 = vmatprep.subr.bf16.mxu1 %v11542_v26  ;;  %10445 = vmatpush3.bf16.msra.mxu0 %v11541_v10  ;;  %v11553_v10 = vld [vmem:[%s14486_s3 + $0x160] sm:$0xff]  }
 0x2f6   :  { %10446 = vmatprep.subr.bf16.mxu0 %v11543_v3 }
 0x2f9   :  { %10447 = vmatpush3.bf16.msra.mxu0 %v11543_v3  ;;  %v11555_v3 = vld [vmem:[%s14486_s3 + $0x170] sm:$0xff]  }
 0x2fa   :  { %10448 = vmatprep.subr.bf16.mxu0 %v11545_v8 }
 0x2fd   :  { %10449 = vmatpush3.bf16.msra.mxu0 %v11545_v8 }
 0x2fe   :  { %10450 = vmatprep.subr.bf16.mxu0 %v11547_v27 }
 0x301   :  { %10451 = vmatpush3.bf16.msra.mxu0 %v11547_v27 }
 0x302   :  { %10468 = vmatprep.subr.bf16.mxu0 %v11549_v19 }
 0x3b7   :  { %v10406_v36 = vpop.f32.mrb[44].mxu0 }
 0x3b8   :  { %v10418_v22 = vpop.f32.mrb[44].mxu1  ;;  %v2185_v1 = vpop.f32.mrb[45].mxu0 }
 0x3b9   :  { %v2272_v40 = vadd.f32 %v10418_v22, %v10406_v36  ;;  %v2263_v59 = vpop.f32.mrb[45].mxu1  ;;  %v10407_v28 = vpop.f32.mrb[46].mxu0 }
 0x3ba   :  { %v2264_v7 = vadd.f32 %v2263_v59, %v2185_v1  ;;  %v10419_v0 = vpop.f32.mrb[46].mxu1  ;;  %v2188_v48 = vpop.f32.mrb[47].mxu0 }
 0x3bb   :  { %v2266_v23 = vpop.f32.mrb[47].mxu1 }
 0x3bc   :  { %v2267_v55 = vadd.f32 %v2266_v23, %v2188_v48 }
 0x3c7   :  { %v10430_v63 = vpop.f32.mrb[48].mxu0 }
 0x3c8   :  { %v2374_v12 = vadd.f32 %v10430_v63, %v2272_v40  ;;  %v2358_v6 = vpop.f32.mrb[49].mxu0 }
 0x3c9   :  { %v2372_v46 = vadd.f32 %v2358_v6, %v2264_v7  ;;  %v10431_v31 = vpop.f32.mrb[50].mxu0 }
 0x3ca   :  { %v2381_v2 = vadd.f32 %v8885_v56, %v2374_v12  ;;  %v2361_v13 = vpop.f32.mrb[51].mxu0 }
 0x3cb   :  { %v2379_v32 = vadd.f32 %v8885_v56, %v2372_v46  ;;  %v2373_v35 = vadd.f32 %v2361_v13, %v2267_v55 }
 0x3cc   :  { %v2384_v62 = vmax.f32 %v2381_v2, 0.0 }
 0x3cd   :  { %v2380_v21 = vadd.f32 %v8885_v56, %v2373_v35  ;;  %v2382_v25 = vmax.f32 %v2379_v32, 0.0  ;;  %v11550_v35 = vld [vmem:[%s14486_s3 + $0x148] sm:$0xff]  }
 0x3ce   :  { %v2386_v44 = vpack.c.bf16 %v2384_v62, %v2384_v62  ;;  %v11551_v62 = vld [vmem:[%s14486_s3 + $0x150] sm:$0xff]  }
 0x3cf   :  { %v2383_v43 = vmax.f32 %v2380_v21, 0.0 }
 0x3d1   :  { %v2385_v42 = vpack.c.bf16 %v2383_v43, %v2382_v25  ;;  %v11552_v25 = vld [vmem:[%s14486_s3 + $0x158] sm:$0xff]  }
 0x3d3   :  { %10440 = vmatprep.mubr.msk.bf16.mxu1 %vm159_vm5, %v2385_v42 }
 0x3d4   :  { %10441 = vmatmul.mubr.msk.bf16.vlgmr.msra.gmra.mrb[48].mxu1 %vm159_vm5, %v2386_v44 }
 0x3d5   :  { %10457 = vmatpush3.bf16.msra.mxu1 %v11542_v26  ;;  %v11554_v26 = vld [vmem:[%s14486_s3 + $0x168] sm:$0xff]  }
 0x3d6   :  { %10458 = vmatprep.subr.bf16.mxu1 %v11544_v5 }
 0x3d9   :  { %10459 = vmatpush3.bf16.msra.mxu1 %v11544_v5  ;;  %v11556_v5 = vld [vmem:[%s14486_s3 + $0x178] sm:$0xff]  }
 0x3da   :  { %10460 = vmatprep.subr.bf16.mxu1 %v11546_v57 }
 0x3dd   :  { %10461 = vmatpush3.bf16.msra.mxu1 %v11546_v57 }
 0x3de   :  { %10462 = vmatprep.subr.bf16.mxu1 %v11548_v34 }
 0x3e1   :  { %10463 = vmatpush3.bf16.msra.mxu1 %v11548_v34 }
 0x3e2   :  { %10480 = vmatprep.subr.bf16.mxu1 %v11553_v10 }
 0x4a7   :  { %v10442_v45 = vpop.f32.mrb[48].mxu1 }
 0x4a8   :  { %v2474_v37 = vadd.f32 %v10442_v45, %v8894_v58  ;;  %v2465_v49 = vpop.f32.mrb[49].mxu1 }
 0x4a9   :  { %v2466_v33 = vadd.f32 %v8894_v58, %v2465_v49  ;;  %v10443_v61 = vpop.f32.mrb[50].mxu1 }
 0x4aa   :  { %v2481_v15 = vmul.f32 %v12743_v54, %v2474_v37  ;;  %v2468_v60 = vpop.f32.mrb[51].mxu1 }
 0x4ab   :  { %v2482_v50 = vadd.f32 %v2466_v33, %v12754_v51  ;;  %v2469_v16 = vadd.f32 %v8894_v58, %v2468_v60 }
 0x4ac   :  { %v2484_v36 = vadd.f32 %v2481_v15, %v12756_v47  ;;  %v8943_v15 = vld [vmem:[%s14487_s4 + $0x4] ss:$0 sm:$0xff] }
 0x4ad   :  { %2485 = vst.msk [vmem:[#allocation4 + $0x6] sm:$0xff] %vm159_vm5, %v2482_v50  ;;  %v2480_v22 = vmul.f32 %v12748_v30, %v2469_v16 }
 0x4ae   :  { %2487 = vst.msk [vmem:[#allocation4 + $0x16] sm:$0x3f] %vm167_vm9, %v2484_v36 }
 0x4af   :  { %v2483_v40 = vadd.f32 %v2480_v22, %v12758_v41 }
 0x4b1   :  { %2486 = vst.msk [vmem:[#allocation4 + $0xe] sm:$0xff] %vm159_vm5, %v2483_v40 }
 0x4b4   :  { %v12834_v1 = vld [vmem:[#allocation4 + $0x6] sm:$0xff] }
 0x4b5   :  { %v12836_v59 = vld [vmem:[#allocation4 + $0x16] sm:$0x3f]  ;;  %v2489_v7 = vld [vmem:[#allocation4 + $0x3] sm:$0xff]  ;;  %v2509_v51 = vmax.f32 %v12834_v1, 0.0 }
 0x4b6   :  { %v2511_v0 = vmax.f32 %v12836_v59, 0.0  ;;  %v2492_v55 = vmax.f32 %v2489_v7, 0.0  ;;  %v2681_v43 = vld [vmem:[#allocation4 + $0x19] sm:$0x3f] }
 0x4b7   :  { %v2684_v42 = vmax.f32 %v2681_v43, 0.0 }
 0x4b8   :  { %v12838_v28 = vld [vmem:[#allocation4 + $0xe] sm:$0xff]  ;;  %v2513_v32 = vpack.c.bf16 %v2511_v0, %v2511_v0 }
 0x4b9   :  { %v2490_v47 = vld [vmem:[#allocation4 + $0xb] sm:$0xff]  ;;  %v2491_v48 = vld [vmem:[#allocation4 + $0x13] sm:$0x3f]  ;;  %v2510_v23 = vmax.f32 %v12838_v28, 0.0  ;;  %v2686_v44 = vpack.c.bf16 %v2684_v42, %v2684_v42 }
 0x4ba   :  { %v2493_v56 = vmax.f32 %v2490_v47, 0.0  ;;  %v2494_v41 = vmax.f32 %v2491_v48, 0.0  ;;  %v2679_v63 = vld [vmem:[#allocation4 + $0x9] sm:$0xff]  ;;  %v2680_v12 = vld [vmem:[#allocation4 + $0x11] sm:$0xff] }
 0x4bb   :  { %v2682_v6 = vmax.f32 %v2679_v63, 0.0  ;;  %v2683_v46 = vmax.f32 %v2680_v12, 0.0  ;;  %v2512_v31 = vpack.c.bf16 %v2510_v23, %v2509_v51  ;;  %v11557_v63 = vld [vmem:[%s14486_s3 + $0x1a0] sm:$0xff]  }
 0x4bc   :  { %v2495_v2 = vpack.c.bf16 %v2493_v56, %v2492_v55  ;;  %v2496_v13 = vpack.c.bf16 %v2494_v41, %v2494_v41  ;;  %v12879_v41 = vld [vmem:[#allocation2] sm:$0xff] }
 0x4bd   :  { %10452 = vmatprep.mubr.msk.bf16.mxu0 %vm159_vm5, %v2512_v31  ;;  %v2685_v21 = vpack.c.bf16 %v2683_v46, %v2682_v6  ;;  %v11558_v12 = vld [vmem:[%s14486_s3 + $0x180] sm:$0xff]   ;;  %v11559_v6 = vld [vmem:[%s14486_s3 + $0x1a8] sm:$0xff]   ;;  %v11561_v31 = vld [vmem:[%s14486_s3 + $0x1b0] sm:$0xff]   ;;  %173 = vst.msk [vmem:[#allocation5 + $0x7] sm:$0x7] %vm171_vm12, %v12879_v41 }
 0x4be   :  { %10464 = vmatprep.mubr.msk.bf16.mxu1 %vm159_vm5, %v2495_v2  ;;  %10453 = vmatmul.mubr.msk.bf16.vlgmr.msra.gmra.mrb[52].mxu0 %vm159_vm5, %v2513_v32  ;;  %v11560_v46 = vld [vmem:[%s14486_s3 + $0x188] sm:$0xff]   ;;  %v11562_v2 = vld [vmem:[%s14486_s3 + $0x190] sm:$0xff]   ;;  %v11564_v32 = vld [vmem:[%s14486_s3 + $0x198] sm:$0xff]   ;;  %172 = vst.msk [vmem:[#allocation5] sm:$0x7] %vm171_vm12, %v12879_v41 }
 0x4bf   :  { %10465 = vmatmul.mubr.msk.bf16.vlgmr.msra.gmra.mrb[52].mxu1 %vm159_vm5, %v2496_v13  ;;  %10469 = vmatpush3.bf16.msra.mxu0 %v11549_v19  ;;  %v11563_v13 = vld [vmem:[%s14486_s3 + $0x1b8] sm:$0xff]   ;;  %174 = vst.msk [vmem:[#allocation5 + $0xe] sm:$0x7] %vm171_vm12, %v12879_v41  ;;  %175 = vst.msk [vmem:[#allocation7] sm:$0x7] %vm171_vm12, %v12879_v41 }
 0x4c0   :  { %10476 = vmatprep.mubr.msk.bf16.mxu0 %vm159_vm5, %v2685_v21  ;;  %10470 = vmatprep.subr.bf16.mxu0 %v11550_v35  ;;  %176 = vst.msk [vmem:[#allocation7 + $0x7] sm:$0x7] %vm171_vm12, %v12879_v41  ;;  %177 = vst.msk [vmem:[#allocation7 + $0xe] sm:$0x7] %vm171_vm12, %v12879_v41 }
 0x4c1   :  { %10481 = vmatpush3.bf16.msra.mxu1 %v11553_v10  ;;  %178 = vst.msk [vmem:[#allocation8] sm:$0x7] %vm171_vm12, %v12879_v41  ;;  %179 = vst.msk [vmem:[#allocation8 + $0x7] sm:$0x7] %vm171_vm12, %v12879_v41 }
 0x4c2   :  { %10482 = vmatprep.subr.bf16.mxu1 %v11554_v26  ;;  %180 = vst.msk [vmem:[#allocation8 + $0xe] sm:$0x7] %vm171_vm12, %v12879_v41 }
 0x4c3   :  { %10471 = vmatpush3.bf16.msra.mxu0 %v11550_v35  ;;  %v8952_v35 = vld [vmem:[%s14487_s4 + $0x5] ss:$0 sm:$0xff] }
 0x4c4   :  { %10472 = vmatprep.subr.bf16.mxu0 %v11551_v62 }
 0x4c5   :  { %10483 = vmatpush3.bf16.msra.mxu1 %v11554_v26 }
 0x4c6   :  { %10484 = vmatprep.subr.bf16.mxu1 %v11555_v3 }
 0x4c7   :  { %10473 = vmatpush3.bf16.msra.mxu0 %v11551_v62 }
 0x4c8   :  { %10474 = vmatprep.subr.bf16.mxu0 %v11552_v25 }
 0x4c9   :  { %10485 = vmatpush3.bf16.msra.mxu1 %v11555_v3 }
 0x4ca   :  { %10486 = vmatprep.subr.bf16.mxu1 %v11556_v5 }
 0x4cb   :  { %10475 = vmatpush3.bf16.msra.mxu0 %v11552_v25 }
 0x4cc   :  { %10492 = vmatprep.subr.bf16.mxu0 %v12581_v39 }
 0x4cd   :  { %10487 = vmatpush3.bf16.msra.mxu1 %v11556_v5 }
 0x4ce   :  { %10477 = vmatmul.mubr.msk.bf16.vlgmr.msra.gmra.mrb[56].mxu0 %vm159_vm5, %v2686_v44  ;;  %10504 = vmatprep.subr.bf16.mxu1 %v12581_v39 }
 0x4cf   :  { %10500 = vmatprep.mubr.msk.bf16.mxu0 %vm11817_vm0, %v12581_v39  ;;  %10493 = vmatpush3.bf16.msra.mxu0 %v11557_v63 }
 0x4d0   :  { %10494 = vmatprep.subr.bf16.mxu0 %v12879_v41 }
 0x4d3   :  { %10495 = vmatpush3.bf16.msra.mxu0 %v11559_v6 }
 0x4d4   :  { %10496 = vmatprep.subr.bf16.mxu0 %v12879_v41 }
 0x4d7   :  { %10497 = vmatpush3.bf16.msra.mxu0 %v11561_v31 }
 0x4d8   :  { %10498 = vmatprep.subr.bf16.mxu0 %v12879_v41 }
 0x4db   :  { %10499 = vmatpush3.bf16.msra.mxu0 %v11563_v13 }
 0x4dc   :  { %10516 = vmatprep.subr.bf16.mxu0 %v12879_v41 }
 0x591   :  { %v10454_v8 = vpop.f32.mrb[52].mxu0 }
 0x592   :  { %v10466_v57 = vpop.f32.mrb[52].mxu1  ;;  %v2587_v34 = vpop.f32.mrb[53].mxu0 }
 0x593   :  { %v2674_v27 = vadd.f32 %v10466_v57, %v10454_v8  ;;  %v2665_v19 = vpop.f32.mrb[53].mxu1  ;;  %v10455_v45 = vpop.f32.mrb[54].mxu0 }
 0x594   :  { %v2666_v58 = vadd.f32 %v2665_v19, %v2587_v34  ;;  %v10467_v37 = vpop.f32.mrb[54].mxu1  ;;  %v2590_v49 = vpop.f32.mrb[55].mxu0 }
 0x595   :  { %v2668_v33 = vpop.f32.mrb[55].mxu1 }
 0x596   :  { %v2669_v61 = vadd.f32 %v2668_v33, %v2590_v49  ;;  %v11568_v49 = vld [vmem:[%s14486_s3 + $0x1e8] sm:$0xff]   ;;  %v11569_v33 = vld [vmem:[%s14486_s3 + $0x1d0] sm:$0xff]  }
 0x5a1   :  { %v10478_v60 = vpop.f32.mrb[56].mxu0 }
 0x5a2   :  { %v2776_v50 = vadd.f32 %v10478_v60, %v2674_v27  ;;  %v2760_v16 = vpop.f32.mrb[57].mxu0  ;;  %v11572_v60 = vld [vmem:[%s14486_s3 + $0x1f8] sm:$0xff]  }
 0x5a3   :  { %v2774_v36 = vadd.f32 %v2760_v16, %v2666_v58  ;;  %v10479_v39 = vpop.f32.mrb[58].mxu0 }
 0x5a4   :  { %v2783_v22 = vadd.f32 %v8943_v15, %v2776_v50  ;;  %v2763_v40 = vpop.f32.mrb[59].mxu0 }
 0x5a5   :  { %v2781_v7 = vadd.f32 %v8943_v15, %v2774_v36  ;;  %v2775_v51 = vadd.f32 %v2763_v40, %v2669_v61  ;;  %v11570_v61 = vld [vmem:[%s14486_s3 + $0x1f0] sm:$0xff]  }
 0x5a6   :  { %v2786_v0 = vmax.f32 %v2783_v22, 0.0 }
 0x5a7   :  { %v2782_v47 = vadd.f32 %v8943_v15, %v2775_v51  ;;  %v2784_v48 = vmax.f32 %v2781_v7, 0.0  ;;  %v11571_v15 = vld [vmem:[%s14486_s3 + $0x1d8] sm:$0xff]   ;;  %v11573_v7 = vld [vmem:[%s14486_s3 + $0x220] sm:$0xff]  }
 0x5a8   :  { %v2788_v56 = vpack.c.bf16 %v2786_v0, %v2786_v0  ;;  %v11574_v51 = vld [vmem:[%s14486_s3 + $0x200] sm:$0xff]   ;;  %v11576_v0 = vld [vmem:[%s14486_s3 + $0x208] sm:$0xff]  }
 0x5a9   :  { %v2785_v23 = vmax.f32 %v2782_v47, 0.0  ;;  %v11575_v47 = vld [vmem:[%s14486_s3 + $0x228] sm:$0xff]  }
 0x5ab   :  { %v2787_v55 = vpack.c.bf16 %v2785_v23, %v2784_v48  ;;  %v11577_v48 = vld [vmem:[%s14486_s3 + $0x230] sm:$0xff]  }
 0x5ac   :  { %v11578_v23 = vld [vmem:[%s14486_s3 + $0x210] sm:$0xff]  }
 0x5ad   :  { %10488 = vmatprep.mubr.msk.bf16.mxu1 %vm159_vm5, %v2787_v55  ;;  %v11579_v55 = vld [vmem:[%s14486_s3 + $0x238] sm:$0xff]  }
 0x5ae   :  { %10489 = vmatmul.mubr.msk.bf16.vlgmr.msra.gmra.mrb[56].mxu1 %vm159_vm5, %v2788_v56  ;;  %v11580_v56 = vld [vmem:[%s14486_s3 + $0x218] sm:$0xff]  }
 0x5af   :  { %10512 = vmatprep.mubr.msk.bf16.mxu1 %vm11817_vm0, %v12879_v41  ;;  %10505 = vmatpush3.bf16.msra.mxu1 %v11558_v12 }
 0x5b0   :  { %10506 = vmatprep.subr.bf16.mxu1 %v12879_v41 }
 0x5b3   :  { %10507 = vmatpush3.bf16.msra.mxu1 %v11560_v46 }
 0x5b4   :  { %10508 = vmatprep.subr.bf16.mxu1 %v12879_v41 }
 0x5b7   :  { %10509 = vmatpush3.bf16.msra.mxu1 %v11562_v2 }
 0x5b8   :  { %10510 = vmatprep.subr.bf16.mxu1 %v12879_v41 }
 0x5bb   :  { %10511 = vmatpush3.bf16.msra.mxu1 %v11564_v32 }
 0x5bc   :  { %10528 = vmatprep.subr.bf16.mxu1 %v12879_v41 }
 0x681   :  { %v10490_v21 = vpop.f32.mrb[56].mxu1 }
 0x682   :  { %v2876_v62 = vadd.f32 %v10490_v21, %v8952_v35  ;;  %v2867_v25 = vpop.f32.mrb[57].mxu1 }
 0x683   :  { %v2868_v43 = vadd.f32 %v8952_v35, %v2867_v25  ;;  %v10491_v42 = vpop.f32.mrb[58].mxu1 }
 0x684   :  { %v2883_v44 = vmul.f32 %v12743_v54, %v2876_v62  ;;  %v2870_v10 = vpop.f32.mrb[59].mxu1 }
 0x685   :  { %v2884_v26 = vadd.f32 %v2868_v43, %v12834_v1  ;;  %v2871_v3 = vadd.f32 %v8952_v35, %v2870_v10  ;;  %v11565_v1 = vld [vmem:[%s14486_s3 + $0x1c0] sm:$0xff]  }
 0x686   :  { %v2886_v5 = vadd.f32 %v2883_v44, %v12836_v59  ;;  %v11566_v59 = vld [vmem:[%s14486_s3 + $0x1e0] sm:$0xff]  }
 0x687   :  { %2887 = vst.msk [vmem:[#allocation4 + $0x6] sm:$0xff] %vm159_vm5, %v2884_v26  ;;  %v2882_v8 = vmul.f32 %v12748_v30, %v2871_v3  ;;  %v9011_v44 = vld [vmem:[%s14487_s4 + $0x6] ss:$0 sm:$0xff] }
 0x688   :  { %2889 = vst.msk [vmem:[#allocation4 + $0x16] sm:$0x3f] %vm167_vm9, %v2886_v5 }
 0x689   :  { %v2885_v57 = vadd.f32 %v2882_v8, %v12838_v28  ;;  %v11567_v28 = vld [vmem:[%s14486_s3 + $0x1c8] sm:$0xff]  }
 0x68b   :  { %2888 = vst.msk [vmem:[#allocation4 + $0xe] sm:$0xff] %vm159_vm5, %v2885_v57 }
 0x68f   :  { %v2907_v27 = vld [vmem:[#allocation4 + $0x16] ss:$2 sm:$0x7]  ;;  %v3057_v36 = vld [vmem:[#allocation4 + $0x17] ss:$2 sm:$0x7] }
 0x690   :  { %v3141_v22 = vld [vmem:[#allocation4 + $0x18] ss:$2 sm:$0x7] }
 0x692   :  { %v2905_v34 = vld [vmem:[#allocation4 + $0x6] ss:$2 sm:$0xff]  ;;  %v2891_v19 = vld [vmem:[#allocation4 + $0x5] ss:$2 sm:$0xff] }
 0x693   :  { %v2908_v58 = vpack.c.bf16 %v2907_v27, %v2905_v34  ;;  %v2893_v45 = vld [vmem:[#allocation4 + $0x15] ss:$2 sm:$0x7]  ;;  %v3139_v16 = vld [vmem:[#allocation4 + $0x8] ss:$2 sm:$0xff]  ;;  %v13027_v27 = vsel %vm135_vm15, 1.0, %v12879_v41 }
 0x694   :  { %v2894_v37 = vpack.c.bf16 %v2893_v45, %v2891_v19  ;;  %v3055_v50 = vld [vmem:[#allocation4 + $0x7] ss:$2 sm:$0xff]  ;;  %v3142_v40 = vpack.c.bf16 %v3141_v22, %v3139_v16  ;;  %vm4707_vm15 = vcmask 523268  }
 0x695   :  { %10501 = vmatmul.mubr.msk.bf16.vlgmr.msra.gmra.mrb[60].mxu0 %vm159_vm5, %v2908_v58  ;;  %v3058_v39 = vpack.c.bf16 %v3057_v36, %v3055_v50  ;;  %v11581_v50 = vld [vmem:[%s14486_s3 + $0x240] sm:$0xff]   ;;  %v11583_v22 = vld [vmem:[%s14486_s3 + $0x250] sm:$0xff]  }
 0x696   :  { %10513 = vmatmul.mubr.msk.bf16.vlgmr.msra.gmra.mrb[60].mxu1 %vm159_vm5, %v2894_v37  ;;  %10517 = vmatpush3.bf16.msra.mxu0 %v11565_v1  ;;  %v13030_v1 = vsel %vm132_vm2, 1.0, %v12879_v41  ;;  %vm5689_vm2 = vcmask 1040384  }
 0x697   :  { %10529 = vmatpush3.bf16.msra.mxu1 %v11566_v59  ;;  %10518 = vmatprep.subr.bf16.mxu0 %v12879_v41 }
 0x698   :  { %10530 = vmatprep.subr.bf16.mxu1 %v12879_v41  ;;  %10524 = vmatprep.mubr.msk.bf16.mxu0 %vm11817_vm0, %v12879_v41 }
 0x699   :  { %10536 = vmatprep.mubr.msk.bf16.mxu1 %vm11817_vm0, %v12879_v41 }
 0x69a   :  { %10519 = vmatpush3.bf16.msra.mxu0 %v11567_v28 }
 0x69b   :  { %10531 = vmatpush3.bf16.msra.mxu1 %v11568_v49  ;;  %10520 = vmatprep.subr.bf16.mxu0 %v12879_v41 }
 0x69c   :  { %10532 = vmatprep.subr.bf16.mxu1 %v12879_v41 }
 0x69e   :  { %10521 = vmatpush3.bf16.msra.mxu0 %v11569_v33 }
 0x69f   :  { %10533 = vmatpush3.bf16.msra.mxu1 %v11570_v61  ;;  %10522 = vmatprep.subr.bf16.mxu0 %v12879_v41 }
 0x6a0   :  { %10534 = vmatprep.subr.bf16.mxu1 %v12879_v41 }
 0x6a2   :  { %10523 = vmatpush3.bf16.msra.mxu0 %v11571_v15 }
 0x6a3   :  { %10535 = vmatpush3.bf16.msra.mxu1 %v11572_v60  ;;  %10540 = vmatprep.subr.bf16.mxu0 %v12879_v41 }
 0x6a4   :  { %10552 = vmatprep.subr.bf16.mxu1 %v12879_v41 }
 0x6a5   :  { %10525 = vmatmul.mubr.msk.bf16.vlgmr.msra.gmra.mrb[64].mxu0 %vm159_vm5, %v3058_v39  ;;  %v11582_v39 = vld [vmem:[%s14486_s3 + $0x248] sm:$0xff]  }
 0x6a6   :  { %10537 = vmatmul.mubr.msk.bf16.vlgmr.msra.gmra.mrb[64].mxu1 %vm159_vm5, %v3142_v40  ;;  %10548 = vmatprep.mubr.msk.bf16.mxu0 %vm11817_vm0, %v12879_v41 }
 0x6a7   :  { %10560 = vmatprep.mubr.msk.bf16.mxu1 %vm11817_vm0, %v12879_v41  ;;  %10541 = vmatpush3.bf16.msra.mxu0 %v11573_v7 }
 0x6a8   :  { %10553 = vmatpush3.bf16.msra.mxu1 %v11574_v51  ;;  %10542 = vmatprep.subr.bf16.mxu0 %v12879_v41  ;;  %v11584_v51 = vld [vmem:[%s14486_s3 + $0x258] sm:$0xff]  }
 0x6a9   :  { %10554 = vmatprep.subr.bf16.mxu1 %v12879_v41 }
 0x6ab   :  { %10543 = vmatpush3.bf16.msra.mxu0 %v11575_v47 }
 0x6ac   :  { %10555 = vmatpush3.bf16.msra.mxu1 %v11576_v0  ;;  %10544 = vmatprep.subr.bf16.mxu0 %v12879_v41 }
 0x6ad   :  { %10556 = vmatprep.subr.bf16.mxu1 %v12879_v41 }
 0x6af   :  { %10545 = vmatpush3.bf16.msra.mxu0 %v11577_v48 }
 0x6b0   :  { %10557 = vmatpush3.bf16.msra.mxu1 %v11578_v23  ;;  %10546 = vmatprep.subr.bf16.mxu0 %v12879_v41  ;;  %v11585_v23 = vld [vmem:[%s14486_s3 + $0x260] sm:$0xff]  }
 0x6b1   :  { %10558 = vmatprep.subr.bf16.mxu1 %v12879_v41 }
 0x6b3   :  { %10547 = vmatpush3.bf16.msra.mxu0 %v11579_v55  ;;  %v11586_v55 = vld [vmem:[%s14486_s3 + $0x268] sm:$0xff]  }
 0x6b4   :  { %10559 = vmatpush3.bf16.msra.mxu1 %v11580_v56  ;;  %10564 = vmatprep.subr.bf16.mxu0 %v12879_v41  ;;  %v11587_v56 = vld [vmem:[%s14486_s3 + $0x270] sm:$0xff]  }
 0x6b5   :  { %10576 = vmatprep.subr.bf16.mxu1 %v12879_v41 }
 0x768   :  { %v2979_v63 = vpop.f32.mrb[60].mxu0 }
 0x769   :  { %v3047_v12 = vpop.f32.mrb[60].mxu1  ;;  %v10502_v6 = vpop.f32.mrb[61].mxu0 }
 0x76a   :  { %v3048_v46 = vadd.f32 %v3047_v12, %v2979_v63  ;;  %v10514_v31 = vpop.f32.mrb[61].mxu1  ;;  %v2982_v2 = vpop.f32.mrb[62].mxu0  ;;  %v11588_v63 = vld [vmem:[%s14486_s3 + $0x278] sm:$0xff]  }
 0x76b   :  { %v3050_v13 = vpop.f32.mrb[62].mxu1  ;;  %v10503_v32 = vpop.f32.mrb[63].mxu0 }
 0x76c   :  { %v3051_v35 = vadd.f32 %v3050_v13, %v2982_v2  ;;  %v10515_v21 = vpop.f32.mrb[63].mxu1 }
 0x778   :  { %v3129_v62 = vpop.f32.mrb[64].mxu0 }
 0x779   :  { %v3136_v25 = vadd.f32 %v3129_v62, %v3048_v46  ;;  %v3213_v43 = vpop.f32.mrb[64].mxu1  ;;  %v10526_v42 = vpop.f32.mrb[65].mxu0 }
 0x77a   :  { %v10538_v10 = vpop.f32.mrb[65].mxu1  ;;  %v3132_v26 = vpop.f32.mrb[66].mxu0 }
 0x77b   :  { %v3220_v3 = vadd.f32 %v3213_v43, %v3136_v25  ;;  %v3137_v5 = vadd.f32 %v3132_v26, %v3051_v35  ;;  %v3216_v8 = vpop.f32.mrb[66].mxu1  ;;  %v10527_v57 = vpop.f32.mrb[67].mxu0  ;;  %v9051_v25 = vld [vmem:[%s14487_s4 + $0x7] ss:$0 sm:$0xff] }
 0x77c   :  { %v10539_v4 = vpop.f32.mrb[67].mxu1 }
 0x77d   :  { %v3227_v34 = vadd.f32 %v9011_v44, %v3220_v3  ;;  %v3221_v19 = vadd.f32 %v3216_v8, %v3137_v5 }
 0x77f   :  { %v3229_v58 = vmul.f32 %v13027_v27, %v3227_v34  ;;  %v3228_v45 = vadd.f32 %v9011_v44, %v3221_v19  ;;  %v11589_v19 = vld [vmem:[%s14486_s3 + $0x280] sm:$0xff]  }
 0x781   :  { %3231 = vst.msk [vmem:[#allocation5 + $0x3] sm:$0xff] %vm159_vm5, %v3229_v58  ;;  %v3230_v59 = vmul.f32 %v13030_v1, %v3228_v45  ;;  %v11590_v58 = vld [vmem:[%s14486_s3 + $0x2a0] sm:$0xff]   ;;  %v11591_v45 = vld [vmem:[%s14486_s3 + $0x288] sm:$0xff]  }
 0x783   :  { %3232 = vst.msk [vmem:[#allocation5 + $0xb] sm:$0x7] %vm171_vm12, %v3230_v59  ;;  %v11592_v59 = vld [vmem:[%s14486_s3 + $0x2a8] sm:$0xff]  }
 0x788   :  { %v13036_v17 = vld [vmem:[#allocation5 + $0x3] sm:$0xff] }
 0x789   :  { %v3234_v37 = vld [vmem:[#allocation5 + $0x2] sm:$0xff]  ;;  %v3250_v33 = vmax.f32 %v13036_v17, 0.0 }
 0x78a   :  { %v13038_v28 = vld [vmem:[#allocation5 + $0xb] sm:$0x7]  ;;  %v3236_v15 = vmax.f32 %v3234_v37, 0.0 }
 0x78b   :  { %v3235_v49 = vld [vmem:[#allocation5 + $0xa] sm:$0x7]  ;;  %v3251_v61 = vmax.f32 %v13038_v28, 0.0 }
 0x78c   :  { %v3237_v60 = vmax.f32 %v3235_v49, 0.0  ;;  %v3398_v40 = vld [vmem:[#allocation5 + $0x4] sm:$0xff]  ;;  %v3399_v7 = vld [vmem:[#allocation5 + $0xc] sm:$0x7] }
 0x78d   :  { %v3252_v16 = vpack.c.bf16 %v3251_v61, %v3250_v33  ;;  %v3400_v47 = vmax.f32 %v3398_v40, 0.0  ;;  %v3401_v0 = vmax.f32 %v3399_v7, 0.0  ;;  %v11593_v37 = vld [vmem:[%s14486_s3 + $0x290] sm:$0xff]   ;;  %v11595_v33 = vld [vmem:[%s14486_s3 + $0x298] sm:$0xff]  }
 0x78e   :  { %v3238_v36 = vpack.c.bf16 %v3237_v60, %v3236_v15  ;;  %v11594_v49 = vld [vmem:[%s14486_s3 + $0x2b0] sm:$0xff]   ;;  %v11596_v61 = vld [vmem:[%s14486_s3 + $0x2b8] sm:$0xff]   ;;  %v9060_v15 = vld [vmem:[%s14487_s4 + $0x8] ss:$0 sm:$0xff] }
 0x78f   :  { %10549 = vmatmul.mubr.msk.bf16.vlgmr.msra.gmra.mrb[68].mxu0 %vm159_vm5, %v3252_v16  ;;  %v3402_v48 = vpack.c.bf16 %v3401_v0, %v3400_v47 }
 0x790   :  { %10561 = vmatmul.mubr.msk.bf16.vlgmr.msra.gmra.mrb[68].mxu1 %vm159_vm5, %v3238_v36  ;;  %10565 = vmatpush3.bf16.msra.mxu0 %v11581_v50 }
 0x791   :  { %10572 = vmatprep.mubr.msk.bf16.mxu0 %vm11817_vm0, %v12879_v41  ;;  %10566 = vmatprep.subr.bf16.mxu0 %v12879_v41 }
 0x792   :  { %10584 = vmatprep.mubr.msk.bf16.mxu1 %vm11817_vm0, %v12879_v41  ;;  %10577 = vmatpush3.bf16.msra.mxu1 %v11585_v23 }
 0x793   :  { %10578 = vmatprep.subr.bf16.mxu1 %v12879_v41 }
 0x794   :  { %10567 = vmatpush3.bf16.msra.mxu0 %v11582_v39 }
 0x795   :  { %10568 = vmatprep.subr.bf16.mxu0 %v12879_v41 }
 0x796   :  { %10579 = vmatpush3.bf16.msra.mxu1 %v11586_v55 }
 0x797   :  { %10580 = vmatprep.subr.bf16.mxu1 %v12879_v41 }
 0x798   :  { %10569 = vmatpush3.bf16.msra.mxu0 %v11583_v22 }
 0x799   :  { %10570 = vmatprep.subr.bf16.mxu0 %v12879_v41 }
 0x79a   :  { %10581 = vmatpush3.bf16.msra.mxu1 %v11587_v56 }
 0x79b   :  { %10582 = vmatprep.subr.bf16.mxu1 %v12879_v41 }
 0x79c   :  { %10571 = vmatpush3.bf16.msra.mxu0 %v11584_v51 }
 0x79d   :  { %10588 = vmatprep.subr.bf16.mxu0 %v12879_v41 }
 0x79e   :  { %10583 = vmatpush3.bf16.msra.mxu1 %v11588_v63 }
 0x79f   :  { %10573 = vmatmul.mubr.msk.bf16.vlgmr.msra.gmra.mrb[72].mxu0 %vm159_vm5, %v3402_v48  ;;  %10600 = vmatprep.subr.bf16.mxu1 %v12879_v41 }
 0x7a0   :  { %10596 = vmatprep.mubr.msk.bf16.mxu0 %vm11817_vm0, %v12879_v41  ;;  %10589 = vmatpush3.bf16.msra.mxu0 %v11590_v58 }
 0x7a1   :  { %10590 = vmatprep.subr.bf16.mxu0 %v12879_v41 }
 0x7a4   :  { %10591 = vmatpush3.bf16.msra.mxu0 %v11592_v59  ;;  %v9105_v59 = vld [vmem:[%s14487_s4 + $0x9] ss:$0 sm:$0xff] }
 0x7a5   :  { %10592 = vmatprep.subr.bf16.mxu0 %v12879_v41 }
 0x7a8   :  { %10593 = vmatpush3.bf16.msra.mxu0 %v11594_v49 }
 0x7a9   :  { %10594 = vmatprep.subr.bf16.mxu0 %v12879_v41 }
 0x7ac   :  { %10595 = vmatpush3.bf16.msra.mxu0 %v11596_v61 }
 0x7ad   :  { %10612 = vmatprep.subr.bf16.mxu0 %v12879_v41 }
 0x862   :  { %v3323_v12 = vpop.f32.mrb[68].mxu0 }
 0x863   :  { %v3391_v6 = vpop.f32.mrb[68].mxu1  ;;  %v10550_v31 = vpop.f32.mrb[69].mxu0 }
 0x864   :  { %v3392_v46 = vadd.f32 %v3391_v6, %v3323_v12  ;;  %v10562_v2 = vpop.f32.mrb[69].mxu1  ;;  %v3326_v13 = vpop.f32.mrb[70].mxu0  ;;  %v11598_v31 = vld [vmem:[%s14486_s3 + $0x2c8] sm:$0xff]  }
 0x865   :  { %v3394_v32 = vpop.f32.mrb[70].mxu1  ;;  %v10551_v21 = vpop.f32.mrb[71].mxu0  ;;  %v11599_v2 = vld [vmem:[%s14486_s3 + $0x2d0] sm:$0xff]  }
 0x866   :  { %v3395_v35 = vadd.f32 %v3394_v32, %v3326_v13  ;;  %v10563_v62 = vpop.f32.mrb[71].mxu1  ;;  %v3745_v32 = vld [vmem:[#allocation5 + $0xe] sm:$0x7] }
 0x867   :  { %v3747_v62 = vmax.f32 %v3745_v32, 0.0 }
 0x872   :  { %v3473_v43 = vpop.f32.mrb[72].mxu0 }
 0x873   :  { %v3480_v42 = vadd.f32 %v3473_v43, %v3392_v46  ;;  %v10574_v44 = vpop.f32.mrb[73].mxu0  ;;  %v11597_v46 = vld [vmem:[%s14486_s3 + $0x2c0] sm:$0xff]  }
 0x874   :  { %v3476_v10 = vpop.f32.mrb[74].mxu0  ;;  %v11601_v43 = vld [vmem:[%s14486_s3 + $0x2e0] sm:$0xff]   ;;  %v11603_v44 = vld [vmem:[%s14486_s3 + $0x2f0] sm:$0xff]  }
 0x875   :  { %v3486_v26 = vadd.f32 %v9051_v25, %v3480_v42  ;;  %v3481_v3 = vadd.f32 %v3476_v10, %v3395_v35  ;;  %v10575_v5 = vpop.f32.mrb[75].mxu0  ;;  %v11600_v35 = vld [vmem:[%s14486_s3 + $0x2d8] sm:$0xff]   ;;  %v11602_v42 = vld [vmem:[%s14486_s3 + $0x2e8] sm:$0xff]  }
 0x876   :  { %v11604_v10 = vld [vmem:[%s14486_s3 + $0x2f8] sm:$0xff]  }
 0x877   :  { %v3487_v8 = vadd.f32 %v9051_v25, %v3481_v3  ;;  %v3488_v57 = vmax.f32 %v3486_v26, 0.0 }
 0x879   :  { %v3489_v4 = vmax.f32 %v3487_v8, 0.0 }
 0x87b   :  { %v3490_v34 = vpack.c.bf16 %v3489_v4, %v3488_v57 }
 0x87d   :  { %10585 = vmatmul.mubr.msk.bf16.vlgmr.msra.gmra.mrb[72].mxu1 %vm159_vm5, %v3490_v34 }
 0x87e   :  { %10608 = vmatprep.mubr.msk.bf16.mxu1 %vm11817_vm0, %v12879_v41  ;;  %10601 = vmatpush3.bf16.msra.mxu1 %v11589_v19 }
 0x87f   :  { %10602 = vmatprep.subr.bf16.mxu1 %v12879_v41 }
 0x882   :  { %10603 = vmatpush3.bf16.msra.mxu1 %v11591_v45 }
 0x883   :  { %10604 = vmatprep.subr.bf16.mxu1 %v12879_v41 }
 0x886   :  { %10605 = vmatpush3.bf16.msra.mxu1 %v11593_v37 }
 0x887   :  { %10606 = vmatprep.subr.bf16.mxu1 %v12879_v41 }
 0x88a   :  { %10607 = vmatpush3.bf16.msra.mxu1 %v11595_v33 }
 0x88b   :  { %10624 = vmatprep.subr.bf16.mxu1 %v12879_v41 }
 0x950   :  { %v3566_v60 = vpop.f32.mrb[72].mxu1 }
 0x951   :  { %v3567_v50 = vadd.f32 %v9060_v15, %v3566_v60  ;;  %v10586_v16 = vpop.f32.mrb[73].mxu1 }
 0x952   :  { %v3569_v36 = vpop.f32.mrb[74].mxu1 }
 0x953   :  { %v3573_v39 = vmul.f32 %v13027_v27, %v3567_v50  ;;  %v3570_v22 = vadd.f32 %v9060_v15, %v3569_v36  ;;  %v10587_v40 = vpop.f32.mrb[75].mxu1 }
 0x954   :  { %v11605_v40 = vld [vmem:[%s14486_s3 + $0x320] sm:$0xff]  }
 0x955   :  { %v3575_v7 = vadd.f32 %v3573_v39, %v13036_v17  ;;  %v3574_v51 = vmul.f32 %v13030_v1, %v3570_v22 }
 0x957   :  { %3577 = vst.msk [vmem:[#allocation5 + $0x3] sm:$0xff] %vm159_vm5, %v3575_v7  ;;  %v3576_v47 = vadd.f32 %v3574_v51, %v13038_v28  ;;  %v11606_v7 = vld [vmem:[%s14486_s3 + $0x300] sm:$0xff]   ;;  %v11607_v51 = vld [vmem:[%s14486_s3 + $0x328] sm:$0xff]  }
 0x959   :  { %3578 = vst.msk [vmem:[#allocation5 + $0xb] sm:$0x7] %vm171_vm12, %v3576_v47  ;;  %v11608_v47 = vld [vmem:[%s14486_s3 + $0x308] sm:$0xff]  }
 0x95e   :  { %v3580_v0 = vld [vmem:[#allocation5] sm:$0xff]  ;;  %v3581_v48 = vld [vmem:[#allocation5 + $0x8] sm:$0x7] }
 0x95f   :  { %v13130_v23 = vld [vmem:[#allocation5 + $0x3] sm:$0xff]  ;;  %v3582_v55 = vmax.f32 %v3580_v0, 0.0  ;;  %v3583_v56 = vmax.f32 %v3581_v48, 0.0 }
 0x960   :  { %v13132_v63 = vld [vmem:[#allocation5 + $0xb] sm:$0x7]  ;;  %v3596_v6 = vmax.f32 %v13130_v23, 0.0 }
 0x961   :  { %v3584_v12 = vpack.c.bf16 %v3583_v56, %v3582_v55  ;;  %v3597_v17 = vmax.f32 %v13132_v63, 0.0  ;;  %v3744_v13 = vld [vmem:[#allocation5 + $0x6] sm:$0xff]  ;;  %v11611_v55 = vld [vmem:[%s14486_s3 + $0x338] sm:$0xff]  }
 0x962   :  { %v3746_v21 = vmax.f32 %v3744_v13, 0.0  ;;  %v11609_v0 = vld [vmem:[%s14486_s3 + $0x330] sm:$0xff]   ;;  %v11612_v56 = vld [vmem:[%s14486_s3 + $0x318] sm:$0xff]  }
 0x963   :  { %10609 = vmatmul.mubr.msk.bf16.vlgmr.msra.gmra.mrb[76].mxu1 %vm159_vm5, %v3584_v12  ;;  %v3598_v28 = vpack.c.bf16 %v3597_v17, %v3596_v6  ;;  %v11610_v48 = vld [vmem:[%s14486_s3 + $0x310] sm:$0xff]   ;;  %v11818_v12 = vmov 0.0|0.0   ;;  %v9114_v6 = vld [vmem:[%s14487_s4 + $0xa] ss:$0 sm:$0xff] }
 0x964   :  { %10632 = vmatprep.mubr.msk.bf16.mxu1 %vm11817_vm0, %v12879_v41  ;;  %v3748_v25 = vpack.c.bf16 %v3747_v62, %v3746_v21  ;;  %10625 = vmatpush3.bf16.msra.mxu1 %v11601_v43  ;;  %v4180_v43 = vld [vmem:[%s14489_s6 + $0x8] sm:$0xff] }
 0x965   :  { %10597 = vmatmul.mubr.msk.bf16.vlgmr.msra.gmra.mrb[76].mxu0 %vm159_vm5, %v3598_v28  ;;  %10626 = vmatprep.subr.bf16.mxu1 %v12879_v41 }
 0x966   :  { %10613 = vmatpush3.bf16.msra.mxu0 %v11597_v46  ;;  %10620 = vmatprep.mubr.msk.bf16.mxu0 %vm11817_vm0, %v12879_v41 }
 0x967   :  { %10614 = vmatprep.subr.bf16.mxu0 %v12879_v41 }
 0x968   :  { %10627 = vmatpush3.bf16.msra.mxu1 %v11602_v42 }
 0x969   :  { %10628 = vmatprep.subr.bf16.mxu1 %v12879_v41 }
 0x96a   :  { %10615 = vmatpush3.bf16.msra.mxu0 %v11598_v31 }
 0x96b   :  { %10616 = vmatprep.subr.bf16.mxu0 %v12879_v41 }
 0x96c   :  { %10629 = vmatpush3.bf16.msra.mxu1 %v11603_v44 }
 0x96d   :  { %10630 = vmatprep.subr.bf16.mxu1 %v12879_v41 }
 0x96e   :  { %10617 = vmatpush3.bf16.msra.mxu0 %v11599_v2 }
 0x96f   :  { %10618 = vmatprep.subr.bf16.mxu0 %v12879_v41 }
 0x970   :  { %10631 = vmatpush3.bf16.msra.mxu1 %v11604_v10 }
 0x971   :  { %10648 = vmatprep.subr.bf16.mxu1 %v12879_v41 }
 0x972   :  { %10619 = vmatpush3.bf16.msra.mxu0 %v11600_v35 }
 0x973   :  { %10636 = vmatprep.subr.bf16.mxu0 %v12879_v41 }
 0x975   :  { %10621 = vmatmul.mubr.msk.bf16.vlgmr.msra.gmra.mrb[80].mxu0 %vm159_vm5, %v3748_v25  ;;  %v4179_v25 = vld [vmem:[%s14489_s6] sm:$0xff] }
 0x976   :  { %10644 = vmatprep.mubr.msk.bf16.mxu0 %vm11817_vm0, %v12879_v41  ;;  %10637 = vmatpush3.bf16.msra.mxu0 %v11605_v40  ;;  %v4189_v40 = vld [vmem:[%s14489_s6 + $0x50] sm:$0xff] }
 0x977   :  { %10638 = vmatprep.subr.bf16.mxu0 %v12879_v41 }
 0x97a   :  { %10639 = vmatpush3.bf16.msra.mxu0 %v11607_v51 }
 0x97b   :  { %10640 = vmatprep.subr.bf16.mxu0 %v12879_v41 }
 0x97e   :  { %10641 = vmatpush3.bf16.msra.mxu0 %v11609_v0  ;;  %v4192_v0 = vld [vmem:[%s14489_s6 + $0x68] sm:$0xff] }
 0x97f   :  { %10642 = vmatprep.subr.bf16.mxu0 %v12879_v41 }
 0x982   :  { %10643 = vmatpush3.bf16.msra.mxu0 %v11611_v55  ;;  %v4193_v55 = vld [vmem:[%s14489_s6 + $0x70] sm:$0xff] }
 0x983   :  { %10660 = vmatprep.subr.bf16.mxu0 %v12879_v41 }
 0xa36   :  { %v3737_v26 = vpop.f32.mrb[76].mxu1 }
 0xa37   :  { %v10610_v3 = vpop.f32.mrb[77].mxu1 }
 0xa38   :  { %v3669_v5 = vpop.f32.mrb[76].mxu0  ;;  %v3740_v8 = vpop.f32.mrb[78].mxu1 }
 0xa39   :  { %v3738_v57 = vadd.f32 %v3737_v26, %v3669_v5  ;;  %v10598_v4 = vpop.f32.mrb[77].mxu0  ;;  %v10611_v34 = vpop.f32.mrb[79].mxu1  ;;  %v11299_v5 = vpack.c.bf16 %v4180_v43, %v4179_v25  ;;  %v9159_v25 = vld [vmem:[%s14487_s4 + $0xb] ss:$0 sm:$0xff] }
 0xa3a   :  { %v3672_v19 = vpop.f32.mrb[78].mxu0  ;;  %v4181_v4 = vld [vmem:[%s14489_s6 + $0x10] sm:$0xff]  ;;  %v4182_v34 = vld [vmem:[%s14489_s6 + $0x18] sm:$0xff] }
 0xa3b   :  { %v3741_v58 = vadd.f32 %v3740_v8, %v3672_v19  ;;  %v10599_v45 = vpop.f32.mrb[79].mxu0  ;;  %v11615_v19 = vld [vmem:[%s14486_s3 + $0x350] sm:$0xff]  }
 0xa3c   :  { %v11616_v45 = vld [vmem:[%s14486_s3 + $0x358] sm:$0xff]  }
 0xa48   :  { %v3819_v37 = vpop.f32.mrb[80].mxu0 }
 0xa49   :  { %v3826_v49 = vadd.f32 %v3819_v37, %v3738_v57  ;;  %v10622_v33 = vpop.f32.mrb[81].mxu0  ;;  %v11614_v57 = vld [vmem:[%s14486_s3 + $0x348] sm:$0xff]  }
 0xa4a   :  { %v3822_v61 = vpop.f32.mrb[82].mxu0  ;;  %v4184_v33 = vld [vmem:[%s14489_s6 + $0x28] sm:$0xff] }
 0xa4b   :  { %v3832_v15 = vadd.f32 %v9105_v59, %v3826_v49  ;;  %v3827_v60 = vadd.f32 %v3822_v61, %v3741_v58  ;;  %v10623_v50 = vpop.f32.mrb[83].mxu0  ;;  %v11303_v58 = vpack.c.bf16 %v4182_v34, %v4181_v4 }
 0xa4c   :  { %v4186_v50 = vld [vmem:[%s14489_s6 + $0x38] sm:$0xff] }
 0xa4d   :  { %v3833_v16 = vadd.f32 %v9105_v59, %v3827_v60  ;;  %v3834_v36 = vmax.f32 %v3832_v15, 0.0  ;;  %v4183_v59 = vld [vmem:[%s14489_s6 + $0x20] sm:$0xff]  ;;  %v4185_v60 = vld [vmem:[%s14489_s6 + $0x30] sm:$0xff] }
 0xa4e   :  { %v11307_v15 = vpack.c.bf16 %v4184_v33, %v4183_v59  ;;  %v9177_v59 = vld [vmem:[%s14490_s7] ss:$0 sm:$0xff]  ;;  %v14524_v33 = vlaneseq }
 0xa4f   :  { %v3835_v39 = vmax.f32 %v3833_v16, 0.0  ;;  %v11311_v16 = vpack.c.bf16 %v4186_v50, %v4185_v60 }
 0xa51   :  { %v3836_v22 = vpack.c.bf16 %v3835_v39, %v3834_v36  ;;  %v4187_v36 = vld [vmem:[%s14489_s6 + $0x40] sm:$0xff]  ;;  %v4188_v39 = vld [vmem:[%s14489_s6 + $0x48] sm:$0xff] }
 0xa53   :  { %10633 = vmatmul.mubr.msk.bf16.vlgmr.msra.gmra.mrb[80].mxu1 %vm159_vm5, %v3836_v22  ;;  %v11315_v22 = vpack.c.bf16 %v4188_v39, %v4187_v36 }
 0xa54   :  { %10656 = vmatprep.mubr.msk.bf16.mxu1 %vm11817_vm0, %v12879_v41  ;;  %10649 = vmatpush3.bf16.msra.mxu1 %v11606_v7  ;;  %v4190_v7 = vld [vmem:[%s14489_s6 + $0x58] sm:$0xff] }
 0xa55   :  { %10650 = vmatprep.subr.bf16.mxu1 %v12879_v41  ;;  %v11319_v51 = vpack.c.bf16 %v4190_v7, %v4189_v40  ;;  %v9180_v40 = vld [vmem:[%s14489_s6 + $0x80] sm:$0xff]  ;;  %v9181_v7 = vld [vmem:[%s14489_s6 + $0x88] sm:$0xff] }
 0xa58   :  { %10651 = vmatpush3.bf16.msra.mxu1 %v11608_v47  ;;  %v4191_v47 = vld [vmem:[%s14489_s6 + $0x60] sm:$0xff] }
 0xa59   :  { %10652 = vmatprep.subr.bf16.mxu1 %v12879_v41 }
 0xa5c   :  { %10653 = vmatpush3.bf16.msra.mxu1 %v11610_v48  ;;  %v11323_v48 = vpack.c.bf16 %v4192_v0, %v4191_v47  ;;  %v9182_v47 = vld [vmem:[%s14489_s6 + $0x90] sm:$0xff]  ;;  %v9183_v0 = vld [vmem:[%s14489_s6 + $0x98] sm:$0xff] }
 0xa5d   :  { %10654 = vmatprep.subr.bf16.mxu1 %v12879_v41 }
 0xa60   :  { %10655 = vmatpush3.bf16.msra.mxu1 %v11612_v56  ;;  %v4194_v56 = vld [vmem:[%s14489_s6 + $0x78] sm:$0xff] }
 0xa61   :  { %11298 = vmatprep.subr.bf16.mxu1 %v11818_v12 }
 0xb26   :  { %v3912_v17 = vpop.f32.mrb[80].mxu1 }
 0xb27   :  { %v3913_v46 = vadd.f32 %v9114_v6, %v3912_v17  ;;  %v10634_v28 = vpop.f32.mrb[81].mxu1 }
 0xb28   :  { %v3915_v31 = vpop.f32.mrb[82].mxu1 }
 0xb29   :  { %v3919_v2 = vmul.f32 %v13027_v27, %v3913_v46  ;;  %v3916_v13 = vadd.f32 %v9114_v6, %v3915_v31  ;;  %v10635_v32 = vpop.f32.mrb[83].mxu1  ;;  %v11327_v6 = vpack.c.bf16 %v4194_v56, %v4193_v55  ;;  %v9184_v55 = vld [vmem:[%s14489_s6 + $0xa0] sm:$0xff]  ;;  %v9185_v56 = vld [vmem:[%s14489_s6 + $0xa8] sm:$0xff] }
 0xb2b   :  { %v3921_v35 = vadd.f32 %v3919_v2, %v13130_v23  ;;  %v3920_v21 = vmul.f32 %v13030_v1, %v3916_v13  ;;  %v11613_v23 = vld [vmem:[%s14486_s3 + $0x340] sm:$0xff]  }
 0xb2d   :  { %3923 = vst.msk [vmem:[#allocation5 + $0x3] sm:$0xff] %vm159_vm5, %v3921_v35  ;;  %v3922_v62 = vadd.f32 %v3920_v21, %v13132_v63 }
 0xb2f   :  { %3924 = vst.msk [vmem:[#allocation5 + $0xb] sm:$0x7] %vm171_vm12, %v3922_v62 }
 0xb34   :  { %v3938_v42 = vld [vmem:[#allocation5 + $0x3] sm:$0xff] }
 0xb35   :  { %v3926_v10 = vld [vmem:[#allocation5 + $0x2] sm:$0xff] }
 0xb36   :  { %v3939_v44 = vld [vmem:[#allocation5 + $0xb] sm:$0x7] }
 0xb37   :  { %v3927_v26 = vld [vmem:[#allocation5 + $0xa] sm:$0x7]  ;;  %v3940_v3 = vpack.c.bf16 %v3939_v44, %v3938_v42 }
 0xb38   :  { %v3928_v63 = vpack.c.bf16 %v3927_v26, %v3926_v10  ;;  %v4086_v37 = vld [vmem:[#allocation5 + $0x4] sm:$0xff]  ;;  %v4087_v49 = vld [vmem:[#allocation5 + $0xc] sm:$0x7] }
 0xb39   :  { %10645 = vmatmul.mubr.msk.bf16.vlgmr.msra.gmra.mrb[84].mxu0 %vm159_vm5, %v3940_v3  ;;  %v4088_v61 = vpack.c.bf16 %v4087_v49, %v4086_v37 }
 0xb3a   :  { %10657 = vmatmul.mubr.msk.bf16.vlgmr.msra.gmra.mrb[84].mxu1 %vm159_vm5, %v3928_v63  ;;  %10661 = vmatpush3.bf16.msra.mxu0 %v11613_v23 }
 0xb3b   :  { %10668 = vmatprep.mubr.msk.bf16.mxu0 %vm11817_vm0, %v12879_v41  ;;  %10662 = vmatprep.subr.bf16.mxu0 %v12879_v41 }
 0xb3c   :  { %11301 = vmatpush3.bf16.xpose.msk.msra.mxu1 %vm13235_vm3, %v11299_v5  ;;  %10704 = vmatprep.mubr.msk.f32.mxu1 %vm11817_vm0, %v12879_v41 }
 0xb3d   :  { %11302 = vmatprep.subr.bf16.mxu1 %v11818_v12 }
 0xb3e   :  { %10663 = vmatpush3.bf16.msra.mxu0 %v11614_v57 }
 0xb3f   :  { %10664 = vmatprep.subr.bf16.mxu0 %v12879_v41 }
 0xb42   :  { %10665 = vmatpush3.bf16.msra.mxu0 %v11615_v19 }
 0xb43   :  { %10666 = vmatprep.subr.bf16.mxu0 %v12879_v41 }
 0xb44   :  { %11305 = vmatpush3.bf16.xpose.msk.msra.mxu1 %vm13235_vm3, %v11303_v58 }
 0xb45   :  { %11306 = vmatprep.subr.bf16.mxu1 %v11818_v12 }
 0xb46   :  { %10667 = vmatpush3.bf16.msra.mxu0 %v11616_v45 }
 0xb47   :  { %11330 = vmatprep.subr.bf16.mxu0 %v11818_v12 }
 0xb49   :  { %10669 = vmatmul.mubr.msk.bf16.vlgmr.msra.gmra.mrb[88].mxu0 %vm159_vm5, %v4088_v61  ;;  %v13353_v61 = vand.u32 127, %v14524_v33 }
 0xb4a   :  { %11332 = vmatpush3.bf16.msra.mxu0 %v11299_v5  ;;  %10739 = vmatprep.mubr.msk.f32.mxu0 %vm11817_vm0, %v12879_v41 }
 0xb4b   :  { %11333 = vmatprep.subr.bf16.mxu0 %v11818_v12 }
 0xb4c   :  { %11309 = vmatpush3.bf16.xpose.msk.msra.mxu1 %vm13235_vm3, %v11307_v15 }
 0xb4d   :  { %11310 = vmatprep.subr.bf16.mxu1 %v11818_v12 }
 0xb4e   :  { %11335 = vmatpush3.bf16.msra.mxu0 %v11303_v58 }
 0xb4f   :  { %11336 = vmatprep.subr.bf16.mxu0 %v11818_v12 }
 0xb52   :  { %11338 = vmatpush3.bf16.msra.mxu0 %v11307_v15 }
 0xb53   :  { %11339 = vmatprep.subr.bf16.mxu0 %v11818_v12 }
 0xb54   :  { %11313 = vmatpush3.bf16.xpose.msk.msra.mxu1 %vm13235_vm3, %v11311_v16 }
 0xb55   :  { %11314 = vmatprep.subr.bf16.mxu1 %v11818_v12 }
 0xb56   :  { %11341 = vmatpush3.bf16.msra.mxu0 %v11311_v16 }
 0xb57   :  { %11342 = vmatprep.subr.bf16.mxu0 %v11818_v12 }
 0xb5a   :  { %11344 = vmatpush3.bf16.msra.mxu0 %v11315_v22 }
 0xb5b   :  { %11345 = vmatprep.subr.bf16.mxu0 %v11818_v12 }
 0xb5c   :  { %11317 = vmatpush3.bf16.xpose.msk.msra.mxu1 %vm13235_vm3, %v11315_v22 }
 0xb5d   :  { %11318 = vmatprep.subr.bf16.mxu1 %v11818_v12 }
 0xb5e   :  { %11347 = vmatpush3.bf16.msra.mxu0 %v11319_v51 }
 0xb5f   :  { %11348 = vmatprep.subr.bf16.mxu0 %v11818_v12 }
 0xb62   :  { %11350 = vmatpush3.bf16.msra.mxu0 %v11323_v48 }
 0xb63   :  { %11351 = vmatprep.subr.bf16.mxu0 %v11818_v12 }
 0xb64   :  { %11321 = vmatpush3.bf16.xpose.msk.msra.mxu1 %vm13235_vm3, %v11319_v51  ;;  %v11355_v51 = vpack.c.bf16 %v9181_v7, %v9180_v40 }
 0xb65   :  { %11322 = vmatprep.subr.bf16.mxu1 %v11818_v12 }
 0xb66   :  { %11353 = vmatpush3.bf16.msra.mxu0 %v11327_v6 }
 0xb67   :  { %11354 = vmatprep.subr.bf16.mxu0 %v11818_v12 }
 0xb6c   :  { %11325 = vmatpush3.bf16.xpose.msk.msra.mxu1 %vm13235_vm3, %v11323_v48  ;;  %v11359_v48 = vpack.c.bf16 %v9183_v0, %v9182_v47 }
 0xb6d   :  { %11326 = vmatprep.subr.bf16.mxu1 %v11818_v12 }
 0xb74   :  { %11329 = vmatpush3.bf16.xpose.msk.msra.mxu1 %vm13235_vm3, %v11327_v6  ;;  %v11363_v6 = vpack.c.bf16 %v9185_v56, %v9184_v55  ;;  %v9213_v55 = vld [vmem:[%s14490_s7 + $0x1] ss:$0 sm:$0xff] }
 0xb75   :  { %11386 = vmatprep.subr.bf16.mxu1 %v11818_v12 }
 0xc0c   :  { %v4011_v17 = vpop.f32.mrb[84].mxu0 }
 0xc0d   :  { %v4079_v46 = vpop.f32.mrb[84].mxu1  ;;  %v10646_v31 = vpop.f32.mrb[85].mxu0 }
 0xc0e   :  { %v4080_v28 = vadd.f32 %v4079_v46, %v4011_v17  ;;  %v10658_v2 = vpop.f32.mrb[85].mxu1  ;;  %v4014_v13 = vpop.f32.mrb[86].mxu0  ;;  %v9186_v17 = vld [vmem:[%s14489_s6 + $0xb0] sm:$0xff]  ;;  %v9187_v46 = vld [vmem:[%s14489_s6 + $0xb8] sm:$0xff]  ;;  %v9188_v31 = vld [vmem:[%s14489_s6 + $0xc0] sm:$0xff] }
 0xc0f   :  { %v4082_v32 = vpop.f32.mrb[86].mxu1  ;;  %v10647_v21 = vpop.f32.mrb[87].mxu0  ;;  %v9189_v2 = vld [vmem:[%s14489_s6 + $0xc8] sm:$0xff] }
 0xc10   :  { %v4083_v35 = vadd.f32 %v4082_v32, %v4014_v13  ;;  %v10659_v62 = vpop.f32.mrb[87].mxu1  ;;  %v11371_v13 = vpack.c.bf16 %v9189_v2, %v9188_v31  ;;  %v9190_v32 = vld [vmem:[%s14489_s6 + $0xd0] sm:$0xff] }
 0xc11   :  { %v9192_v62 = vld [vmem:[%s14489_s6 + $0xe0] sm:$0xff] }
 0xc1c   :  { %v4159_v43 = vpop.f32.mrb[88].mxu0 }
 0xc1d   :  { %v4166_v42 = vadd.f32 %v4159_v43, %v4080_v28  ;;  %v10670_v23 = vpop.f32.mrb[89].mxu0  ;;  %v11367_v28 = vpack.c.bf16 %v9187_v46, %v9186_v17 }
 0xc1e   :  { %v4162_v44 = vpop.f32.mrb[90].mxu0  ;;  %v9195_v23 = vld [vmem:[%s14489_s6 + $0xf8] sm:$0xff] }
 0xc1f   :  { %v4172_v10 = vadd.f32 %v9159_v25, %v4166_v42  ;;  %v4167_v26 = vadd.f32 %v4162_v44, %v4083_v35  ;;  %v10671_v3 = vpop.f32.mrb[91].mxu0  ;;  %v9191_v35 = vld [vmem:[%s14489_s6 + $0xd8] sm:$0xff]  ;;  %v9194_v42 = vld [vmem:[%s14489_s6 + $0xf0] sm:$0xff] }
 0xc20   :  { %v11375_v21 = vpack.c.bf16 %v9191_v35, %v9190_v32  ;;  %v11383_v44 = vpack.c.bf16 %v9195_v23, %v9194_v42 }
 0xc21   :  { %4174 = vst.msk [vmem:[#allocation6] sm:$0xf] %vm161_vm6, %v4172_v10  ;;  %v4173_v63 = vadd.f32 %v9159_v25, %v4167_v26  ;;  %v9193_v25 = vld [vmem:[%s14489_s6 + $0xe8] sm:$0xff] }
 0xc22   :  { %4176 = vst.msk [vmem:[#allocation6 - $0x3] sm:$0x80] %vm4175_vm4, %v4172_v10  ;;  %v11379_v43 = vpack.c.bf16 %v9193_v25, %v9192_v62  ;;  %v13411_v10 = vld [vmem:[#allocation2] sm:$0xff] }
 0xc23   :  { %4177 = vst.msk [vmem:[#allocation6 + $0x5] sm:$0x7] %vm171_vm12, %v4173_v63 }
 0xc2a   :  { %v13340_v5 = vld [vmem:[#allocation6] sm:$0xff] }
 0xc2b   :  { %10705 = vmatmul.mubr.msk.f32.vlgmr.msra.gmra.mrb[88].mxu1 %vm159_vm5, %v13340_v5  ;;  %v4196_v57 = vmul.f32 %v13340_v5, %v13340_v5 }
 0xc2c   :  { %10809 = vmatprep.mubr.msk.f32.mxu1 %vm11817_vm0, %v12879_v41  ;;  %11388 = vmatpush3.bf16.msra.mxu1 %v11355_v51 }
 0xc2d   :  { %v4197_v4 = vsel %vm159_vm5, %v4196_v57, 0.0  ;;  %11389 = vmatprep.subr.bf16.mxu1 %v11818_v12 }
 0xc2e   :  { %4198 = vadd.xlane.f32.xlu0 %v4197_v4 }
 0xc30   :  { %11391 = vmatpush3.bf16.msra.mxu1 %v11359_v48 }
 0xc31   :  { %11392 = vmatprep.subr.bf16.mxu1 %v11818_v12 }
 0xc34   :  { %11394 = vmatpush3.bf16.msra.mxu1 %v11363_v6 }
 0xc35   :  { %11395 = vmatprep.subr.bf16.mxu1 %v11818_v12 }
 0xc38   :  { %11397 = vmatpush3.bf16.msra.mxu1 %v11367_v28 }
 0xc39   :  { %11398 = vmatprep.subr.bf16.mxu1 %v11818_v12 }
 0xc3c   :  { %11400 = vmatpush3.bf16.msra.mxu1 %v11371_v13 }
 0xc3d   :  { %11401 = vmatprep.subr.bf16.mxu1 %v11818_v12 }
 0xc40   :  { %11403 = vmatpush3.bf16.msra.mxu1 %v11375_v21 }
 0xc41   :  { %11404 = vmatprep.subr.bf16.mxu1 %v11818_v12 }
 0xc44   :  { %11406 = vmatpush3.bf16.msra.mxu1 %v11379_v43 }
 0xc45   :  { %11407 = vmatprep.subr.bf16.mxu1 %v11818_v12 }
 0xc48   :  { %11409 = vmatpush3.bf16.msra.mxu1 %v11383_v44 }
 0xc49   :  { %10812 = vmatprep.subr.bf16.mxu1 %v13411_v10 }
 0xcbb   :  { %v4199_v45 = vpop.xlane.xlu0 %4198 }
 0xcfe   :  { %v4317_v34 = vpop.f32.mrb[88].mxu1 }
 0xcff   :  { %v4321_v19 = vmul.f32 2.0, %v4317_v34  ;;  %v10706_v58 = vpop.f32.mrb[89].mxu1 }
 0xd01   :  { %v4322_v37 = vsub.f32 %v4199_v45, %v4321_v19  ;;  %v11819_v19 = vmov 1.0  }
 0xd03   :  { %v4327_v49 = vadd.f32 %v9177_v59, %v4322_v37 }
 0xd05   :  { %4328 = vmin.xlane.f32.xlu1 %v4327_v49 }
 0xd92   :  { %v4329_v15 = vpop.xlane.xlu1 %4328 }
 0xd93   :  { %vm4332_vm7 = vcmp.le.f32.partialorder %v4327_v49, %v4329_v15 }
 0xd94   :  { %v4333_v41 = vsel %vm4332_vm7, %v13353_v61, 1073741824 }
 0xd95   :  { %v4335_v60 = vshra.s32 %v4333_v41, 16  ;;  %v4334_v16 = vand.u32 65535, %v4333_v41 }
 0xd97   :  { %v4337_v50 = vcvt.s32.f32 %v4335_v60  ;;  %v4336_v39 = vcvt.s32.f32 %v4334_v16 }
 0xd99   :  { %4338 = vmin.xlane.f32.xlu0 %v4337_v50 }
 0xe26   :  { %v4339_v36 = vpop.xlane.xlu0 %4338 }
 0xe27   :  { %vm4340_vm8 = vcmp.eq.f32.partialorder %v4337_v50, %v4339_v36  ;;  %v4345_v26 = vcvt.f32.s32 %v4339_v36 }
 0xe28   :  { %v4341_v22 = vsel %vm4340_vm8, %v4336_v39, inf }
 0xe29   :  { %4342 = vmin.xlane.f32.xlu0 %v4341_v22  ;;  %v4346_v63 = vshll.u32 %v4345_v26, 16 }
 0xeb6   :  { %v4343_v3 = vpop.xlane.xlu0 %4342 }
 0xeb7   :  { %v4344_v57 = vcvt.f32.s32 %v4343_v3 }
 0xeb9   :  { %v4347_v4 = vadd.s32 %v4346_v63, %v4344_v57 }
 0xebb   :  { %vm4348_vm10 = vcmp.eq.s32.totalorder %v13353_v61, %v4347_v4 }
 0xebc   :  { %v9178_v34 = vsel %vm4348_vm10, 1.0, %v13411_v10  ;;  %10740 = vmatmul.mubr.msk.f32.vlgmr.msra.gmra.mrb[92].mxu0 %vm4348_vm10, %v11819_v19 }
 0xebd   :  { %v4436_v58 = vrot.slane %v9178_v34, 4  ;;  %11357 = vmatpush3.bf16.xpose.msk.msra.mxu0 %vm13235_vm3, %v11355_v51  ;;  %10774 = vmatprep.mubr.msk.f32.mxu0 %vm11817_vm0, %v13411_v10 }
 0xebe   :  { %11358 = vmatprep.subr.bf16.mxu0 %v11818_v12 }
 0xebf   :  { %v4437_v45 = vadd.f32 %v9178_v34, %v4436_v58 }
 0xec1   :  { %v4438_v59 = vrot.slane %v4437_v45, 2 }
 0xec3   :  { %v4439_v37 = vadd.f32 %v4438_v59, %v4437_v45  ;;  %v11621_v59 = vld [vmem:[%s14486_s3 + $0x390] sm:$0xff]  }
 0xec5   :  { %v4440_v49 = vrot.slane %v4439_v37, 1  ;;  %11361 = vmatpush3.bf16.xpose.msk.msra.mxu0 %vm13235_vm3, %v11359_v48 }
 0xec6   :  { %11362 = vmatprep.subr.bf16.mxu0 %v11818_v12 }
 0xec7   :  { %v4441_v33 = vadd.f32 %v4440_v49, %v4439_v37  ;;  %v11622_v37 = vld [vmem:[%s14486_s3 + $0x370] sm:$0xff]   ;;  %v11623_v49 = vld [vmem:[%s14486_s3 + $0x398] sm:$0xff]  }
 0xec9   :  { %v4443_v15 = vmul.f32 0.125, %v4441_v33  ;;  %v11624_v33 = vld [vmem:[%s14486_s3 + $0x378] sm:$0xff]  }
 0xecb   :  { %4444 = vst [vmem:[%s14494_s11] sm:$0x1] %v4443_v15 }
 0xecd   :  { %11365 = vmatpush3.bf16.xpose.msk.msra.mxu0 %vm13235_vm3, %v11363_v6 }
 0xece   :  { %11366 = vmatprep.subr.bf16.mxu0 %v11818_v12 }
 0xed5   :  { %11369 = vmatpush3.bf16.xpose.msk.msra.mxu0 %vm13235_vm3, %v11367_v28 }
 0xed6   :  { %11370 = vmatprep.subr.bf16.mxu0 %v11818_v12 }
 0xedd   :  { %11373 = vmatpush3.bf16.xpose.msk.msra.mxu0 %vm13235_vm3, %v11371_v13 }
 0xede   :  { %11374 = vmatprep.subr.bf16.mxu0 %v11818_v12 }
 0xee5   :  { %11377 = vmatpush3.bf16.xpose.msk.msra.mxu0 %vm13235_vm3, %v11375_v21  ;;  %v11618_v21 = vld [vmem:[%s14486_s3 + $0x360] sm:$0xff]  }
 0xee6   :  { %11378 = vmatprep.subr.bf16.mxu0 %v11818_v12 }
 0xeed   :  { %11381 = vmatpush3.bf16.xpose.msk.msra.mxu0 %vm13235_vm3, %v11379_v43 }
 0xeee   :  { %11382 = vmatprep.subr.bf16.mxu0 %v11818_v12 }
 0xef5   :  { %11385 = vmatpush3.bf16.xpose.msk.msra.mxu0 %vm13235_vm3, %v11383_v44  ;;  %v11617_v44 = vld [vmem:[%s14486_s3 + $0x380] sm:$0xff]  }
 0xef6   :  { %10824 = vmatprep.subr.bf16.mxu0 %v13411_v10 }
 0xf8f   :  { %v13446_v41 = vpop.f32.mrb[92].mxu0 }
 0xf90   :  { %v13450_v60 = vsub.f32 %v13340_v5, %v13446_v41  ;;  %v10741_v50 = vpop.f32.mrb[93].mxu0 }
 0xf92   :  { %10775 = vmatmul.mubr.msk.f32.vlgmr.msra.gmra.mrb[94].mxu0 %vm159_vm5, %v13450_v60  ;;  %v4422_v16 = vmul.f32 %v13450_v60, %v13450_v60 }
 0xf93   :  { %10832 = vmatprep.mubr.msk.bf16.mxu0 %vm11817_vm0, %v13411_v10  ;;  %10825 = vmatpush3.bf16.msra.mxu0 %v11618_v21 }
 0xf94   :  { %v4423_v12 = vsel %vm159_vm5, %v4422_v16, 0.0  ;;  %10826 = vmatprep.subr.bf16.mxu0 %v13411_v10 }
 0xf95   :  { %4424 = vadd.xlane.f32.xlu1 %v4423_v12 }
0x1022   :  { %v4425_v8 = vpop.xlane.xlu1 %4424 }
0x1023   :  { %v4426_v36 = vrot.slane %v4425_v8, 4 }
0x1025   :  { %v4427_v39 = vadd.f32 %v4426_v36, %v4425_v8 }
0x1027   :  { %v4428_v22 = vrot.slane %v4427_v39, 2 }
0x1029   :  { %v4429_v40 = vadd.f32 %v4428_v22, %v4427_v39  ;;  %v11625_v39 = vld [vmem:[%s14486_s3 + $0x3a0] sm:$0xff]  }
0x102b   :  { %v4430_v5 = vrot.slane %v4429_v40, 1 }
0x102d   :  { %v4431_v7 = vadd.f32 %v4430_v5, %v4429_v40 }
0x102f   :  { %v4433_v51 = vmul.f32 0.001953125, %v4431_v7 }
0x1031   :  { %4435 = vst [vmem:[%s14495_s12] sm:$0x1] %v4433_v51 }
0x1065   :  { %v4581_v47 = vpop.f32.mrb[94].mxu0 }
0x1066   :  { %v4585_v0 = vmul.f32 2.0, %v4581_v47  ;;  %v10776_v48 = vpop.f32.mrb[95].mxu0  ;;  %v11627_v47 = vld [vmem:[%s14486_s3 + $0x3b0] sm:$0xff]  }
0x1068   :  { %v4586_v56 = vsub.f32 %v4425_v8, %v4585_v0  ;;  %v11628_v0 = vld [vmem:[%s14486_s3 + $0x3b8] sm:$0xff]  }
0x106a   :  { %v4591_v6 = vadd.f32 %v9213_v55, %v4586_v56 }
0x106c   :  { %4592 = vmin.xlane.f32.xlu0 %v4591_v6 }
0x10f9   :  { %v4593_v17 = vpop.xlane.xlu0 %4592 }
0x10fa   :  { %vm4594_vm11 = vcmp.le.f32.partialorder %v4591_v6, %v4593_v17  ;;  %v11629_v6 = vld [vmem:[%s14486_s3 + $0x3c0] sm:$0xff]  }
0x10fb   :  { %v4595_v46 = vsel %vm4594_vm11, %v13353_v61, 1073741824  ;;  %v11630_v17 = vld [vmem:[%s14486_s3 + $0x3e0] sm:$0xff]  }
0x10fc   :  { %v4597_v28 = vshra.s32 %v4595_v46, 16  ;;  %v4596_v2 = vand.u32 65535, %v4595_v46  ;;  %v11631_v46 = vld [vmem:[%s14486_s3 + $0x3c8] sm:$0xff]  }
0x10fe   :  { %v4599_v31 = vcvt.s32.f32 %v4597_v28  ;;  %v4598_v32 = vcvt.s32.f32 %v4596_v2  ;;  %v11632_v28 = vld [vmem:[%s14486_s3 + $0x3e8] sm:$0xff]   ;;  %v11634_v2 = vld [vmem:[%s14486_s3 + $0x3f0] sm:$0xff]  }
0x1100   :  { %4600 = vmin.xlane.f32.xlu1 %v4599_v31 }
0x118d   :  { %v4601_v13 = vpop.xlane.xlu1 %4600 }
0x118e   :  { %vm4602_vm13 = vcmp.eq.f32.partialorder %v4599_v31, %v4601_v13  ;;  %v4607_v62 = vcvt.f32.s32 %v4601_v13  ;;  %v11633_v31 = vld [vmem:[%s14486_s3 + $0x3d0] sm:$0xff]   ;;  %v11635_v13 = vld [vmem:[%s14486_s3 + $0x3d8] sm:$0xff]  }
0x118f   :  { %v4603_v35 = vsel %vm4602_vm13, %v4598_v32, inf  ;;  %v11636_v32 = vld [vmem:[%s14486_s3 + $0x3f8] sm:$0xff]  }
0x1190   :  { %4604 = vmin.xlane.f32.xlu0 %v4603_v35  ;;  %v4608_v43 = vshll.u32 %v4607_v62, 16 }
0x121d   :  { %v4605_v25 = vpop.xlane.xlu0 %4604 }
0x121e   :  { %v4606_v42 = vcvt.f32.s32 %v4605_v25 }
0x1220   :  { %v4609_v23 = vadd.s32 %v4608_v43, %v4606_v42 }
0x1222   :  { %vm4610_vm14 = vcmp.eq.s32.totalorder %v13353_v61, %v4609_v23  ;;  %v11619_v61 = vld [vmem:[%s14486_s3 + $0x388] sm:$0xff]  }
0x1223   :  { %v9214_v26 = vsel %vm4610_vm14, 1.0, %v13411_v10  ;;  %10810 = vmatmul.mubr.msk.f32.vlgmr.msra.gmra.mrb[90].mxu1 %vm4610_vm14, %v11819_v19  ;;  %v11620_v19 = vld [vmem:[%s14486_s3 + $0x368] sm:$0xff]  }
0x1224   :  { %v4697_v3 = vrot.slane %v9214_v26, 4  ;;  %10813 = vmatpush3.bf16.msra.mxu1 %v11617_v44  ;;  %10820 = vmatprep.mubr.msk.bf16.mxu1 %vm11817_vm0, %v13411_v10 }
0x1225   :  { %10814 = vmatprep.subr.bf16.mxu1 %v13411_v10  ;;  %10827 = vmatpush3.bf16.msra.mxu0 %v11620_v19 }
0x1226   :  { %v4698_v63 = vadd.f32 %v9214_v26, %v4697_v3  ;;  %10828 = vmatprep.subr.bf16.mxu0 %v13411_v10 }
0x1228   :  { %v4699_v57 = vrot.slane %v4698_v63, 2  ;;  %10815 = vmatpush3.bf16.msra.mxu1 %v11619_v61 }
0x1229   :  { %10816 = vmatprep.subr.bf16.mxu1 %v13411_v10  ;;  %10829 = vmatpush3.bf16.msra.mxu0 %v11622_v37 }
0x122a   :  { %v4700_v4 = vadd.f32 %v4699_v57, %v4698_v63  ;;  %10830 = vmatprep.subr.bf16.mxu0 %v13411_v10 }
0x122c   :  { %v4701_v34 = vrot.slane %v4700_v4, 1  ;;  %10817 = vmatpush3.bf16.msra.mxu1 %v11621_v59  ;;  %v9255_v59 = vld [vmem:[%s14487_s4 + $0xc] ss:$0 sm:$0xff] }
0x122d   :  { %10818 = vmatprep.subr.bf16.mxu1 %v13411_v10  ;;  %10831 = vmatpush3.bf16.msra.mxu0 %v11624_v33 }
0x122e   :  { %v4702_v58 = vadd.f32 %v4701_v34, %v4700_v4  ;;  %10848 = vmatprep.subr.bf16.mxu0 %v13411_v10 }
0x1230   :  { %v4703_v45 = vmul.f32 0.125, %v4702_v58  ;;  %10819 = vmatpush3.bf16.msra.mxu1 %v11623_v49 }
0x1231   :  { %10836 = vmatprep.subr.bf16.mxu1 %v13411_v10 }
0x1232   :  { %4704 = vst [vmem:[%s14494_s11 + $0x1] sm:$0x1] %v4703_v45 }
0x12f6   :  { %v4679_v15 = vpop.f32.mrb[90].mxu1 }
0x12f7   :  { %v4683_v50 = vsub.f32 %v13450_v60, %v4679_v15  ;;  %v4705_v16 = vadd.f32 %v4679_v15, %v13446_v41  ;;  %v10811_v12 = vpop.f32.mrb[91].mxu1  ;;  %v11626_v41 = vld [vmem:[%s14486_s3 + $0x3a8] sm:$0xff]  }
0x12f9   :  { %v4684_v8 = vmul.f32 %v4683_v50, %v4683_v50  ;;  %4706 = vst.msk [vmem:[#allocation7 + $0x3] sm:$0xf] %vm161_vm6, %v4705_v16 }
0x12fa   :  { %4708 = vst.msk [vmem:[#allocation7 + $0x6] sm:$0xf0] %vm4707_vm15, %v4705_v16 }
0x12fb   :  { %v4685_v36 = vsel %vm159_vm5, %v4684_v8, 0.0 }
0x12fc   :  { %4686 = vadd.xlane.f32.xlu1 %v4685_v36 }
0x1300   :  { %v4710_v5 = vld [vmem:[#allocation7 + $0x2] sm:$0xff] }
0x1301   :  { %v4722_v22 = vld [vmem:[#allocation7 + $0x3] sm:$0xff]  ;;  %v4723_v40 = vld [vmem:[#allocation7 + $0xb] sm:$0x7] }
0x1302   :  { %v4724_v7 = vpack.c.bf16 %v4723_v40, %v4722_v22  ;;  %v4711_v51 = vld [vmem:[#allocation7 + $0xa] sm:$0x7] }
0x1303   :  { %v4712_v60 = vpack.c.bf16 %v4711_v51, %v4710_v5  ;;  %v4870_v48 = vld [vmem:[#allocation7 + $0x4] sm:$0xff]  ;;  %v4871_v55 = vld [vmem:[#allocation7 + $0xc] sm:$0x7] }
0x1304   :  { %10821 = vmatmul.mubr.msk.bf16.vlgmr.msra.gmra.mrb[92].mxu1 %vm159_vm5, %v4724_v7  ;;  %v4872_v56 = vpack.c.bf16 %v4871_v55, %v4870_v48 }
0x1305   :  { %10833 = vmatmul.mubr.msk.bf16.vlgmr.msra.gmra.mrb[96].mxu0 %vm159_vm5, %v4712_v60  ;;  %10837 = vmatpush3.bf16.msra.mxu1 %v11625_v39 }
0x1306   :  { %10838 = vmatprep.subr.bf16.mxu1 %v13411_v10  ;;  %10844 = vmatprep.mubr.msk.bf16.mxu1 %vm11817_vm0, %v13411_v10 }
0x1307   :  { %10856 = vmatprep.mubr.msk.bf16.mxu0 %vm11817_vm0, %v13411_v10  ;;  %10849 = vmatpush3.bf16.msra.mxu0 %v11630_v17  ;;  %v11638_v17 = vld [vmem:[%s14486_s3 + $0x408] sm:$0xff]  }
0x1308   :  { %10850 = vmatprep.subr.bf16.mxu0 %v13411_v10 }
0x1309   :  { %10839 = vmatpush3.bf16.msra.mxu1 %v11626_v41 }
0x130a   :  { %10840 = vmatprep.subr.bf16.mxu1 %v13411_v10 }
0x130b   :  { %10851 = vmatpush3.bf16.msra.mxu0 %v11632_v28 }
0x130c   :  { %10852 = vmatprep.subr.bf16.mxu0 %v13411_v10 }
0x130d   :  { %10841 = vmatpush3.bf16.msra.mxu1 %v11627_v47 }
0x130e   :  { %10842 = vmatprep.subr.bf16.mxu1 %v13411_v10 }
0x130f   :  { %10853 = vmatpush3.bf16.msra.mxu0 %v11634_v2  ;;  %v11640_v2 = vld [vmem:[%s14486_s3 + $0x418] sm:$0xff]  }
0x1310   :  { %10854 = vmatprep.subr.bf16.mxu0 %v13411_v10 }
0x1311   :  { %10843 = vmatpush3.bf16.msra.mxu1 %v11628_v0 }
0x1312   :  { %10860 = vmatprep.subr.bf16.mxu1 %v13411_v10 }
0x1313   :  { %10855 = vmatpush3.bf16.msra.mxu0 %v11636_v32 }
0x1314   :  { %10845 = vmatmul.mubr.msk.bf16.vlgmr.msra.gmra.mrb[96].mxu1 %vm159_vm5, %v4872_v56  ;;  %10872 = vmatprep.subr.bf16.mxu0 %v13411_v10  ;;  %v11637_v56 = vld [vmem:[%s14486_s3 + $0x400] sm:$0xff]  }
0x1315   :  { %10868 = vmatprep.mubr.msk.bf16.mxu1 %vm11817_vm0, %v13411_v10  ;;  %10861 = vmatpush3.bf16.msra.mxu1 %v11629_v6 }
0x1316   :  { %10862 = vmatprep.subr.bf16.mxu1 %v13411_v10 }
0x1319   :  { %10863 = vmatpush3.bf16.msra.mxu1 %v11631_v46  ;;  %v11639_v46 = vld [vmem:[%s14486_s3 + $0x410] sm:$0xff]  }
0x131a   :  { %10864 = vmatprep.subr.bf16.mxu1 %v13411_v10 }
0x131d   :  { %10865 = vmatpush3.bf16.msra.mxu1 %v11633_v31  ;;  %v5130_v31 = vld [vmem:[#allocation8 + $0xe] sm:$0x7] }
0x131e   :  { %10866 = vmatprep.subr.bf16.mxu1 %v13411_v10  ;;  %v5132_v32 = vmax.f32 %v5130_v31, 0.0 }
0x1321   :  { %10867 = vmatpush3.bf16.msra.mxu1 %v11635_v13 }
0x1322   :  { %10884 = vmatprep.subr.bf16.mxu1 %v13411_v10 }
0x1389   :  { %v4687_v35 = vpop.xlane.xlu1 %4686 }
0x138a   :  { %v4688_v21 = vrot.slane %v4687_v35, 4 }
0x138c   :  { %v4689_v62 = vadd.f32 %v4688_v21, %v4687_v35  ;;  %v11641_v21 = vld [vmem:[%s14486_s3 + $0x420] sm:$0xff]  }
0x138e   :  { %v4690_v25 = vrot.slane %v4689_v62, 2 }
0x1390   :  { %v4691_v43 = vadd.f32 %v4690_v25, %v4689_v62  ;;  %v11642_v62 = vld [vmem:[%s14486_s3 + $0x428] sm:$0xff]   ;;  %v11643_v25 = vld [vmem:[%s14486_s3 + $0x430] sm:$0xff]  }
0x1392   :  { %v4692_v42 = vrot.slane %v4691_v43, 1 }
0x1394   :  { %v4693_v23 = vadd.f32 %v4692_v42, %v4691_v43  ;;  %v11644_v43 = vld [vmem:[%s14486_s3 + $0x438] sm:$0xff]  }
0x1396   :  { %v4694_v44 = vmul.f32 0.001953125, %v4693_v23 }
0x1398   :  { %4696 = vst [vmem:[%s14495_s12 + $0x1] sm:$0x1] %v4694_v44 }
0x13d7   :  { %v4795_v26 = vpop.f32.mrb[92].mxu1 }
0x13d8   :  { %v4863_v3 = vpop.f32.mrb[96].mxu0  ;;  %v10822_v63 = vpop.f32.mrb[93].mxu1 }
0x13d9   :  { %v4864_v57 = vadd.f32 %v4863_v3, %v4795_v26  ;;  %v10834_v4 = vpop.f32.mrb[97].mxu0  ;;  %v4798_v34 = vpop.f32.mrb[94].mxu1 }
0x13da   :  { %v4866_v58 = vpop.f32.mrb[98].mxu0  ;;  %v10823_v45 = vpop.f32.mrb[95].mxu1 }
0x13db   :  { %v4867_v61 = vadd.f32 %v4866_v58, %v4798_v34  ;;  %v10835_v19 = vpop.f32.mrb[99].mxu0  ;;  %v9295_v45 = vld [vmem:[%s14487_s4 + $0xd] ss:$0 sm:$0xff] }
0x13e7   :  { %v4943_v37 = vpop.f32.mrb[96].mxu1 }
0x13e8   :  { %v4950_v49 = vadd.f32 %v4943_v37, %v4864_v57  ;;  %v10846_v33 = vpop.f32.mrb[97].mxu1 }
0x13e9   :  { %v4946_v15 = vpop.f32.mrb[98].mxu1 }
0x13ea   :  { %v4956_v50 = vadd.f32 %v9255_v59, %v4950_v49  ;;  %v4951_v16 = vadd.f32 %v4946_v15, %v4867_v61  ;;  %v10847_v12 = vpop.f32.mrb[99].mxu1 }
0x13ec   :  { %v4958_v8 = vmax.f32 %v4956_v50, 0.0  ;;  %v4957_v36 = vadd.f32 %v9255_v59, %v4951_v16 }
0x13ee   :  { %v4960_v39 = vmul.f32 %v13027_v27, %v4958_v8  ;;  %v4959_v22 = vmax.f32 %v4957_v36, 0.0  ;;  %v11645_v36 = vld [vmem:[%s14486_s3 + $0x460] sm:$0xff]  }
0x13f0   :  { %4962 = vst.msk [vmem:[#allocation8 + $0x3] sm:$0xff] %vm159_vm5, %v4960_v39  ;;  %v4961_v40 = vmul.f32 %v13030_v1, %v4959_v22  ;;  %v11646_v39 = vld [vmem:[%s14486_s3 + $0x440] sm:$0xff]   ;;  %v11647_v22 = vld [vmem:[%s14486_s3 + $0x468] sm:$0xff]  }
0x13f2   :  { %4963 = vst.msk [vmem:[#allocation8 + $0xb] sm:$0x7] %vm171_vm12, %v4961_v40  ;;  %v11648_v40 = vld [vmem:[%s14486_s3 + $0x448] sm:$0xff]  }
0x13f7   :  { %v4965_v5 = vld [vmem:[#allocation8] sm:$0xff]  ;;  %v4966_v7 = vld [vmem:[#allocation8 + $0x8] sm:$0x7] }
0x13f8   :  { %v13577_v51 = vld [vmem:[#allocation8 + $0x3] sm:$0xff]  ;;  %v4967_v60 = vmax.f32 %v4965_v5, 0.0  ;;  %v4968_v41 = vmax.f32 %v4966_v7, 0.0  ;;  %v11649_v5 = vld [vmem:[%s14486_s3 + $0x470] sm:$0xff]  }
0x13f9   :  { %v13579_v47 = vld [vmem:[#allocation8 + $0xb] sm:$0x7]  ;;  %v4981_v48 = vmax.f32 %v13577_v51, 0.0  ;;  %v11650_v7 = vld [vmem:[%s14486_s3 + $0x450] sm:$0xff]  }
0x13fa   :  { %v4969_v0 = vpack.c.bf16 %v4968_v41, %v4967_v60  ;;  %v4982_v55 = vmax.f32 %v13579_v47, 0.0  ;;  %v5129_v28 = vld [vmem:[#allocation8 + $0x6] sm:$0xff]  ;;  %v11651_v60 = vld [vmem:[%s14486_s3 + $0x478] sm:$0xff]  }
0x13fb   :  { %v5131_v13 = vmax.f32 %v5129_v28, 0.0  ;;  %v11652_v41 = vld [vmem:[%s14486_s3 + $0x458] sm:$0xff]  }
0x13fc   :  { %10869 = vmatmul.mubr.msk.bf16.vlgmr.msra.gmra.mrb[100].mxu1 %vm159_vm5, %v4969_v0  ;;  %v4983_v6 = vpack.c.bf16 %v4982_v55, %v4981_v48  ;;  %v9304_v0 = vld [vmem:[%s14487_s4 + $0xe] ss:$0 sm:$0xff] }
0x13fd   :  { %10892 = vmatprep.mubr.msk.bf16.mxu1 %vm11817_vm0, %v13411_v10  ;;  %v5133_v35 = vpack.c.bf16 %v5132_v32, %v5131_v13  ;;  %10885 = vmatpush3.bf16.msra.mxu1 %v11641_v21 }
0x13fe   :  { %10857 = vmatmul.mubr.msk.bf16.vlgmr.msra.gmra.mrb[100].mxu0 %vm159_vm5, %v4983_v6  ;;  %10886 = vmatprep.subr.bf16.mxu1 %v13411_v10 }
0x13ff   :  { %10873 = vmatpush3.bf16.msra.mxu0 %v11637_v56  ;;  %10880 = vmatprep.mubr.msk.bf16.mxu0 %vm11817_vm0, %v13411_v10 }
0x1400   :  { %10874 = vmatprep.subr.bf16.mxu0 %v13411_v10 }
0x1401   :  { %10887 = vmatpush3.bf16.msra.mxu1 %v11642_v62 }
0x1402   :  { %10888 = vmatprep.subr.bf16.mxu1 %v13411_v10 }
0x1403   :  { %10875 = vmatpush3.bf16.msra.mxu0 %v11638_v17 }
0x1404   :  { %10876 = vmatprep.subr.bf16.mxu0 %v13411_v10 }
0x1405   :  { %10889 = vmatpush3.bf16.msra.mxu1 %v11643_v25 }
0x1406   :  { %10890 = vmatprep.subr.bf16.mxu1 %v13411_v10 }
0x1407   :  { %10877 = vmatpush3.bf16.msra.mxu0 %v11639_v46 }
0x1408   :  { %10878 = vmatprep.subr.bf16.mxu0 %v13411_v10 }
0x1409   :  { %10891 = vmatpush3.bf16.msra.mxu1 %v11644_v43 }
0x140a   :  { %10908 = vmatprep.subr.bf16.mxu1 %v13411_v10 }
0x140b   :  { %10879 = vmatpush3.bf16.msra.mxu0 %v11640_v2 }
0x140c   :  { %10896 = vmatprep.subr.bf16.mxu0 %v13411_v10 }
0x140e   :  { %10881 = vmatmul.mubr.msk.bf16.vlgmr.msra.gmra.mrb[104].mxu0 %vm159_vm5, %v5133_v35 }
0x140f   :  { %10904 = vmatprep.mubr.msk.bf16.mxu0 %vm11817_vm0, %v13411_v10  ;;  %10897 = vmatpush3.bf16.msra.mxu0 %v11645_v36 }
0x1410   :  { %10898 = vmatprep.subr.bf16.mxu0 %v13411_v10 }
0x1413   :  { %10899 = vmatpush3.bf16.msra.mxu0 %v11647_v22 }
0x1414   :  { %10900 = vmatprep.subr.bf16.mxu0 %v13411_v10 }
0x1417   :  { %10901 = vmatpush3.bf16.msra.mxu0 %v11649_v5 }
0x1418   :  { %10902 = vmatprep.subr.bf16.mxu0 %v13411_v10 }
0x141b   :  { %10903 = vmatpush3.bf16.msra.mxu0 %v11651_v60 }
0x141c   :  { %10920 = vmatprep.subr.bf16.mxu0 %v13411_v10 }
0x14cf   :  { %v5122_v42 = vpop.f32.mrb[100].mxu1 }
0x14d0   :  { %v10870_v23 = vpop.f32.mrb[101].mxu1 }
0x14d1   :  { %v5054_v44 = vpop.f32.mrb[100].mxu0  ;;  %v5125_v26 = vpop.f32.mrb[102].mxu1  ;;  %v11653_v23 = vld [vmem:[%s14486_s3 + $0x480] sm:$0xff]  }
0x14d2   :  { %v5123_v3 = vadd.f32 %v5122_v42, %v5054_v44  ;;  %v10858_v63 = vpop.f32.mrb[101].mxu0  ;;  %v10871_v57 = vpop.f32.mrb[103].mxu1 }
0x14d3   :  { %v5057_v4 = vpop.f32.mrb[102].mxu0 }
0x14d4   :  { %v5126_v34 = vadd.f32 %v5125_v26, %v5057_v4  ;;  %v10859_v58 = vpop.f32.mrb[103].mxu0  ;;  %v11654_v26 = vld [vmem:[%s14486_s3 + $0x488] sm:$0xff]   ;;  %v11656_v4 = vld [vmem:[%s14486_s3 + $0x498] sm:$0xff]  }
0x14e1   :  { %v5204_v61 = vpop.f32.mrb[104].mxu0 }
0x14e2   :  { %v5211_v19 = vadd.f32 %v5204_v61, %v5123_v3  ;;  %v10882_v59 = vpop.f32.mrb[105].mxu0  ;;  %v11655_v3 = vld [vmem:[%s14486_s3 + $0x490] sm:$0xff]   ;;  %v11657_v61 = vld [vmem:[%s14486_s3 + $0x4a0] sm:$0xff]  }
0x14e3   :  { %v5207_v37 = vpop.f32.mrb[106].mxu0  ;;  %v11659_v59 = vld [vmem:[%s14486_s3 + $0x4b0] sm:$0xff]  }
0x14e4   :  { %v5217_v49 = vadd.f32 %v9295_v45, %v5211_v19  ;;  %v5212_v33 = vadd.f32 %v5207_v37, %v5126_v34  ;;  %v10883_v15 = vpop.f32.mrb[107].mxu0  ;;  %v11658_v19 = vld [vmem:[%s14486_s3 + $0x4a8] sm:$0xff]   ;;  %v11660_v37 = vld [vmem:[%s14486_s3 + $0x4b8] sm:$0xff]  }
0x14e6   :  { %v5218_v50 = vadd.f32 %v9295_v45, %v5212_v33  ;;  %v5219_v16 = vmax.f32 %v5217_v49, 0.0 }
0x14e8   :  { %v5220_v12 = vmax.f32 %v5218_v50, 0.0 }
0x14ea   :  { %v5221_v8 = vpack.c.bf16 %v5220_v12, %v5219_v16 }
0x14ec   :  { %10893 = vmatmul.mubr.msk.bf16.vlgmr.msra.gmra.mrb[104].mxu1 %vm159_vm5, %v5221_v8 }
0x14ed   :  { %10916 = vmatprep.mubr.msk.bf16.mxu1 %vm11817_vm0, %v13411_v10  ;;  %10909 = vmatpush3.bf16.msra.mxu1 %v11646_v39 }
0x14ee   :  { %10910 = vmatprep.subr.bf16.mxu1 %v13411_v10 }
0x14f1   :  { %10911 = vmatpush3.bf16.msra.mxu1 %v11648_v40  ;;  %v9349_v40 = vld [vmem:[%s14487_s4 + $0xf] ss:$0 sm:$0xff] }
0x14f2   :  { %10912 = vmatprep.subr.bf16.mxu1 %v13411_v10 }
0x14f5   :  { %10913 = vmatpush3.bf16.msra.mxu1 %v11650_v7 }
0x14f6   :  { %10914 = vmatprep.subr.bf16.mxu1 %v13411_v10 }
0x14f9   :  { %10915 = vmatpush3.bf16.msra.mxu1 %v11652_v41 }
0x14fa   :  { %10932 = vmatprep.subr.bf16.mxu1 %v13411_v10 }
0x15bf   :  { %v5297_v48 = vpop.f32.mrb[104].mxu1 }
0x15c0   :  { %v5298_v55 = vadd.f32 %v9304_v0, %v5297_v48  ;;  %v10894_v56 = vpop.f32.mrb[105].mxu1 }
0x15c1   :  { %v5300_v6 = vpop.f32.mrb[106].mxu1 }
0x15c2   :  { %v5304_v17 = vmul.f32 %v13027_v27, %v5298_v55  ;;  %v5301_v46 = vadd.f32 %v9304_v0, %v5300_v6  ;;  %v10895_v28 = vpop.f32.mrb[107].mxu1 }
0x15c3   :  { %v9358_v28 = vld [vmem:[%s14487_s4 + $0x10] ss:$0 sm:$0xff] }
0x15c4   :  { %v5306_v31 = vadd.f32 %v5304_v17, %v13577_v51  ;;  %v5305_v2 = vmul.f32 %v13030_v1, %v5301_v46 }
0x15c6   :  { %5308 = vst.msk [vmem:[#allocation8 + $0x3] sm:$0xff] %vm159_vm5, %v5306_v31  ;;  %v5307_v13 = vadd.f32 %v5305_v2, %v13579_v47 }
0x15c8   :  { %5309 = vst.msk [vmem:[#allocation8 + $0xb] sm:$0x7] %vm171_vm12, %v5307_v13 }
0x15cd   :  { %v13671_v32 = vld [vmem:[#allocation8 + $0x3] sm:$0xff] }
0x15ce   :  { %v5311_v35 = vld [vmem:[#allocation8 + $0x2] sm:$0xff]  ;;  %v5327_v25 = vmax.f32 %v13671_v32, 0.0 }
0x15cf   :  { %v13673_v21 = vld [vmem:[#allocation8 + $0xb] sm:$0x7]  ;;  %v5313_v42 = vmax.f32 %v5311_v35, 0.0 }
0x15d0   :  { %v5312_v62 = vld [vmem:[#allocation8 + $0xa] sm:$0x7]  ;;  %v5328_v43 = vmax.f32 %v13673_v21, 0.0 }
0x15d1   :  { %v5314_v51 = vmax.f32 %v5312_v62, 0.0  ;;  %v5475_v63 = vld [vmem:[#allocation8 + $0x4] sm:$0xff]  ;;  %v5476_v57 = vld [vmem:[#allocation8 + $0xc] sm:$0x7] }
0x15d2   :  { %v5329_v44 = vpack.c.bf16 %v5328_v43, %v5327_v25  ;;  %v5477_v34 = vmax.f32 %v5475_v63, 0.0  ;;  %v5478_v58 = vmax.f32 %v5476_v57, 0.0  ;;  %v11820_v63 = vmov 0  }
0x15d3   :  { %v5315_v47 = vpack.c.bf16 %v5314_v51, %v5313_v42 }
0x15d4   :  { %10905 = vmatmul.mubr.msk.bf16.vlgmr.msra.gmra.mrb[108].mxu0 %vm159_vm5, %v5329_v44  ;;  %v5479_v45 = vpack.c.bf16 %v5478_v58, %v5477_v34  ;;  %v5663_v44 = vld [vmem:[#allocation8 + $0x10] sm:$0x1]  ;;  %v11664_v34 = vld [vmem:[%s14486_s3 + $0x4c0] sm:$0xff]   ;;  %v11665_v58 = vld [vmem:[%s14486_s3 + $0x4e8] sm:$0xff]  }
0x15d5   :  { %10917 = vmatmul.mubr.msk.bf16.vlgmr.msra.gmra.mrb[108].mxu1 %vm159_vm5, %v5315_v47  ;;  %10921 = vmatpush3.bf16.msra.mxu0 %v11653_v23  ;;  %v5665_v47 = vpack.c.bf16 %v5663_v44, %v5663_v44  ;;  %v11678_v44 = vld [vmem:[%s14486_s3 + $0x548] sm:$0xff]  }
0x15d6   :  { %10928 = vmatprep.mubr.msk.bf16.mxu0 %vm11817_vm0, %v13411_v10  ;;  %10922 = vmatprep.subr.bf16.mxu0 %v13411_v10 }
0x15d7   :  { %10940 = vmatprep.mubr.msk.bf16.mxu1 %vm11817_vm0, %v13411_v10  ;;  %10933 = vmatpush3.bf16.msra.mxu1 %v11657_v61  ;;  %v11668_v61 = vld [vmem:[%s14491_s8 + $0x10] ss:$0 sps:$4 sm:$0x11]  }
0x15d8   :  { %10934 = vmatprep.subr.bf16.mxu1 %v13411_v10 }
0x15d9   :  { %10923 = vmatpush3.bf16.msra.mxu0 %v11654_v26 }
0x15da   :  { %10924 = vmatprep.subr.bf16.mxu0 %v13411_v10 }
0x15db   :  { %10935 = vmatpush3.bf16.msra.mxu1 %v11658_v19  ;;  %v11669_v19 = vld [vmem:[%s14486_s3 + $0x4d0] sm:$0xff]  }
0x15dc   :  { %10936 = vmatprep.subr.bf16.mxu1 %v13411_v10 }
0x15dd   :  { %10925 = vmatpush3.bf16.msra.mxu0 %v11655_v3 }
0x15de   :  { %10926 = vmatprep.subr.bf16.mxu0 %v13411_v10 }
0x15df   :  { %10937 = vmatpush3.bf16.msra.mxu1 %v11659_v59  ;;  %v11670_v59 = vld [vmem:[%s14486_s3 + $0x4f8] sm:$0xff]  }
0x15e0   :  { %10938 = vmatprep.subr.bf16.mxu1 %v13411_v10 }
0x15e1   :  { %10927 = vmatpush3.bf16.msra.mxu0 %v11656_v4  ;;  %v11663_v4 = vld [vmem:[%s14486_s3 + $0x4e0] sm:$0xff]  }
0x15e2   :  { %10944 = vmatprep.subr.bf16.mxu0 %v13411_v10 }
0x15e3   :  { %10939 = vmatpush3.bf16.msra.mxu1 %v11660_v37  ;;  %v11671_v37 = vld [vmem:[%s14486_s3 + $0x4d8] sm:$0xff]  }
0x15e4   :  { %10929 = vmatmul.mubr.msk.bf16.vlgmr.msra.gmra.mrb[112].mxu0 %vm159_vm5, %v5479_v45  ;;  %10960 = vmatprep.subr.bf16.mxu1 %v11663_v4  ;;  %v11667_v45 = vld [vmem:[%s14486_s3 + $0x4f0] sm:$0xff]  }
0x15e5   :  { %10948 = vmatprep.mubr.msk.bf16.mxu0 %vm11817_vm0, %v13411_v10 }
0x16a7   :  { %v5400_v49 = vpop.f32.mrb[108].mxu0 }
0x16a8   :  { %v5468_v33 = vpop.f32.mrb[108].mxu1  ;;  %v10906_v50 = vpop.f32.mrb[109].mxu0 }
0x16a9   :  { %v5469_v15 = vadd.f32 %v5468_v33, %v5400_v49  ;;  %v10918_v16 = vpop.f32.mrb[109].mxu1  ;;  %v5403_v12 = vpop.f32.mrb[110].mxu0  ;;  %v11672_v49 = vld [vmem:[%s14486_s3 + $0x500] sm:$0xff]  }
0x16aa   :  { %v5471_v8 = vpop.f32.mrb[110].mxu1  ;;  %v10907_v39 = vpop.f32.mrb[111].mxu0 }
0x16ab   :  { %v5472_v36 = vadd.f32 %v5471_v8, %v5403_v12  ;;  %v10919_v22 = vpop.f32.mrb[111].mxu1 }
0x16b7   :  { %v5550_v5 = vpop.f32.mrb[112].mxu0 }
0x16b8   :  { %v5557_v7 = vadd.f32 %v5550_v5, %v5469_v15  ;;  %v10930_v60 = vpop.f32.mrb[113].mxu0 }
0x16b9   :  { %v5553_v41 = vpop.f32.mrb[114].mxu0 }
0x16ba   :  { %v5563_v0 = vadd.f32 %v9349_v40, %v5557_v7  ;;  %v5558_v48 = vadd.f32 %v5553_v41, %v5472_v36  ;;  %v10931_v55 = vpop.f32.mrb[115].mxu0 }
0x16bc   :  { %v5564_v56 = vadd.f32 %v9349_v40, %v5558_v48  ;;  %v5565_v6 = vmax.f32 %v5563_v0, 0.0 }
0x16be   :  { %v5566_v17 = vmax.f32 %v5564_v56, 0.0 }
0x16c0   :  { %v5567_v46 = vpack.c.bf16 %v5566_v17, %v5565_v6 }
0x16c2   :  { %10941 = vmatmul.mubr.msk.bf16.vlgmr.msra.gmra.mrb[112].mxu1 %vm159_vm5, %v5567_v46  ;;  %v11673_v46 = vld [vmem:[%s14486_s3 + $0x508] sm:$0xff]  }
0x16c3   :  { %10961 = vmatpush3.bf16.msra.mxu1 %v11663_v4 }
0x16c4   :  { %10962 = vmatprep.subr.bf16.mxu1 %v11665_v58 }
0x16c7   :  { %10963 = vmatpush3.bf16.msra.mxu1 %v11665_v58 }
0x16c8   :  { %10964 = vmatprep.subr.bf16.mxu1 %v11667_v45 }
0x16cb   :  { %10965 = vmatpush3.bf16.msra.mxu1 %v11667_v45 }
0x16cc   :  { %10966 = vmatprep.subr.bf16.mxu1 %v11670_v59 }
0x16cf   :  { %10967 = vmatpush3.bf16.msra.mxu1 %v11670_v59 }
0x16d0   :  { %10984 = vmatprep.subr.bf16.mxu1 %v11672_v49 }
0x1795   :  { %v5643_v31 = vpop.f32.mrb[112].mxu1 }
0x1796   :  { %v5644_v2 = vadd.f32 %v9358_v28, %v5643_v31  ;;  %v10942_v13 = vpop.f32.mrb[113].mxu1  ;;  %v11674_v31 = vld [vmem:[%s14486_s3 + $0x510] sm:$0xff]  }
0x1797   :  { %v5646_v35 = vpop.f32.mrb[114].mxu1 }
0x1798   :  { %v5650_v62 = vmul.f32 %v13027_v27, %v5644_v2  ;;  %v5647_v25 = vadd.f32 %v9358_v28, %v5646_v35  ;;  %v10943_v43 = vpop.f32.mrb[115].mxu1  ;;  %v5691_v27 = vsel %vm5689_vm2, 65535, %v11820_v63  ;;  %v11675_v2 = vld [vmem:[%s14486_s3 + $0x518] sm:$0xff]  }
0x179a   :  { %v5652_v42 = vadd.f32 %v5650_v62, %v13671_v32  ;;  %v5651_v51 = vmul.f32 %v13030_v1, %v5647_v25  ;;  %v5693_v32 = vand.u32 %v5691_v27, %v5665_v47  ;;  %v11661_v1 = vld [vmem:[%s14491_s8] sm:$0xff]   ;;  %v11679_v47 = vld [vmem:[%s14486_s3 + $0x528] sm:$0xff]   ;;  %v11682_v27 = vld [vmem:[%s14486_s3 + $0x558] sm:$0xff]  }
0x179c   :  { %5654 = vst.msk [vmem:[#allocation8 + $0x3] sm:$0xff] %vm159_vm5, %v5652_v42  ;;  %v5653_v23 = vadd.f32 %v5651_v51, %v13673_v21  ;;  %v11662_v21 = vld [vmem:[%s14491_s8 + $0x8] sm:$0xff]   ;;  %v11676_v51 = vld [vmem:[%s14486_s3 + $0x540] sm:$0xff]  }
0x179e   :  { %5655 = vst.msk [vmem:[#allocation8 + $0xb] sm:$0x7] %vm171_vm12, %v5653_v23  ;;  %vm5679_vm12 = vcmask 138240   ;;  %v11677_v23 = vld [vmem:[%s14486_s3 + $0x520] sm:$0xff]  }
0x17a3   :  { %v5661_v26 = vld [vmem:[#allocation8] sm:$0xff] }
0x17a5   :  { %v5662_v3 = vld [vmem:[#allocation8 + $0x8] sm:$0xff] }
0x17a6   :  { %v5664_v57 = vpack.c.bf16 %v5662_v3, %v5661_v26  ;;  %v11680_v26 = vld [vmem:[%s14486_s3 + $0x550] sm:$0xff]  }
0x17a7   :  { %v11681_v3 = vld [vmem:[%s14486_s3 + $0x530] sm:$0xff]  }
0x17a8   :  { %10945 = vmatpush3.bf16.msra.mxu0 %v5664_v57  ;;  %v11683_v57 = vld [vmem:[%s14486_s3 + $0x538] sm:$0xff]  }
0x17a9   :  { %10946 = vmatprep.subr.bf16.mxu0 %v13411_v10 }
0x17ac   :  { %10947 = vmatpush3.bf16.msra.mxu0 %v5693_v32  ;;  %v11684_v32 = vld [vmem:[%s14486_s3 + $0x560] sm:$0xff]  }
0x17ad   :  { %10972 = vmatprep.subr.bf16.mxu0 %v11664_v34 }
0x17af   :  { %10949 = vmatmul.mubr.msk.bf16.vlgmr.msra.gmra.mrb[116].mxu0 %vm5679_vm12, %v11661_v1 }
0x17b0   :  { %10952 = vmatprep.mubr.msk.bf16.mxu0 %vm11817_vm0, %v13411_v10  ;;  %10973 = vmatpush3.bf16.msra.mxu0 %v11664_v34 }
0x17b7   :  { %10953 = vmatmul.mubr.msk.bf16.gmra.mrb[120].mxu0 %vm5679_vm12, %v11662_v21 }
0x17b8   :  { %10956 = vmatprep.mubr.msk.bf16.mxu0 %vm11817_vm0, %v13411_v10  ;;  %v11666_v10 = vld [vmem:[%s14486_s3 + $0x4c8] sm:$0xff]  }
0x17b9   :  { %10974 = vmatprep.subr.bf16.mxu0 %v11666_v10 }
0x17ba   :  { %10975 = vmatpush3.bf16.msra.mxu0 %v11666_v10 }
0x17bb   :  { %10976 = vmatprep.subr.bf16.mxu0 %v11669_v19 }
0x17be   :  { %10977 = vmatpush3.bf16.msra.mxu0 %v11669_v19 }
0x17bf   :  { %10957 = vmatmul.mubr.msk.bf16.gmra.mrb[124].mxu0 %vm5679_vm12, %v11668_v61  ;;  %10978 = vmatprep.subr.bf16.mxu0 %v11671_v37 }
0x17c2   :  { %10979 = vmatpush3.bf16.msra.mxu0 %v11671_v37 }
0x17c3   :  { %10996 = vmatprep.subr.bf16.mxu0 %v11676_v51 }
0x1882   :  { %v5729_v33 = vpop.f32.mrb[116].mxu0 }
0x1883   :  { %5751 = vst.msk [vmem:[#allocation9] sm:$0xff] %vm159_vm5, %v5729_v33  ;;  %v10950_v15 = vpop.f32.mrb[117].mxu0 }
0x1884   :  { %v5732_v50 = vpop.f32.mrb[118].mxu0 }
0x1885   :  { %5752 = vst.msk [vmem:[#allocation9 + $0x8] sm:$0xff] %vm159_vm5, %v5732_v50  ;;  %v10951_v16 = vpop.f32.mrb[119].mxu0 }
0x188a   :  { %v5737_v12 = vpop.f32.mrb[120].mxu0 }
0x188b   :  { %5753 = vst.msk [vmem:[#allocation9 + $0x10] sm:$0xff] %vm159_vm5, %v5737_v12  ;;  %v10954_v8 = vpop.f32.mrb[121].mxu0 }
0x188c   :  { %v5740_v36 = vpop.f32.mrb[122].mxu0  ;;  %v5772_v22 = vld [vmem:[#allocation9 + $0x6] sm:$0xff] }
0x188d   :  { %5754 = vst.msk [vmem:[#allocation9 + $0x18] sm:$0xff] %vm159_vm5, %v5740_v36  ;;  %v10955_v39 = vpop.f32.mrb[123].mxu0  ;;  %v5758_v5 = vld [vmem:[#allocation9 + $0x5] sm:$0xff] }
0x188e   :  { %v5942_v17 = vld [vmem:[#allocation9 + $0x7] sm:$0xff] }
0x1892   :  { %v5773_v40 = vld [vmem:[#allocation9 + $0xe] sm:$0xff]  ;;  %v5745_v62 = vpop.f32.mrb[124].mxu0 }
0x1893   :  { %v5759_v7 = vld [vmem:[#allocation9 + $0xd] sm:$0xff]  ;;  %v5775_v60 = vpack.c.bf16 %v5773_v40, %v5772_v22  ;;  %v10958_v25 = vpop.f32.mrb[125].mxu0 }
0x1894   :  { %v5761_v41 = vpack.c.bf16 %v5759_v7, %v5758_v5  ;;  %v5943_v0 = vld [vmem:[#allocation9 + $0xf] sm:$0xff]  ;;  %v5944_v13 = vld [vmem:[#allocation9 + $0x17] sm:$0x3f]  ;;  %v5748_v43 = vpop.f32.mrb[126].mxu0 }
0x1895   :  { %v5774_v48 = vld [vmem:[#allocation9 + $0x16] sm:$0x3f]  ;;  %10968 = vmatprep.mubr.msk.bf16.mxu1 %vm159_vm5, %v5775_v60  ;;  %v5945_v28 = vpack.c.bf16 %v5943_v0, %v5942_v17  ;;  %v5946_v35 = vpack.c.bf16 %v5944_v13, %v5944_v13  ;;  %v10959_v42 = vpop.f32.mrb[127].mxu0 }
0x1896   :  { %v5760_v55 = vld [vmem:[#allocation9 + $0x15] sm:$0x3f]  ;;  %10980 = vmatprep.mubr.msk.bf16.mxu0 %vm159_vm5, %v5761_v41  ;;  %v5776_v56 = vpack.c.bf16 %v5774_v48, %v5774_v48 }
0x1897   :  { %v5762_v6 = vpack.c.bf16 %v5760_v55, %v5760_v55 }
0x1898   :  { %10969 = vmatmul.mubr.msk.bf16.vlgmr.msra.gmra.mrb[116].mxu1 %vm159_vm5, %v5776_v56 }
0x1899   :  { %10981 = vmatmul.mubr.msk.bf16.vlgmr.msra.gmra.mrb[128].mxu0 %vm159_vm5, %v5762_v6  ;;  %10985 = vmatpush3.bf16.msra.mxu1 %v11672_v49  ;;  %v9412_v49 = vld [vmem:[%s14487_s4 + $0x11] ss:$0 sm:$0xff] }
0x189a   :  { %10992 = vmatprep.mubr.msk.bf16.mxu1 %vm159_vm5, %v5945_v28  ;;  %10986 = vmatprep.subr.bf16.mxu1 %v11673_v46 }
0x189b   :  { %10997 = vmatpush3.bf16.msra.mxu0 %v11676_v51 }
0x189c   :  { %10998 = vmatprep.subr.bf16.mxu0 %v11678_v44 }
0x189d   :  { %10987 = vmatpush3.bf16.msra.mxu1 %v11673_v46 }
0x189e   :  { %10988 = vmatprep.subr.bf16.mxu1 %v11674_v31 }
0x189f   :  { %10999 = vmatpush3.bf16.msra.mxu0 %v11678_v44  ;;  %v11685_v44 = vld [vmem:[%s14486_s3 + $0x568] sm:$0xff]  }
0x18a0   :  { %11000 = vmatprep.subr.bf16.mxu0 %v11680_v26 }
0x18a1   :  { %10989 = vmatpush3.bf16.msra.mxu1 %v11674_v31 }
0x18a2   :  { %10990 = vmatprep.subr.bf16.mxu1 %v11675_v2 }
0x18a3   :  { %11001 = vmatpush3.bf16.msra.mxu0 %v11680_v26  ;;  %v11686_v26 = vld [vmem:[%s14486_s3 + $0x570] sm:$0xff]  }
0x18a4   :  { %11002 = vmatprep.subr.bf16.mxu0 %v11682_v27 }
0x18a5   :  { %10991 = vmatpush3.bf16.msra.mxu1 %v11675_v2 }
0x18a6   :  { %11008 = vmatprep.subr.bf16.mxu1 %v11677_v23 }
0x18a7   :  { %11003 = vmatpush3.bf16.msra.mxu0 %v11682_v27 }
0x18a8   :  { %10993 = vmatmul.mubr.msk.bf16.vlgmr.msra.gmra.mrb[120].mxu1 %vm159_vm5, %v5946_v35  ;;  %11020 = vmatprep.subr.bf16.mxu0 %v11684_v32 }
0x18a9   :  { %11009 = vmatpush3.bf16.msra.mxu1 %v11677_v23 }
0x18aa   :  { %11010 = vmatprep.subr.bf16.mxu1 %v11679_v47 }
0x18ad   :  { %11011 = vmatpush3.bf16.msra.mxu1 %v11679_v47 }
0x18ae   :  { %11012 = vmatprep.subr.bf16.mxu1 %v11681_v3 }
0x18b1   :  { %11013 = vmatpush3.bf16.msra.mxu1 %v11681_v3  ;;  %v11687_v3 = vld [vmem:[%s14486_s3 + $0x578] sm:$0xff]  }
0x18b2   :  { %11014 = vmatprep.subr.bf16.mxu1 %v11683_v57 }
0x18b5   :  { %11015 = vmatpush3.bf16.msra.mxu1 %v11683_v57 }
0x196b   :  { %v10970_v1 = vpop.f32.mrb[116].mxu1 }
0x196c   :  { %v10982_v21 = vpop.f32.mrb[128].mxu0  ;;  %v5850_v34 = vpop.f32.mrb[117].mxu1 }
0x196d   :  { %v5937_v4 = vadd.f32 %v10982_v21, %v10970_v1  ;;  %v5928_v58 = vpop.f32.mrb[129].mxu0  ;;  %v10971_v45 = vpop.f32.mrb[118].mxu1  ;;  %v11689_v21 = vld [vmem:[%s14486_s3 + $0x588] sm:$0xff]  }
0x196e   :  { %v5929_v10 = vadd.f32 %v5928_v58, %v5850_v34  ;;  %v10983_v61 = vpop.f32.mrb[130].mxu0  ;;  %v5853_v19 = vpop.f32.mrb[119].mxu1  ;;  %v11691_v34 = vld [vmem:[%s14486_s3 + $0x598] sm:$0xff]  }
0x196f   :  { %v5931_v59 = vpop.f32.mrb[131].mxu0 }
0x1970   :  { %v5932_v37 = vadd.f32 %v5931_v59, %v5853_v19 }
0x197b   :  { %v10994_v33 = vpop.f32.mrb[120].mxu1 }
0x197c   :  { %v6036_v15 = vadd.f32 %v10994_v33, %v5937_v4  ;;  %v6020_v50 = vpop.f32.mrb[121].mxu1  ;;  %v11690_v4 = vld [vmem:[%s14486_s3 + $0x590] sm:$0xff]  }
0x197d   :  { %v6034_v16 = vadd.f32 %v6020_v50, %v5929_v10  ;;  %v10995_v12 = vpop.f32.mrb[122].mxu1 }
0x197e   :  { %v6043_v8 = vadd.f32 %v9412_v49, %v6036_v15  ;;  %v6023_v36 = vpop.f32.mrb[123].mxu1 }
0x197f   :  { %v6041_v39 = vadd.f32 %v9412_v49, %v6034_v16  ;;  %v6035_v22 = vadd.f32 %v6023_v36, %v5932_v37  ;;  %v9455_v16 = vld [vmem:[%s14487_s4 + $0x12] ss:$0 sm:$0xff] }
0x1980   :  { %v6046_v40 = vmul.f32 %v12743_v54, %v6043_v8 }
0x1981   :  { %6047 = vst.msk [vmem:[#allocation10 + $0x6] sm:$0xff] %vm159_vm5, %v6041_v39  ;;  %v6042_v5 = vadd.f32 %v9412_v49, %v6035_v22 }
0x1982   :  { %6049 = vst.msk [vmem:[#allocation10 + $0x16] sm:$0x3f] %vm167_vm9, %v6046_v40 }
0x1983   :  { %v6045_v7 = vmul.f32 %v12748_v30, %v6042_v5 }
0x1985   :  { %6048 = vst.msk [vmem:[#allocation10 + $0xe] sm:$0xff] %vm159_vm5, %v6045_v7 }
0x1988   :  { %v13830_v60 = vld [vmem:[#allocation10 + $0x6] sm:$0xff] }
0x1989   :  { %v13832_v41 = vld [vmem:[#allocation10 + $0x16] sm:$0x3f]  ;;  %v6051_v0 = vld [vmem:[#allocation10 + $0x3] sm:$0xff]  ;;  %v6071_v55 = vmax.f32 %v13830_v60, 0.0 }
0x198a   :  { %v6073_v6 = vmax.f32 %v13832_v41, 0.0  ;;  %v6054_v28 = vmax.f32 %v6051_v0, 0.0  ;;  %v6243_v27 = vld [vmem:[#allocation10 + $0x19] sm:$0x3f] }
0x198b   :  { %v6246_v57 = vmax.f32 %v6243_v27, 0.0 }
0x198c   :  { %v13834_v48 = vld [vmem:[#allocation10 + $0xe] sm:$0xff]  ;;  %v6075_v23 = vpack.c.bf16 %v6073_v6, %v6073_v6 }
0x198d   :  { %v6052_v56 = vld [vmem:[#allocation10 + $0xb] sm:$0xff]  ;;  %v6053_v17 = vld [vmem:[#allocation10 + $0x13] sm:$0x3f]  ;;  %v6072_v46 = vmax.f32 %v13834_v48, 0.0  ;;  %v6248_v1 = vpack.c.bf16 %v6246_v57, %v6246_v57 }
0x198e   :  { %v6055_v31 = vmax.f32 %v6052_v56, 0.0  ;;  %v6056_v2 = vmax.f32 %v6053_v17, 0.0  ;;  %v6241_v13 = vld [vmem:[#allocation10 + $0x9] sm:$0xff]  ;;  %v6242_v35 = vld [vmem:[#allocation10 + $0x11] sm:$0xff] }
0x198f   :  { %v6244_v62 = vmax.f32 %v6241_v13, 0.0  ;;  %v6245_v25 = vmax.f32 %v6242_v35, 0.0  ;;  %v6074_v43 = vpack.c.bf16 %v6072_v46, %v6071_v55  ;;  %v11694_v13 = vld [vmem:[%s14486_s3 + $0x5c8] sm:$0xff]  }
0x1990   :  { %v6057_v42 = vpack.c.bf16 %v6055_v31, %v6054_v28  ;;  %v6058_v51 = vpack.c.bf16 %v6056_v2, %v6056_v2  ;;  %v11692_v31 = vld [vmem:[%s14486_s3 + $0x5c0] sm:$0xff]   ;;  %v11695_v35 = vld [vmem:[%s14486_s3 + $0x5a8] sm:$0xff]  }
0x1991   :  { %11004 = vmatprep.mubr.msk.bf16.mxu0 %vm159_vm5, %v6074_v43  ;;  %v6247_v47 = vpack.c.bf16 %v6245_v25, %v6244_v62  ;;  %v11693_v2 = vld [vmem:[%s14486_s3 + $0x5a0] sm:$0xff]   ;;  %v11696_v62 = vld [vmem:[%s14486_s3 + $0x5d0] sm:$0xff]   ;;  %v11698_v43 = vld [vmem:[%s14486_s3 + $0x5d8] sm:$0xff]  }
0x1992   :  { %11016 = vmatprep.mubr.msk.bf16.mxu1 %vm159_vm5, %v6057_v42  ;;  %11005 = vmatmul.mubr.msk.bf16.vlgmr.msra.gmra.mrb[132].mxu0 %vm159_vm5, %v6075_v23  ;;  %v11697_v25 = vld [vmem:[%s14486_s3 + $0x5b0] sm:$0xff]   ;;  %v11699_v42 = vld [vmem:[%s14486_s3 + $0x5b8] sm:$0xff]  }
0x1993   :  { %11017 = vmatmul.mubr.msk.bf16.vlgmr.msra.gmra.mrb[124].mxu1 %vm159_vm5, %v6058_v51  ;;  %11021 = vmatpush3.bf16.msra.mxu0 %v11684_v32  ;;  %v11688_v32 = vld [vmem:[%s14486_s3 + $0x580] sm:$0xff]   ;;  %v9464_v23 = vld [vmem:[%s14487_s4 + $0x13] ss:$0 sm:$0xff] }
0x1994   :  { %11028 = vmatprep.mubr.msk.bf16.mxu0 %vm159_vm5, %v6247_v47  ;;  %11022 = vmatprep.subr.bf16.mxu0 %v11685_v44  ;;  %v11700_v51 = vld [vmem:[%s14486_s3 + $0x5e0] sm:$0xff]  }
0x1995   :  { %11032 = vmatprep.subr.bf16.mxu1 %v11688_v32 }
0x1996   :  { %11033 = vmatpush3.bf16.msra.mxu1 %v11688_v32 }
0x1997   :  { %11023 = vmatpush3.bf16.msra.mxu0 %v11685_v44  ;;  %11034 = vmatprep.subr.bf16.mxu1 %v11689_v21 }
0x1998   :  { %11024 = vmatprep.subr.bf16.mxu0 %v11686_v26 }
0x199a   :  { %11035 = vmatpush3.bf16.msra.mxu1 %v11689_v21 }
0x199b   :  { %11025 = vmatpush3.bf16.msra.mxu0 %v11686_v26  ;;  %11036 = vmatprep.subr.bf16.mxu1 %v11690_v4 }
0x199c   :  { %11026 = vmatprep.subr.bf16.mxu0 %v11687_v3 }
0x199e   :  { %11037 = vmatpush3.bf16.msra.mxu1 %v11690_v4 }
0x199f   :  { %11027 = vmatpush3.bf16.msra.mxu0 %v11687_v3  ;;  %11038 = vmatprep.subr.bf16.mxu1 %v11691_v34 }
0x19a0   :  { %11044 = vmatprep.subr.bf16.mxu0 %v11692_v31 }
0x19a2   :  { %11029 = vmatmul.mubr.msk.bf16.vlgmr.msra.gmra.mrb[136].mxu0 %vm159_vm5, %v6248_v1  ;;  %11039 = vmatpush3.bf16.msra.mxu1 %v11691_v34 }
0x19a3   :  { %11056 = vmatprep.subr.bf16.mxu1 %v11693_v2  ;;  %11045 = vmatpush3.bf16.msra.mxu0 %v11692_v31  ;;  %v11705_v31 = vld [vmem:[%s14486_s3 + $0x608] sm:$0xff]  }
0x19a4   :  { %11046 = vmatprep.subr.bf16.mxu0 %v11694_v13 }
0x19a7   :  { %11047 = vmatpush3.bf16.msra.mxu0 %v11694_v13  ;;  %v11707_v13 = vld [vmem:[%s14486_s3 + $0x618] sm:$0xff]  }
0x19a8   :  { %11048 = vmatprep.subr.bf16.mxu0 %v11696_v62 }
0x19ab   :  { %11049 = vmatpush3.bf16.msra.mxu0 %v11696_v62 }
0x19ac   :  { %11050 = vmatprep.subr.bf16.mxu0 %v11698_v43 }
0x19af   :  { %11051 = vmatpush3.bf16.msra.mxu0 %v11698_v43 }
0x19b0   :  { %11068 = vmatprep.subr.bf16.mxu0 %v11700_v51 }
0x1a65   :  { %v11006_v58 = vpop.f32.mrb[132].mxu0 }
0x1a66   :  { %v11018_v10 = vpop.f32.mrb[124].mxu1  ;;  %v6149_v61 = vpop.f32.mrb[133].mxu0 }
0x1a67   :  { %v6236_v45 = vadd.f32 %v11018_v10, %v11006_v58  ;;  %v6227_v19 = vpop.f32.mrb[125].mxu1  ;;  %v11007_v37 = vpop.f32.mrb[134].mxu0 }
0x1a68   :  { %v6228_v59 = vadd.f32 %v6227_v19, %v6149_v61  ;;  %v11019_v49 = vpop.f32.mrb[126].mxu1  ;;  %v6152_v33 = vpop.f32.mrb[135].mxu0 }
0x1a69   :  { %v6230_v15 = vpop.f32.mrb[127].mxu1 }
0x1a6a   :  { %v6231_v50 = vadd.f32 %v6230_v15, %v6152_v33 }
0x1a75   :  { %v11030_v12 = vpop.f32.mrb[136].mxu0 }
0x1a76   :  { %v6338_v8 = vadd.f32 %v11030_v12, %v6236_v45  ;;  %v6322_v36 = vpop.f32.mrb[137].mxu0 }
0x1a77   :  { %v6336_v39 = vadd.f32 %v6322_v36, %v6228_v59  ;;  %v11031_v22 = vpop.f32.mrb[138].mxu0 }
0x1a78   :  { %v6345_v40 = vadd.f32 %v9455_v16, %v6338_v8  ;;  %v6325_v5 = vpop.f32.mrb[139].mxu0 }
0x1a79   :  { %v6343_v7 = vadd.f32 %v9455_v16, %v6336_v39  ;;  %v6337_v0 = vadd.f32 %v6325_v5, %v6231_v50  ;;  %v11701_v5 = vld [vmem:[%s14486_s3 + $0x5e8] sm:$0xff]  }
0x1a7a   :  { %v6348_v56 = vmax.f32 %v6345_v40, 0.0 }
0x1a7b   :  { %v6344_v55 = vadd.f32 %v9455_v16, %v6337_v0  ;;  %v6346_v6 = vmax.f32 %v6343_v7, 0.0  ;;  %v11702_v0 = vld [vmem:[%s14486_s3 + $0x5f0] sm:$0xff]  }
0x1a7c   :  { %v6350_v28 = vpack.c.bf16 %v6348_v56, %v6348_v56 }
0x1a7d   :  { %v6347_v17 = vmax.f32 %v6344_v55, 0.0  ;;  %v11703_v55 = vld [vmem:[%s14486_s3 + $0x5f8] sm:$0xff]  }
0x1a7f   :  { %v6349_v46 = vpack.c.bf16 %v6347_v17, %v6346_v6 }
0x1a81   :  { %11040 = vmatprep.mubr.msk.bf16.mxu1 %vm159_vm5, %v6349_v46  ;;  %v13932_v46 = vld [vmem:[#allocation2] sm:$0xff] }
0x1a82   :  { %11041 = vmatmul.mubr.msk.bf16.vlgmr.msra.gmra.mrb[128].mxu1 %vm159_vm5, %v6350_v28  ;;  %v11704_v28 = vld [vmem:[%s14486_s3 + $0x600] sm:$0xff]  }
0x1a83   :  { %11057 = vmatpush3.bf16.msra.mxu1 %v11693_v2  ;;  %v11706_v2 = vld [vmem:[%s14486_s3 + $0x610] sm:$0xff]  }
0x1a84   :  { %11058 = vmatprep.subr.bf16.mxu1 %v11695_v35 }
0x1a87   :  { %11059 = vmatpush3.bf16.msra.mxu1 %v11695_v35 }
0x1a88   :  { %11060 = vmatprep.subr.bf16.mxu1 %v11697_v25 }
0x1a8b   :  { %11061 = vmatpush3.bf16.msra.mxu1 %v11697_v25 }
0x1a8c   :  { %11062 = vmatprep.subr.bf16.mxu1 %v11699_v42 }
0x1a8f   :  { %11063 = vmatpush3.bf16.msra.mxu1 %v11699_v42 }
0x1a90   :  { %11080 = vmatprep.subr.bf16.mxu1 %v11704_v28 }
0x1b55   :  { %v11042_v44 = vpop.f32.mrb[128].mxu1 }
0x1b56   :  { %v6438_v47 = vadd.f32 %v11042_v44, %v9464_v23  ;;  %v6429_v26 = vpop.f32.mrb[129].mxu1 }
0x1b57   :  { %v6430_v3 = vadd.f32 %v9464_v23, %v6429_v26  ;;  %v11043_v27 = vpop.f32.mrb[130].mxu1 }
0x1b58   :  { %v6445_v57 = vmul.f32 %v12743_v54, %v6438_v47  ;;  %v6432_v1 = vpop.f32.mrb[131].mxu1  ;;  %v9513_v27 = vld [vmem:[%s14487_s4 + $0x14] ss:$0 sm:$0xff] }
0x1b59   :  { %v6446_v32 = vadd.f32 %v6430_v3, %v13830_v60  ;;  %v6433_v21 = vadd.f32 %v9464_v23, %v6432_v1 }
0x1b5a   :  { %v6448_v4 = vadd.f32 %v6445_v57, %v13832_v41 }
0x1b5b   :  { %6449 = vst.msk [vmem:[#allocation10 + $0x6] sm:$0xff] %vm159_vm5, %v6446_v32  ;;  %v6444_v34 = vmul.f32 %v12748_v30, %v6433_v21 }
0x1b5c   :  { %6451 = vst.msk [vmem:[#allocation10 + $0x16] sm:$0x3f] %vm167_vm9, %v6448_v4 }
0x1b5d   :  { %v6447_v58 = vadd.f32 %v6444_v34, %v13834_v48 }
0x1b5f   :  { %6450 = vst.msk [vmem:[#allocation10 + $0xe] sm:$0xff] %vm159_vm5, %v6447_v58 }
0x1b62   :  { %v13909_v10 = vld [vmem:[#allocation10 + $0x6] sm:$0xff] }
0x1b63   :  { %v13911_v45 = vld [vmem:[#allocation10 + $0x16] sm:$0x3f]  ;;  %v6453_v61 = vld [vmem:[#allocation10 + $0x5] sm:$0xff]  ;;  %v6473_v60 = vmax.f32 %v13909_v10, 0.0 }
0x1b64   :  { %v6475_v59 = vmax.f32 %v13911_v45, 0.0  ;;  %v6456_v33 = vmax.f32 %v6453_v61, 0.0  ;;  %v6645_v56 = vld [vmem:[#allocation10 + $0x17] sm:$0x3f] }
0x1b65   :  { %v6648_v6 = vmax.f32 %v6645_v56, 0.0 }
0x1b66   :  { %v13913_v19 = vld [vmem:[#allocation10 + $0xe] sm:$0xff]  ;;  %v6477_v40 = vpack.c.bf16 %v6475_v59, %v6475_v59 }
0x1b67   :  { %v6454_v41 = vld [vmem:[#allocation10 + $0xd] sm:$0xff]  ;;  %v6455_v37 = vld [vmem:[#allocation10 + $0x15] sm:$0x3f]  ;;  %v6474_v49 = vmax.f32 %v13913_v19, 0.0  ;;  %v6650_v17 = vpack.c.bf16 %v6648_v6, %v6648_v6 }
0x1b68   :  { %v6457_v15 = vmax.f32 %v6454_v41, 0.0  ;;  %v6458_v48 = vmax.f32 %v6455_v37, 0.0  ;;  %v6643_v50 = vld [vmem:[#allocation10 + $0x7] sm:$0xff]  ;;  %v6644_v16 = vld [vmem:[#allocation10 + $0xf] sm:$0xff] }
0x1b69   :  { %v6646_v12 = vmax.f32 %v6643_v50, 0.0  ;;  %v6647_v8 = vmax.f32 %v6644_v16, 0.0  ;;  %v6476_v36 = vpack.c.bf16 %v6474_v49, %v6473_v60 }
0x1b6a   :  { %v6459_v39 = vpack.c.bf16 %v6457_v15, %v6456_v33  ;;  %v6460_v22 = vpack.c.bf16 %v6458_v48, %v6458_v48  ;;  %v9522_v48 = vld [vmem:[%s14487_s4 + $0x15] ss:$0 sm:$0xff] }
0x1b6b   :  { %11052 = vmatprep.mubr.msk.bf16.mxu0 %vm159_vm5, %v6476_v36  ;;  %v6649_v7 = vpack.c.bf16 %v6647_v8, %v6646_v12 }
0x1b6c   :  { %11064 = vmatprep.mubr.msk.bf16.mxu1 %vm159_vm5, %v6459_v39  ;;  %11053 = vmatmul.mubr.msk.bf16.vlgmr.msra.gmra.mrb[140].mxu0 %vm159_vm5, %v6477_v40 }
0x1b6d   :  { %11065 = vmatmul.mubr.msk.bf16.vlgmr.msra.gmra.mrb[132].mxu1 %vm159_vm5, %v6460_v22  ;;  %11069 = vmatpush3.bf16.msra.mxu0 %v11700_v51 }
0x1b6e   :  { %11076 = vmatprep.mubr.msk.bf16.mxu0 %vm159_vm5, %v6649_v7  ;;  %11070 = vmatprep.subr.bf16.mxu0 %v11701_v5 }
0x1b6f   :  { %11081 = vmatpush3.bf16.msra.mxu1 %v11704_v28 }
0x1b70   :  { %11082 = vmatprep.subr.bf16.mxu1 %v11705_v31 }
0x1b71   :  { %11071 = vmatpush3.bf16.msra.mxu0 %v11701_v5 }
0x1b72   :  { %11072 = vmatprep.subr.bf16.mxu0 %v11702_v0 }
0x1b73   :  { %11083 = vmatpush3.bf16.msra.mxu1 %v11705_v31 }
0x1b74   :  { %11084 = vmatprep.subr.bf16.mxu1 %v11706_v2 }
0x1b75   :  { %11073 = vmatpush3.bf16.msra.mxu0 %v11702_v0 }
0x1b76   :  { %11074 = vmatprep.subr.bf16.mxu0 %v11703_v55 }
0x1b77   :  { %11085 = vmatpush3.bf16.msra.mxu1 %v11706_v2  ;;  %v11709_v2 = vld [vmem:[%s14492_s9 + $0x8] sm:$0xff]  }
0x1b78   :  { %11086 = vmatprep.subr.bf16.mxu1 %v11707_v13 }
0x1b79   :  { %11075 = vmatpush3.bf16.msra.mxu0 %v11703_v55 }
0x1b7a   :  { %11092 = vmatprep.subr.bf16.mxu0 %v13932_v46 }
0x1b7b   :  { %11087 = vmatpush3.bf16.msra.mxu1 %v11707_v13  ;;  %v11710_v13 = vld [vmem:[%s14492_s9 + $0x10] sm:$0xff]  }
0x1b7c   :  { %11077 = vmatmul.mubr.msk.bf16.vlgmr.msra.gmra.mrb[144].mxu0 %vm159_vm5, %v6650_v17  ;;  %11118 = vmatprep.subr.bf16.mxu1 %v13932_v46 }
0x1b7d   :  { %11098 = vmatprep.mubr.msk.bf16.mxu0 %vm11817_vm0, %v13932_v46 }
0x1c3f   :  { %v11054_v35 = vpop.f32.mrb[140].mxu0 }
0x1c40   :  { %v11066_v62 = vpop.f32.mrb[132].mxu1  ;;  %v6551_v43 = vpop.f32.mrb[141].mxu0 }
0x1c41   :  { %v6638_v25 = vadd.f32 %v11066_v62, %v11054_v35  ;;  %v6629_v42 = vpop.f32.mrb[133].mxu1  ;;  %v11055_v23 = vpop.f32.mrb[142].mxu0  ;;  %v11711_v35 = vld [vmem:[%s14492_s9 + $0x18] sm:$0xff]   ;;  %v11712_v62 = vld [vmem:[%s14486_s3 + $0x640] sm:$0xff]  }
0x1c42   :  { %v6630_v51 = vadd.f32 %v6629_v42, %v6551_v43  ;;  %v11067_v44 = vpop.f32.mrb[134].mxu1  ;;  %v6554_v47 = vpop.f32.mrb[143].mxu0  ;;  %v11714_v43 = vld [vmem:[%s14486_s3 + $0x648] sm:$0xff]   ;;  %v11717_v23 = vld [vmem:[%s14486_s3 + $0x650] sm:$0xff]  }
0x1c43   :  { %v6632_v26 = vpop.f32.mrb[135].mxu1  ;;  %v11715_v42 = vld [vmem:[%s14486_s3 + $0x668] sm:$0xff]   ;;  %v11718_v44 = vld [vmem:[%s14486_s3 + $0x670] sm:$0xff]  }
0x1c44   :  { %v6633_v3 = vadd.f32 %v6632_v26, %v6554_v47  ;;  %v11719_v47 = vld [vmem:[%s14486_s3 + $0x658] sm:$0xff]  }
0x1c45   :  { %v11720_v26 = vld [vmem:[%s14486_s3 + $0x678] sm:$0xff]  }
0x1c4f   :  { %v11078_v57 = vpop.f32.mrb[144].mxu0 }
0x1c50   :  { %v6740_v1 = vadd.f32 %v11078_v57, %v6638_v25  ;;  %v6724_v32 = vpop.f32.mrb[145].mxu0  ;;  %v11713_v25 = vld [vmem:[%s14486_s3 + $0x660] sm:$0xff]  }
0x1c51   :  { %v6738_v21 = vadd.f32 %v6724_v32, %v6630_v51  ;;  %v11079_v4 = vpop.f32.mrb[146].mxu0  ;;  %v11716_v51 = vld [vmem:[%s14492_s9 + $0x20] ss:$0 sps:$4 sm:$0x33]  }
0x1c52   :  { %v6747_v34 = vadd.f32 %v9513_v27, %v6740_v1  ;;  %v6727_v58 = vpop.f32.mrb[147].mxu0 }
0x1c53   :  { %v6745_v61 = vadd.f32 %v9513_v27, %v6738_v21  ;;  %v6739_v60 = vadd.f32 %v6727_v58, %v6633_v3 }
0x1c54   :  { %v6750_v59 = vmax.f32 %v6747_v34, 0.0 }
0x1c55   :  { %v6746_v41 = vadd.f32 %v9513_v27, %v6739_v60  ;;  %v6748_v37 = vmax.f32 %v6745_v61, 0.0 }
0x1c56   :  { %v6752_v15 = vpack.c.bf16 %v6750_v59, %v6750_v59 }
0x1c57   :  { %v6749_v49 = vmax.f32 %v6746_v41, 0.0  ;;  %v11721_v41 = vld [vmem:[%s14486_s3 + $0x620] sm:$0xff]  }
0x1c59   :  { %v6751_v33 = vpack.c.bf16 %v6749_v49, %v6748_v37 }
0x1c5b   :  { %11088 = vmatprep.mubr.msk.bf16.mxu1 %vm159_vm5, %v6751_v33 }
0x1c5c   :  { %11089 = vmatmul.mubr.msk.bf16.vlgmr.msra.gmra.mrb[136].mxu1 %vm159_vm5, %v6752_v15 }
0x1c5d   :  { %11126 = vmatprep.mubr.msk.bf16.mxu1 %vm11817_vm0, %v13932_v46  ;;  %11119 = vmatpush3.bf16.msra.mxu1 %v11712_v62 }
0x1c5e   :  { %11120 = vmatprep.subr.bf16.mxu1 %v13932_v46 }
0x1c61   :  { %11121 = vmatpush3.bf16.msra.mxu1 %v11714_v43 }
0x1c62   :  { %11122 = vmatprep.subr.bf16.mxu1 %v13932_v46 }
0x1c65   :  { %11123 = vmatpush3.bf16.msra.mxu1 %v11717_v23 }
0x1c66   :  { %11124 = vmatprep.subr.bf16.mxu1 %v13932_v46 }
0x1c69   :  { %11125 = vmatpush3.bf16.msra.mxu1 %v11719_v47 }
0x1c6a   :  { %11138 = vmatprep.subr.bf16.mxu1 %v13932_v46 }
0x1d2f   :  { %v11090_v50 = vpop.f32.mrb[136].mxu1 }
0x1d30   :  { %v6840_v16 = vadd.f32 %v11090_v50, %v9522_v48  ;;  %v6831_v12 = vpop.f32.mrb[137].mxu1 }
0x1d31   :  { %v6832_v8 = vadd.f32 %v9522_v48, %v6831_v12  ;;  %v11091_v36 = vpop.f32.mrb[138].mxu1 }
0x1d32   :  { %v6847_v39 = vmul.f32 %v12743_v54, %v6840_v16  ;;  %v6834_v22 = vpop.f32.mrb[139].mxu1  ;;  %v6867_v54 = vld [vmem:[#allocation10 + $0x20] sm:$0x3]  ;;  %v11722_v16 = vld [vmem:[%s14486_s3 + $0x628] sm:$0xff]  }
0x1d33   :  { %v6848_v40 = vadd.f32 %v6832_v8, %v13909_v10  ;;  %v6835_v5 = vadd.f32 %v9522_v48, %v6834_v22 }
0x1d34   :  { %v6850_v7 = vadd.f32 %v6847_v39, %v13911_v45  ;;  %v6870_v45 = vpack.c.bf16 %v6867_v54, %v6867_v54  ;;  %v11723_v39 = vld [vmem:[%s14486_s3 + $0x630] sm:$0xff]  }
0x1d35   :  { %6851 = vst.msk [vmem:[#allocation10 + $0x6] sm:$0xff] %vm159_vm5, %v6848_v40  ;;  %v6846_v0 = vmul.f32 %v12748_v30, %v6835_v5 }
0x1d36   :  { %6853 = vst.msk [vmem:[#allocation10 + $0x16] sm:$0x3f] %vm167_vm9, %v6850_v7  ;;  %v6911_v30 = vsel %vm5689_vm2, %v6870_v45, 0  ;;  %vm6894_vm9 = vcmask 277504  }
0x1d37   :  { %v6849_v55 = vadd.f32 %v6846_v0, %v13913_v19  ;;  %v11708_v19 = vld [vmem:[%s14492_s9] sm:$0xff]  }
0x1d39   :  { %6852 = vst.msk [vmem:[#allocation10 + $0xe] sm:$0xff] %vm159_vm5, %v6849_v55 }
0x1d3c   :  { %v6863_v56 = vld [vmem:[#allocation10] sm:$0xff] }
0x1d3d   :  { %v6866_v10 = vld [vmem:[#allocation10 + $0x18] sm:$0xff] }
0x1d40   :  { %v6864_v6 = vld [vmem:[#allocation10 + $0x8] sm:$0xff]  ;;  %v6865_v28 = vld [vmem:[#allocation10 + $0x10] sm:$0xff] }
0x1d41   :  { %v6868_v17 = vpack.c.bf16 %v6864_v6, %v6863_v56  ;;  %v6869_v31 = vpack.c.bf16 %v6866_v10, %v6865_v28  ;;  %v11724_v6 = vld [vmem:[%s14486_s3 + $0x638] sm:$0xff]  }
0x1d43   :  { %11093 = vmatpush3.bf16.msra.mxu0 %v6868_v17 }
0x1d44   :  { %11094 = vmatprep.subr.bf16.mxu0 %v13932_v46 }
0x1d47   :  { %11095 = vmatpush3.bf16.msra.mxu0 %v6869_v31 }
0x1d48   :  { %11096 = vmatprep.subr.bf16.mxu0 %v13932_v46 }
0x1d4b   :  { %11097 = vmatpush3.bf16.msra.mxu0 %v6911_v30 }
0x1d4c   :  { %11158 = vmatprep.subr.bf16.mxu0 %v13932_v46 }
0x1d4e   :  { %11099 = vmatmul.mubr.msk.bf16.vlgmr.msra.gmra.mrb[148].mxu0 %vm6894_vm9, %v11708_v19 }
0x1d4f   :  { %11102 = vmatprep.mubr.msk.bf16.mxu0 %vm11817_vm0, %v13932_v46  ;;  %11159 = vmatpush3.bf16.msra.mxu0 %v11713_v25 }
0x1d50   :  { %11160 = vmatprep.subr.bf16.mxu0 %v13932_v46 }
0x1d53   :  { %11161 = vmatpush3.bf16.msra.mxu0 %v11715_v42 }
0x1d54   :  { %11162 = vmatprep.subr.bf16.mxu0 %v13932_v46 }
0x1d56   :  { %11103 = vmatmul.mubr.msk.bf16.gmra.mrb[152].mxu0 %vm6894_vm9, %v11709_v2 }
0x1d57   :  { %11106 = vmatprep.mubr.msk.bf16.mxu0 %vm11817_vm0, %v13932_v46  ;;  %11163 = vmatpush3.bf16.msra.mxu0 %v11718_v44 }
0x1d58   :  { %11164 = vmatprep.subr.bf16.mxu0 %v13932_v46 }
0x1d5b   :  { %11165 = vmatpush3.bf16.msra.mxu0 %v11720_v26  ;;  %v11725_v26 = vld [vmem:[%s14486_s3 + $0x6a0] sm:$0xff]  }
0x1d5c   :  { %11198 = vmatprep.subr.bf16.mxu0 %v13932_v46 }
0x1d5e   :  { %11107 = vmatmul.mubr.msk.bf16.gmra.mrb[156].mxu0 %vm6894_vm9, %v11710_v13 }
0x1d5f   :  { %11110 = vmatprep.mubr.msk.bf16.mxu0 %vm11817_vm0, %v13932_v46 }
0x1d66   :  { %11111 = vmatmul.mubr.msk.bf16.gmra.mrb[160].mxu0 %vm6894_vm9, %v11711_v35 }
0x1d67   :  { %11114 = vmatprep.mubr.msk.bf16.mxu0 %vm11817_vm0, %v13932_v46 }
0x1d6e   :  { %11115 = vmatmul.mubr.msk.bf16.gmra.mrb[164].mxu0 %vm6894_vm9, %v11716_v51 }
0x1d6f   :  { %11166 = vmatprep.mubr.msk.bf16.mxu0 %vm11817_vm0, %v13932_v46 }
0x1e21   :  { %v6947_v3 = vpop.f32.mrb[148].mxu0 }
0x1e22   :  { %v11100_v27 = vpop.f32.mrb[149].mxu0  ;;  %v11726_v3 = vld [vmem:[%s14486_s3 + $0x6a8] sm:$0xff]  }
0x1e23   :  { %v6950_v57 = vpop.f32.mrb[150].mxu0  ;;  %v11727_v27 = vld [vmem:[%s14486_s3 + $0x680] sm:$0xff]  }
0x1e24   :  { %6986 = vst.msk [vmem:[#allocation11 + $0x8] sm:$0xff] %vm159_vm5, %v6950_v57  ;;  %v11101_v1 = vpop.f32.mrb[151].mxu0  ;;  %v11728_v57 = vld [vmem:[%s14486_s3 + $0x688] sm:$0xff]  }
0x1e25   :  { %v11729_v1 = vld [vmem:[%s14486_s3 + $0x6b0] sm:$0xff]  }
0x1e29   :  { %v6955_v32 = vpop.f32.mrb[152].mxu0 }
0x1e2a   :  { %6987 = vst.msk [vmem:[#allocation11 + $0x10] sm:$0xff] %vm159_vm5, %v6955_v32  ;;  %v11104_v21 = vpop.f32.mrb[153].mxu0  ;;  %v11730_v32 = vld [vmem:[%s14486_s3 + $0x690] sm:$0xff]  }
0x1e2b   :  { %v6958_v4 = vpop.f32.mrb[154].mxu0  ;;  %v11731_v21 = vld [vmem:[%s14486_s3 + $0x6b8] sm:$0xff]  }
0x1e2c   :  { %6988 = vst.msk [vmem:[#allocation11 + $0x18] sm:$0xff] %vm159_vm5, %v6958_v4  ;;  %v11105_v34 = vpop.f32.mrb[155].mxu0  ;;  %v11732_v4 = vld [vmem:[%s14486_s3 + $0x698] sm:$0xff]  }
0x1e31   :  { %v6963_v58 = vpop.f32.mrb[156].mxu0  ;;  %v7013_v60 = vld [vmem:[#allocation11 + $0xc] sm:$0xff] }
0x1e32   :  { %6989 = vst.msk [vmem:[#allocation11 + $0x20] sm:$0xff] %vm159_vm5, %v6963_v58  ;;  %v11108_v61 = vpop.f32.mrb[157].mxu0  ;;  %v7211_v49 = vld [vmem:[#allocation11 + $0xd] sm:$0xff] }
0x1e33   :  { %v6966_v59 = vpop.f32.mrb[158].mxu0  ;;  %v7014_v37 = vld [vmem:[#allocation11 + $0x14] sm:$0xff]  ;;  %v6995_v19 = vld [vmem:[#allocation11 + $0xb] sm:$0xff] }
0x1e34   :  { %v7212_v33 = vld [vmem:[#allocation11 + $0x15] sm:$0xff]  ;;  %6990 = vst.msk [vmem:[#allocation11 + $0x28] sm:$0xff] %vm159_vm5, %v6966_v59  ;;  %v11109_v15 = vpop.f32.mrb[159].mxu0  ;;  %v7019_v48 = vpack.c.bf16 %v7014_v37, %v7013_v60 }
0x1e35   :  { %v7217_v50 = vpack.c.bf16 %v7212_v33, %v7211_v49  ;;  %v6996_v30 = vld [vmem:[#allocation11 + $0x13] sm:$0xff] }
0x1e36   :  { %11127 = vmatmul.mubr.msk.bf16.vlgmr.msra.gmra.mrb[140].mxu1 %vm159_vm5, %v7019_v48  ;;  %v7001_v2 = vpack.c.bf16 %v6996_v30, %v6995_v19 }
0x1e37   :  { %11167 = vmatmul.mubr.msk.bf16.vlgmr.msra.gmra.mrb[168].mxu0 %vm159_vm5, %v7217_v50  ;;  %11139 = vmatpush3.bf16.msra.mxu1 %v11721_v41 }
0x1e38   :  { %11130 = vmatprep.mubr.msk.bf16.mxu1 %vm11817_vm0, %v13932_v46  ;;  %11140 = vmatprep.subr.bf16.mxu1 %v13932_v46 }
0x1e39   :  { %11170 = vmatprep.mubr.msk.bf16.mxu0 %vm11817_vm0, %v13932_v46  ;;  %v6971_v12 = vpop.f32.mrb[160].mxu0  ;;  %v7015_v36 = vld [vmem:[#allocation11 + $0x1c] sm:$0xff]  ;;  %11199 = vmatpush3.bf16.msra.mxu0 %v11727_v27 }
0x1e3a   :  { %6991 = vst.msk [vmem:[#allocation11 + $0x30] sm:$0xff] %vm159_vm5, %v6971_v12  ;;  %v11112_v8 = vpop.f32.mrb[161].mxu0  ;;  %v7213_v5 = vld [vmem:[#allocation11 + $0x1d] sm:$0xff]  ;;  %11200 = vmatprep.subr.bf16.mxu0 %v13932_v46 }
0x1e3b   :  { %v6974_v22 = vpop.f32.mrb[162].mxu0  ;;  %11141 = vmatpush3.bf16.msra.mxu1 %v11722_v16  ;;  %v7016_v40 = vld [vmem:[#allocation11 + $0x24] sm:$0xff]  ;;  %v6997_v35 = vld [vmem:[#allocation11 + $0x1b] sm:$0xff] }
0x1e3c   :  { %v7214_v7 = vld [vmem:[#allocation11 + $0x25] sm:$0xff]  ;;  %6992 = vst.msk [vmem:[#allocation11 + $0x38] sm:$0xff] %vm159_vm5, %v6974_v22  ;;  %v11113_v0 = vpop.f32.mrb[163].mxu0  ;;  %v7020_v55 = vpack.c.bf16 %v7016_v40, %v7015_v36  ;;  %11142 = vmatprep.subr.bf16.mxu1 %v13932_v46 }
0x1e3d   :  { %v7218_v56 = vpack.c.bf16 %v7214_v7, %v7213_v5  ;;  %v6998_v13 = vld [vmem:[#allocation11 + $0x23] sm:$0xff]  ;;  %11201 = vmatpush3.bf16.msra.mxu0 %v11728_v57  ;;  %v11733_v57 = vld [vmem:[%s14486_s3 + $0x6c0] sm:$0xff]  }
0x1e3e   :  { %11131 = vmatmul.mubr.msk.bf16.gmra.mrb[144].mxu1 %vm159_vm5, %v7020_v55  ;;  %v7002_v62 = vpack.c.bf16 %v6998_v13, %v6997_v35  ;;  %11202 = vmatprep.subr.bf16.mxu0 %v13932_v46 }
0x1e3f   :  { %11171 = vmatmul.mubr.msk.bf16.gmra.mrb[172].mxu0 %vm159_vm5, %v7218_v56  ;;  %11143 = vmatpush3.bf16.msra.mxu1 %v11723_v39 }
0x1e40   :  { %11134 = vmatprep.mubr.msk.bf16.mxu1 %vm11817_vm0, %v13932_v46  ;;  %11174 = vmatprep.mubr.msk.bf16.mxu0 %vm11817_vm0, %v13932_v46 }
0x1e41   :  { %11144 = vmatprep.subr.bf16.mxu1 %v13932_v46  ;;  %v7017_v17 = vld [vmem:[#allocation11 + $0x2c] sm:$0xff]  ;;  %v7018_v54 = vld [vmem:[#allocation11 + $0x34] sm:$0xf]  ;;  %v6979_v51 = vpop.f32.mrb[164].mxu0  ;;  %11203 = vmatpush3.bf16.msra.mxu0 %v11730_v32 }
0x1e42   :  { %v7215_v28 = vld [vmem:[#allocation11 + $0x2d] sm:$0xff]  ;;  %v7021_v45 = vpack.c.bf16 %v7018_v54, %v7017_v17  ;;  %v11116_v23 = vpop.f32.mrb[165].mxu0  ;;  %11204 = vmatprep.subr.bf16.mxu0 %v13932_v46 }
0x1e43   :  { %v7216_v10 = vld [vmem:[#allocation11 + $0x35] sm:$0xf]  ;;  %11145 = vmatpush3.bf16.msra.mxu1 %v11724_v6  ;;  %v6999_v25 = vld [vmem:[#allocation11 + $0x2b] sm:$0xff]  ;;  %v6982_v44 = vpop.f32.mrb[166].mxu0 }
0x1e44   :  { %v7219_v31 = vpack.c.bf16 %v7216_v10, %v7215_v28  ;;  %11178 = vmatprep.subr.bf16.mxu1 %v13932_v46  ;;  %v7000_v43 = vld [vmem:[#allocation11 + $0x33] sm:$0xf]  ;;  %v11117_v47 = vpop.f32.mrb[167].mxu0  ;;  %v9584_v28 = vld [vmem:[%s14487_s4 + $0x16] ss:$0 sm:$0xff] }
0x1e45   :  { %v7003_v42 = vpack.c.bf16 %v7000_v43, %v6999_v25  ;;  %11205 = vmatpush3.bf16.msra.mxu0 %v11732_v4 }
0x1e46   :  { %11135 = vmatmul.mubr.msk.bf16.gmra.mrb[148].mxu1 %vm159_vm5, %v7021_v45 }
0x1e47   :  { %11175 = vmatmul.mubr.msk.bf16.gmra.mrb[176].mxu0 %vm159_vm5, %v7219_v31  ;;  %11146 = vmatprep.mubr.msk.bf16.mxu1 %vm11817_vm0, %v13932_v46 }
0x1e48   :  { %11206 = vmatprep.mubr.msk.bf16.mxu0 %vm11817_vm0, %v13932_v46 }
0x1e4e   :  { %11147 = vmatmul.mubr.msk.bf16.vlgmr.msra.gmra.mrb[152].mxu1 %vm159_vm5, %v7001_v2 }
0x1e4f   :  { %11150 = vmatprep.mubr.msk.bf16.mxu1 %vm11817_vm0, %v13932_v46  ;;  %11179 = vmatpush3.bf16.msra.mxu1 %v11725_v26 }
0x1e50   :  { %11180 = vmatprep.subr.bf16.mxu1 %v13932_v46 }
0x1e53   :  { %11181 = vmatpush3.bf16.msra.mxu1 %v11726_v3 }
0x1e54   :  { %11182 = vmatprep.subr.bf16.mxu1 %v13932_v46 }
0x1e56   :  { %11151 = vmatmul.mubr.msk.bf16.gmra.mrb[156].mxu1 %vm159_vm5, %v7002_v62 }
0x1e57   :  { %11154 = vmatprep.mubr.msk.bf16.mxu1 %vm11817_vm0, %v13932_v46  ;;  %11183 = vmatpush3.bf16.msra.mxu1 %v11729_v1 }
0x1e58   :  { %11184 = vmatprep.subr.bf16.mxu1 %v13932_v46 }
0x1e5b   :  { %11185 = vmatpush3.bf16.msra.mxu1 %v11731_v21 }
0x1e5c   :  { %11218 = vmatprep.subr.bf16.mxu1 %v13932_v46 }
0x1e5e   :  { %11155 = vmatmul.mubr.msk.bf16.gmra.mrb[160].mxu1 %vm159_vm5, %v7003_v42 }
0x1e5f   :  { %11186 = vmatprep.mubr.msk.bf16.mxu1 %vm11817_vm0, %v13932_v46 }
0x1f09   :  { %v7098_v34 = vpop.f32.mrb[140].mxu1 }
0x1f0a   :  { %v7296_v58 = vpop.f32.mrb[168].mxu0  ;;  %v11128_v61 = vpop.f32.mrb[141].mxu1 }
0x1f0b   :  { %v11168_v60 = vpop.f32.mrb[169].mxu0  ;;  %v7101_v41 = vpop.f32.mrb[142].mxu1 }
0x1f0c   :  { %v7299_v59 = vpop.f32.mrb[170].mxu0  ;;  %v11129_v37 = vpop.f32.mrb[143].mxu1 }
0x1f0d   :  { %v11169_v49 = vpop.f32.mrb[171].mxu0 }
0x1f11   :  { %v7106_v33 = vpop.f32.mrb[144].mxu1 }
0x1f12   :  { %v7304_v15 = vpop.f32.mrb[172].mxu0  ;;  %v11132_v48 = vpop.f32.mrb[145].mxu1 }
0x1f13   :  { %v11172_v50 = vpop.f32.mrb[173].mxu0  ;;  %v7109_v16 = vpop.f32.mrb[146].mxu1 }
0x1f14   :  { %v7307_v12 = vpop.f32.mrb[174].mxu0  ;;  %v11133_v8 = vpop.f32.mrb[147].mxu1 }
0x1f15   :  { %v11173_v36 = vpop.f32.mrb[175].mxu0 }
0x1f19   :  { %v7114_v39 = vpop.f32.mrb[148].mxu1 }
0x1f1a   :  { %v7312_v22 = vpop.f32.mrb[176].mxu0  ;;  %v11136_v40 = vpop.f32.mrb[149].mxu1 }
0x1f1b   :  { %v11176_v5 = vpop.f32.mrb[177].mxu0  ;;  %v7117_v7 = vpop.f32.mrb[150].mxu1 }
0x1f1c   :  { %v7315_v0 = vpop.f32.mrb[178].mxu0  ;;  %v11137_v55 = vpop.f32.mrb[151].mxu1 }
0x1f1d   :  { %v11177_v56 = vpop.f32.mrb[179].mxu0 }
0x1f21   :  { %v7188_v6 = vpop.f32.mrb[152].mxu1 }
0x1f22   :  { %v7189_v17 = vadd.f32 %v7188_v6, %v7098_v34  ;;  %v11148_v54 = vpop.f32.mrb[153].mxu1 }
0x1f23   :  { %v7191_v10 = vpop.f32.mrb[154].mxu1 }
0x1f24   :  { %v7319_v45 = vadd.f32 %v7296_v58, %v7189_v17  ;;  %v7192_v31 = vadd.f32 %v7191_v10, %v7101_v41  ;;  %v11149_v30 = vpop.f32.mrb[155].mxu1 }
0x1f26   :  { %v7329_v19 = vadd.f32 %v9584_v28, %v7319_v45  ;;  %v7320_v2 = vadd.f32 %v7299_v59, %v7192_v31 }
0x1f28   :  { %7341 = vst.msk [vmem:[#allocation12 + $0xc] sm:$0xff] %vm159_vm5, %v7329_v19  ;;  %v7330_v13 = vadd.f32 %v9584_v28, %v7320_v2 }
0x1f29   :  { %v7196_v35 = vpop.f32.mrb[156].mxu1 }
0x1f2a   :  { %7342 = vst.msk [vmem:[#allocation12 + $0x14] sm:$0xff] %vm159_vm5, %v7330_v13  ;;  %v7197_v62 = vadd.f32 %v7196_v35, %v7106_v33  ;;  %v11152_v25 = vpop.f32.mrb[157].mxu1 }
0x1f2b   :  { %v7199_v43 = vpop.f32.mrb[158].mxu1  ;;  %v11737_v25 = vld [vmem:[%s14488_s5 + $0x60] ss:$12 sps:$4 sm:$0xff]  }
0x1f2c   :  { %v7321_v42 = vadd.f32 %v7304_v15, %v7197_v62  ;;  %v7200_v51 = vadd.f32 %v7199_v43, %v7109_v16  ;;  %v11153_v23 = vpop.f32.mrb[159].mxu1  ;;  %v11734_v15 = vld [vmem:[%s14486_s3 + $0x6c8] sm:$0xff]   ;;  %v11739_v43 = vld [vmem:[%s14488_s5 + $0x64] ss:$12 sps:$4 sm:$0xff]  }
0x1f2d   :  { %7830 = vmatprep.subr.bf16.mxu0 %v11739_v43  ;;  %v11743_v23 = vld [vmem:[%s14488_s5 + $0x68] ss:$12 sps:$4 sm:$0xff]  }
0x1f2e   :  { %v7331_v44 = vadd.f32 %v9584_v28, %v7321_v42  ;;  %v7322_v47 = vadd.f32 %v7307_v12, %v7200_v51  ;;  %v11735_v12 = vld [vmem:[%s14486_s3 + $0x6d0] sm:$0xff]   ;;  %v11740_v42 = vld [vmem:[%s14488_s5 + $0x78] ss:$12 sps:$4 sm:$0xff]   ;;  %v11742_v51 = vld [vmem:[%s14488_s5 + $0x7c] ss:$12 sps:$4 sm:$0xff]  }
0x1f2f   :  { %v7366_v27 = vld [vmem:[#allocation12 + $0xc] sm:$0xff] }
0x1f30   :  { %v7337_v26 = vmul.f32 0.0, %v7331_v44  ;;  %v7332_v3 = vadd.f32 %v9584_v28, %v7322_v47  ;;  %v7348_v21 = vld [vmem:[#allocation12 + $0xb] sm:$0xff] }
0x1f31   :  { %v7204_v1 = vpop.f32.mrb[160].mxu1  ;;  %v7367_v32 = vld [vmem:[#allocation12 + $0x14] sm:$0xff]  ;;  %v11744_v44 = vld [vmem:[%s14488_s5 + $0x80] ss:$12 sps:$4 sm:$0xff]  }
0x1f32   :  { %v7349_v4 = vld [vmem:[#allocation12 + $0x13] sm:$0xff]  ;;  %7343 = vst.msk [vmem:[#allocation12 + $0x1c] sm:$0xff] %vm159_vm5, %v7337_v26  ;;  %v7338_v34 = vmul.f32 %v12652_v38, %v7332_v3  ;;  %v7205_v58 = vadd.f32 %v7204_v1, %v7114_v39  ;;  %v11156_v61 = vpop.f32.mrb[161].mxu1  ;;  %v7372_v60 = vpack.c.bf16 %v7367_v32, %v7366_v27  ;;  %v11745_v26 = vld [vmem:[%s14488_s5 + $0x90] ss:$12 sps:$4 sm:$0xff]  }
0x1f33   :  { %v7354_v41 = vpack.c.bf16 %v7349_v4, %v7348_v21  ;;  %v7207_v59 = vpop.f32.mrb[162].mxu1  ;;  %v7564_v45 = vld [vmem:[#allocation12 + $0xd] sm:$0xff]  ;;  %v11749_v27 = vld [vmem:[%s14488_s5 + $0xa8] ss:$12 sps:$4 sm:$0xff]  }
0x1f34   :  { %7344 = vst.msk [vmem:[#allocation12 + $0x24] sm:$0xff] %vm159_vm5, %v7338_v34  ;;  %v7323_v37 = vadd.f32 %v7312_v22, %v7205_v58  ;;  %v7208_v49 = vadd.f32 %v7207_v59, %v7117_v7  ;;  %v11157_v33 = vpop.f32.mrb[163].mxu1  ;;  %11187 = vmatmul.mubr.msk.bf16.vlgmr.msra.gmra.mrb[164].mxu1 %vm159_vm5, %v7372_v60  ;;  %v11747_v47 = vld [vmem:[%s14488_s5 + $0x94] ss:$12 sps:$4 sm:$0xff]   ;;  %v11748_v3 = vld [vmem:[%s14488_s5 + $0x98] ss:$12 sps:$4 sm:$0xff]  }
0x1f35   :  { %11207 = vmatmul.mubr.msk.bf16.vlgmr.msra.gmra.mrb[180].mxu0 %vm159_vm5, %v7354_v41  ;;  %11219 = vmatpush3.bf16.msra.mxu1 %v11733_v57  ;;  %v11751_v57 = vld [vmem:[%s14488_s5 + $0xac] ss:$12 sps:$4 sm:$0xff]   ;;  %v11752_v1 = vld [vmem:[%s14488_s5 + $0xb0] ss:$12 sps:$4 sm:$0xff]  }
0x1f36   :  { %11190 = vmatprep.mubr.msk.bf16.mxu1 %vm11817_vm0, %v13932_v46  ;;  %v7333_v48 = vadd.f32 %v9584_v28, %v7323_v37  ;;  %v7324_v50 = vadd.f32 %v7315_v0, %v7208_v49  ;;  %11220 = vmatprep.subr.bf16.mxu1 %v13932_v46  ;;  %v11736_v0 = vld [vmem:[%s14486_s3 + $0x6d8] sm:$0xff]   ;;  %v11755_v32 = vld [vmem:[%s14488_s5 + $0x4] ss:$12 sps:$4 sm:$0xff]  }
0x1f37   :  { %11210 = vmatprep.mubr.msk.bf16.mxu0 %vm11817_vm0, %v13932_v46  ;;  %7831 = vmatpush1.bf16.msra.mxu0 %v11737_v25 }
0x1f38   :  { %7345 = vst.msk [vmem:[#allocation12 + $0x2c] sm:$0xff] %vm159_vm5, %v7333_v48  ;;  %v7334_v16 = vadd.f32 %v9584_v28, %v7324_v50  ;;  %7832 = vmatprep.subr.bf16.mxu0 %v11742_v51 }
0x1f39   :  { %11221 = vmatpush3.bf16.msra.mxu1 %v11734_v15  ;;  %v7368_v36 = vld [vmem:[#allocation12 + $0x1c] sm:$0xff] }
0x1f3a   :  { %v7340_v8 = vmul.f32 %v12660_v11, %v7334_v16  ;;  %11222 = vmatprep.subr.bf16.mxu1 %v13932_v46  ;;  %v7350_v22 = vld [vmem:[#allocation12 + $0x1b] sm:$0xff] }
0x1f3b   :  { %v7369_v39 = vld [vmem:[#allocation12 + $0x24] sm:$0xff]  ;;  %v7565_v10 = vld [vmem:[#allocation12 + $0x15] sm:$0xff]  ;;  %7833 = vmatpush1.bf16.msra.mxu0 %v11740_v42 }
0x1f3c   :  { %v7351_v40 = vld [vmem:[#allocation12 + $0x23] sm:$0xff]  ;;  %7346 = vst.msk [vmem:[#allocation12 + $0x34] sm:$0xf] %vm161_vm6, %v7340_v8  ;;  %v7373_v5 = vpack.c.bf16 %v7369_v39, %v7368_v36  ;;  %v7570_v31 = vpack.c.bf16 %v7565_v10, %v7564_v45  ;;  %7834 = vmatprep.subr.bf16.mxu0 %v11747_v47 }
0x1f3d   :  { %v7355_v7 = vpack.c.bf16 %v7351_v40, %v7350_v22  ;;  %11223 = vmatpush3.bf16.msra.mxu1 %v11735_v12  ;;  %v7566_v19 = vld [vmem:[#allocation12 + $0x1d] sm:$0xff]  ;;  %v9630_v10 = vld [vmem:[%s14487_s4 + $0x17] ss:$0 sm:$0xff] }
0x1f3e   :  { %11191 = vmatmul.mubr.msk.bf16.gmra.mrb[168].mxu1 %vm159_vm5, %v7373_v5  ;;  %11224 = vmatprep.subr.bf16.mxu1 %v13932_v46 }
0x1f3f   :  { %11211 = vmatmul.mubr.msk.bf16.gmra.mrb[184].mxu0 %vm159_vm5, %v7355_v7  ;;  %11194 = vmatprep.mubr.msk.bf16.mxu1 %vm11817_vm0, %v13932_v46  ;;  %v7370_v55 = vld [vmem:[#allocation12 + $0x2c] sm:$0xff] }
0x1f40   :  { %11214 = vmatprep.mubr.msk.bf16.mxu0 %vm11817_vm0, %v13932_v46  ;;  %v7352_v6 = vld [vmem:[#allocation12 + $0x2b] sm:$0xff]  ;;  %7835 = vmatpush1.bf16.msra.mxu0 %v11745_v26 }
0x1f41   :  { %11225 = vmatpush3.bf16.msra.mxu1 %v11736_v0  ;;  %v7567_v30 = vld [vmem:[#allocation12 + $0x25] sm:$0xff]  ;;  %7836 = vmatprep.subr.bf16.mxu0 %v11751_v57 }
0x1f42   :  { %11238 = vmatprep.subr.bf16.mxu1 %v13932_v46  ;;  %v7571_v2 = vpack.c.bf16 %v7567_v30, %v7566_v19 }
0x1f43   :  { %v7371_v56 = vld [vmem:[#allocation12 + $0x34] sm:$0xf] }
0x1f44   :  { %v7353_v17 = vld [vmem:[#allocation12 + $0x33] sm:$0xf]  ;;  %v7374_v54 = vpack.c.bf16 %v7371_v56, %v7370_v55  ;;  %7837 = vmatpush1.bf16.msra.mxu0 %v11749_v27 }
0x1f45   :  { %v7356_v28 = vpack.c.bf16 %v7353_v17, %v7352_v6  ;;  %v7568_v13 = vld [vmem:[#allocation12 + $0x2d] sm:$0xff]  ;;  %v7569_v35 = vld [vmem:[#allocation12 + $0x35] sm:$0xf]  ;;  %8020 = vmatprep.subr.bf16.mxu0 %v11755_v32 }
0x1f46   :  { %11195 = vmatmul.mubr.msk.bf16.gmra.mrb[172].mxu1 %vm159_vm5, %v7374_v54  ;;  %v7572_v62 = vpack.c.bf16 %v7569_v35, %v7568_v13 }
0x1f47   :  { %11215 = vmatmul.mubr.msk.bf16.gmra.mrb[188].mxu0 %vm159_vm5, %v7356_v28  ;;  %11226 = vmatprep.mubr.msk.bf16.mxu1 %vm11817_vm0, %v13932_v46 }
0x1f48   :  { %7862 = vmatprep.mubr.bf16.mxu0 %v11820_v63 }
0x1f4e   :  { %11227 = vmatmul.mubr.msk.bf16.vlgmr.msra.gmra.mrb[176].mxu1 %vm159_vm5, %v7570_v31 }
0x1f4f   :  { %11230 = vmatprep.mubr.msk.bf16.mxu1 %vm11817_vm0, %v13932_v46  ;;  %11239 = vmatpush3.bf16.msra.mxu1 %v11743_v23 }
0x1f50   :  { %11240 = vmatprep.subr.bf16.mxu1 %v13932_v46 }
0x1f53   :  { %11241 = vmatpush3.bf16.msra.mxu1 %v11744_v44 }
0x1f54   :  { %11242 = vmatprep.subr.bf16.mxu1 %v13932_v46 }
0x1f56   :  { %11231 = vmatmul.mubr.msk.bf16.gmra.mrb[180].mxu1 %vm159_vm5, %v7571_v2 }
0x1f57   :  { %11234 = vmatprep.mubr.msk.bf16.mxu1 %vm11817_vm0, %v13932_v46  ;;  %11243 = vmatpush3.bf16.msra.mxu1 %v11748_v3 }
0x1f58   :  { %11244 = vmatprep.subr.bf16.mxu1 %v13932_v46 }
0x1f5b   :  { %11245 = vmatpush3.bf16.msra.mxu1 %v11752_v1 }
0x1f5c   :  { %11258 = vmatprep.subr.bf16.mxu1 %v13932_v46 }
0x1f5e   :  { %11235 = vmatmul.mubr.msk.bf16.gmra.mrb[184].mxu1 %vm159_vm5, %v7572_v62 }
0x1f5f   :  { %11246 = vmatprep.mubr.msk.bf16.mxu1 %vm11817_vm0, %v13932_v46 }
0x2007   :  { %v7451_v21 = vpop.f32.mrb[164].mxu1 }
0x2008   :  { %v7541_v4 = vpop.f32.mrb[180].mxu0  ;;  %v11188_v58 = vpop.f32.mrb[165].mxu1 }
0x2009   :  { %v7542_v34 = vadd.f32 %v7541_v4, %v7451_v21  ;;  %v11208_v61 = vpop.f32.mrb[181].mxu0  ;;  %v7454_v60 = vpop.f32.mrb[166].mxu1  ;;  %v11753_v58 = vld [vmem:[%s14488_s5] ss:$12 sps:$4 sm:$0xff]  }
0x200a   :  { %v7544_v41 = vpop.f32.mrb[182].mxu0  ;;  %v11189_v37 = vpop.f32.mrb[167].mxu1 }
0x200b   :  { %v7545_v59 = vadd.f32 %v7544_v41, %v7454_v60  ;;  %v11209_v49 = vpop.f32.mrb[183].mxu0  ;;  %v11758_v37 = vld [vmem:[%s14488_s5 + $0x1c] ss:$12 sps:$4 sm:$0xff]  }
0x2011   :  { %v7459_v33 = vpop.f32.mrb[168].mxu1 }
0x2012   :  { %v7549_v15 = vpop.f32.mrb[184].mxu0  ;;  %v11192_v50 = vpop.f32.mrb[169].mxu1 }
0x2013   :  { %v7550_v48 = vadd.f32 %v7549_v15, %v7459_v33  ;;  %v11212_v16 = vpop.f32.mrb[185].mxu0  ;;  %v7462_v12 = vpop.f32.mrb[170].mxu1  ;;  %v11759_v33 = vld [vmem:[%s14488_s5 + $0x8] ss:$12 sps:$4 sm:$0xff]  }
0x2014   :  { %v7552_v8 = vpop.f32.mrb[186].mxu0  ;;  %v11193_v39 = vpop.f32.mrb[171].mxu1 }
0x2015   :  { %v7553_v36 = vadd.f32 %v7552_v8, %v7462_v12  ;;  %v11213_v22 = vpop.f32.mrb[187].mxu0  ;;  %v11762_v8 = vld [vmem:[%s14488_s5 + $0x34] ss:$12 sps:$4 sm:$0xff]  }
0x2016   :  { %v11760_v22 = vld [vmem:[%s14488_s5 + $0x30] ss:$12 sps:$4 sm:$0xff]  }
0x2019   :  { %v7467_v40 = vpop.f32.mrb[172].mxu1 }
0x201a   :  { %v7557_v5 = vpop.f32.mrb[188].mxu0  ;;  %v11196_v0 = vpop.f32.mrb[173].mxu1 }
0x201b   :  { %v7558_v7 = vadd.f32 %v7557_v5, %v7467_v40  ;;  %v11216_v55 = vpop.f32.mrb[189].mxu0  ;;  %v7470_v56 = vpop.f32.mrb[174].mxu1 }
0x201c   :  { %v7560_v6 = vpop.f32.mrb[190].mxu0  ;;  %v11197_v54 = vpop.f32.mrb[175].mxu1  ;;  %v11764_v55 = vld [vmem:[%s14488_s5 + $0x38] ss:$12 sps:$4 sm:$0xff]  }
0x201d   :  { %v7561_v17 = vadd.f32 %v7560_v6, %v7470_v56  ;;  %v11217_v28 = vpop.f32.mrb[191].mxu0  ;;  %v11767_v56 = vld [vmem:[%s14488_s5 + $0x4c] ss:$12 sps:$4 sm:$0xff]   ;;  %v11771_v6 = vld [vmem:[%s14488_s5 + $0xc4] ss:$12 sps:$4 sm:$0xff]  }
0x2021   :  { %v7649_v45 = vpop.f32.mrb[176].mxu1 }
0x2022   :  { %v7672_v31 = vadd.f32 %v7649_v45, %v7542_v34  ;;  %v11228_v30 = vpop.f32.mrb[177].mxu1 }
0x2023   :  { %v7652_v19 = vpop.f32.mrb[178].mxu1  ;;  %v11769_v30 = vld [vmem:[%s14488_s5 + $0xc0] ss:$12 sps:$4 sm:$0xff]  }
0x2024   :  { %v7682_v2 = vadd.f32 %v9630_v10, %v7672_v31  ;;  %v7673_v13 = vadd.f32 %v7652_v19, %v7545_v59  ;;  %v11229_v35 = vpop.f32.mrb[179].mxu1 }
0x2025   :  { %v11772_v35 = vld [vmem:[%s14488_s5 + $0xd8] ss:$12 sps:$4 sm:$0xff]  }
0x2026   :  { %v7688_v62 = vmax.f32 %v7682_v2, 0.0  ;;  %v7683_v25 = vadd.f32 %v9630_v10, %v7673_v13  ;;  %v11774_v2 = vld [vmem:[%s14488_s5 + $0xdc] ss:$12 sps:$4 sm:$0xff]  }
0x2027   :  { %v11775_v13 = vld [vmem:[%s14488_s5 + $0xc8] ss:$12 sps:$4 sm:$0xff]  }
0x2028   :  { %7700 = vst.msk [vmem:[#allocation13 + $0xc] sm:$0xff] %vm159_vm5, %v7688_v62  ;;  %v7689_v43 = vmax.f32 %v7683_v25, 0.0  ;;  %v11778_v62 = vld [vmem:[%s14488_s5 + $0xf4] ss:$12 sps:$4 sm:$0xff]  }
0x2029   :  { %v7657_v42 = vpop.f32.mrb[180].mxu1 }
0x202a   :  { %7701 = vst.msk [vmem:[#allocation13 + $0x14] sm:$0xff] %vm159_vm5, %v7689_v43  ;;  %v7674_v51 = vadd.f32 %v7657_v42, %v7550_v48  ;;  %v11232_v23 = vpop.f32.mrb[181].mxu1  ;;  %v11779_v43 = vld [vmem:[%s14488_s5 + $0xe0] ss:$12 sps:$4 sm:$0xff]  }
0x202b   :  { %v7660_v44 = vpop.f32.mrb[182].mxu1  ;;  %v11790_v42 = vld [vmem:[#allocation2] sm:$0xff]  ;;  %v11776_v23 = vld [vmem:[%s14488_s5 + $0xf0] ss:$12 sps:$4 sm:$0xff]  }
0x202c   :  { %v7684_v47 = vadd.f32 %v9630_v10, %v7674_v51  ;;  %v7675_v26 = vadd.f32 %v7660_v44, %v7553_v36  ;;  %v11233_v3 = vpop.f32.mrb[183].mxu1  ;;  %v11763_v36 = vld [vmem:[%s14488_s5 + $0x20] ss:$12 sps:$4 sm:$0xff]  }
0x202e   :  { %v7690_v27 = vmax.f32 %v7684_v47, 0.0  ;;  %v7685_v57 = vadd.f32 %v9630_v10, %v7675_v26  ;;  %v11783_v47 = vld [vmem:[%s14488_s5 + $0x10c] ss:$12 sps:$4 sm:$0xff]   ;;  %v11781_v26 = vld [vmem:[%s14488_s5 + $0x108] ss:$12 sps:$4 sm:$0xff]  }
0x202f   :  { %v7731_v4 = vld [vmem:[#allocation13 + $0xc] sm:$0xff] }
0x2030   :  { %v7696_v1 = vmul.f32 0.0, %v7690_v27  ;;  %v7691_v32 = vmax.f32 %v7685_v57, 0.0  ;;  %v7706_v31 = vld [vmem:[#allocation13 + $0xb] sm:$0xff]  ;;  %v11784_v27 = vld [vmem:[%s14488_s5 + $0x110] ss:$12 sps:$4 sm:$0xff]  }
0x2031   :  { %v7665_v21 = vpop.f32.mrb[184].mxu1  ;;  %v7732_v34 = vld [vmem:[#allocation13 + $0x14] sm:$0xff] }
0x2032   :  { %7702 = vst.msk [vmem:[#allocation13 + $0x1c] sm:$0xff] %vm159_vm5, %v7696_v1  ;;  %v7697_v61 = vmul.f32 %v12652_v38, %v7691_v32  ;;  %v7676_v60 = vadd.f32 %v7665_v21, %v7558_v7  ;;  %v11236_v41 = vpop.f32.mrb[185].mxu1  ;;  %v7737_v59 = vpack.c.bf16 %v7732_v34, %v7731_v4  ;;  %v11756_v38 = vld [vmem:[%s14488_s5 + $0x18] ss:$12 sps:$4 sm:$0xff]   ;;  %v7707_v45 = vld [vmem:[#allocation13 + $0x13] sm:$0xff] }
0x2033   :  { %v7668_v49 = vpop.f32.mrb[186].mxu1  ;;  %v7712_v19 = vpack.c.bf16 %v7707_v45, %v7706_v31  ;;  %v8137_v21 = vld [vmem:[#allocation13 + $0xd] sm:$0xff] }
0x2034   :  { %7703 = vst.msk [vmem:[#allocation13 + $0x24] sm:$0xff] %vm159_vm5, %v7697_v61  ;;  %v7686_v15 = vadd.f32 %v9630_v10, %v7676_v60  ;;  %v7677_v48 = vadd.f32 %v7668_v49, %v7561_v17  ;;  %v11237_v50 = vpop.f32.mrb[187].mxu1  ;;  %9659 = vmatmul.mubr.msk.bf16.vlgmr.msra.gmra.mrb[192].mxu0 %vm159_vm5, %v7737_v59  ;;  %11247 = vmatmul.mubr.msk.bf16.vlgmr.msra.gmra.mrb[188].mxu1 %vm159_vm5, %v7737_v59  ;;  %v11768_v17 = vld [vmem:[%s14488_s5 + $0x50] ss:$12 sps:$4 sm:$0xff]  }
0x2035   :  { %8021 = vmatpush1.bf16.msra.mxu0 %v11753_v58  ;;  %7872 = vmatprep.mubr.bf16.mxu0 %v11820_v63 }
0x2036   :  { %v7692_v16 = vmax.f32 %v7686_v15, 0.0  ;;  %v7687_v12 = vadd.f32 %v9630_v10, %v7677_v48  ;;  %8022 = vmatprep.subr.bf16.mxu0 %v11758_v37  ;;  %11250 = vmatprep.mubr.msk.bf16.mxu1 %vm11817_vm0, %v13932_v46 }
0x2037   :  { %11259 = vmatpush3.bf16.msra.mxu1 %v11759_v33 }
0x2038   :  { %7704 = vst.msk [vmem:[#allocation13 + $0x2c] sm:$0xff] %vm159_vm5, %v7692_v16  ;;  %v7693_v39 = vmax.f32 %v7687_v12, 0.0  ;;  %11260 = vmatprep.subr.bf16.mxu1 %v13932_v46 }
0x2039   :  { %8023 = vmatpush1.bf16.msra.mxu0 %v11756_v38  ;;  %v7733_v5 = vld [vmem:[#allocation13 + $0x1c] sm:$0xff] }
0x203a   :  { %v7699_v40 = vmul.f32 %v12660_v11, %v7693_v39  ;;  %8024 = vmatprep.subr.bf16.mxu0 %v11762_v8  ;;  %v11765_v11 = vld [vmem:[%s14488_s5 + $0x48] ss:$12 sps:$4 sm:$0xff]  }
0x203b   :  { %v7734_v7 = vld [vmem:[#allocation13 + $0x24] sm:$0xff]  ;;  %11261 = vmatpush3.bf16.msra.mxu1 %v11763_v36  ;;  %v7708_v51 = vld [vmem:[#allocation13 + $0x1b] sm:$0xff] }
0x203c   :  { %7705 = vst.msk [vmem:[#allocation13 + $0x34] sm:$0xf] %vm161_vm6, %v7699_v40  ;;  %v7738_v0 = vpack.c.bf16 %v7734_v7, %v7733_v5  ;;  %11262 = vmatprep.subr.bf16.mxu1 %v13932_v46  ;;  %v7709_v25 = vld [vmem:[#allocation13 + $0x23] sm:$0xff]  ;;  %v8138_v32 = vld [vmem:[#allocation13 + $0x15] sm:$0xff] }
0x203d   :  { %8025 = vmatpush1.bf16.msra.mxu0 %v11760_v22  ;;  %v7713_v44 = vpack.c.bf16 %v7709_v25, %v7708_v51  ;;  %v8143_v4 = vpack.c.bf16 %v8138_v32, %v8137_v21  ;;  %v8139_v58 = vld [vmem:[#allocation13 + $0x1d] sm:$0xff] }
0x203e   :  { %9660 = vmatmul.mubr.msk.bf16.gmra.mrb[196].mxu0 %vm159_vm5, %v7738_v0  ;;  %11251 = vmatmul.mubr.msk.bf16.gmra.mrb[192].mxu1 %vm159_vm5, %v7738_v0 }
0x203f   :  { %7880 = vmatprep.mubr.bf16.mxu0 %v11820_v63  ;;  %11254 = vmatprep.mubr.msk.bf16.mxu1 %vm11817_vm0, %v13932_v46  ;;  %v7735_v54 = vld [vmem:[#allocation13 + $0x2c] sm:$0xff] }
0x2040   :  { %11263 = vmatpush3.bf16.msra.mxu1 %v11764_v55  ;;  %8026 = vmatprep.subr.bf16.mxu0 %v11767_v56  ;;  %v7710_v57 = vld [vmem:[#allocation13 + $0x2b] sm:$0xff] }
0x2041   :  { %8027 = vmatpush1.bf16.msra.mxu0 %v11765_v11  ;;  %11264 = vmatprep.subr.bf16.mxu1 %v13932_v46  ;;  %v8140_v34 = vld [vmem:[#allocation13 + $0x25] sm:$0xff] }
0x2042   :  { %8236 = vmatprep.subr.bf16.mxu0 %v11771_v6  ;;  %v8144_v61 = vpack.c.bf16 %v8140_v34, %v8139_v58 }
0x2043   :  { %v7736_v28 = vld [vmem:[#allocation13 + $0x34] sm:$0xf] }
0x2044   :  { %v7739_v10 = vpack.c.bf16 %v7736_v28, %v7735_v54  ;;  %11265 = vmatpush3.bf16.msra.mxu1 %v11768_v17  ;;  %v7711_v3 = vld [vmem:[#allocation13 + $0x33] sm:$0xf] }
0x2045   :  { %11278 = vmatprep.subr.bf16.mxu1 %v13932_v46  ;;  %v7714_v1 = vpack.c.bf16 %v7711_v3, %v7710_v57  ;;  %v8141_v60 = vld [vmem:[#allocation13 + $0x2d] sm:$0xff]  ;;  %v8142_v41 = vld [vmem:[#allocation13 + $0x35] sm:$0xf] }
0x2046   :  { %9661 = vmatmul.mubr.msk.bf16.gmra.mrb[200].mxu0 %vm159_vm5, %v7739_v10  ;;  %11255 = vmatmul.mubr.msk.bf16.gmra.mrb[196].mxu1 %vm159_vm5, %v7739_v10  ;;  %v8145_v59 = vpack.c.bf16 %v8142_v41, %v8141_v60 }
0x2047   :  { %8052 = vmatprep.mubr.bf16.mxu0 %v11820_v63  ;;  %11266 = vmatprep.mubr.msk.bf16.mxu1 %vm11817_vm0, %v13932_v46 }
0x204e   :  { %9677 = vmatmul.mubr.msk.bf16.vlgmr.msra.gmra.mrb[192].mxu0 %vm159_vm5, %v7712_v19  ;;  %11267 = vmatmul.mubr.msk.bf16.vlgmr.msra.gmra.mrb[200].mxu1 %vm159_vm5, %v7712_v19 }
0x204f   :  { %8237 = vmatpush1.bf16.msra.mxu0 %v11769_v30  ;;  %8062 = vmatprep.mubr.bf16.mxu0 %v11820_v63 }
0x2050   :  { %8238 = vmatprep.subr.bf16.mxu0 %v11774_v2  ;;  %11270 = vmatprep.mubr.msk.bf16.mxu1 %vm11817_vm0, %v13932_v46  ;;  %v11780_v46 = vld [vmem:[%s14488_s5 + $0xf8] ss:$12 sps:$4 sm:$0xff]  }
0x2051   :  { %11279 = vmatpush3.bf16.msra.mxu1 %v11775_v13 }
0x2052   :  { %11280 = vmatprep.subr.bf16.mxu1 %v11790_v42 }
0x2053   :  { %8239 = vmatpush1.bf16.msra.mxu0 %v11772_v35 }
0x2054   :  { %8240 = vmatprep.subr.bf16.mxu0 %v11778_v62 }
0x2055   :  { %11281 = vmatpush3.bf16.msra.mxu1 %v11779_v43 }
0x2056   :  { %9678 = vmatmul.mubr.msk.bf16.gmra.mrb[204].mxu0 %vm159_vm5, %v7713_v44  ;;  %11271 = vmatmul.mubr.msk.bf16.gmra.mrb[204].mxu1 %vm159_vm5, %v7713_v44  ;;  %v8624_v44 = vld [vmem:[%s14484_s1 + $0x7] ss:$8 sm:$0x7] }
0x2057   :  { %8241 = vmatpush1.bf16.msra.mxu0 %v11776_v23  ;;  %8070 = vmatprep.mubr.bf16.mxu0 %v11820_v63 }
0x2058   :  { %11274 = vmatprep.mubr.msk.bf16.mxu1 %vm11817_vm0, %v11790_v42  ;;  %11282 = vmatprep.subr.bf16.mxu1 %v11790_v42 }
0x2059   :  { %11283 = vmatpush3.bf16.msra.mxu1 %v11780_v46  ;;  %8242 = vmatprep.subr.bf16.mxu0 %v11783_v47  ;;  %v8622_v46 = vld [vmem:[%s14484_s1 + $0x5] ss:$8 sm:$0x7]  ;;  %v8376_v47 = vrot.slane %v8624_v44, %v12036_v52 }
0x205a   :  { %11284 = vmatprep.subr.bf16.mxu1 %v11790_v42  ;;  %v14345_v57 = vrot.slane %v8622_v46, %v12036_v52  ;;  %v14348_v32 = vrot.slane %v8622_v46, %v12039_v53 }
0x205b   :  { %8243 = vmatpush1.bf16.msra.mxu0 %v11781_v26  ;;  %v14342_v26 = vrot.slane %v8624_v44, %v12039_v53 }
0x205d   :  { %11285 = vmatpush3.bf16.msra.mxu1 %v11784_v27 }
0x205e   :  { %9679 = vmatmul.mubr.msk.bf16.gmra.mrb[200].mxu0 %vm159_vm5, %v7714_v1  ;;  %11275 = vmatmul.mubr.msk.bf16.gmra.mrb[208].mxu1 %vm159_vm5, %v7714_v1 }
0x205f   :  { %8268 = vmatprep.mubr.bf16.mxu0 %v11820_v63  ;;  %11286 = vmatprep.mubr.msk.bf16.mxu1 %vm11817_vm0, %v11790_v42 }
0x2066   :  { %9711 = vmatmul.mubr.msk.bf16.vlgmr.msra.gmra.mrb[192].mxu0 %vm159_vm5, %v8143_v4  ;;  %11287 = vmatmul.mubr.msk.bf16.vlgmr.msra.gmra.mrb[212].mxu1 %vm159_vm5, %v8143_v4 }
0x2067   :  { %8278 = vmatprep.mubr.bf16.mxu0 %v11820_v63  ;;  %11290 = vmatprep.mubr.msk.bf16.mxu1 %vm11817_vm0, %v11790_v42 }
0x206e   :  { %9712 = vmatmul.mubr.msk.bf16.gmra.mrb[208].mxu0 %vm159_vm5, %v8144_v61  ;;  %11291 = vmatmul.mubr.msk.bf16.gmra.mrb[216].mxu1 %vm159_vm5, %v8144_v61 }
0x206f   :  { %8286 = vmatprep.mubr.bf16.mxu0 %v11820_v63  ;;  %11294 = vmatprep.mubr.msk.bf16.mxu1 %vm11817_vm0, %v11790_v42 }
0x2076   :  { %9713 = vmatmul.mubr.msk.bf16.gmra.mrb[200].mxu0 %vm159_vm5, %v8145_v59  ;;  %11295 = vmatmul.mubr.msk.bf16.gmra.mrb[220].mxu1 %vm159_vm5, %v8145_v59 }
0x2107   :  { %v7925_v37 = vpop.f32.mrb[188].mxu1 }
0x2108   :  { %v11248_v49 = vpop.f32.mrb[189].mxu1 }
0x2109   :  { %v7928_v33 = vpop.f32.mrb[190].mxu1 }
0x210a   :  { %v11249_v15 = vpop.f32.mrb[191].mxu1 }
0x2111   :  { %v7874_v48 = vpop.f32.mrb[196].mxu0  ;;  %v7933_v50 = vpop.f32.mrb[192].mxu1 }
0x2112   :  { %v7875_v38 = vpop.f32.mrb[197].mxu0  ;;  %v11252_v16 = vpop.f32.mrb[193].mxu1 }
0x2113   :  { %v7876_v12 = vpop.f32.mrb[198].mxu0  ;;  %v7935_v8 = vpop.f32.mrb[194].mxu1  ;;  %v8372_v16 = vrot.slane %v8624_v44, %v11923_v9 }
0x2114   :  { %v7878_v63 = vpop.f32.mrb[199].mxu0  ;;  %v11253_v36 = vpop.f32.mrb[195].mxu1 }
0x2119   :  { %v7940_v39 = vpop.f32.mrb[196].mxu1 }
0x211a   :  { %v11256_v22 = vpop.f32.mrb[197].mxu1 }
0x211b   :  { %v7943_v40 = vpop.f32.mrb[198].mxu1 }
0x211c   :  { %v11257_v5 = vpop.f32.mrb[199].mxu1 }
0x2121   :  { %v8115_v7 = vpop.f32.mrb[200].mxu1 }
0x2122   :  { %v8116_v0 = vadd.f32 %v8115_v7, %v7925_v37  ;;  %v11268_v55 = vpop.f32.mrb[201].mxu1 }
0x2123   :  { %v8118_v56 = vpop.f32.mrb[202].mxu1 }
0x2124   :  { %v8119_v11 = vadd.f32 %v8118_v56, %v7928_v33  ;;  %v11269_v6 = vpop.f32.mrb[203].mxu1  ;;  %v8403_v56 = vrot.slane %v8622_v46, %v11923_v9 }
0x2129   :  { %v8064_v17 = vpop.f32.mrb[204].mxu0  ;;  %v8123_v54 = vpop.f32.mrb[204].mxu1 }
0x212a   :  { %v8065_v28 = vpop.f32.mrb[205].mxu0  ;;  %v11272_v10 = vpop.f32.mrb[205].mxu1 }
0x212b   :  { %v8066_v45 = vpop.f32.mrb[206].mxu0  ;;  %v8125_v31 = vpop.f32.mrb[206].mxu1 }
0x212c   :  { %v8067_v30 = vadd.f32 %v8066_v45, %v7876_v12  ;;  %v8126_v19 = vadd.f32 %v8125_v31, %v7935_v8  ;;  %v8068_v2 = vpop.f32.mrb[207].mxu0  ;;  %v11273_v13 = vpop.f32.mrb[207].mxu1 }
0x212d   :  { %v8069_v35 = vadd.f32 %v8068_v2, %v7878_v63 }
0x2131   :  { %v8130_v62 = vpop.f32.mrb[208].mxu1 }
0x2132   :  { %v8131_v25 = vadd.f32 %v8130_v62, %v7940_v39  ;;  %v11276_v43 = vpop.f32.mrb[209].mxu1 }
0x2133   :  { %v8133_v42 = vpop.f32.mrb[210].mxu1 }
0x2134   :  { %v8134_v51 = vadd.f32 %v8133_v42, %v7943_v40  ;;  %v11277_v23 = vpop.f32.mrb[211].mxu1 }
0x2139   :  { %v8270_v3 = vpop.f32.mrb[192].mxu0  ;;  %v8331_v27 = vpop.f32.mrb[212].mxu1 }
0x213a   :  { %v8355_v1 = vadd.f32 %v8331_v27, %v8116_v0  ;;  %v8272_v21 = vpop.f32.mrb[193].mxu0  ;;  %v11288_v4 = vpop.f32.mrb[213].mxu1  ;;  %v8384_v55 = vadd.f32 %v8372_v16, %v8270_v3 }
0x213b   :  { %v8385_v34 = vadd.f32 %v8376_v47, %v8272_v21  ;;  %v8274_v58 = vpop.f32.mrb[194].mxu0  ;;  %v8334_v61 = vpop.f32.mrb[214].mxu1 }
0x213c   :  { %v8386_v60 = vadd.f32 %v14342_v26, %v8355_v1  ;;  %v8358_v41 = vadd.f32 %v8334_v61, %v8119_v11  ;;  %v8276_v59 = vpop.f32.mrb[195].mxu0  ;;  %v11289_v37 = vpop.f32.mrb[215].mxu1  ;;  %v8415_v45 = vmul.f32 %v8403_v56, %v8384_v55 }
0x213d   :  { %v14352_v49 = vmul.f32 %v14345_v57, %v8385_v34  ;;  %v8388_v33 = vadd.f32 %v8376_v47, %v8276_v59  ;;  %v8387_v34 = vadd.f32 %v8372_v16, %v8274_v58 }
0x213e   :  { %v14355_v15 = vmul.f32 %v14348_v32, %v8386_v60  ;;  %v8389_v48 = vadd.f32 %v14342_v26, %v8358_v41 }
0x213f   :  { %v14359_v50 = vmul.f32 %v14345_v57, %v8388_v33 }
0x2140   :  { %v14362_v38 = vmul.f32 %v14348_v32, %v8389_v48 }
0x2141   :  { %v8280_v12 = vpop.f32.mrb[208].mxu0  ;;  %v8339_v8 = vpop.f32.mrb[216].mxu1 }
0x2142   :  { %v8281_v63 = vpop.f32.mrb[209].mxu0  ;;  %v11292_v36 = vpop.f32.mrb[217].mxu1  ;;  %v8418_v12 = vmul.f32 %v8403_v56, %v8387_v34 }
0x2143   :  { %v8282_v39 = vpop.f32.mrb[210].mxu0  ;;  %v8341_v22 = vpop.f32.mrb[218].mxu1 }
0x2144   :  { %v8359_v40 = vadd.f32 %v8282_v39, %v8067_v30  ;;  %v8361_v5 = vadd.f32 %v8341_v22, %v8126_v19  ;;  %v8284_v7 = vpop.f32.mrb[211].mxu0  ;;  %v11293_v0 = vpop.f32.mrb[219].mxu1  ;;  %v14525_v39 = vld [vmem:[#allocation20_spill] sm:$0xff] }
0x2145   :  { %v8360_v11 = vadd.f32 %v8284_v7, %v8069_v35 }
0x2146   :  { %v8390_v6 = vadd.f32 %v8372_v16, %v8359_v40  ;;  %v8392_v17 = vadd.f32 %v14342_v26, %v8361_v5  ;;  %v8431_v40 = vadd.f32 %v14352_v49, %v12107_v24  ;;  %v14404_v5 = vadd.f32 %v14359_v50, %v12107_v24 }
0x2147   :  { %v8391_v54 = vadd.f32 %v8376_v47, %v8360_v11 }
0x2148   :  { %v8421_v28 = vmul.f32 %v8403_v56, %v8390_v6  ;;  %v8423_v10 = vmul.f32 %v14348_v32, %v8392_v17 }
0x2149   :  { %v8422_v31 = vmul.f32 %v14345_v57, %v8391_v54  ;;  %v8288_v2 = vpop.f32.mrb[200].mxu0  ;;  %v8346_v13 = vpop.f32.mrb[220].mxu1  ;;  %v14526_v54 = vld [vmem:[#allocation17_spill] sm:$0xff] }
0x214a   :  { %v8393_v30 = vadd.f32 %v8372_v16, %v8288_v2  ;;  %v8364_v19 = vadd.f32 %v8346_v13, %v8131_v25  ;;  %v8290_v62 = vpop.f32.mrb[201].mxu0  ;;  %v11296_v43 = vpop.f32.mrb[221].mxu1  ;;  %v8436_v42 = vadd.f32 %v8421_v28, %v12103_v20  ;;  %v8430_v25 = vadd.f32 %v8415_v45, %v12103_v20  ;;  %v14528_v45 = vld [vmem:[#allocation19_spill] sm:$0xff] }
0x214b   :  { %v8394_v23 = vadd.f32 %v8376_v47, %v8290_v62  ;;  %v8292_v35 = vpop.f32.mrb[202].mxu0  ;;  %v8349_v44 = vpop.f32.mrb[222].mxu1  ;;  %v8437_v63 = vadd.f32 %v8422_v31, %v12107_v24 }
0x214c   :  { %v8424_v46 = vmul.f32 %v8403_v56, %v8393_v30  ;;  %v8395_v3 = vadd.f32 %v14342_v26, %v8364_v19  ;;  %v8396_v27 = vadd.f32 %v8372_v16, %v8292_v35  ;;  %v8367_v1 = vadd.f32 %v8349_v44, %v8134_v51  ;;  %v8294_v21 = vpop.f32.mrb[203].mxu0  ;;  %v11297_v4 = vpop.f32.mrb[223].mxu1  ;;  %8457 = vperm.xlu0 %11435, %v8436_v42  }
0x214d   :  { %v8425_v61 = vmul.f32 %v14345_v57, %v8394_v23  ;;  %v8397_v60 = vadd.f32 %v8376_v47, %v8294_v21  ;;  %v14383_v47 = vadd.f32 %v8418_v12, %v12103_v20 }
0x214e   :  { %v8426_v41 = vmul.f32 %v14348_v32, %v8395_v3  ;;  %v8427_v59 = vmul.f32 %v8403_v56, %v8396_v27  ;;  %v8398_v37 = vadd.f32 %v14342_v26, %v8367_v1  ;;  %v8439_v33 = vadd.f32 %v8424_v46, %v12103_v20  ;;  %v8619_v26 = vld [vmem:[%s14484_s1 + $0x2] ss:$8 sm:$0x7]  ;;  %s11821_s1 = smov [#allocation14]  }
0x214f   :  { %v8428_v48 = vmul.f32 %v14345_v57, %v8397_v60  ;;  %v8438_v57 = vadd.f32 %v8423_v10, %v12110_v29  ;;  %v14394_v16 = vrot.slane %v8619_v26, %v12036_v52  ;;  %v8432_v52 = vadd.f32 %v14355_v15, %v12110_v29  ;;  %v14527_v15 = vld [vmem:[#allocation18_spill] sm:$0xff]  ;;  %s8593_s16 = sshll.u32 %s11821_s1, 4  ;;  %s8594_s16 = int_to_ptr.vmem [resolvable:$true] %s8593_s16 }
0x2150   :  { %v8429_v51 = vmul.f32 %v14348_v32, %v8398_v37  ;;  %8462 = vperm.xlu1 %11436, %v8439_v33   ;;  %8447 = vperm.xlu0 %11435, %v8430_v25   ;;  %v14379_v58 = vadd.f32 %v8427_v59, %v12103_v20  ;;  %v14391_v32 = vrot.slane %v8619_v26, %v11923_v9  ;;  %s11791_s17 = scalar_lea.vmem %s8594_s16, 1536  ;;  %p11796_p1 = scmp.lt.s32.totalorder %s8594_s16, %s8594_s16 }
0x2151   :  { %v14407_v9 = vrot.slane %v8619_v26, %v12039_v53  ;;  %v14413_v56 = vadd.f32 %v14362_v38, %v12110_v29  ;;  %v8441_v11 = vadd.f32 %v8426_v41, %v12110_v29  ;;  %v8440_v49 = vadd.f32 %v8425_v61, %v12107_v24  ;;  %p11792_p0 = scmp.ne.s32.totalorder %s8594_s16, %s11791_s17  ;;  %p11797_p2 = scmp.lt.s32.totalorder %s11791_s17, %s11791_s17 }
0x2152   :  { %v8444_v50 = vadd.f32 %v8429_v51, %v12110_v29  ;;  %v8443_v6 = vadd.f32 %v8428_v48, %v12107_v24 }
0x2153   :  { %p11798_p3 = por %p11797_p2, %p11796_p1 }
0x2154   :  { %8467 = vperm.xlu1 %11436, %v14379_v58  }
0x2155   :  { %p11799_p4 = pnand %p11798_p3, %p11792_p0 }
0x2158   :  { %8452 = vperm.xlu1 %11436, %v14383_v47  }
0x21cb   :  { %v8458_v8 = vpop.permute.xlu0 %8457 }
0x21cc   :  { %v8476_v20 = vmul.f32 %v8458_v8, %v12093_v14  ;;  %v8477_v36 = vmul.f32 %v8458_v8, %v12097_v18  ;;  %v8478_v22 = vmul.f32 %v8458_v8, %v14525_v39 }
0x21ce   :  { %v8491_v7 = vadd.f32 %v8476_v20, %v8436_v42  ;;  %v8492_v0 = vadd.f32 %v8477_v36, %v8437_v63  ;;  %v8493_v55 = vadd.f32 %v8478_v22, %v8438_v57 }
0x21cf   :  { %v8463_v53 = vpop.permute.xlu1 %8462  ;;  %v8448_v17 = vpop.permute.xlu0 %8447 }
0x21d0   :  { %v8506_v28 = vsub.f32 %v8491_v7, %v14526_v54  ;;  %v8507_v10 = vsub.f32 %v8492_v0, %v14527_v15  ;;  %v8508_v31 = vsub.f32 %v8493_v55, %v14528_v45  ;;  %v8479_v2 = vmul.f32 %v8463_v53, %v12093_v14 }
0x21d1   :  { %v8480_v38 = vmul.f32 %v8463_v53, %v12097_v18  ;;  %v8481_v13 = vmul.f32 %v8463_v53, %v14525_v39  ;;  %v8470_v30 = vmul.f32 %v8448_v17, %v12093_v14  ;;  %v8471_v29 = vmul.f32 %v8448_v17, %v12097_v18 }
0x21d2   :  { %v8537_v24 = vmul.f32 %v14391_v32, %v8506_v28  ;;  %v8538_v19 = vmul.f32 %v14394_v16, %v8507_v10  ;;  %v8539_v62 = vmul.f32 %v14407_v9, %v8508_v31  ;;  %v8494_v43 = vadd.f32 %v8479_v2, %v8439_v33 }
0x21d3   :  { %v8495_v42 = vadd.f32 %v8480_v38, %v8440_v49  ;;  %v8496_v23 = vadd.f32 %v8481_v13, %v8441_v11  ;;  %v8472_v35 = vmul.f32 %v8448_v17, %v14525_v39  ;;  %v8485_v44 = vadd.f32 %v8470_v30, %v8430_v25  ;;  %v8468_v46 = vpop.permute.xlu1 %8467 }
0x21d4   :  { %v8561_v3 = vrot.slane %v8537_v24, 4  ;;  %v8564_v27 = vrot.slane %v8538_v19, 4  ;;  %v8567_v1 = vrot.slane %v8539_v62, 4  ;;  %v8509_v21 = vsub.f32 %v8494_v43, %v14526_v54 }
0x21d5   :  { %v8510_v4 = vsub.f32 %v8495_v42, %v14527_v15  ;;  %v8511_v34 = vsub.f32 %v8496_v23, %v14528_v45  ;;  %v8486_v61 = vadd.f32 %v8471_v29, %v8431_v40  ;;  %v8487_v60 = vadd.f32 %v8472_v35, %v8432_v52 }
0x21d6   :  { %v8540_v41 = vmul.f32 %v14391_v32, %v8509_v21  ;;  %v8500_v59 = vsub.f32 %v8485_v44, %v14526_v54  ;;  %v8482_v37 = vmul.f32 %v8468_v46, %v12093_v14  ;;  %v8483_v25 = vmul.f32 %v8468_v46, %v12097_v18 }
0x21d7   :  { %v8541_v33 = vmul.f32 %v14394_v16, %v8510_v4  ;;  %v8542_v48 = vmul.f32 %v14407_v9, %v8511_v34  ;;  %v8501_v51 = vsub.f32 %v8486_v61, %v14527_v15  ;;  %v8502_v12 = vsub.f32 %v8487_v60, %v14528_v45  ;;  %v8453_v20 = vpop.permute.xlu1 %8452 }
0x21d8   :  { %v8562_v26 = vrot.slane %v8540_v41, 4  ;;  %v8531_v57 = vmul.f32 %v14391_v32, %v8500_v59  ;;  %v8484_v8 = vmul.f32 %v8468_v46, %v14525_v39  ;;  %v8497_v63 = vadd.f32 %v8482_v37, %v14379_v58 }
0x21d9   :  { %v8565_v36 = vrot.slane %v8541_v33, 4  ;;  %v8568_v22 = vrot.slane %v8542_v48, 4  ;;  %v8532_v40 = vmul.f32 %v14394_v16, %v8501_v51  ;;  %v8533_v52 = vmul.f32 %v14407_v9, %v8502_v12 }
0x21da   :  { %v8563_v7 = vsel %vm401_vm1, %v8561_v3, %v8562_v26  ;;  %8546 = vst [vmem:[#allocation14] sm:$0xff] %v8531_v57  ;;  %v8498_v0 = vadd.f32 %v8483_v25, %v8443_v6  ;;  %v8499_v55 = vadd.f32 %v8484_v8, %v8444_v50  ;;  %v8512_v11 = vsub.f32 %v8497_v63, %v14526_v54 }
0x21db   :  { %v8566_v49 = vsel %vm401_vm1, %v8564_v27, %v8565_v36  ;;  %v8569_v53 = vsel %vm401_vm1, %v8567_v1, %v8568_v22  ;;  %8582 = vst [vmem:[#allocation14 + $0x30] sm:$0xff] %v8563_v7  ;;  %8547 = vst [vmem:[#allocation14 + $0x8] sm:$0xff] %v8532_v40  ;;  %v8473_v58 = vmul.f32 %v8453_v20, %v12093_v14 }
0x21dc   :  { %8548 = vst [vmem:[#allocation14 + $0x10] sm:$0xff] %v8533_v52  ;;  %v8474_v17 = vmul.f32 %v8453_v20, %v12097_v18  ;;  %8583 = vst [vmem:[#allocation14 + $0x38] sm:$0xff] %v8566_v49  ;;  %v8513_v28 = vsub.f32 %v8498_v0, %v14527_v15  ;;  %v8514_v6 = vsub.f32 %v8499_v55, %v14528_v45 }
0x21dd   :  { %8584 = vst [vmem:[#allocation14 + $0x40] sm:$0xff] %v8569_v53  ;;  %v8543_v50 = vmul.f32 %v14391_v32, %v8512_v11  ;;  %v8475_v10 = vmul.f32 %v8453_v20, %v14525_v39  ;;  %v8488_v31 = vadd.f32 %v8473_v58, %v14383_v47 }
0x21de   :  { %v8489_v2 = vadd.f32 %v8474_v17, %v14404_v5  ;;  %v8544_v38 = vmul.f32 %v14394_v16, %v8513_v28  ;;  %v8545_v14 = vmul.f32 %v14407_v9, %v8514_v6 }
0x21df   :  { %v8570_v13 = vrot.slane %v8543_v50, 4  ;;  %v8490_v18 = vadd.f32 %v8475_v10, %v14413_v56  ;;  %v8503_v30 = vsub.f32 %v8488_v31, %v14526_v54 }
0x21e0   :  { %v8504_v29 = vsub.f32 %v8489_v2, %v14527_v15  ;;  %v8572_v39 = vrot.slane %v8544_v38, 4  ;;  %v8574_v19 = vrot.slane %v8545_v14, 4 }
0x21e1   :  { %v8571_v24 = vsel %vm401_vm1, %v8562_v26, %v8570_v13  ;;  %v8505_v47 = vsub.f32 %v8490_v18, %v14528_v45  ;;  %v8534_v5 = vmul.f32 %v14391_v32, %v8503_v30 }
0x21e2   :  { %8585 = vst [vmem:[#allocation14 + $0x48] sm:$0xff] %v8571_v24  ;;  %v8535_v62 = vmul.f32 %v14394_v16, %v8504_v29  ;;  %v8573_v43 = vsel %vm401_vm1, %v8565_v36, %v8572_v39  ;;  %v8575_v56 = vsel %vm401_vm1, %v8568_v22, %v8574_v19 }
0x21e3   :  { %v8536_v54 = vmul.f32 %v14407_v9, %v8505_v47  ;;  %8586 = vst [vmem:[#allocation14 + $0x50] sm:$0xff] %v8573_v43  ;;  %8587 = vst [vmem:[#allocation14 + $0x58] sm:$0xff] %v8575_v56 }
0x21e4   :  { %8549 = vst [vmem:[#allocation14 + $0x18] sm:$0xff] %v8534_v5  ;;  %8550 = vst [vmem:[#allocation14 + $0x20] sm:$0xff] %v8535_v62 }
0x21e5   :  { %8551 = vst [vmem:[#allocation14 + $0x28] sm:$0xff] %v8536_v54 }
0x21e6   :  { %11802 = shalt.err (!%p11799_p4)
}
0x21e7   :  { %s11803_s3 = scalar_lea.hbm %s14493_s10, 1536 }
0x21e8   :  { %p11804_p5 = scmp.ne.s32.totalorder %s14493_s10, %s11803_s3  ;;  %p11807_p6 = scmp.lt.u32.totalorder %s11803_s3, %s14493_s10 }
0x21ea   :  { %p11809_p7 = pnand %p11807_p6, %p11804_p5 }
0x21ec   :  { %11812 = shalt.err (!%p11809_p7)
}
0x21ed   :  { %s11822_s22 = smov 384   ;;  %s11823_s12 = smov 24  }
0x21ee   :  { %8599 = dma.vmem_to_hbm [thread:$0]  %s8594_s16, 1536, %s14493_s10, [#allocation15], %s11822_s22, %s11822_s22, %s11823_s12  }
0x21ef   :  { %11813 = dma.done.wait [#allocation15], 1536  }
0x21f0   :  { %11814 = vsyncadd [#allocation15], 4294965760 }
0x21f1   :  { %8611 = vsyncpa [#allocation15], 1 }

</bundles_post_ra>
